<compile_context>
chip_gen: v6e
topology: v6e:2x2x1
jax: 0.10.0
libtpu: 0.0.40
codegen_flags: <defaults>
</compile_context>

<pallas_src>
import functools

import numpy as np
import jax
import jax.numpy as jnp
from jax.experimental import pallas as pl
from jax.experimental.pallas import tpu as pltpu


def _round_up(n, m):
    return ((n + m - 1) // m) * m


# -----------------------------------------------------------------------------
# DoG kernel weights (stand-in for the un-provided `kernels(size=5)` generator)
# -----------------------------------------------------------------------------
def dog_kernel_np(size=5, sigma1=1.0, sigma2=2.0):
    # TODO(synk): original `kernels(size=5)` not in provided source; standard DoG used.
    ax = np.arange(size, dtype=np.float64) - (size - 1) / 2.0
    xx, yy = np.meshgrid(ax, ax)
    g1 = np.exp(-(xx ** 2 + yy ** 2) / (2.0 * sigma1 ** 2))
    g1 /= g1.sum()
    g2 = np.exp(-(xx ** 2 + yy ** 2) / (2.0 * sigma2 ** 2))
    g2 /= g2.sum()
    return (g1 - g2).astype(np.float32)


# -----------------------------------------------------------------------------
# Pallas kernel 1: depthwise (1,5,5) DoG conv, SAME padding, groups=channels.
# Lane-dense layout: the flattened (b, c, t) plane index lives in the 128-wide
# lane dimension, spatial (H, W) in the leading/sublane dims, so every output
# store is a full unmasked vst and each grid step is a big (Hp*Wp*128) block.
# Accumulation stays f32 (v5e has no bf16 VPU); output is bf16 for the MXU.
# -----------------------------------------------------------------------------
def _dog_kernel(x_ref, o_ref, *, kern, H, W, K):
    x = x_ref[...].astype(jnp.float32)                 # (Hp, Wp, LANE)
    acc = jnp.zeros((H, W, x.shape[-1]), jnp.float32)
    for i in range(K):
        for j in range(K):
            acc = acc + float(kern[i, j]) * x[i:i + H, j:j + W, :]
    o_ref[...] = acc.astype(o_ref.dtype)


def dog_conv(x, kern_np, out_dtype=jnp.bfloat16, lane_tile=128):
    # x: (B, C, T, H, W) -> (B, C, T, H, W) in out_dtype
    B, C, T, H, W = x.shape
    K = kern_np.shape[0]
    pad = (K - 1) // 2
    L = B * C * T
    Lp = _round_up(L, lane_tile)

    # (B,C,T,H,W) -> (H, W, B*C*T): "plane per lane" lane-dense layout (XLA plumbing).
    xt = jnp.transpose(x, (3, 4, 0, 1, 2)).reshape(H, W, L)
    xt = jnp.pad(xt, ((pad, pad), (pad, pad), (0, Lp - L)))
    Hp, Wp = H + 2 * pad, W + 2 * pad

    out = pl.pallas_call(
        functools.partial(_dog_kernel, kern=kern_np, H=H, W=W, K=K),
        out_shape=jax.ShapeDtypeStruct((H, W, Lp), out_dtype),
        grid=(Lp // lane_tile,),
        in_specs=[pl.BlockSpec((Hp, Wp, lane_tile), lambda i: (0, 0, i))],
        out_specs=pl.BlockSpec((H, W, lane_tile), lambda i: (0, 0, i)),
        compiler_params=pltpu.CompilerParams(dimension_semantics=("parallel",)),
    )(xt)

    out = out[:, :, :L].reshape(H, W, B, C, T)
    return jnp.transpose(out, (2, 3, 4, 0, 1))          # (B, C, T, H, W)


# -----------------------------------------------------------------------------
# Pallas kernel 2: tiled matmul + bias (+ optional ReLU), bf16 operands on the
# MXU, f32 accumulation in VMEM scratch.  Grid = (M tiles, N tiles, K tiles)
# with the K reduction last ("arbitrary"), M/N "parallel" (megacore / 2-TC).
# -----------------------------------------------------------------------------
def _matmul_kernel(x_ref, w_ref, b_ref, o_ref, acc_ref, *, relu):
    @pl.when(pl.program_id(2) == 0)
    def _init():
        acc_ref[...] = jnp.zeros_like(acc_ref)

    acc_ref[...] += jnp.dot(x_ref[...], w_ref[...],
                            preferred_element_type=jnp.float32)

    @pl.when(pl.program_id(2) == pl.num_programs(2) - 1)
    def _finalize():
        acc = acc_ref[...] + b_ref[...]
        if relu:
            acc = jnp.maximum(acc, 0.0)
        o_ref[...] = acc.astype(o_ref.dtype)


def linear_pallas(x, w, b, relu=False):
    """out = (relu?)(x @ w + b).

    x:(M,K) w:(K,N) b:(N,).  Only weights/bias are padded (cheap); the big x
    matrix is NOT re-padded through HBM: K that is not a multiple of a nice
    tile is run as a single full-K reduction step (K here is <= ~1K).
    """
    M, K = x.shape
    N = w.shape[1]
    Np = _round_up(N, 128)
    wp = jnp.pad(w, ((0, 0), (0, Np - N))).astype(jnp.bfloat16)
    bp = jnp.pad(b.astype(jnp.float32), (0, Np - N)).reshape(1, Np)
    xb = x.astype(jnp.bfloat16)

    if M % 8 != 0:
        # TODO(synk): remainder rows cost one extra pad copy of x; a fused
        # in-kernel patch gather would remove this.  Not hit at these shapes.
        Mp = _round_up(M, 8)
        xb = jnp.pad(xb, ((0, Mp - M), (0, 0)))
    else:
        Mp = M

    # Tile choices: keep >=2 M tiles when possible (dual-TC), cap working set
    # well under the v7x 64 MiB VMEM budget.
    tm = next(t for t in (256, 128, 64, 32, 16, 8) if Mp % t == 0)
    tn = 256 if (Np % 256 == 0 and Np >= 256) else 128
    tk = next((t for t in (512, 256, 128) if K % t == 0), K)
    grid = (Mp // tm, Np // tn, K // tk)

    out = pl.pallas_call(
        functools.partial(_matmul_kernel, relu=relu),
        out_shape=jax.ShapeDtypeStruct((Mp, Np), jnp.float32),
        grid=grid,
        in_specs=[pl.BlockSpec((tm, tk), lambda i, j, k: (i, k)),
                  pl.BlockSpec((tk, tn), lambda i, j, k: (k, j)),
                  pl.BlockSpec((1, tn), lambda i, j, k: (0, j))],
        out_specs=pl.BlockSpec((tm, tn), lambda i, j, k: (i, j)),
        scratch_shapes=[pltpu.VMEM((tm, tn), jnp.float32)],
        compiler_params=pltpu.CompilerParams(
            dimension_semantics=("parallel", "parallel", "arbitrary"),
            vmem_limit_bytes=32 * 1024 * 1024),
    )(xb, wp, bp)
    return out[:M, :N]


# -----------------------------------------------------------------------------
# Pallas kernel 3: fused two-stream head.
#   per stream: proj (64->1024) + ReLU, logits (1024->num_classes)
#   then: logits1 + logits2, masked softmax over the real classes.
# One launch instead of 5; class dim padded to 128 for lane-dense stores.
# -----------------------------------------------------------------------------
def _head_kernel(f1_ref, pw1_ref, pb1_ref, lw1_ref, lb1_ref,
                 f2_ref, pw2_ref, pb2_ref, lw2_ref, lb2_ref,
                 probs_ref, logits_ref, *, num_classes):
    def stream_logits(f_ref, pw_ref, pb_ref, lw_ref, lb_ref):
        h = jnp.dot(f_ref[...], pw_ref[...], preferred_element_type=jnp.float32)
        h = jnp.maximum(h + pb_ref[...], 0.0).astype(jnp.bfloat16)
        l = jnp.dot(h, lw_ref[...], preferred_element_type=jnp.float32)
        return l + lb_ref[...]

    s = (stream_logits(f1_ref, pw1_ref, pb1_ref, lw1_ref, lb1_ref)
         + stream_logits(f2_ref, pw2_ref, pb2_ref, lw2_ref, lb2_ref))   # (B, Np)

    col = jax.lax.broadcasted_iota(jnp.int32, s.shape, dimension=1)
    sm = jnp.where(col < num_classes, s, -1e30)          # mask padded classes
    m = jnp.max(sm, axis=1, keepdims=True)
    e = jnp.exp(sm - m)
    denom = jnp.sum(e, axis=1, keepdims=True)
    probs_ref[...] = (e / denom).astype(probs_ref.dtype)  # exact div: sum==1
    logits_ref[...] = s.astype(logits_ref.dtype)


def fused_head(feat1, params1, feat2, params2, num_classes=101):
    B = feat1.shape[0]
    Np = _round_up(num_classes, 128)

    def prep(p):
        pw = p["proj_w"].astype(jnp.bfloat16)                           # (64, 1024)
        pb = p["proj_b"].astype(jnp.float32).reshape(1, -1)             # (1, 1024)
        lw = jnp.pad(p["logits_w"],
                     ((0, 0), (0, Np - num_classes))).astype(jnp.bfloat16)
        lb = jnp.pad(p["logits_b"].astype(jnp.float32),
                     (0, Np - num_classes)).reshape(1, Np)
        return pw, pb, lw, lb

    args = (feat1.astype(jnp.bfloat16), *prep(params1),
            feat2.astype(jnp.bfloat16), *prep(params2))

    probs, logits = pl.pallas_call(
        functools.partial(_head_kernel, num_classes=num_classes),
        out_shape=(jax.ShapeDtypeStruct((B, Np), jnp.float32),
                   jax.ShapeDtypeStruct((B, Np), jnp.float32)),
    )(*args)
    return probs[:, :num_classes], logits[:, :num_classes]


# -----------------------------------------------------------------------------
# conv3d_1a_7x7 (7x7x7, stride 2, SAME) via im2col (glue) + tiled Pallas matmul
# -----------------------------------------------------------------------------
def _same_pad(n, k, s):
    out = -(-n // s)
    total = max((out - 1) * s + k - n, 0)
    return out, total // 2, total - total // 2


def im2col_7x7x7_s2(x, k=7, s=2):
    B, C, T, H, W = x.shape
    To, pt0, pt1 = _same_pad(T, k, s)
    Ho, ph0, ph1 = _same_pad(H, k, s)
    Wo, pw0, pw1 = _same_pad(W, k, s)
    xp = jnp.pad(x, ((0, 0), (0, 0), (pt0, pt1), (ph0, ph1), (pw0, pw1)))
    patches = []
    for kt in range(k):
        for kh in range(k):
            for kw in range(k):
                patches.append(
                    xp[:, :, kt:kt + To * s:s, kh:kh + Ho * s:s, kw:kw + Wo * s:s])
    p = jnp.stack(patches, axis=0)                 # (k^3, B, C, To, Ho, Wo)
    p = p.transpose(1, 3, 4, 5, 2, 0)              # (B, To, Ho, Wo, C, k^3)
    cols = p.reshape(B * To * Ho * Wo, C * k * k * k)
    return cols, (To, Ho, Wo)


# -----------------------------------------------------------------------------
# One modI3D stream: DoG [optional] -> conv1a -> [trunk stand-in] -> features
# -----------------------------------------------------------------------------
def stream_features(x, params, use_dog, dog_kern):
    B, C = x.shape[0], x.shape[1]
    if use_dog:
        x = dog_conv(x, dog_kern)                  # bf16 output for the MXU
    else:
        x = x.astype(jnp.bfloat16)

    cols, (To, Ho, Wo) = im2col_7x7x7_s2(x)        # (M, C*343) bf16
    w1 = params["conv1a_w"].reshape(64, C * 343).T  # (C*343, 64)
    y = linear_pallas(cols, w1, params["conv1a_b"], relu=True)   # (M, 64) f32
    y = y.reshape(B, To, Ho, Wo, 64)

    # TODO(synk): I3D inception trunk not in provided source; global-avg-pool stand-in.
    feat = jnp.mean(y, axis=(1, 2, 3))             # (B, 64)
    return feat


def init_stream_params(key, in_channels, num_classes=101, feat_dim=1024):
    ks = jax.random.split(key, 6)
    return {
        "conv1a_w": jax.random.normal(ks[0], (64, in_channels, 7, 7, 7), jnp.float32) * 0.05,
        "conv1a_b": jax.random.normal(ks[1], (64,), jnp.float32) * 0.01,
        "proj_w":   jax.random.normal(ks[2], (64, feat_dim), jnp.float32) * 0.05,
        "proj_b":   jax.random.normal(ks[3], (feat_dim,), jnp.float32) * 0.01,
        "logits_w": jax.random.normal(ks[4], (feat_dim, num_classes), jnp.float32) * 0.05,
        "logits_b": jax.random.normal(ks[5], (num_classes,), jnp.float32) * 0.01,
    }


# -----------------------------------------------------------------------------
# TwoStream forward:  (softmax(logits1+logits2), logits1+logits2)
# -----------------------------------------------------------------------------
def two_stream_forward(input1, input2, params1, params2, dog_kern):
    # stream1: flow-like modality with DoG ; stream2: rgb-weight stream, no DoG.
    feat1 = stream_features(input1, params1, use_dog=True, dog_kern=dog_kern)
    feat2 = stream_features(input2, params2, use_dog=False, dog_kern=dog_kern)
    out_pt, summed = fused_head(feat1, params1, feat2, params2)
    return out_pt, summed


if __name__ == "__main__":
    key = jax.random.PRNGKey(0)
    k_in1, k_in2, k_p1, k_p2 = jax.random.split(key, 4)

    B, T, H, W = 2, 8, 16, 16
    C1 = 2   # stream1 modality 'flow' -> 2 input channels
    C2 = 3   # stream2 modality 'rgb'  -> 3 input channels

    input1 = jax.random.normal(k_in1, (B, C1, T, H, W), jnp.float32)
    input2 = jax.random.normal(k_in2, (B, C2, T, H, W), jnp.float32)

    params1 = init_stream_params(k_p1, C1)
    params2 = init_stream_params(k_p2, C2)
    dog_kern = dog_kernel_np(size=5)

    fwd = jax.jit(lambda i1, i2, p1, p2: two_stream_forward(i1, i2, p1, p2, dog_kern))
    out_pt, summed_logits = fwd(input1, input2, params1, params2)
    out_pt = jax.block_until_ready(out_pt)
    summed_logits = jax.block_until_ready(summed_logits)

    assert out_pt.shape == (B, 101) and summed_logits.shape == (B, 101)
    assert bool(jnp.all(jnp.isfinite(out_pt))) and bool(jnp.all(jnp.isfinite(summed_logits)))
    assert bool(jnp.allclose(jnp.sum(out_pt, axis=1), 1.0, atol=1e-4))
    print("KERNEL_OK")
</pallas_src>

<mosaic_0001>
module attributes {stable_mosaic.version = 11 : i64} {
  func.func @_matmul_kernel(%arg0: i32, %arg1: i32, %arg2: i32, %arg3: memref<256x1029xbf16, #tpu.memory_space<vmem>>, %arg4: memref<1029x128xbf16, #tpu.memory_space<vmem>>, %arg5: memref<1x128xf32, #tpu.memory_space<vmem>>, %arg6: memref<256x128xf32, #tpu.memory_space<vmem>>, %arg7: memref<256x128xf32, #tpu.memory_space<vmem>>) attributes {dimension_semantics = [#tpu.dimension_semantics<parallel>, #tpu.dimension_semantics<parallel>, #tpu.dimension_semantics<arbitrary>], iteration_bounds = array<i64: 2, 1, 1>, scalar_prefetch = 0 : i64, scratch_operands = 1 : i64, tpu.core_type = #tpu.core_type<tc>, window_params = [{transform_indices = @transform_0, window_bounds = array<i64: 256, 1029>}, {transform_indices = @transform_1, window_bounds = array<i64: 1029, 128>}, {transform_indices = @transform_2, window_bounds = array<i64: 1, 128>}, {transform_indices = @transform_3, window_bounds = array<i64: 256, 128>}]} {
    %c0_i32 = arith.constant 0 : i32
    %0 = arith.cmpi eq, %arg2, %c0_i32 : i32
    %1 = arith.extui %0 : i1 to i32
    %c0_i32_0 = arith.constant 0 : i32
    %2 = arith.cmpi ne, %1, %c0_i32_0 : i32
    scf.if %2 {
      %cst_10 = arith.constant 0.000000e+00 : f32
      %12 = vector.broadcast %cst_10 : f32 to vector<256x128xf32>
      %c0_11 = arith.constant 0 : index
      %c0_12 = arith.constant 0 : index
      %13 = vector.load %arg7[%c0_11, %c0_12] : memref<256x128xf32, #tpu.memory_space<vmem>>, vector<256x128xf32>
      tpu.vector_store %arg7[%c0_11, %c0_12], %12 {strides = array<i32>} : memref<256x128xf32, #tpu.memory_space<vmem>>, vector<256x128xf32>,
    } else {
    }
    %c0 = arith.constant 0 : index
    %c0_1 = arith.constant 0 : index
    %3 = vector.load %arg7[%c0, %c0_1] : memref<256x128xf32, #tpu.memory_space<vmem>>, vector<256x128xf32>
    %c0_2 = arith.constant 0 : index
    %c0_3 = arith.constant 0 : index
    %4 = vector.load %arg3[%c0_2, %c0_3] : memref<256x1029xbf16, #tpu.memory_space<vmem>>, vector<256x1029xbf16>
    %c0_4 = arith.constant 0 : index
    %c0_5 = arith.constant 0 : index
    %5 = vector.load %arg4[%c0_4, %c0_5] : memref<1029x128xbf16, #tpu.memory_space<vmem>>, vector<1029x128xbf16>
    %cst = arith.constant dense<0.000000e+00> : vector<256x128xf32>
    %6 = tpu.matmul %4, %5, %cst {dimension_numbers = #tpu.dot_dimension_numbers<[1], [0], [0], [1], [0, 0, 1, 1], [], []>} : vector<256x1029xbf16>, vector<1029x128xbf16>, vector<256x128xf32> -> vector<256x128xf32>
    %7 = arith.addf %3, %6 : vector<256x128xf32>
    %c0_6 = arith.constant 0 : index
    %c0_7 = arith.constant 0 : index
    %8 = vector.load %arg7[%c0_6, %c0_7] : memref<256x128xf32, #tpu.memory_space<vmem>>, vector<256x128xf32>
    tpu.vector_store %arg7[%c0_6, %c0_7], %7 {strides = array<i32>} : memref<256x128xf32, #tpu.memory_space<vmem>>, vector<256x128xf32>,
    %c0_i32_8 = arith.constant 0 : i32
    %9 = arith.cmpi eq, %arg2, %c0_i32_8 : i32
    %10 = arith.extui %9 : i1 to i32
    %c0_i32_9 = arith.constant 0 : i32
    %11 = arith.cmpi ne, %10, %c0_i32_9 : i32
    scf.if %11 {
      %c0_10 = arith.constant 0 : index
      %c0_11 = arith.constant 0 : index
      %12 = vector.load %arg7[%c0_10, %c0_11] : memref<256x128xf32, #tpu.memory_space<vmem>>, vector<256x128xf32>
      %c0_12 = arith.constant 0 : index
      %c0_13 = arith.constant 0 : index
      %13 = vector.load %arg5[%c0_12, %c0_13] : memref<1x128xf32, #tpu.memory_space<vmem>>, vector<1x128xf32>
      %14 = vector.broadcast %13 : vector<1x128xf32> to vector<256x128xf32>
      %15 = arith.addf %12, %14 : vector<256x128xf32>
      %cst_14 = arith.constant 0.000000e+00 : f32
      %16 = vector.broadcast %cst_14 : f32 to vector<256x128xf32>
      %17 = arith.maximumf %15, %16 : vector<256x128xf32>
      %c0_15 = arith.constant 0 : index
      %c0_16 = arith.constant 0 : index
      %18 = vector.load %arg6[%c0_15, %c0_16] : memref<256x128xf32, #tpu.memory_space<vmem>>, vector<256x128xf32>
      tpu.vector_store %arg6[%c0_15, %c0_16], %17 {strides = array<i32>} : memref<256x128xf32, #tpu.memory_space<vmem>>, vector<256x128xf32>,
    } else {
    }
    return
  }
  func.func @transform_0(%arg0: i32, %arg1: i32, %arg2: i32) -> (i32, i32) {
    %c0_i32 = arith.constant 0 : i32
    return %arg0, %arg2 : i32, i32
  }
  func.func @transform_1(%arg0: i32, %arg1: i32, %arg2: i32) -> (i32, i32) {
    %c0_i32 = arith.constant 0 : i32
    return %arg2, %arg1 : i32, i32
  }
  func.func @transform_2(%arg0: i32, %arg1: i32, %arg2: i32) -> (i32, i32) {
    %c0_i32 = arith.constant 0 : i32
    %c0_i32_0 = arith.constant 0 : i32
    return %c0_i32, %arg1 : i32, i32
  }
  func.func @transform_3(%arg0: i32, %arg1: i32, %arg2: i32) -> (i32, i32) {
    %c0_i32 = arith.constant 0 : i32
    return %arg0, %arg1 : i32, i32
  }
}

module attributes {stable_mosaic.version = 11 : i64} {
  func.func @_dog_kernel(%arg0: i32, %arg1: memref<20x20x128xf32, #tpu.memory_space<vmem>>, %arg2: memref<16x16x128xbf16, #tpu.memory_space<vmem>>) attributes {dimension_semantics = [#tpu.dimension_semantics<parallel>], iteration_bounds = array<i64: 1>, scalar_prefetch = 0 : i64, scratch_operands = 0 : i64, tpu.core_type = #tpu.core_type<tc>, window_params = [{transform_indices = @transform_0, window_bounds = array<i64: 20, 20, 128>}, {transform_indices = @transform_1, window_bounds = array<i64: 16, 16, 128>}]} {
    %c0 = arith.constant 0 : index
    %c0_0 = arith.constant 0 : index
    %c0_1 = arith.constant 0 : index
    %0 = vector.load %arg1[%c0, %c0_0, %c0_1] : memref<20x20x128xf32, #tpu.memory_space<vmem>>, vector<20x20x128xf32>
    %cst = arith.constant 0.000000e+00 : f32
    %1 = vector.broadcast %cst : f32 to vector<16x16x128xf32>
    %2 = vector.extract_strided_slice %0 {offsets = [0, 0, 0], sizes = [16, 16, 128], strides = [1, 1, 1]} : vector<20x20x128xf32> to vector<16x16x128xf32>
    %cst_2 = arith.constant -0.0202778224 : f32
    %3 = vector.broadcast %cst_2 : f32 to vector<16x16x128xf32>
    %4 = arith.mulf %3, %2 : vector<16x16x128xf32>
    %5 = arith.addf %1, %4 : vector<16x16x128xf32>
    %6 = vector.extract_strided_slice %0 {offsets = [0, 1, 0], sizes = [16, 16, 128], strides = [1, 1, 1]} : vector<20x20x128xf32> to vector<16x16x128xf32>
    %cst_3 = arith.constant -0.0205177423 : f32
    %7 = vector.broadcast %cst_3 : f32 to vector<16x16x128xf32>
    %8 = arith.mulf %7, %6 : vector<16x16x128xf32>
    %9 = arith.addf %5, %8 : vector<16x16x128xf32>
    %10 = vector.extract_strided_slice %0 {offsets = [0, 2, 0], sizes = [16, 16, 128], strides = [1, 1, 1]} : vector<20x20x128xf32> to vector<16x16x128xf32>
    %cst_4 = arith.constant -0.016389329 : f32
    %11 = vector.broadcast %cst_4 : f32 to vector<16x16x128xf32>
    %12 = arith.mulf %11, %10 : vector<16x16x128xf32>
    %13 = arith.addf %9, %12 : vector<16x16x128xf32>
    %14 = vector.extract_strided_slice %0 {offsets = [0, 3, 0], sizes = [16, 16, 128], strides = [1, 1, 1]} : vector<20x20x128xf32> to vector<16x16x128xf32>
    %cst_5 = arith.constant -0.0205177423 : f32
    %15 = vector.broadcast %cst_5 : f32 to vector<16x16x128xf32>
    %16 = arith.mulf %15, %14 : vector<16x16x128xf32>
    %17 = arith.addf %13, %16 : vector<16x16x128xf32>
    %18 = vector.extract_strided_slice %0 {offsets = [0, 4, 0], sizes = [16, 16, 128], strides = [1, 1, 1]} : vector<20x20x128xf32> to vector<16x16x128xf32>
    %cst_6 = arith.constant -0.0202778224 : f32
    %19 = vector.broadcast %cst_6 : f32 to vector<16x16x128xf32>
    %20 = arith.mulf %19, %18 : vector<16x16x128xf32>
    %21 = arith.addf %17, %20 : vector<16x16x128xf32>
    %22 = vector.extract_strided_slice %0 {offsets = [1, 0, 0], sizes = [16, 16, 128], strides = [1, 1, 1]} : vector<20x20x128xf32> to vector<16x16x128xf32>
    %cst_7 = arith.constant -0.0205177423 : f32
    %23 = vector.broadcast %cst_7 : f32 to vector<16x16x128xf32>
    %24 = arith.mulf %23, %22 : vector<16x16x128xf32>
    %25 = arith.addf %21, %24 : vector<16x16x128xf32>
    %26 = vector.extract_strided_slice %0 {offsets = [1, 1, 0], sizes = [16, 16, 128], strides = [1, 1, 1]} : vector<20x20x128xf32> to vector<16x16x128xf32>
    %cst_8 = arith.constant 0.010420735 : f32
    %27 = vector.broadcast %cst_8 : f32 to vector<16x16x128xf32>
    %28 = arith.mulf %27, %26 : vector<16x16x128xf32>
    %29 = arith.addf %25, %28 : vector<16x16x128xf32>
    %30 = vector.extract_strided_slice %0 {offsets = [1, 2, 0], sizes = [16, 16, 128], strides = [1, 1, 1]} : vector<20x20x128xf32> to vector<16x16x128xf32>
    %cst_9 = arith.constant 0.0425540619 : f32
    %31 = vector.broadcast %cst_9 : f32 to vector<16x16x128xf32>
    %32 = arith.mulf %31, %30 : vector<16x16x128xf32>
    %33 = arith.addf %29, %32 : vector<16x16x128xf32>
    %34 = vector.extract_strided_slice %0 {offsets = [1, 3, 0], sizes = [16, 16, 128], strides = [1, 1, 1]} : vector<20x20x128xf32> to vector<16x16x128xf32>
    %cst_10 = arith.constant 0.010420735 : f32
    %35 = vector.broadcast %cst_10 : f32 to vector<16x16x128xf32>
    %36 = arith.mulf %35, %34 : vector<16x16x128xf32>
    %37 = arith.addf %33, %36 : vector<16x16x128xf32>
    %38 = vector.extract_strided_slice %0 {offsets = [1, 4, 0], sizes = [16, 16, 128], strides = [1, 1, 1]} : vector<20x20x128xf32> to vector<16x16x128xf32>
    %cst_11 = arith.constant -0.0205177423 : f32
    %39 = vector.broadcast %cst_11 : f32 to vector<16x16x128xf32>
    %40 = arith.mulf %39, %38 : vector<16x16x128xf32>
    %41 = arith.addf %37, %40 : vector<16x16x128xf32>
    %42 = vector.extract_strided_slice %0 {offsets = [2, 0, 0], sizes = [16, 16, 128], strides = [1, 1, 1]} : vector<20x20x128xf32> to vector<16x16x128xf32>
    %cst_12 = arith.constant -0.016389329 : f32
    %43 = vector.broadcast %cst_12 : f32 to vector<16x16x128xf32>
    %44 = arith.mulf %43, %42 : vector<16x16x128xf32>
    %45 = arith.addf %41, %44 : vector<16x16x128xf32>
    %46 = vector.extract_strided_slice %0 {offsets = [2, 1, 0], sizes = [16, 16, 128], strides = [1, 1, 1]} : vector<20x20x128xf32> to vector<16x16x128xf32>
    %cst_13 = arith.constant 0.0425540619 : f32
    %47 = vector.broadcast %cst_13 : f32 to vector<16x16x128xf32>
    %48 = arith.mulf %47, %46 : vector<16x16x128xf32>
    %49 = arith.addf %45, %48 : vector<16x16x128xf32>
    %50 = vector.extract_strided_slice %0 {offsets = [2, 2, 0], sizes = [16, 16, 128], strides = [1, 1, 1]} : vector<20x20x128xf32> to vector<16x16x128xf32>
    %cst_14 = arith.constant 0.0989113599 : f32
    %51 = vector.broadcast %cst_14 : f32 to vector<16x16x128xf32>
    %52 = arith.mulf %51, %50 : vector<16x16x128xf32>
    %53 = arith.addf %49, %52 : vector<16x16x128xf32>
    %54 = vector.extract_strided_slice %0 {offsets = [2, 3, 0], sizes = [16, 16, 128], strides = [1, 1, 1]} : vector<20x20x128xf32> to vector<16x16x128xf32>
    %cst_15 = arith.constant 0.0425540619 : f32
    %55 = vector.broadcast %cst_15 : f32 to vector<16x16x128xf32>
    %56 = arith.mulf %55, %54 : vector<16x16x128xf32>
    %57 = arith.addf %53, %56 : vector<16x16x128xf32>
    %58 = vector.extract_strided_slice %0 {offsets = [2, 4, 0], sizes = [16, 16, 128], strides = [1, 1, 1]} : vector<20x20x128xf32> to vector<16x16x128xf32>
    %cst_16 = arith.constant -0.016389329 : f32
    %59 = vector.broadcast %cst_16 : f32 to vector<16x16x128xf32>
    %60 = arith.mulf %59, %58 : vector<16x16x128xf32>
    %61 = arith.addf %57, %60 : vector<16x16x128xf32>
    %62 = vector.extract_strided_slice %0 {offsets = [3, 0, 0], sizes = [16, 16, 128], strides = [1, 1, 1]} : vector<20x20x128xf32> to vector<16x16x128xf32>
    %cst_17 = arith.constant -0.0205177423 : f32
    %63 = vector.broadcast %cst_17 : f32 to vector<16x16x128xf32>
    %64 = arith.mulf %63, %62 : vector<16x16x128xf32>
    %65 = arith.addf %61, %64 : vector<16x16x128xf32>
    %66 = vector.extract_strided_slice %0 {offsets = [3, 1, 0], sizes = [16, 16, 128], strides = [1, 1, 1]} : vector<20x20x128xf32> to vector<16x16x128xf32>
    %cst_18 = arith.constant 0.010420735 : f32
    %67 = vector.broadcast %cst_18 : f32 to vector<16x16x128xf32>
    %68 = arith.mulf %67, %66 : vector<16x16x128xf32>
    %69 = arith.addf %65, %68 : vector<16x16x128xf32>
    %70 = vector.extract_strided_slice %0 {offsets = [3, 2, 0], sizes = [16, 16, 128], strides = [1, 1, 1]} : vector<20x20x128xf32> to vector<16x16x128xf32>
    %cst_19 = arith.constant 0.0425540619 : f32
    %71 = vector.broadcast %cst_19 : f32 to vector<16x16x128xf32>
    %72 = arith.mulf %71, %70 : vector<16x16x128xf32>
    %73 = arith.addf %69, %72 : vector<16x16x128xf32>
    %74 = vector.extract_strided_slice %0 {offsets = [3, 3, 0], sizes = [16, 16, 128], strides = [1, 1, 1]} : vector<20x20x128xf32> to vector<16x16x128xf32>
    %cst_20 = arith.constant 0.010420735 : f32
    %75 = vector.broadcast %cst_20 : f32 to vector<16x16x128xf32>
    %76 = arith.mulf %75, %74 : vector<16x16x128xf32>
    %77 = arith.addf %73, %76 : vector<16x16x128xf32>
    %78 = vector.extract_strided_slice %0 {offsets = [3, 4, 0], sizes = [16, 16, 128], strides = [1, 1, 1]} : vector<20x20x128xf32> to vector<16x16x128xf32>
    %cst_21 = arith.constant -0.0205177423 : f32
    %79 = vector.broadcast %cst_21 : f32 to vector<16x16x128xf32>
    %80 = arith.mulf %79, %78 : vector<16x16x128xf32>
    %81 = arith.addf %77, %80 : vector<16x16x128xf32>
    %82 = vector.extract_strided_slice %0 {offsets = [4, 0, 0], sizes = [16, 16, 128], strides = [1, 1, 1]} : vector<20x20x128xf32> to vector<16x16x128xf32>
    %cst_22 = arith.constant -0.0202778224 : f32
    %83 = vector.broadcast %cst_22 : f32 to vector<16x16x128xf32>
    %84 = arith.mulf %83, %82 : vector<16x16x128xf32>
    %85 = arith.addf %81, %84 : vector<16x16x128xf32>
    %86 = vector.extract_strided_slice %0 {offsets = [4, 1, 0], sizes = [16, 16, 128], strides = [1, 1, 1]} : vector<20x20x128xf32> to vector<16x16x128xf32>
    %cst_23 = arith.constant -0.0205177423 : f32
    %87 = vector.broadcast %cst_23 : f32 to vector<16x16x128xf32>
    %88 = arith.mulf %87, %86 : vector<16x16x128xf32>
    %89 = arith.addf %85, %88 : vector<16x16x128xf32>
    %90 = vector.extract_strided_slice %0 {offsets = [4, 2, 0], sizes = [16, 16, 128], strides = [1, 1, 1]} : vector<20x20x128xf32> to vector<16x16x128xf32>
    %cst_24 = arith.constant -0.016389329 : f32
    %91 = vector.broadcast %cst_24 : f32 to vector<16x16x128xf32>
    %92 = arith.mulf %91, %90 : vector<16x16x128xf32>
    %93 = arith.addf %89, %92 : vector<16x16x128xf32>
    %94 = vector.extract_strided_slice %0 {offsets = [4, 3, 0], sizes = [16, 16, 128], strides = [1, 1, 1]} : vector<20x20x128xf32> to vector<16x16x128xf32>
    %cst_25 = arith.constant -0.0205177423 : f32
    %95 = vector.broadcast %cst_25 : f32 to vector<16x16x128xf32>
    %96 = arith.mulf %95, %94 : vector<16x16x128xf32>
    %97 = arith.addf %93, %96 : vector<16x16x128xf32>
    %98 = vector.extract_strided_slice %0 {offsets = [4, 4, 0], sizes = [16, 16, 128], strides = [1, 1, 1]} : vector<20x20x128xf32> to vector<16x16x128xf32>
    %cst_26 = arith.constant -0.0202778224 : f32
    %99 = vector.broadcast %cst_26 : f32 to vector<16x16x128xf32>
    %100 = arith.mulf %99, %98 : vector<16x16x128xf32>
    %101 = arith.addf %97, %100 : vector<16x16x128xf32>
    %102 = arith.truncf %101 : vector<16x16x128xf32> to vector<16x16x128xbf16>
    %c0_27 = arith.constant 0 : index
    %c0_28 = arith.constant 0 : index
    %c0_29 = arith.constant 0 : index
    %103 = vector.load %arg2[%c0_27, %c0_28, %c0_29] : memref<16x16x128xbf16, #tpu.memory_space<vmem>>, vector<16x16x128xbf16>
    tpu.vector_store %arg2[%c0_27, %c0_28, %c0_29], %102 {strides = array<i32>} : memref<16x16x128xbf16, #tpu.memory_space<vmem>>, vector<16x16x128xbf16>,
    return
  }
  func.func @transform_0(%arg0: i32) -> (i32, i32, i32) {
    %c0_i32 = arith.constant 0 : i32
    %c0_i32_0 = arith.constant 0 : i32
    %c0_i32_1 = arith.constant 0 : i32
    return %c0_i32, %c0_i32_0, %arg0 : i32, i32, i32
  }
  func.func @transform_1(%arg0: i32) -> (i32, i32, i32) {
    %c0_i32 = arith.constant 0 : i32
    %c0_i32_0 = arith.constant 0 : i32
    %c0_i32_1 = arith.constant 0 : i32
    return %c0_i32, %c0_i32_0, %arg0 : i32, i32, i32
  }
}

module attributes {stable_mosaic.version = 11 : i64} {
  func.func @_matmul_kernel(%arg0: i32, %arg1: i32, %arg2: i32, %arg3: memref<256x686xbf16, #tpu.memory_space<vmem>>, %arg4: memref<686x128xbf16, #tpu.memory_space<vmem>>, %arg5: memref<1x128xf32, #tpu.memory_space<vmem>>, %arg6: memref<256x128xf32, #tpu.memory_space<vmem>>, %arg7: memref<256x128xf32, #tpu.memory_space<vmem>>) attributes {dimension_semantics = [#tpu.dimension_semantics<parallel>, #tpu.dimension_semantics<parallel>, #tpu.dimension_semantics<arbitrary>], iteration_bounds = array<i64: 2, 1, 1>, scalar_prefetch = 0 : i64, scratch_operands = 1 : i64, tpu.core_type = #tpu.core_type<tc>, window_params = [{transform_indices = @transform_0, window_bounds = array<i64: 256, 686>}, {transform_indices = @transform_1, window_bounds = array<i64: 686, 128>}, {transform_indices = @transform_2, window_bounds = array<i64: 1, 128>}, {transform_indices = @transform_3, window_bounds = array<i64: 256, 128>}]} {
    %c0_i32 = arith.constant 0 : i32
    %0 = arith.cmpi eq, %arg2, %c0_i32 : i32
    %1 = arith.extui %0 : i1 to i32
    %c0_i32_0 = arith.constant 0 : i32
    %2 = arith.cmpi ne, %1, %c0_i32_0 : i32
    scf.if %2 {
      %cst_10 = arith.constant 0.000000e+00 : f32
      %12 = vector.broadcast %cst_10 : f32 to vector<256x128xf32>
      %c0_11 = arith.constant 0 : index
      %c0_12 = arith.constant 0 : index
      %13 = vector.load %arg7[%c0_11, %c0_12] : memref<256x128xf32, #tpu.memory_space<vmem>>, vector<256x128xf32>
      tpu.vector_store %arg7[%c0_11, %c0_12], %12 {strides = array<i32>} : memref<256x128xf32, #tpu.memory_space<vmem>>, vector<256x128xf32>,
    } else {
    }
    %c0 = arith.constant 0 : index
    %c0_1 = arith.constant 0 : index
    %3 = vector.load %arg7[%c0, %c0_1] : memref<256x128xf32, #tpu.memory_space<vmem>>, vector<256x128xf32>
    %c0_2 = arith.constant 0 : index
    %c0_3 = arith.constant 0 : index
    %4 = vector.load %arg3[%c0_2, %c0_3] : memref<256x686xbf16, #tpu.memory_space<vmem>>, vector<256x686xbf16>
    %c0_4 = arith.constant 0 : index
    %c0_5 = arith.constant 0 : index
    %5 = vector.load %arg4[%c0_4, %c0_5] : memref<686x128xbf16, #tpu.memory_space<vmem>>, vector<686x128xbf16>
    %cst = arith.constant dense<0.000000e+00> : vector<256x128xf32>
    %6 = tpu.matmul %4, %5, %cst {dimension_numbers = #tpu.dot_dimension_numbers<[1], [0], [0], [1], [0, 0, 1, 1], [], []>} : vector<256x686xbf16>, vector<686x128xbf16>, vector<256x128xf32> -> vector<256x128xf32>
    %7 = arith.addf %3, %6 : vector<256x128xf32>
    %c0_6 = arith.constant 0 : index
    %c0_7 = arith.constant 0 : index
    %8 = vector.load %arg7[%c0_6, %c0_7] : memref<256x128xf32, #tpu.memory_space<vmem>>, vector<256x128xf32>
    tpu.vector_store %arg7[%c0_6, %c0_7], %7 {strides = array<i32>} : memref<256x128xf32, #tpu.memory_space<vmem>>, vector<256x128xf32>,
    %c0_i32_8 = arith.constant 0 : i32
    %9 = arith.cmpi eq, %arg2, %c0_i32_8 : i32
    %10 = arith.extui %9 : i1 to i32
    %c0_i32_9 = arith.constant 0 : i32
    %11 = arith.cmpi ne, %10, %c0_i32_9 : i32
    scf.if %11 {
      %c0_10 = arith.constant 0 : index
      %c0_11 = arith.constant 0 : index
      %12 = vector.load %arg7[%c0_10, %c0_11] : memref<256x128xf32, #tpu.memory_space<vmem>>, vector<256x128xf32>
      %c0_12 = arith.constant 0 : index
      %c0_13 = arith.constant 0 : index
      %13 = vector.load %arg5[%c0_12, %c0_13] : memref<1x128xf32, #tpu.memory_space<vmem>>, vector<1x128xf32>
      %14 = vector.broadcast %13 : vector<1x128xf32> to vector<256x128xf32>
      %15 = arith.addf %12, %14 : vector<256x128xf32>
      %cst_14 = arith.constant 0.000000e+00 : f32
      %16 = vector.broadcast %cst_14 : f32 to vector<256x128xf32>
      %17 = arith.maximumf %15, %16 : vector<256x128xf32>
      %c0_15 = arith.constant 0 : index
      %c0_16 = arith.constant 0 : index
      %18 = vector.load %arg6[%c0_15, %c0_16] : memref<256x128xf32, #tpu.memory_space<vmem>>, vector<256x128xf32>
      tpu.vector_store %arg6[%c0_15, %c0_16], %17 {strides = array<i32>} : memref<256x128xf32, #tpu.memory_space<vmem>>, vector<256x128xf32>,
    } else {
    }
    return
  }
  func.func @transform_0(%arg0: i32, %arg1: i32, %arg2: i32) -> (i32, i32) {
    %c0_i32 = arith.constant 0 : i32
    return %arg0, %arg2 : i32, i32
  }
  func.func @transform_1(%arg0: i32, %arg1: i32, %arg2: i32) -> (i32, i32) {
    %c0_i32 = arith.constant 0 : i32
    return %arg2, %arg1 : i32, i32
  }
  func.func @transform_2(%arg0: i32, %arg1: i32, %arg2: i32) -> (i32, i32) {
    %c0_i32 = arith.constant 0 : i32
    %c0_i32_0 = arith.constant 0 : i32
    return %c0_i32, %arg1 : i32, i32
  }
  func.func @transform_3(%arg0: i32, %arg1: i32, %arg2: i32) -> (i32, i32) {
    %c0_i32 = arith.constant 0 : i32
    return %arg0, %arg1 : i32, i32
  }
}

module attributes {stable_mosaic.version = 11 : i64} {
  func.func @_head_kernel(%arg0: memref<2x64xbf16, #tpu.memory_space<vmem>>, %arg1: memref<64x1024xbf16, #tpu.memory_space<vmem>>, %arg2: memref<1x1024xf32, #tpu.memory_space<vmem>>, %arg3: memref<1024x128xbf16, #tpu.memory_space<vmem>>, %arg4: memref<1x128xf32, #tpu.memory_space<vmem>>, %arg5: memref<2x64xbf16, #tpu.memory_space<vmem>>, %arg6: memref<64x1024xbf16, #tpu.memory_space<vmem>>, %arg7: memref<1x1024xf32, #tpu.memory_space<vmem>>, %arg8: memref<1024x128xbf16, #tpu.memory_space<vmem>>, %arg9: memref<1x128xf32, #tpu.memory_space<vmem>>, %arg10: memref<2x128xf32, #tpu.memory_space<vmem>>, %arg11: memref<2x128xf32, #tpu.memory_space<vmem>>) attributes {dimension_semantics = [], scalar_prefetch = 0 : i64, scratch_operands = 0 : i64, tpu.core_type = #tpu.core_type<tc>} {
    %c0 = arith.constant 0 : index
    %c0_0 = arith.constant 0 : index
    %0 = vector.load %arg0[%c0, %c0_0] : memref<2x64xbf16, #tpu.memory_space<vmem>>, vector<2x64xbf16>
    %c0_1 = arith.constant 0 : index
    %c0_2 = arith.constant 0 : index
    %1 = vector.load %arg1[%c0_1, %c0_2] : memref<64x1024xbf16, #tpu.memory_space<vmem>>, vector<64x1024xbf16>
    %cst = arith.constant dense<0.000000e+00> : vector<2x1024xf32>
    %2 = tpu.matmul %0, %1, %cst {dimension_numbers = #tpu.dot_dimension_numbers<[1], [0], [0], [1], [0, 0, 1, 1], [], []>} : vector<2x64xbf16>, vector<64x1024xbf16>, vector<2x1024xf32> -> vector<2x1024xf32>
    %c0_3 = arith.constant 0 : index
    %c0_4 = arith.constant 0 : index
    %3 = vector.load %arg2[%c0_3, %c0_4] : memref<1x1024xf32, #tpu.memory_space<vmem>>, vector<1x1024xf32>
    %4 = vector.broadcast %3 : vector<1x1024xf32> to vector<2x1024xf32>
    %5 = arith.addf %2, %4 : vector<2x1024xf32>
    %cst_5 = arith.constant 0.000000e+00 : f32
    %6 = vector.broadcast %cst_5 : f32 to vector<2x1024xf32>
    %7 = arith.maximumf %5, %6 : vector<2x1024xf32>
    %8 = arith.truncf %7 : vector<2x1024xf32> to vector<2x1024xbf16>
    %c0_6 = arith.constant 0 : index
    %c0_7 = arith.constant 0 : index
    %9 = vector.load %arg3[%c0_6, %c0_7] : memref<1024x128xbf16, #tpu.memory_space<vmem>>, vector<1024x128xbf16>
    %cst_8 = arith.constant dense<0.000000e+00> : vector<2x128xf32>
    %10 = tpu.matmul %8, %9, %cst_8 {dimension_numbers = #tpu.dot_dimension_numbers<[1], [0], [0], [1], [0, 0, 1, 1], [], []>} : vector<2x1024xbf16>, vector<1024x128xbf16>, vector<2x128xf32> -> vector<2x128xf32>
    %c0_9 = arith.constant 0 : index
    %c0_10 = arith.constant 0 : index
    %11 = vector.load %arg4[%c0_9, %c0_10] : memref<1x128xf32, #tpu.memory_space<vmem>>, vector<1x128xf32>
    %12 = vector.broadcast %11 : vector<1x128xf32> to vector<2x128xf32>
    %13 = arith.addf %10, %12 : vector<2x128xf32>
    %c0_11 = arith.constant 0 : index
    %c0_12 = arith.constant 0 : index
    %14 = vector.load %arg5[%c0_11, %c0_12] : memref<2x64xbf16, #tpu.memory_space<vmem>>, vector<2x64xbf16>
    %c0_13 = arith.constant 0 : index
    %c0_14 = arith.constant 0 : index
    %15 = vector.load %arg6[%c0_13, %c0_14] : memref<64x1024xbf16, #tpu.memory_space<vmem>>, vector<64x1024xbf16>
    %cst_15 = arith.constant dense<0.000000e+00> : vector<2x1024xf32>
    %16 = tpu.matmul %14, %15, %cst_15 {dimension_numbers = #tpu.dot_dimension_numbers<[1], [0], [0], [1], [0, 0, 1, 1], [], []>} : vector<2x64xbf16>, vector<64x1024xbf16>, vector<2x1024xf32> -> vector<2x1024xf32>
    %c0_16 = arith.constant 0 : index
    %c0_17 = arith.constant 0 : index
    %17 = vector.load %arg7[%c0_16, %c0_17] : memref<1x1024xf32, #tpu.memory_space<vmem>>, vector<1x1024xf32>
    %18 = vector.broadcast %17 : vector<1x1024xf32> to vector<2x1024xf32>
    %19 = arith.addf %16, %18 : vector<2x1024xf32>
    %cst_18 = arith.constant 0.000000e+00 : f32
    %20 = vector.broadcast %cst_18 : f32 to vector<2x1024xf32>
    %21 = arith.maximumf %19, %20 : vector<2x1024xf32>
    %22 = arith.truncf %21 : vector<2x1024xf32> to vector<2x1024xbf16>
    %c0_19 = arith.constant 0 : index
    %c0_20 = arith.constant 0 : index
    %23 = vector.load %arg8[%c0_19, %c0_20] : memref<1024x128xbf16, #tpu.memory_space<vmem>>, vector<1024x128xbf16>
    %cst_21 = arith.constant dense<0.000000e+00> : vector<2x128xf32>
    %24 = tpu.matmul %22, %23, %cst_21 {dimension_numbers = #tpu.dot_dimension_numbers<[1], [0], [0], [1], [0, 0, 1, 1], [], []>} : vector<2x1024xbf16>, vector<1024x128xbf16>, vector<2x128xf32> -> vector<2x128xf32>
    %c0_22 = arith.constant 0 : index
    %c0_23 = arith.constant 0 : index
    %25 = vector.load %arg9[%c0_22, %c0_23] : memref<1x128xf32, #tpu.memory_space<vmem>>, vector<1x128xf32>
    %26 = vector.broadcast %25 : vector<1x128xf32> to vector<2x128xf32>
    %27 = arith.addf %24, %26 : vector<2x128xf32>
    %28 = arith.addf %13, %27 : vector<2x128xf32>
    %29 = tpu.iota {dimensions = array<i32: 1>} : vector<2x128xi32>
    %c101_i32 = arith.constant 101 : i32
    %30 = vector.broadcast %c101_i32 : i32 to vector<2x128xi32>
    %31 = arith.cmpi slt, %29, %30 : vector<2x128xi32>
    %cst_24 = arith.constant -1.000000e+30 : f32
    %32 = vector.broadcast %cst_24 : f32 to vector<2x128xf32>
    %33 = arith.select %31, %28, %32 : vector<2x128xi1>, vector<2x128xf32>
    %cst_25 = arith.constant dense<0xFF800000> : vector<2xf32>
    %34 = vector.multi_reduction <maximumf>, %33, %cst_25 [1] : vector<2x128xf32> to vector<2xf32>
    %35 = vector.shape_cast %34 : vector<2xf32> to vector<2x1xf32>
    %36 = vector.broadcast %35 : vector<2x1xf32> to vector<2x128xf32>
    %37 = arith.subf %33, %36 : vector<2x128xf32>
    %38 = math.exp %37 : vector<2x128xf32>
    %cst_26 = arith.constant dense<0.000000e+00> : vector<2xf32>
    %39 = vector.multi_reduction <add>, %38, %cst_26 [1] : vector<2x128xf32> to vector<2xf32>
    %40 = vector.shape_cast %39 : vector<2xf32> to vector<2x1xf32>
    %41 = vector.broadcast %40 : vector<2x1xf32> to vector<2x128xf32>
    %42 = arith.divf %38, %41 : vector<2x128xf32>
    %c0_27 = arith.constant 0 : index
    %c0_28 = arith.constant 0 : index
    %43 = vector.load %arg10[%c0_27, %c0_28] : memref<2x128xf32, #tpu.memory_space<vmem>>, vector<2x128xf32>
    tpu.vector_store %arg10[%c0_27, %c0_28], %42 {strides = array<i32>} : memref<2x128xf32, #tpu.memory_space<vmem>>, vector<2x128xf32>,
    %c0_29 = arith.constant 0 : index
    %c0_30 = arith.constant 0 : index
    %44 = vector.load %arg11[%c0_29, %c0_30] : memref<2x128xf32, #tpu.memory_space<vmem>>, vector<2x128xf32>
    tpu.vector_store %arg11[%c0_29, %c0_30], %28 {strides = array<i32>} : memref<2x128xf32, #tpu.memory_space<vmem>>, vector<2x128xf32>,
    return
  }
}

</mosaic_0001>

<bundles_post_ra>
// kernel: _lambda_.6
= control target key start
LH: loop header
LB: loop body
LE: loop exit
PB: predicated region body
PF: predicated region fallthrough
CT: control target
= control target key end

     0   :  { %s4007_s12 = smov 0   ;;  %s4009_s13 = smov 0   ;;  %s4892_s0 = inlined_call_operand.vmem [shape: bf16[512,1029], index: 0, kind: input, shape index: {}]   ;;  %s4893_s1 = inlined_call_operand.vmem [shape: bf16[1029,128], index: 1, kind: input, shape index: {}]   ;;  %s4894_s2 = inlined_call_operand.vmem [shape: f32[1,128], index: 2, kind: input, shape index: {}]   ;;  %s4895_s3 = inlined_call_operand.vmem [shape: f32[512,128], index: 3, kind: output, shape index: {}]  }
   0x1   :  { %s4011_s14 = smov 0  }
   0x2 LB: > { %s32_s15 = sadd.s32 1, %s3980_s13  ;;  %p2915_p0 = scmp.ge.s32.totalorder %s3984_s14, 1  ;;  %s3984_s14 = sphi %s4011_s14, %s13_s14   ;;  %s3980_s13 = sphi %s4009_s13, %s4917_s13   ;;  %s3976_s12 = sphi %s4007_s12, %s4916_s12  }
   0x3   : > { %p34_p1 = scmp.ge.s32.totalorder %s32_s15, 2  ;;  %p191_p2 = scmp.lt.s32.totalorder %s3984_s14, 3 }
   0x5   : > { %s4919_s15 = smov (%p34_p1, %s32_s15), 0  ;;  %p192_p3 = pnand %p2915_p0, %p191_p2 }
   0x7   : > { %195 = sbr.rel (%p192_p3) target bundleno = 535 (0x217), region = 32 }
   0xc   : > { %v3689_v0 = vld [vmem:[%s4893_s1 + $0x78] sm:$0xff]   ;;  %s2916_s18 = sshll.u32 %s3976_s12, 5  ;;  %v3691_v2 = vld [vmem:[%s4893_s1 + $0x70] sm:$0xff]   ;;  %v3693_v4 = vld [vmem:[%s4893_s1 + $0x68] sm:$0xff]   ;;  %vm1781_vm0 = vcmask 1041408   ;;  %vm1782_vm1 = vcmask 1042432  }
   0xd   : > { %v3690_v1 = vld [vmem:[%s4893_s1 + $0x38] sm:$0xff]   ;;  %3148 = vmatprep.subr.bf16.mxu0 %v3689_v0  ;;  %3647 = vmatprep.subr.bf16.mxu1 %v3689_v0  ;;  %p236_p4 = scmp.lt.s32.totalorder %s2916_s18, 63  ;;  %v3692_v3 = vld [vmem:[%s4893_s1 + $0x30] sm:$0xff]   ;;  %v3694_v5 = vld [vmem:[%s4893_s1 + $0x28] sm:$0xff]   ;;  %vm1732_vm2 = vcmask 39936  }
   0xe   : > { %3149 = vmatpush3.bf16.msra.mxu0 %v3690_v1  ;;  %3655 = vmatpush3.bf16.msra.mxu1 %v3690_v1  ;;  %v3695_v6 = vld [vmem:[%s4893_s1 + $0x60] sm:$0xff]   ;;  %v3697_v8 = vld [vmem:[%s4893_s1 + $0x58] sm:$0xff]   ;;  %v3699_v10 = vld [vmem:[%s4893_s1 + $0x50] sm:$0xff]  }
   0xf   : > { %3150 = vmatprep.subr.bf16.mxu0 %v3691_v2  ;;  %3648 = vmatprep.subr.bf16.mxu1 %v3691_v2  ;;  %s4921_s18 = smov (!%p236_p4, %s2916_s18), 63  ;;  %v3696_v7 = vld [vmem:[%s4893_s1 + $0x20] sm:$0xff]   ;;  %v3698_v9 = vld [vmem:[%s4893_s1 + $0x18] sm:$0xff]   ;;  %v3700_v13 = vld [vmem:[%s4893_s1 + $0x10] sm:$0xff]  }
  0x10   : > { %s3663_s4 = smul.u32 36, %s4921_s18  ;;  %v3701_v14 = vld [vmem:[%s4893_s1 + $0x48] sm:$0xff]   ;;  %v3703_v16 = vld [vmem:[%s4893_s1 + $0x40] sm:$0xff]   ;;  %v3711_v18 = vld [vmem:[%s4893_s1 + $0xf8] sm:$0xff]   ;;  %s2919_s19 = sshll.u32 %s4921_s18, 3 }
  0x11   : > { %v3702_v15 = vld [vmem:[%s4893_s1 + $0x8] sm:$0xff]   ;;  %v3704_v17 = vld [vmem:[%s4893_s1] sm:$0xff]   ;;  %v3714_v21 = vld [vmem:[%s4893_s1 + $0x178] sm:$0xff]   ;;  %s4735_s22 = scalar_lea.vmem %s4895_s3, %s2919_s19 }
  0x12   : > { %3151 = vmatpush3.bf16.msra.mxu0 %v3692_v3  ;;  %3656 = vmatpush3.bf16.msra.mxu1 %v3692_v3  ;;  %s4058_s11 = scalar_lea.vmem %s4892_s0, %s3663_s4  ;;  %v3712_v22 = vld [vmem:[%s4893_s1 + $0xb8] sm:$0xff]   ;;  %v3713_v23 = vld [vmem:[%s4893_s1 + $0xf0] sm:$0xff]   ;;  %v3723_v31 = vld [vmem:[%s4893_s1 + $0xe8] sm:$0xff]  }
  0x13   : > { %3152 = vmatprep.subr.bf16.mxu0 %v3693_v4  ;;  %3649 = vmatprep.subr.bf16.mxu1 %v3693_v4  ;;  %v3707_v11 = vld [vmem:[%s4058_s11 + $0x4] ss:$36 sps:$4 sm:$0xff]   ;;  %v3716_v24 = vld [vmem:[%s4893_s1 + $0x138] sm:$0xff]   ;;  %v3717_v25 = vld [vmem:[%s4058_s11 + $0x4c] ss:$36 sps:$4 sm:$0xff]  }
  0x14   : > { %v3710_v12 = vld [vmem:[%s4058_s11 + $0x364] ss:$36 sps:$4 sm:$0xff]   ;;  %1820 = vmatprep.mubr.bf16.mxu0 %v3707_v11  ;;  %v3719_v26 = vld [vmem:[%s4058_s11 + $0x3ac] ss:$36 sps:$4 sm:$0xff]   ;;  %v3727_v35 = vld [vmem:[%s4058_s11 + $0x94] ss:$36 sps:$4 sm:$0xff]  }
  0x15   : > { %1916 = vmatprep.mubr.bf16.mxu1 %v3710_v12  ;;  %v3705_v19 = vld [vmem:[%s4058_s11] ss:$36 sps:$4 sm:$0xff]   ;;  %v3715_v27 = vld [vmem:[%s4893_s1 + $0xb0] sm:$0xff]   ;;  %v3721_v29 = vld [vmem:[%s4058_s11 + $0x48] ss:$36 sps:$4 sm:$0xff]  }
  0x16   : > { %3153 = vmatpush3.bf16.msra.mxu0 %v3694_v5  ;;  %3657 = vmatpush3.bf16.msra.mxu1 %v3694_v5  ;;  %v3708_v20 = vld [vmem:[%s4058_s11 + $0x360] ss:$36 sps:$4 sm:$0xff]   ;;  %v3734_v28 = vld [vmem:[%s4893_s1 + $0x170] sm:$0xff]   ;;  %v3722_v30 = vld [vmem:[%s4058_s11 + $0x3a8] ss:$36 sps:$4 sm:$0xff]  }
  0x17   : > { %3154 = vmatprep.subr.bf16.mxu0 %v3695_v6  ;;  %3650 = vmatprep.subr.bf16.mxu1 %v3695_v6  ;;  %v3724_v32 = vld [vmem:[%s4893_s1 + $0xa8] sm:$0xff]   ;;  %v3736_v33 = vld [vmem:[%s4893_s1 + $0x130] sm:$0xff]   ;;  %v3725_v34 = vld [vmem:[%s4893_s1 + $0xe0] sm:$0xff]  }
  0x18   : > { %v3729_v36 = vld [vmem:[%s4058_s11 + $0x3f4] ss:$36 sps:$4 sm:$0xff]   ;;  %v3726_v37 = vld [vmem:[%s4893_s1 + $0xa0] sm:$0xff]   ;;  %v3748_v43 = vld [vmem:[%s4893_s1 + $0x168] sm:$0xff]  }
  0x19   : > { %v3731_v38 = vld [vmem:[%s4058_s11 + $0x90] ss:$36 sps:$4 sm:$0xff]   ;;  %v3733_v40 = vld [vmem:[%s4893_s1 + $0xd8] sm:$0xff]   ;;  %v3750_v46 = vld [vmem:[%s4893_s1 + $0x128] sm:$0xff]  }
  0x1a   : > { %3155 = vmatpush3.bf16.msra.mxu0 %v3696_v7  ;;  %3658 = vmatpush3.bf16.msra.mxu1 %v3696_v7  ;;  %v3732_v39 = vld [vmem:[%s4058_s11 + $0x3f0] ss:$36 sps:$4 sm:$0xff]   ;;  %v3735_v41 = vld [vmem:[%s4893_s1 + $0x98] sm:$0xff]   ;;  %v3745_v48 = vld [vmem:[%s4893_s1 + $0xc8] sm:$0xff]  }
  0x1b   : > { %3156 = vmatprep.subr.bf16.mxu0 %v3697_v8  ;;  %3651 = vmatprep.subr.bf16.mxu1 %v3697_v8  ;;  %v3737_v42 = vld [vmem:[%s4893_s1 + $0xd0] sm:$0xff]   ;;  %v3739_v44 = vld [vmem:[%s4058_s11 + $0xdc] ss:$36 sps:$4 sm:$0xff]   ;;  %v3746_v51 = vld [vmem:[%s4893_s1 + $0x88] sm:$0xff]  }
  0x1c   : > { %v3741_v45 = vld [vmem:[%s4058_s11 + $0x43c] ss:$36 sps:$4 sm:$0xff]   ;;  %v3738_v47 = vld [vmem:[%s4893_s1 + $0x90] sm:$0xff]   ;;  %v3751_v53 = vld [vmem:[%s4058_s11 + $0x124] ss:$36 sps:$4 sm:$0xff]  }
  0x1d   : > { %v3743_v49 = vld [vmem:[%s4058_s11 + $0xd8] ss:$36 sps:$4 sm:$0xff]   ;;  %v3747_v52 = vld [vmem:[%s4893_s1 + $0xc0] sm:$0xff]   ;;  %v3755_v54 = vld [vmem:[%s4058_s11 + $0xc] ss:$36 sps:$4 sm:$0xff]  }
  0x1e   : > { %3157 = vmatpush3.bf16.msra.mxu0 %v3698_v9  ;;  %3659 = vmatpush3.bf16.msra.mxu1 %v3698_v9  ;;  %v3744_v50 = vld [vmem:[%s4058_s11 + $0x438] ss:$36 sps:$4 sm:$0xff]   ;;  %v3765_v55 = vld [vmem:[%s4893_s1 + $0x160] sm:$0xff]   ;;  %v3753_v58 = vld [vmem:[%s4058_s11 + $0x8] ss:$36 sps:$4 sm:$0xff]  }
  0x1f   : > { %3158 = vmatprep.subr.bf16.mxu0 %v3699_v10  ;;  %3652 = vmatprep.subr.bf16.mxu1 %v3699_v10  ;;  %v3766_v56 = vld [vmem:[%s4893_s1 + $0x120] sm:$0xff]   ;;  %v3757_v60 = vld [vmem:[%s4893_s1 + $0x1f8] sm:$0xff]   ;;  %v3759_v62 = vld [vmem:[%s4058_s11 + $0x16c] ss:$36 sps:$4 sm:$0xff]  }
  0x20   : > { %v3749_v57 = vld [vmem:[%s4893_s1 + $0x80] sm:$0xff]   ;;  %v3758_v61 = vld [vmem:[%s4893_s1 + $0x1b8] sm:$0xff]   ;;  %v3773_v1 = vld [vmem:[%s4893_s1 + $0x1f0] sm:$0xff]  }
  0x21   : > { %v3756_v59 = vld [vmem:[%s4058_s11 + $0x120] ss:$36 sps:$4 sm:$0xff]   ;;  %v3761_v63 = vld [vmem:[%s4058_s11 + $0x54] ss:$36 sps:$4 sm:$0xff]   ;;  %v3763_v4 = vld [vmem:[%s4058_s11 + $0x168] ss:$36 sps:$4 sm:$0xff]  }
  0x22   : > { %3159 = vmatpush3.bf16.msra.mxu0 %v3700_v13  ;;  %3660 = vmatpush3.bf16.msra.mxu1 %v3700_v13  ;;  %v3775_v0 = vld [vmem:[%s4893_s1 + $0x158] sm:$0xff]   ;;  %v3774_v3 = vld [vmem:[%s4893_s1 + $0x1b0] sm:$0xff]   ;;  %v3790_v9 = vld [vmem:[%s4893_s1 + $0x1e8] sm:$0xff]  }
  0x23   : > { %3160 = vmatprep.subr.bf16.mxu0 %v3701_v14  ;;  %3653 = vmatprep.subr.bf16.mxu1 %v3701_v14  ;;  %v3776_v2 = vld [vmem:[%s4893_s1 + $0x118] sm:$0xff]   ;;  %v3764_v5 = vld [vmem:[%s4058_s11 + $0x50] ss:$36 sps:$4 sm:$0xff]   ;;  %v3792_v11 = vld [vmem:[%s4893_s1 + $0x1a8] sm:$0xff]  }
  0x24   : > { %v3767_v6 = vld [vmem:[%s4058_s11 + $0x1b4] ss:$36 sps:$4 sm:$0xff]   ;;  %v3769_v7 = vld [vmem:[%s4058_s11 + $0x9c] ss:$36 sps:$4 sm:$0xff]  }
  0x25   : > { %v3789_v8 = vld [vmem:[%s4893_s1 + $0x150] sm:$0xff]   ;;  %v3772_v13 = vld [vmem:[%s4058_s11 + $0x98] ss:$36 sps:$4 sm:$0xff]  }
  0x26   : > { %3161 = vmatpush3.bf16.msra.mxu0 %v3702_v15  ;;  %3661 = vmatpush3.bf16.msra.mxu1 %v3702_v15  ;;  %v3791_v10 = vld [vmem:[%s4893_s1 + $0x110] sm:$0xff]   ;;  %v3777_v14 = vld [vmem:[%s4058_s11 + $0x1fc] ss:$36 sps:$4 sm:$0xff]   ;;  %v3799_v15 = vld [vmem:[%s4893_s1 + $0x148] sm:$0xff]  }
  0x27   : > { %3162 = vmatprep.subr.bf16.mxu0 %v3703_v16  ;;  %3654 = vmatprep.subr.bf16.mxu1 %v3703_v16  ;;  %v3771_v12 = vld [vmem:[%s4058_s11 + $0x1b0] ss:$36 sps:$4 sm:$0xff]   ;;  %v3800_v16 = vld [vmem:[%s4893_s1 + $0x108] sm:$0xff]  }
  0x2a   : > { %3163 = vmatpush3.bf16.msra.mxu0 %v3704_v17  ;;  %3662 = vmatpush3.bf16.msra.mxu1 %v3704_v17  ;;  %v3779_v17 = vld [vmem:[%s4058_s11 + $0xe4] ss:$36 sps:$4 sm:$0xff]  }
  0x2b   : > { %3260 = vmatprep.subr.bf16.mxu1 %v3711_v18  ;;  %3372 = vmatprep.subr.bf16.mxu0 %v3714_v21  ;;  %v3807_v18 = vld [vmem:[%s4893_s1 + $0x1e0] sm:$0xff]  }
  0x2c   : > { %v3782_v21 = vld [vmem:[%s4058_s11 + $0xe0] ss:$36 sps:$4 sm:$0xff]  }
  0x2d   : > { %1821 = vmatmul.mubr.bf16.vlgmr.msra.gmra.mxu0 %v3705_v19  ;;  %1917 = vmatmul.mubr.bf16.vlgmr.msra.gmra.mxu1 %v3708_v20  ;;  %v3808_v19 = vld [vmem:[%s4893_s1 + $0x1a0] sm:$0xff]   ;;  %v3781_v20 = vld [vmem:[%s4058_s11 + $0x1f8] ss:$36 sps:$4 sm:$0xff]  }
  0x2e   : > { %3261 = vmatpush3.bf16.msra.mxu1 %v3712_v22  ;;  %3373 = vmatpush3.bf16.msra.mxu0 %v3716_v24  ;;  %v3783_v22 = vld [vmem:[%s4058_s11 + $0x244] ss:$36 sps:$4 sm:$0xff]  }
  0x2f   : > { %3262 = vmatprep.subr.bf16.mxu1 %v3713_v23  ;;  %1828 = vmatprep.mubr.bf16.mxu0 %v3717_v25  ;;  %v3785_v23 = vld [vmem:[%s4058_s11 + $0x12c] ss:$36 sps:$4 sm:$0xff]   ;;  %v3815_v24 = vld [vmem:[%s4893_s1 + $0x140] sm:$0xff]  }
  0x30   : > { %1924 = vmatprep.mubr.bf16.mxu1 %v3719_v26  ;;  %3374 = vmatprep.subr.bf16.mxu0 %v3734_v28  ;;  %v3816_v25 = vld [vmem:[%s4893_s1 + $0x100] sm:$0xff]   ;;  %v3986_v26 = vmov 65535   ;;  %v3823_v28 = vld [vmem:[%s4893_s1 + $0x1d8] sm:$0xff]  }
  0x32   : > { %3263 = vmatpush3.bf16.msra.mxu1 %v3715_v27  ;;  %3375 = vmatpush3.bf16.msra.mxu0 %v3736_v33  ;;  %v1783_v27 = vsel %vm1781_vm0, 4294967295, %v3986_v26  ;;  %v3788_v33 = vld [vmem:[%s4058_s11 + $0x128] ss:$36 sps:$4 sm:$0xff]  }
  0x33   : > { %3264 = vmatprep.subr.bf16.mxu1 %v3723_v31  ;;  %3376 = vmatprep.subr.bf16.mxu0 %v3748_v43  ;;  %v1784_v31 = vsel %vm1782_vm1, %v1783_v27, 0  ;;  %v3852_v43 = vld [vmem:[%s4893_s1 + $0x1c8] sm:$0xff]   ;;  %v3884_v27 = vld [vmem:[%s4058_s11 + $0x298] ss:$36 sps:$4 sm:$0xff]  }
  0x34   : > { %v3882_v26 = vld [vmem:[%s4058_s11 + $0x64] ss:$36 sps:$4 sm:$0xff]  }
  0x35   : > { %1829 = vmatmul.mubr.bf16.gmra.mxu0 %v3721_v29  ;;  %1925 = vmatmul.mubr.bf16.gmra.mxu1 %v3722_v30  ;;  %v3787_v29 = vld [vmem:[%s4058_s11 + $0x240] ss:$36 sps:$4 sm:$0xff]   ;;  %v3824_v30 = vld [vmem:[%s4893_s1 + $0x198] sm:$0xff]  }
  0x36   : > { %3265 = vmatpush3.bf16.msra.mxu1 %v3724_v32  ;;  %1836 = vmatprep.mubr.bf16.mxu0 %v3727_v35  ;;  %v3825_v32 = vld [vmem:[%s4893_s1 + $0x200] ss:$0 sps:$4 sm:$0x77]   ;;  %v3795_v35 = vld [vmem:[%s4058_s11 + $0x174] ss:$36 sps:$4 sm:$0xff]  }
  0x37   : > { %3266 = vmatprep.subr.bf16.mxu1 %v3725_v34  ;;  %1932 = vmatprep.mubr.bf16.mxu1 %v3729_v36  ;;  %v3793_v34 = vld [vmem:[%s4058_s11 + $0x28c] ss:$36 sps:$4 sm:$0xff]   ;;  %v1786_v36 = vand.u32 %v3825_v32, %v1784_v31  ;;  %v3890_v31 = vld [vmem:[%s4058_s11 + $0x2e0] ss:$36 sps:$4 sm:$0xff]  }
  0x38   : > { %3377 = vmatpush3.bf16.msra.mxu0 %v3750_v46  ;;  %v3806_v46 = vld [vmem:[%s4058_s11 + $0x1b8] ss:$36 sps:$4 sm:$0xff]   ;;  %v3891_v32 = vld [vmem:[%s4058_s11 + $0xa8] ss:$36 sps:$4 sm:$0xff]  }
  0x39   : > { %3378 = vmatprep.subr.bf16.mxu0 %v3765_v55  ;;  %v3819_v55 = vld [vmem:[%s4058_s11 + $0x10] ss:$36 sps:$4 sm:$0xff]  }
  0x3a   : > { %3267 = vmatpush3.bf16.msra.mxu1 %v3726_v37  ;;  %v3838_v37 = vld [vmem:[%s4893_s1 + $0x1d0] sm:$0xff]  }
  0x3b   : > { %3268 = vmatprep.subr.bf16.mxu1 %v3733_v40  ;;  %v3798_v40 = vld [vmem:[%s4058_s11 + $0x170] ss:$36 sps:$4 sm:$0xff]  }
  0x3c   : > { %3379 = vmatpush3.bf16.msra.mxu0 %v3766_v56  ;;  %v3822_v56 = vld [vmem:[%s4058_s11 + $0x248] ss:$36 sps:$4 sm:$0xff]  }
  0x3d   : > { %1837 = vmatmul.mubr.bf16.gmra.mxu0 %v3731_v38  ;;  %1933 = vmatmul.mubr.bf16.gmra.mxu1 %v3732_v39  ;;  %v3839_v38 = vld [vmem:[%s4893_s1 + $0x190] sm:$0xff]   ;;  %v3797_v39 = vld [vmem:[%s4058_s11 + $0x288] ss:$36 sps:$4 sm:$0xff]  }
  0x3e   : > { %3269 = vmatpush3.bf16.msra.mxu1 %v3735_v41  ;;  %1844 = vmatprep.mubr.bf16.mxu0 %v3739_v44  ;;  %v3801_v41 = vld [vmem:[%s4058_s11 + $0x2d4] ss:$36 sps:$4 sm:$0xff]   ;;  %v3853_v44 = vld [vmem:[%s4893_s1 + $0x188] sm:$0xff]  }
  0x3f   : > { %3270 = vmatprep.subr.bf16.mxu1 %v3737_v42  ;;  %1940 = vmatprep.mubr.bf16.mxu1 %v3741_v45  ;;  %v3803_v42 = vld [vmem:[%s4058_s11 + $0x1bc] ss:$36 sps:$4 sm:$0xff]   ;;  %v3805_v45 = vld [vmem:[%s4058_s11 + $0x2d0] ss:$36 sps:$4 sm:$0xff]  }
  0x40   : > { %3380 = vmatprep.subr.bf16.mxu0 %v3775_v0  ;;  %v3837_v0 = vld [vmem:[%s4058_s11 + $0xa0] ss:$36 sps:$4 sm:$0xff]  }
  0x41   : > { %3381 = vmatpush3.bf16.msra.mxu0 %v3776_v2  ;;  %v3842_v2 = vld [vmem:[%s4058_s11 + $0xec] ss:$36 sps:$4 sm:$0xff]  }
  0x42   : > { %3271 = vmatpush3.bf16.msra.mxu1 %v3738_v47  ;;  %3382 = vmatprep.subr.bf16.mxu0 %v3789_v8  ;;  %v3809_v47 = vld [vmem:[%s4058_s11 + $0x31c] ss:$36 sps:$4 sm:$0xff]   ;;  %v3851_v8 = vld [vmem:[%s4058_s11 + $0x130] ss:$36 sps:$4 sm:$0xff]  }
  0x43   : > { %3272 = vmatprep.subr.bf16.mxu1 %v3745_v48  ;;  %v3811_v48 = vld [vmem:[%s4058_s11 + $0x204] ss:$36 sps:$4 sm:$0xff]  }
  0x45   : > { %1845 = vmatmul.mubr.bf16.gmra.mxu0 %v3743_v49  ;;  %1941 = vmatmul.mubr.bf16.gmra.mxu1 %v3744_v50  ;;  %v3866_v49 = vld [vmem:[%s4893_s1 + $0x1c0] sm:$0xff]  }
  0x46   : > { %3273 = vmatpush3.bf16.msra.mxu1 %v3746_v51  ;;  %1852 = vmatprep.mubr.bf16.mxu0 %v3751_v53  ;;  %v3867_v50 = vld [vmem:[%s4893_s1 + $0x180] sm:$0xff]   ;;  %v3813_v51 = vld [vmem:[%s4058_s11 + $0x318] ss:$36 sps:$4 sm:$0xff]   ;;  %v3817_v53 = vld [vmem:[%s4058_s11 + $0x24c] ss:$36 sps:$4 sm:$0xff]  }
  0x47   : > { %3274 = vmatprep.subr.bf16.mxu1 %v3747_v52  ;;  %1981 = vmatprep.mubr.bf16.mxu1 %v3755_v54  ;;  %v3814_v52 = vld [vmem:[%s4058_s11 + $0x200] ss:$36 sps:$4 sm:$0xff]   ;;  %v3821_v54 = vld [vmem:[%s4058_s11 + $0x14] ss:$36 sps:$4 sm:$0xff]  }
  0x48   : > { %3383 = vmatpush3.bf16.msra.mxu0 %v3791_v10  ;;  %v3856_v10 = vld [vmem:[%s4058_s11 + $0x17c] ss:$36 sps:$4 sm:$0xff]  }
  0x49   : > { %3384 = vmatprep.subr.bf16.mxu0 %v3799_v15  ;;  %v3864_v15 = vld [vmem:[%s4058_s11 + $0x3f8] ss:$36 sps:$4 sm:$0xff]  }
  0x4a   : > { %3275 = vmatpush3.bf16.msra.mxu1 %v3749_v57  ;;  %v3826_v57 = vld [vmem:[%s4058_s11 + $0x294] ss:$36 sps:$4 sm:$0xff]  }
  0x4b   : > { %3484 = vmatprep.subr.bf16.mxu1 %v3757_v60  ;;  %v3831_v60 = vld [vmem:[%s4058_s11 + $0x58] ss:$36 sps:$4 sm:$0xff]  }
  0x4c   : > { %3385 = vmatpush3.bf16.msra.mxu0 %v3800_v16  ;;  %v3865_v16 = vld [vmem:[%s4058_s11 + $0x1c0] ss:$36 sps:$4 sm:$0xff]  }
  0x4d   : > { %1853 = vmatmul.mubr.bf16.gmra.mxu0 %v3756_v59  ;;  %1982 = vmatmul.mubr.bf16.vlgmr.msra.gmra.mxu1 %v3753_v58  ;;  %v3828_v58 = vld [vmem:[%s4058_s11 + $0x5c] ss:$36 sps:$4 sm:$0xff]   ;;  %v3830_v59 = vld [vmem:[%s4058_s11 + $0x290] ss:$36 sps:$4 sm:$0xff]  }
  0x4e   : > { %3485 = vmatpush3.bf16.msra.mxu1 %v3758_v61  ;;  %1860 = vmatprep.mubr.bf16.mxu0 %v3759_v62  ;;  %v3832_v61 = vld [vmem:[%s4058_s11 + $0x2dc] ss:$36 sps:$4 sm:$0xff]   ;;  %v3834_v62 = vld [vmem:[%s4058_s11 + $0xa4] ss:$36 sps:$4 sm:$0xff]  }
  0x4f   : > { %1989 = vmatprep.mubr.bf16.mxu1 %v3761_v63  ;;  %3486 = vmatprep.subr.bf16.mxu1 %v3773_v1  ;;  %v3836_v63 = vld [vmem:[%s4058_s11 + $0x2d8] ss:$36 sps:$4 sm:$0xff]   ;;  %v3840_v1 = vld [vmem:[%s4058_s11 + $0x324] ss:$36 sps:$4 sm:$0xff]  }
  0x50   : > { %3386 = vmatprep.subr.bf16.mxu0 %v3815_v24  ;;  %v3879_v24 = vld [vmem:[%s4058_s11 + $0x250] ss:$36 sps:$4 sm:$0xff]  }
  0x51   : > { %3387 = vmatpush3.bf16.msra.mxu0 %v3816_v25  ;;  %v3880_v25 = vld [vmem:[%s4058_s11 + $0x29c] ss:$36 sps:$4 sm:$0xff]  }
  0x52   : > { %3487 = vmatpush3.bf16.msra.mxu1 %v3774_v3  ;;  %3613 = vmatprep.subr.bf16.mxu0 %v1786_v36  ;;  %v3844_v3 = vld [vmem:[%s4058_s11 + $0x320] ss:$36 sps:$4 sm:$0xff]  }
  0x53   : > { %3488 = vmatprep.subr.bf16.mxu1 %v3790_v9  ;;  %v3854_v9 = vld [vmem:[%s4058_s11 + $0x3b4] ss:$36 sps:$4 sm:$0xff]  }
  0x55   : > { %1861 = vmatmul.mubr.bf16.gmra.mxu0 %v3763_v4  ;;  %1990 = vmatmul.mubr.bf16.gmra.mxu1 %v3764_v5  ;;  %v3845_v4 = vld [vmem:[%s4058_s11 + $0xe8] ss:$36 sps:$4 sm:$0xff]  }
  0x56   : > { %1868 = vmatprep.mubr.bf16.mxu0 %v3767_v6  ;;  %1997 = vmatprep.mubr.bf16.mxu1 %v3769_v7  ;;  %v3846_v5 = vld [vmem:[%s4058_s11 + $0x36c] ss:$36 sps:$4 sm:$0xff]   ;;  %v3848_v6 = vld [vmem:[%s4058_s11 + $0x134] ss:$36 sps:$4 sm:$0xff]  }
  0x57   : > { %3489 = vmatpush3.bf16.msra.mxu1 %v3792_v11  ;;  %v3850_v7 = vld [vmem:[%s4058_s11 + $0x368] ss:$36 sps:$4 sm:$0xff]   ;;  %v3858_v11 = vld [vmem:[%s4058_s11 + $0x3b0] ss:$36 sps:$4 sm:$0xff]  }
  0x58   : > { %3490 = vmatprep.subr.bf16.mxu1 %v3807_v18  ;;  %v3870_v18 = vld [vmem:[%s4058_s11 + $0x20c] ss:$36 sps:$4 sm:$0xff]  }
  0x5b   : > { %3491 = vmatpush3.bf16.msra.mxu1 %v3808_v19  ;;  %v3872_v19 = vld [vmem:[%s4058_s11 + $0x440] ss:$36 sps:$4 sm:$0xff]  }
  0x5c   : > { %3492 = vmatprep.subr.bf16.mxu1 %v3823_v28  ;;  %v3885_v28 = vld [vmem:[%s4058_s11 + $0x60] ss:$36 sps:$4 sm:$0xff]  }
  0x5d   : > { %1869 = vmatmul.mubr.bf16.gmra.mxu0 %v3771_v12  ;;  %1998 = vmatmul.mubr.bf16.gmra.mxu1 %v3772_v13  ;;  %v3859_v12 = vld [vmem:[%s4058_s11 + $0x178] ss:$36 sps:$4 sm:$0xff]  }
  0x5e   : > { %1876 = vmatprep.mubr.bf16.mxu0 %v3777_v14  ;;  %2005 = vmatprep.mubr.bf16.mxu1 %v3779_v17  ;;  %v3860_v13 = vld [vmem:[%s4058_s11 + $0x3fc] ss:$36 sps:$4 sm:$0xff]   ;;  %v3862_v14 = vld [vmem:[%s4058_s11 + $0x1c4] ss:$36 sps:$4 sm:$0xff]  }
  0x5f   : > { %3493 = vmatpush3.bf16.msra.mxu1 %v3824_v30  ;;  %v3868_v17 = vld [vmem:[%s4058_s11 + $0x444] ss:$36 sps:$4 sm:$0xff]   ;;  %v3888_v30 = vld [vmem:[%s4058_s11 + $0xac] ss:$36 sps:$4 sm:$0xff]  }
  0x60   : > { %3494 = vmatprep.subr.bf16.mxu1 %v3838_v37  ;;  %v3898_v37 = vld [vmem:[%s4058_s11 + $0x374] ss:$36 sps:$4 sm:$0xff]  }
  0x63   : > { %3495 = vmatpush3.bf16.msra.mxu1 %v3839_v38  ;;  %v3900_v38 = vld [vmem:[%s4058_s11 + $0x13c] ss:$36 sps:$4 sm:$0xff]  }
  0x64   : > { %3496 = vmatprep.subr.bf16.mxu1 %v3852_v43 }
  0x65   : > { %1877 = vmatmul.mubr.bf16.gmra.mxu0 %v3781_v20  ;;  %2006 = vmatmul.mubr.bf16.gmra.mxu1 %v3782_v21  ;;  %v3873_v20 = vld [vmem:[%s4058_s11 + $0x208] ss:$36 sps:$4 sm:$0xff]   ;;  %v3874_v21 = vld [vmem:[%s4058_s11 + $0x254] ss:$36 sps:$4 sm:$0xff]  }
  0x66   : > { %1884 = vmatprep.mubr.bf16.mxu0 %v3783_v22  ;;  %2013 = vmatprep.mubr.bf16.mxu1 %v3785_v23  ;;  %v3878_v22 = vld [vmem:[%s4058_s11 + $0x1c] ss:$36 sps:$4 sm:$0xff]  }
  0x67   : > { %3497 = vmatpush3.bf16.msra.mxu1 %v3853_v44  ;;  %v3876_v23 = vld [vmem:[%s4058_s11 + $0x18] ss:$36 sps:$4 sm:$0xff]  }
  0x68   : > { %3498 = vmatprep.subr.bf16.mxu1 %v3866_v49 }
  0x6b   : > { %3499 = vmatpush3.bf16.msra.mxu1 %v3867_v50 }
  0x6d   : > { %1885 = vmatmul.mubr.bf16.gmra.mxu0 %v3787_v29  ;;  %2014 = vmatmul.mubr.bf16.gmra.mxu1 %v3788_v33  ;;  %v3886_v29 = vld [vmem:[%s4058_s11 + $0x2e4] ss:$36 sps:$4 sm:$0xff]   ;;  %v3892_v33 = vld [vmem:[%s4058_s11 + $0x32c] ss:$36 sps:$4 sm:$0xff]  }
  0x6e   : > { %1892 = vmatprep.mubr.bf16.mxu0 %v3793_v34  ;;  %2021 = vmatprep.mubr.bf16.mxu1 %v3795_v35  ;;  %v3894_v34 = vld [vmem:[%s4058_s11 + $0xf4] ss:$36 sps:$4 sm:$0xff]   ;;  %v3896_v35 = vld [vmem:[%s4058_s11 + $0x328] ss:$36 sps:$4 sm:$0xff]  }
  0x75   : > { %1893 = vmatmul.mubr.bf16.gmra.mxu0 %v3797_v39  ;;  %2022 = vmatmul.mubr.bf16.gmra.mxu1 %v3798_v40  ;;  %v3902_v39 = vld [vmem:[%s4058_s11 + $0x370] ss:$36 sps:$4 sm:$0xff]   ;;  %v3903_v40 = vld [vmem:[%s4058_s11 + $0x138] ss:$36 sps:$4 sm:$0xff]  }
  0x76   : > { %1900 = vmatprep.mubr.bf16.mxu0 %v3801_v41  ;;  %2029 = vmatprep.mubr.bf16.mxu1 %v3803_v42  ;;  %v3904_v41 = vld [vmem:[%s4058_s11 + $0x3bc] ss:$36 sps:$4 sm:$0xff]   ;;  %v3906_v42 = vld [vmem:[%s4058_s11 + $0x184] ss:$36 sps:$4 sm:$0xff]  }
  0x7d   : > { %1901 = vmatmul.mubr.bf16.gmra.mxu0 %v3805_v45  ;;  %2030 = vmatmul.mubr.bf16.gmra.mxu1 %v3806_v46 }
  0x7e   : > { %1908 = vmatprep.mubr.bf16.mxu0 %v3809_v47  ;;  %2037 = vmatprep.mubr.bf16.mxu1 %v3811_v48 }
  0x85   : > { %1909 = vmatmul.mubr.bf16.gmra.mxu0 %v3813_v51  ;;  %2038 = vmatmul.mubr.bf16.gmra.mxu1 %v3814_v52  ;;  %v3908_v51 = vld [vmem:[%s4058_s11 + $0x3b8] ss:$36 sps:$4 sm:$0xff]   ;;  %v3909_v52 = vld [vmem:[%s4058_s11 + $0x180] ss:$36 sps:$4 sm:$0xff]  }
  0x86   : > { %2045 = vmatprep.mubr.bf16.mxu1 %v3817_v53  ;;  %2142 = vmatprep.mubr.bf16.mxu0 %v3821_v54  ;;  %v3910_v53 = vld [vmem:[%s4058_s11 + $0x404] ss:$36 sps:$4 sm:$0xff]   ;;  %v3912_v54 = vld [vmem:[%s4058_s11 + $0x1cc] ss:$36 sps:$4 sm:$0xff]  }
  0x8d   : > { %2046 = vmatmul.mubr.bf16.gmra.mxu1 %v3822_v56  ;;  %2143 = vmatmul.mubr.bf16.vlgmr.msra.gmra.mxu0 %v3819_v55 }
  0x8e   : > { %3614 = vmatpush3.bf16.msra.mxu0 %v1786_v36  ;;  %2053 = vmatprep.mubr.bf16.mxu1 %v3826_v57  ;;  %v3897_v36 = vld [vmem:[%s4058_s11 + $0xf0] ss:$36 sps:$4 sm:$0xff]  }
  0x8f   : > { %2150 = vmatprep.mubr.bf16.mxu0 %v3828_v58 }
  0x95   : > { %2054 = vmatmul.mubr.bf16.gmra.mxu1 %v3830_v59  ;;  %2151 = vmatmul.mubr.bf16.gmra.mxu0 %v3831_v60 }
  0x96   : > { %2061 = vmatprep.mubr.bf16.mxu1 %v3832_v61  ;;  %2158 = vmatprep.mubr.bf16.mxu0 %v3834_v62 }
  0x9d   : > { %2062 = vmatmul.mubr.bf16.gmra.mxu1 %v3836_v63  ;;  %2159 = vmatmul.mubr.bf16.gmra.mxu0 %v3837_v0 }
  0x9e   : > { %2069 = vmatprep.mubr.bf16.mxu1 %v3840_v1  ;;  %2166 = vmatprep.mubr.bf16.mxu0 %v3842_v2 }
  0xa5   : > { %2070 = vmatmul.mubr.bf16.gmra.mxu1 %v3844_v3  ;;  %2167 = vmatmul.mubr.bf16.gmra.mxu0 %v3845_v4  ;;  %v3914_v3 = vld [vmem:[%s4058_s11 + $0x400] ss:$36 sps:$4 sm:$0xff]   ;;  %v3915_v4 = vld [vmem:[%s4058_s11 + $0x1c8] ss:$36 sps:$4 sm:$0xff]  }
  0xa6   : > { %2077 = vmatprep.mubr.bf16.mxu1 %v3846_v5  ;;  %2174 = vmatprep.mubr.bf16.mxu0 %v3848_v6  ;;  %v3916_v5 = vld [vmem:[%s4058_s11 + $0x44c] ss:$36 sps:$4 sm:$0xff]   ;;  %v3918_v6 = vld [vmem:[%s4058_s11 + $0x214] ss:$36 sps:$4 sm:$0xff]  }
  0xad   : > { %2078 = vmatmul.mubr.bf16.gmra.mxu1 %v3850_v7  ;;  %2175 = vmatmul.mubr.bf16.gmra.mxu0 %v3851_v8 }
  0xae   : > { %2085 = vmatprep.mubr.bf16.mxu1 %v3854_v9  ;;  %2182 = vmatprep.mubr.bf16.mxu0 %v3856_v10 }
  0xb5   : > { %2086 = vmatmul.mubr.bf16.gmra.mxu1 %v3858_v11  ;;  %2183 = vmatmul.mubr.bf16.gmra.mxu0 %v3859_v12 }
  0xb6   : > { %2093 = vmatprep.mubr.bf16.mxu1 %v3860_v13  ;;  %2190 = vmatprep.mubr.bf16.mxu0 %v3862_v14 }
  0xbd   : > { %2094 = vmatmul.mubr.bf16.gmra.mxu1 %v3864_v15  ;;  %2191 = vmatmul.mubr.bf16.gmra.mxu0 %v3865_v16 }
  0xbe   : > { %2101 = vmatprep.mubr.bf16.mxu1 %v3868_v17  ;;  %2198 = vmatprep.mubr.bf16.mxu0 %v3870_v18 }
  0xc5   : > { %2102 = vmatmul.mubr.bf16.gmra.mxu1 %v3872_v19  ;;  %2199 = vmatmul.mubr.bf16.gmra.mxu0 %v3873_v20  ;;  %v3920_v19 = vld [vmem:[%s4058_s11 + $0x448] ss:$36 sps:$4 sm:$0xff]   ;;  %v3921_v20 = vld [vmem:[%s4058_s11 + $0x210] ss:$36 sps:$4 sm:$0xff]  }
  0xc6   : > { %2206 = vmatprep.mubr.bf16.mxu0 %v3874_v21  ;;  %2303 = vmatprep.mubr.bf16.mxu1 %v3878_v22  ;;  %v3924_v21 = vld [vmem:[%s4058_s11 + $0x25c] ss:$36 sps:$4 sm:$0xff]  }
  0xc7   : > { %v3925_v22 = vld [vmem:[%s4058_s11 + $0x20] ss:$36 sps:$4 sm:$0xff]  }
  0xcd   : > { %2207 = vmatmul.mubr.bf16.gmra.mxu0 %v3879_v24  ;;  %2304 = vmatmul.mubr.bf16.vlgmr.msra.gmra.mxu1 %v3876_v23 }
  0xce   : > { %2214 = vmatprep.mubr.bf16.mxu0 %v3880_v25  ;;  %2311 = vmatprep.mubr.bf16.mxu1 %v3882_v26 }
  0xd5   : > { %2215 = vmatmul.mubr.bf16.gmra.mxu0 %v3884_v27  ;;  %2312 = vmatmul.mubr.bf16.gmra.mxu1 %v3885_v28 }
  0xd6   : > { %2222 = vmatprep.mubr.bf16.mxu0 %v3886_v29  ;;  %2319 = vmatprep.mubr.bf16.mxu1 %v3888_v30 }
  0xdd   : > { %2223 = vmatmul.mubr.bf16.gmra.mxu0 %v3890_v31  ;;  %2320 = vmatmul.mubr.bf16.gmra.mxu1 %v3891_v32 }
  0xde   : > { %2230 = vmatprep.mubr.bf16.mxu0 %v3892_v33  ;;  %2327 = vmatprep.mubr.bf16.mxu1 %v3894_v34 }
  0xe5   : > { %2231 = vmatmul.mubr.bf16.gmra.mxu0 %v3896_v35  ;;  %2328 = vmatmul.mubr.bf16.gmra.mxu1 %v3897_v36  ;;  %v3922_v35 = vld [vmem:[%s4058_s11 + $0x258] ss:$36 sps:$4 sm:$0xff]   ;;  %v3926_v36 = vld [vmem:[%s4058_s11 + $0x68] ss:$36 sps:$4 sm:$0xff]  }
  0xe6   : > { %2238 = vmatprep.mubr.bf16.mxu0 %v3898_v37  ;;  %2335 = vmatprep.mubr.bf16.mxu1 %v3900_v38  ;;  %v3929_v37 = vld [vmem:[%s4058_s11 + $0x2a4] ss:$36 sps:$4 sm:$0xff]   ;;  %v3930_v38 = vld [vmem:[%s4058_s11 + $0xb0] ss:$36 sps:$4 sm:$0xff]  }
  0xed   : > { %v3164_v43 = vpop.f32.mrf.mxu0  ;;  %v3236_v44 = vpop.f32.mrf.mxu1  ;;  %2239 = vmatmul.mubr.bf16.gmra.mxu0 %v3902_v39  ;;  %2336 = vmatmul.mubr.bf16.gmra.mxu1 %v3903_v40 }
  0xee   : > { %2246 = vmatprep.mubr.bf16.mxu0 %v3904_v41  ;;  %2343 = vmatprep.mubr.bf16.mxu1 %v3906_v42 }
  0xef   : > { %v3165_v45 = vpop.f32.mrf.mxu0  ;;  %v3237_v46 = vpop.f32.mrf.mxu1 }
  0xf0   : > { %v4330_v47 = vadd.f32 %v3165_v45, %v3164_v43  ;;  %v4332_v48 = vadd.f32 %v3237_v46, %v3236_v44 }
  0xf1   : > { %v3167_v49 = vpop.f32.mrf.mxu0  ;;  %v3239_v50 = vpop.f32.mrf.mxu1 }
  0xf3   : > { %v3168_v55 = vpop.f32.mrf.mxu0  ;;  %v3240_v56 = vpop.f32.mrf.mxu1 }
  0xf4   : > { %v4338_v57 = vadd.f32 %v3168_v55, %v3167_v49  ;;  %v4340_v58 = vadd.f32 %v3240_v56, %v3239_v50  ;;  %v3934_v56 = vld [vmem:[%s4058_s11 + $0x2ec] ss:$36 sps:$4 sm:$0xff]  }
  0xf5   : > { %v3170_v59 = vpop.f32.mrf.mxu0  ;;  %v3242_v60 = vpop.f32.mrf.mxu1  ;;  %2247 = vmatmul.mubr.bf16.gmra.mxu0 %v3908_v51  ;;  %2344 = vmatmul.mubr.bf16.gmra.mxu1 %v3909_v52 }
  0xf6   : > { %2254 = vmatprep.mubr.bf16.mxu0 %v3910_v53  ;;  %2351 = vmatprep.mubr.bf16.mxu1 %v3912_v54  ;;  %v3927_v53 = vld [vmem:[%s4058_s11 + $0x2a0] ss:$36 sps:$4 sm:$0xff]   ;;  %v3931_v54 = vld [vmem:[%s4058_s11 + $0xf8] ss:$36 sps:$4 sm:$0xff]  }
  0xf7   : > { %v3171_v61 = vpop.f32.mrf.mxu0  ;;  %v3243_v62 = vpop.f32.mrf.mxu1 }
  0xf8   : > { %v4342_v63 = vadd.f32 %v3171_v61, %v3170_v59  ;;  %v4344_v0 = vadd.f32 %v3243_v62, %v3242_v60  ;;  %v3935_v59 = vld [vmem:[%s4058_s11 + $0x140] ss:$36 sps:$4 sm:$0xff]  }
  0xf9   : > { %v3173_v1 = vpop.f32.mrf.mxu0  ;;  %v3245_v2 = vpop.f32.mrf.mxu1 }
  0xfb   : > { %v3174_v7 = vpop.f32.mrf.mxu0  ;;  %v3246_v8 = vpop.f32.mrf.mxu1 }
  0xfc   : > { %v4350_v9 = vadd.f32 %v3174_v7, %v3173_v1  ;;  %v4352_v10 = vadd.f32 %v3246_v8, %v3245_v2 }
  0xfd   : > { %v3176_v11 = vpop.f32.mrf.mxu0  ;;  %v3248_v12 = vpop.f32.mrf.mxu1  ;;  %2255 = vmatmul.mubr.bf16.gmra.mxu0 %v3914_v3  ;;  %2352 = vmatmul.mubr.bf16.gmra.mxu1 %v3915_v4 }
  0xfe   : > { %2262 = vmatprep.mubr.bf16.mxu0 %v3916_v5  ;;  %2359 = vmatprep.mubr.bf16.mxu1 %v3918_v6 }
  0xff   : > { %v3177_v13 = vpop.f32.mrf.mxu0  ;;  %v3249_v14 = vpop.f32.mrf.mxu1 }
 0x100   : > { %v4354_v15 = vadd.f32 %v3177_v13, %v3176_v11  ;;  %v4356_v16 = vadd.f32 %v3249_v14, %v3248_v12  ;;  %v3932_v12 = vld [vmem:[%s4058_s11 + $0x2e8] ss:$36 sps:$4 sm:$0xff]  }
 0x101   : > { %v3179_v17 = vpop.f32.mrf.mxu0  ;;  %v3251_v18 = vpop.f32.mrf.mxu1  ;;  %v3936_v13 = vld [vmem:[%s4058_s11 + $0x188] ss:$36 sps:$4 sm:$0xff]  }
 0x103   : > { %v3180_v23 = vpop.f32.mrf.mxu0  ;;  %v3252_v24 = vpop.f32.mrf.mxu1 }
 0x104   : > { %v4362_v25 = vadd.f32 %v3180_v23, %v3179_v17  ;;  %v4364_v26 = vadd.f32 %v3252_v24, %v3251_v18  ;;  %v3939_v17 = vld [vmem:[%s4058_s11 + $0x334] ss:$36 sps:$4 sm:$0xff]  }
 0x105   : > { %v3182_v27 = vpop.f32.mrf.mxu0  ;;  %v3254_v28 = vpop.f32.mrf.mxu1  ;;  %2263 = vmatmul.mubr.bf16.gmra.mxu0 %v3920_v19  ;;  %2360 = vmatmul.mubr.bf16.gmra.mxu1 %v3921_v20  ;;  %v3940_v18 = vld [vmem:[%s4058_s11 + $0x1d0] ss:$36 sps:$4 sm:$0xff]  }
 0x106   : > { %2367 = vmatprep.mubr.bf16.mxu1 %v3924_v21  ;;  %3615 = vmatprep.mubr.msk.bf16.mxu0 %vm1732_vm2, %v3925_v22 }
 0x107   : > { %v3183_v29 = vpop.f32.mrf.mxu0  ;;  %v3255_v30 = vpop.f32.mrf.mxu1 }
 0x108   : > { %v4367_v31 = vadd.f32 %v3183_v29, %v3182_v27  ;;  %v4369_v32 = vadd.f32 %v3255_v30, %v3254_v28 }
 0x109   : > { %v3185_v33 = vpop.f32.mrf.mxu0  ;;  %v3257_v34 = vpop.f32.mrf.mxu1 }
 0x10b   : > { %v3186_v39 = vpop.f32.mrf.mxu0  ;;  %v3258_v40 = vpop.f32.mrf.mxu1 }
 0x10c   : > { %v4375_v41 = vadd.f32 %v3186_v39, %v3185_v33  ;;  %v4377_v42 = vadd.f32 %v3258_v40, %v3257_v34  ;;  %v3937_v34 = vld [vmem:[%s4058_s11 + $0x330] ss:$36 sps:$4 sm:$0xff]  }
 0x10d   : > { %v3188_v43 = vpop.f32.mrf.mxu0  ;;  %v3276_v44 = vpop.f32.mrf.mxu1  ;;  %2368 = vmatmul.mubr.bf16.gmra.mxu1 %v3922_v35  ;;  %3616 = vmatmul.mubr.msk.bf16.vlgmr.msra.gmra.mxu0 %vm1732_vm2, %v3926_v36  ;;  %v3941_v35 = vld [vmem:[%s4058_s11 + $0x218] ss:$36 sps:$4 sm:$0xff]  }
 0x10e   : > { %2375 = vmatprep.mubr.bf16.mxu1 %v3929_v37  ;;  %3619 = vmatprep.mubr.msk.bf16.mxu0 %vm1732_vm2, %v3930_v38  ;;  %v3944_v37 = vld [vmem:[%s4058_s11 + $0x37c] ss:$36 sps:$4 sm:$0xff]  }
 0x10f   : > { %v3189_v45 = vpop.f32.mrf.mxu0  ;;  %v3277_v46 = vpop.f32.mrf.mxu1  ;;  %v3945_v38 = vld [vmem:[%s4058_s11 + $0x260] ss:$36 sps:$4 sm:$0xff]  }
 0x110   : > { %v4381_v49 = vadd.f32 %v3189_v45, %v3188_v43  ;;  %v3278_v50 = vadd.f32 %v3277_v46, %v3276_v44 }
 0x111   : > { %v3191_v51 = vpop.f32.mrf.mxu0  ;;  %v3279_v52 = vpop.f32.mrf.mxu1 }
 0x112   : > { %v4386_v55 = vadd.f32 %v3278_v50, %v4330_v47 }
 0x113   : > { %v3192_v60 = vpop.f32.mrf.mxu0  ;;  %v3280_v61 = vpop.f32.mrf.mxu1 }
 0x114   : > { %v4390_v62 = vadd.f32 %v3192_v60, %v3191_v51  ;;  %v3281_v1 = vadd.f32 %v3280_v61, %v3279_v52  ;;  %v3949_v61 = vld [vmem:[%s4058_s11 + $0x3c4] ss:$36 sps:$4 sm:$0xff]  }
 0x115   : > { %v3194_v2 = vpop.f32.mrf.mxu0  ;;  %v3282_v3 = vpop.f32.mrf.mxu1  ;;  %2376 = vmatmul.mubr.bf16.gmra.mxu1 %v3927_v53  ;;  %3620 = vmatmul.mubr.msk.bf16.gmra.mxu0 %vm1732_vm2, %v3931_v54 }
 0x116   : > { %v4394_v4 = vadd.f32 %v3281_v1, %v4338_v57  ;;  %2383 = vmatprep.mubr.bf16.mxu1 %v3934_v56  ;;  %3623 = vmatprep.mubr.msk.bf16.mxu0 %vm1732_vm2, %v3935_v59  ;;  %v3942_v56 = vld [vmem:[%s4058_s11 + $0x378] ss:$36 sps:$4 sm:$0xff]   ;;  %v3946_v59 = vld [vmem:[%s4058_s11 + $0x2a8] ss:$36 sps:$4 sm:$0xff]   ;;  %v3950_v1 = vld [vmem:[%s4058_s11 + $0x2f0] ss:$36 sps:$4 sm:$0xff]  }
 0x117   : > { %v3195_v47 = vpop.f32.mrf.mxu0  ;;  %v3283_v5 = vpop.f32.mrf.mxu1 }
 0x118   : > { %v4397_v6 = vadd.f32 %v3195_v47, %v3194_v2  ;;  %v3284_v7 = vadd.f32 %v3283_v5, %v3282_v3 }
 0x119   : > { %v3197_v8 = vpop.f32.mrf.mxu0  ;;  %v3285_v11 = vpop.f32.mrf.mxu1 }
 0x11a   : > { %v4402_v14 = vadd.f32 %v3284_v7, %v4342_v63 }
 0x11b   : > { %v3198_v19 = vpop.f32.mrf.mxu0  ;;  %v3286_v57 = vpop.f32.mrf.mxu1 }
 0x11c   : > { %v4406_v20 = vadd.f32 %v3198_v19, %v3197_v8  ;;  %v3287_v21 = vadd.f32 %v3286_v57, %v3285_v11  ;;  %v3947_v19 = vld [vmem:[%s4058_s11 + $0x3c0] ss:$36 sps:$4 sm:$0xff]   ;;  %v3951_v57 = vld [vmem:[%s4058_s11 + $0x338] ss:$36 sps:$4 sm:$0xff]  }
 0x11d   : > { %v3200_v22 = vpop.f32.mrf.mxu0  ;;  %v3288_v23 = vpop.f32.mrf.mxu1  ;;  %2384 = vmatmul.mubr.bf16.gmra.mxu1 %v3932_v12  ;;  %3624 = vmatmul.mubr.msk.bf16.gmra.mxu0 %vm1732_vm2, %v3936_v13 }
 0x11e   : > { %v4410_v24 = vadd.f32 %v3287_v21, %v4350_v9  ;;  %2391 = vmatprep.mubr.bf16.mxu1 %v3939_v17  ;;  %3627 = vmatprep.mubr.msk.bf16.mxu0 %vm1732_vm2, %v3940_v18 }
 0x11f   : > { %v3201_v63 = vpop.f32.mrf.mxu0  ;;  %v3289_v27 = vpop.f32.mrf.mxu1 }
 0x120   : > { %v4413_v28 = vadd.f32 %v3201_v63, %v3200_v22  ;;  %v3290_v29 = vadd.f32 %v3289_v27, %v3288_v23  ;;  %v3954_v22 = vld [vmem:[%s4058_s11 + $0x40c] ss:$36 sps:$4 sm:$0xff]   ;;  %v3955_v23 = vld [vmem:[%s4058_s11 + $0x380] ss:$36 sps:$4 sm:$0xff]  }
 0x121   : > { %v3203_v30 = vpop.f32.mrf.mxu0  ;;  %v3291_v33 = vpop.f32.mrf.mxu1 }
 0x122   : > { %v4418_v36 = vadd.f32 %v3290_v29, %v4354_v15 }
 0x123   : > { %v3204_v39 = vpop.f32.mrf.mxu0  ;;  %v3292_v9 = vpop.f32.mrf.mxu1 }
 0x124   : > { %v4422_v40 = vadd.f32 %v3204_v39, %v3203_v30  ;;  %v3293_v43 = vadd.f32 %v3292_v9, %v3291_v33 }
 0x125   : > { %v3206_v44 = vpop.f32.mrf.mxu0  ;;  %v3294_v45 = vpop.f32.mrf.mxu1  ;;  %2392 = vmatmul.mubr.bf16.gmra.mxu1 %v3937_v34  ;;  %3628 = vmatmul.mubr.msk.bf16.gmra.mxu0 %vm1732_vm2, %v3941_v35 }
 0x126   : > { %v4426_v46 = vadd.f32 %v3293_v43, %v4362_v25  ;;  %2399 = vmatprep.mubr.bf16.mxu1 %v3944_v37  ;;  %3631 = vmatprep.mubr.msk.bf16.mxu0 %vm1732_vm2, %v3945_v38  ;;  %v3952_v43 = vld [vmem:[%s4058_s11 + $0x408] ss:$36 sps:$4 sm:$0xff]  }
 0x127   : > { %v3207_v15 = vpop.f32.mrf.mxu0  ;;  %v3295_v50 = vpop.f32.mrf.mxu1 }
 0x128   : > { %v4429_v51 = vadd.f32 %v3207_v15, %v3206_v44  ;;  %v3296_v52 = vadd.f32 %v3295_v50, %v3294_v45  ;;  %v3956_v44 = vld [vmem:[%s4058_s11 + $0x3c8] ss:$36 sps:$4 sm:$0xff]   ;;  %v3959_v15 = vld [vmem:[%s4058_s11 + $0x454] ss:$36 sps:$4 sm:$0xff]  }
 0x129   : > { %v3209_v53 = vpop.f32.mrf.mxu0  ;;  %v3297_v54 = vpop.f32.mrf.mxu1  ;;  %v3960_v50 = vld [vmem:[%s4058_s11 + $0x410] ss:$36 sps:$4 sm:$0xff]  }
 0x12a   : > { %v4434_v60 = vadd.f32 %v3296_v52, %v4367_v31 }
 0x12b   : > { %v3210_v2 = vpop.f32.mrf.mxu0  ;;  %v3298_v25 = vpop.f32.mrf.mxu1 }
 0x12c   : > { %v4438_v3 = vadd.f32 %v3210_v2, %v3209_v53  ;;  %v3299_v47 = vadd.f32 %v3298_v25, %v3297_v54 }
 0x12d   : > { %v3212_v5 = vpop.f32.mrf.mxu0  ;;  %v3300_v7 = vpop.f32.mrf.mxu1  ;;  %2400 = vmatmul.mubr.bf16.gmra.mxu1 %v3942_v56  ;;  %3632 = vmatmul.mubr.msk.bf16.gmra.mxu0 %vm1732_vm2, %v3946_v59 }
 0x12e   : > { %v4442_v8 = vadd.f32 %v3299_v47, %v4375_v41  ;;  %2407 = vmatprep.mubr.bf16.mxu1 %v3949_v61  ;;  %3635 = vmatprep.mubr.msk.bf16.mxu0 %vm1732_vm2, %v3950_v1 }
 0x12f   : > { %v3213_v31 = vpop.f32.mrf.mxu0  ;;  %v3301_v11 = vpop.f32.mrf.mxu1 }
 0x130   : > { %v4445_v12 = vadd.f32 %v3213_v31, %v3212_v5  ;;  %v3302_v13 = vadd.f32 %v3301_v11, %v3300_v7  ;;  %v3957_v7 = vld [vmem:[%s4058_s11 + $0x450] ss:$36 sps:$4 sm:$0xff]   ;;  %v3961_v31 = vld [vmem:[%s4058_s11 + $0x458] ss:$36 sps:$4 sm:$0xff]  }
 0x131   : > { %v3215_v17 = vpop.f32.mrf.mxu0  ;;  %v3303_v18 = vpop.f32.mrf.mxu1 }
 0x132   : > { %v4450_v21 = vadd.f32 %v3302_v13, %v4381_v49 }
 0x133   : > { %v3216_v63 = vpop.f32.mrf.mxu0  ;;  %v3304_v41 = vpop.f32.mrf.mxu1 }
 0x134   : > { %v4454_v27 = vadd.f32 %v3216_v63, %v3215_v17  ;;  %v3305_v29 = vadd.f32 %v3304_v41, %v3303_v18 }
 0x135   : > { %v3218_v30 = vpop.f32.mrf.mxu0  ;;  %v3306_v33 = vpop.f32.mrf.mxu1  ;;  %2408 = vmatmul.mubr.bf16.gmra.mxu1 %v3947_v19  ;;  %3636 = vmatmul.mubr.msk.bf16.gmra.mxu0 %vm1732_vm2, %v3951_v57 }
 0x136   : > { %v4458_v34 = vadd.f32 %v3305_v29, %v4390_v62  ;;  %2415 = vmatprep.mubr.bf16.mxu1 %v3954_v22  ;;  %3639 = vmatprep.mubr.msk.bf16.mxu0 %vm1732_vm2, %v3955_v23 }
 0x137   : > { %v3219_v49 = vpop.f32.mrf.mxu0  ;;  %v3307_v35 = vpop.f32.mrf.mxu1 }
 0x138   : > { %v4461_v37 = vadd.f32 %v3219_v49, %v3218_v30  ;;  %v3308_v38 = vadd.f32 %v3307_v35, %v3306_v33 }
 0x139   : > { %v3221_v39 = vpop.f32.mrf.mxu0  ;;  %v3309_v9 = vpop.f32.mrf.mxu1 }
 0x13a   : > { %v4466_v45 = vadd.f32 %v3308_v38, %v4397_v6 }
 0x13b   : > { %v3222_v52 = vpop.f32.mrf.mxu0  ;;  %v3310_v62 = vpop.f32.mrf.mxu1 }
 0x13c   : > { %v4470_v53 = vadd.f32 %v3222_v52, %v3221_v39  ;;  %v3311_v54 = vadd.f32 %v3310_v62, %v3309_v9 }
 0x13d   : > { %v3224_v56 = vpop.f32.mrf.mxu0  ;;  %v3312_v59 = vpop.f32.mrf.mxu1  ;;  %2416 = vmatmul.mubr.bf16.gmra.mxu1 %v3952_v43  ;;  %3640 = vmatmul.mubr.msk.bf16.gmra.mxu0 %vm1732_vm2, %v3956_v44 }
 0x13e   : > { %v4474_v61 = vadd.f32 %v3311_v54, %v4406_v20  ;;  %2423 = vmatprep.mubr.bf16.mxu1 %v3959_v15  ;;  %3643 = vmatprep.mubr.msk.bf16.mxu0 %vm1732_vm2, %v3960_v50 }
 0x13f   : > { %v3225_v6 = vpop.f32.mrf.mxu0  ;;  %v3313_v1 = vpop.f32.mrf.mxu1 }
 0x140   : > { %v4477_v2 = vadd.f32 %v3225_v6, %v3224_v56  ;;  %v3314_v25 = vadd.f32 %v3313_v1, %v3312_v59 }
 0x141   : > { %v3227_v47 = vpop.f32.mrf.mxu0  ;;  %v3315_v5 = vpop.f32.mrf.mxu1 }
 0x142   : > { %v4482_v11 = vadd.f32 %v3314_v25, %v4413_v28 }
 0x143   : > { %v3228_v13 = vpop.f32.mrf.mxu0  ;;  %v3316_v17 = vpop.f32.mrf.mxu1 }
 0x144   : > { %v4484_v18 = vadd.f32 %v3228_v13, %v3227_v47  ;;  %v3317_v20 = vadd.f32 %v3316_v17, %v3315_v5 }
 0x145   : > { %v3230_v19 = vpop.f32.mrf.mxu0  ;;  %v3318_v57 = vpop.f32.mrf.mxu1  ;;  %2424 = vmatmul.mubr.bf16.gmra.mxu1 %v3957_v7  ;;  %3644 = vmatmul.mubr.msk.bf16.gmra.mxu0 %vm1732_vm2, %v3961_v31 }
 0x146   : > { %v4488_v22 = vadd.f32 %v3317_v20, %v4422_v40 }
 0x147   : > { %v3231_v23 = vpop.f32.mrf.mxu0  ;;  %v3319_v63 = vpop.f32.mrf.mxu1 }
 0x148   : > { %v4490_v41 = vadd.f32 %v3231_v23, %v3230_v19  ;;  %v3320_v29 = vadd.f32 %v3319_v63, %v3318_v57 }
 0x149   : > { %v3233_v28 = vpop.f32.mrf.mxu0  ;;  %v3321_v30 = vpop.f32.mrf.mxu1 }
 0x14a   : > { %v4493_v33 = vadd.f32 %v3320_v29, %v4429_v51 }
 0x14b   : > { %v3234_v49 = vpop.f32.mrf.mxu0  ;;  %v3322_v35 = vpop.f32.mrf.mxu1 }
 0x14c   : > { %v4495_v38 = vadd.f32 %v3234_v49, %v3233_v28  ;;  %v3323_v39 = vadd.f32 %v3322_v35, %v3321_v30 }
 0x14d   : > { %v3324_v9 = vpop.f32.mrf.mxu1  ;;  %v3388_v43 = vpop.f32.mrf.mxu0 }
 0x14e   : > { %v4498_v40 = vadd.f32 %v3323_v39, %v4438_v3 }
 0x14f   : > { %v3325_v44 = vpop.f32.mrf.mxu1  ;;  %v3389_v15 = vpop.f32.mrf.mxu0 }
 0x150   : > { %v3326_v50 = vadd.f32 %v3325_v44, %v3324_v9  ;;  %v3390_v52 = vadd.f32 %v3389_v15, %v3388_v43 }
 0x151   : > { %v3327_v62 = vpop.f32.mrf.mxu1  ;;  %v3391_v54 = vpop.f32.mrf.mxu0 }
 0x152   : > { %v4501_v56 = vadd.f32 %v3326_v50, %v4445_v12  ;;  %v4504_v51 = vadd.f32 %v3390_v52, %v4386_v55 }
 0x153   : > { %v3328_v59 = vpop.f32.mrf.mxu1  ;;  %v3392_v6 = vpop.f32.mrf.mxu0 }
 0x154   : > { %v3329_v1 = vadd.f32 %v3328_v59, %v3327_v62  ;;  %v3393_v25 = vadd.f32 %v3392_v6, %v3391_v54 }
 0x155   : > { %v3330_v47 = vpop.f32.mrf.mxu1  ;;  %v3394_v5 = vpop.f32.mrf.mxu0 }
 0x156   : > { %v4507_v3 = vadd.f32 %v3329_v1, %v4454_v27  ;;  %v4510_v7 = vadd.f32 %v3393_v25, %v4394_v4 }
 0x157   : > { %v3331_v31 = vpop.f32.mrf.mxu1  ;;  %v3395_v13 = vpop.f32.mrf.mxu0 }
 0x158   : > { %v3332_v17 = vadd.f32 %v3331_v31, %v3330_v47  ;;  %v3396_v12 = vadd.f32 %v3395_v13, %v3394_v5 }
 0x159   : > { %v3333_v20 = vpop.f32.mrf.mxu1  ;;  %v3397_v19 = vpop.f32.mrf.mxu0 }
 0x15a   : > { %v4513_v55 = vadd.f32 %v3332_v17, %v4461_v37  ;;  %v4516_v57 = vadd.f32 %v3396_v12, %v4402_v14 }
 0x15b   : > { %v3334_v23 = vpop.f32.mrf.mxu1  ;;  %v3398_v63 = vpop.f32.mrf.mxu0 }
 0x15c   : > { %v3335_v29 = vadd.f32 %v3334_v23, %v3333_v20  ;;  %v3399_v27 = vadd.f32 %v3398_v63, %v3397_v19 }
 0x15d   : > { %v3336_v28 = vpop.f32.mrf.mxu1  ;;  %v3400_v30 = vpop.f32.mrf.mxu0 }
 0x15e   : > { %v4519_v4 = vadd.f32 %v3335_v29, %v4470_v53  ;;  %v4522_v49 = vadd.f32 %v3399_v27, %v4410_v24 }
 0x15f   : > { %v3337_v35 = vpop.f32.mrf.mxu1  ;;  %v3401_v39 = vpop.f32.mrf.mxu0 }
 0x160   : > { %v3338_v9 = vadd.f32 %v3337_v35, %v3336_v28  ;;  %v3402_v37 = vadd.f32 %v3401_v39, %v3400_v30 }
 0x161   : > { %v3339_v43 = vpop.f32.mrf.mxu1  ;;  %v3403_v44 = vpop.f32.mrf.mxu0 }
 0x162   : > { %v4525_v14 = vadd.f32 %v3338_v9, %v4477_v2  ;;  %v4528_v15 = vadd.f32 %v3402_v37, %v4418_v36 }
 0x163   : > { %v3340_v50 = vpop.f32.mrf.mxu1  ;;  %v3404_v52 = vpop.f32.mrf.mxu0 }
 0x164   : > { %v3341_v62 = vadd.f32 %v3340_v50, %v3339_v43  ;;  %v3405_v53 = vadd.f32 %v3404_v52, %v3403_v44 }
 0x165   : > { %v3342_v54 = vpop.f32.mrf.mxu1  ;;  %v3406_v59 = vpop.f32.mrf.mxu0 }
 0x166   : > { %v4531_v24 = vadd.f32 %v3341_v62, %v4484_v18  ;;  %v4534_v6 = vadd.f32 %v3405_v53, %v4426_v46 }
 0x167   : > { %v3343_v1 = vpop.f32.mrf.mxu1  ;;  %v3407_v25 = vpop.f32.mrf.mxu0 }
 0x168   : > { %v3344_v47 = vadd.f32 %v3343_v1, %v3342_v54  ;;  %v3408_v2 = vadd.f32 %v3407_v25, %v3406_v59 }
 0x169   : > { %v3345_v5 = vpop.f32.mrf.mxu1  ;;  %v3409_v31 = vpop.f32.mrf.mxu0 }
 0x16a   : > { %v4537_v36 = vadd.f32 %v3344_v47, %v4490_v41  ;;  %v4540_v13 = vadd.f32 %v3408_v2, %v4434_v60 }
 0x16b   : > { %v3346_v17 = vpop.f32.mrf.mxu1  ;;  %v3410_v12 = vpop.f32.mrf.mxu0 }
 0x16c   : > { %v3347_v20 = vadd.f32 %v3346_v17, %v3345_v5  ;;  %v3411_v18 = vadd.f32 %v3410_v12, %v3409_v31 }
 0x16d   : > { %v3348_v19 = vpop.f32.mrf.mxu1  ;;  %v3412_v23 = vpop.f32.mrf.mxu0 }
 0x16e   : > { %v4543_v46 = vadd.f32 %v3347_v20, %v4495_v38  ;;  %v4546_v63 = vadd.f32 %v3411_v18, %v4442_v8 }
 0x16f   : > { %v3349_v29 = vpop.f32.mrf.mxu1  ;;  %v3413_v27 = vpop.f32.mrf.mxu0 }
 0x170   : > { %v3350_v28 = vadd.f32 %v3349_v29, %v3348_v19  ;;  %v3414_v41 = vadd.f32 %v3413_v27, %v3412_v23 }
 0x171   : > { %v3351_v30 = vpop.f32.mrf.mxu1  ;;  %v3415_v35 = vpop.f32.mrf.mxu0 }
 0x172   : > { %v4549_v60 = vadd.f32 %v3350_v28, %v4332_v48  ;;  %v4552_v39 = vadd.f32 %v3414_v41, %v4450_v21 }
 0x173   : > { %v3352_v9 = vpop.f32.mrf.mxu1  ;;  %v3416_v37 = vpop.f32.mrf.mxu0 }
 0x174   : > { %v3353_v43 = vadd.f32 %v3352_v9, %v3351_v30  ;;  %v3417_v38 = vadd.f32 %v3416_v37, %v3415_v35 }
 0x175   : > { %v3354_v44 = vpop.f32.mrf.mxu1  ;;  %v3418_v50 = vpop.f32.mrf.mxu0 }
 0x176   : > { %v4555_v8 = vadd.f32 %v3353_v43, %v4340_v58  ;;  %v4558_v52 = vadd.f32 %v3417_v38, %v4458_v34 }
 0x177   : > { %v3355_v62 = vpop.f32.mrf.mxu1  ;;  %v3419_v53 = vpop.f32.mrf.mxu0 }
 0x178   : > { %v3356_v54 = vadd.f32 %v3355_v62, %v3354_v44  ;;  %v3420_v48 = vadd.f32 %v3419_v53, %v3418_v50 }
 0x179   : > { %v3357_v59 = vpop.f32.mrf.mxu1  ;;  %v3421_v1 = vpop.f32.mrf.mxu0 }
 0x17a   : > { %v4561_v21 = vadd.f32 %v3356_v54, %v4344_v0  ;;  %v4564_v25 = vadd.f32 %v3420_v48, %v4466_v45 }
 0x17b   : > { %v3358_v47 = vpop.f32.mrf.mxu1  ;;  %v3422_v2 = vpop.f32.mrf.mxu0 }
 0x17c   : > { %v3359_v5 = vadd.f32 %v3358_v47, %v3357_v59  ;;  %v3423_v58 = vadd.f32 %v3422_v2, %v3421_v1 }
 0x17d   : > { %v3360_v31 = vpop.f32.mrf.mxu1  ;;  %v3424_v17 = vpop.f32.mrf.mxu0 }
 0x17e   : > { %v4567_v34 = vadd.f32 %v3359_v5, %v4352_v10  ;;  %v4570_v12 = vadd.f32 %v3423_v58, %v4474_v61 }
 0x17f   : > { %v3361_v20 = vpop.f32.mrf.mxu1  ;;  %v3425_v18 = vpop.f32.mrf.mxu0 }
 0x180   : > { %v3362_v19 = vadd.f32 %v3361_v20, %v3360_v31  ;;  %v3426_v0 = vadd.f32 %v3425_v18, %v3424_v17 }
 0x181   : > { %v3363_v23 = vpop.f32.mrf.mxu1  ;;  %v3427_v29 = vpop.f32.mrf.mxu0 }
 0x182   : > { %v4573_v45 = vadd.f32 %v3362_v19, %v4356_v16  ;;  %v4576_v27 = vadd.f32 %v3426_v0, %v4482_v11 }
 0x183   : > { %v3364_v28 = vpop.f32.mrf.mxu1  ;;  %v3428_v41 = vpop.f32.mrf.mxu0 }
 0x184   : > { %v3365_v30 = vadd.f32 %v3364_v28, %v3363_v23  ;;  %v3429_v10 = vadd.f32 %v3428_v41, %v3427_v29 }
 0x185   : > { %v3366_v35 = vpop.f32.mrf.mxu1  ;;  %v3430_v9 = vpop.f32.mrf.mxu0 }
 0x186   : > { %v4579_v61 = vadd.f32 %v3365_v30, %v4364_v26  ;;  %v4582_v37 = vadd.f32 %v3429_v10, %v4488_v22 }
 0x187   : > { %v3367_v43 = vpop.f32.mrf.mxu1  ;;  %v3431_v38 = vpop.f32.mrf.mxu0 }
 0x188   : > { %v3368_v44 = vadd.f32 %v3367_v43, %v3366_v35  ;;  %v3432_v16 = vadd.f32 %v3431_v38, %v3430_v9 }
 0x189   : > { %v3369_v50 = vpop.f32.mrf.mxu1  ;;  %v3433_v62 = vpop.f32.mrf.mxu0 }
 0x18a   : > { %v4585_v11 = vadd.f32 %v3368_v44, %v4369_v32  ;;  %v4588_v53 = vadd.f32 %v3432_v16, %v4493_v33 }
 0x18b   : > { %v3370_v54 = vpop.f32.mrf.mxu1  ;;  %v3434_v48 = vpop.f32.mrf.mxu0 }
 0x18c   : > { %v3371_v59 = vadd.f32 %v3370_v54, %v3369_v50  ;;  %v3435_v26 = vadd.f32 %v3434_v48, %v3433_v62 }
 0x18d   : > { %v3436_v1 = vpop.f32.mrf.mxu0  ;;  %v4590_v47 = vpop.f32.mrf.mxu1 }
 0x18e   : > { %v4593_v22 = vadd.f32 %v3371_v59, %v4377_v42  ;;  %v4596_v2 = vadd.f32 %v3435_v26, %v4498_v40 }
 0x18f   : > { %v3437_v5 = vpop.f32.mrf.mxu0  ;;  %v4598_v58 = vpop.f32.mrf.mxu1 }
 0x190   : > { %v3438_v32 = vadd.f32 %v3437_v5, %v3436_v1 }
 0x191   : > { %v3439_v31 = vpop.f32.mrf.mxu0  ;;  %v4600_v33 = vpop.f32.mrf.mxu1 }
 0x192   : > { %v4603_v17 = vadd.f32 %v3438_v32, %v4501_v56 }
 0x193   : > { %v3440_v20 = vpop.f32.mrf.mxu0  ;;  %v4605_v18 = vpop.f32.mrf.mxu1 }
 0x194   : > { %v3441_v19 = vadd.f32 %v3440_v20, %v3439_v31 }
 0x195   : > { %v3442_v0 = vpop.f32.mrf.mxu0  ;;  %v4607_v42 = vpop.f32.mrf.mxu1 }
 0x196   : > { %v4610_v40 = vadd.f32 %v3441_v19, %v4507_v3 }
 0x197   : > { %v3443_v23 = vpop.f32.mrf.mxu0  ;;  %v4612_v29 = vpop.f32.mrf.mxu1 }
 0x198   : > { %v3444_v28 = vadd.f32 %v3443_v23, %v3442_v0 }
 0x199   : > { %v3445_v41 = vpop.f32.mrf.mxu0  ;;  %v4614_v30 = vpop.f32.mrf.mxu1 }
 0x19a   : > { %v4617_v56 = vadd.f32 %v3444_v28, %v4513_v55 }
 0x19b   : > { %v3446_v10 = vpop.f32.mrf.mxu0  ;;  %v4619_v35 = vpop.f32.mrf.mxu1 }
 0x19c   : > { %v3447_v9 = vadd.f32 %v3446_v10, %v3445_v41 }
 0x19d   : > { %v3448_v43 = vpop.f32.mrf.mxu0  ;;  %v4621_v38 = vpop.f32.mrf.mxu1 }
 0x19e   : > { %v4624_v3 = vadd.f32 %v3447_v9, %v4519_v4 }
 0x19f   : > { %v3449_v44 = vpop.f32.mrf.mxu0  ;;  %v4626_v16 = vpop.f32.mrf.mxu1 }
 0x1a0   : > { %v3450_v50 = vadd.f32 %v3449_v44, %v3448_v43 }
 0x1a1   : > { %v3451_v62 = vpop.f32.mrf.mxu0  ;;  %v4628_v54 = vpop.f32.mrf.mxu1 }
 0x1a2   : > { %v4631_v55 = vadd.f32 %v3450_v50, %v4525_v14 }
 0x1a3   : > { %v3452_v48 = vpop.f32.mrf.mxu0  ;;  %v4633_v59 = vpop.f32.mrf.mxu1 }
 0x1a4   : > { %4896 = vst [vmem:[#allocation3_spill] sm:$0xff] %v4631_v55  ;;  %v3453_v26 = vadd.f32 %v3452_v48, %v3451_v62 }
 0x1a5   : > { %v3454_v1 = vpop.f32.mrf.mxu0  ;;  %v4635_v5 = vpop.f32.mrf.mxu1 }
 0x1a6   : > { %v4638_v4 = vadd.f32 %v3453_v26, %v4531_v24 }
 0x1a7   : > { %v3455_v32 = vpop.f32.mrf.mxu0  ;;  %v4640_v31 = vpop.f32.mrf.mxu1 }
 0x1a8   : > { %4897 = vst [vmem:[#allocation4_spill] sm:$0xff] %v4638_v4  ;;  %v3456_v20 = vadd.f32 %v3455_v32, %v3454_v1 }
 0x1a9   : > { %v3457_v19 = vpop.f32.mrf.mxu0  ;;  %v4642_v0 = vpop.f32.mrf.mxu1 }
 0x1aa   : > { %v4645_v14 = vadd.f32 %v3456_v20, %v4537_v36 }
 0x1ab   : > { %v3458_v23 = vpop.f32.mrf.mxu0  ;;  %v4647_v28 = vpop.f32.mrf.mxu1 }
 0x1ac   : > { %4898 = vst [vmem:[#allocation5_spill] sm:$0xff] %v4645_v14  ;;  %v3459_v41 = vadd.f32 %v3458_v23, %v3457_v19 }
 0x1ad   : > { %v3460_v10 = vpop.f32.mrf.mxu0  ;;  %v4649_v9 = vpop.f32.mrf.mxu1 }
 0x1ae   : > { %v4652_v24 = vadd.f32 %v3459_v41, %v4543_v46 }
 0x1af   : > { %v3461_v43 = vpop.f32.mrf.mxu0  ;;  %v4654_v44 = vpop.f32.mrf.mxu1 }
 0x1b0   : > { %4899 = vst [vmem:[#allocation6_spill] sm:$0xff] %v4652_v24  ;;  %v3462_v50 = vadd.f32 %v3461_v43, %v3460_v10 }
 0x1b1   : > { %v3463_v62 = vpop.f32.mrf.mxu0  ;;  %v4656_v48 = vpop.f32.mrf.mxu1 }
 0x1b2   : > { %v4659_v36 = vadd.f32 %v3462_v50, %v4549_v60 }
 0x1b3   : > { %v3464_v26 = vpop.f32.mrf.mxu0  ;;  %v4661_v1 = vpop.f32.mrf.mxu1 }
 0x1b4   : > { %4900 = vst [vmem:[#allocation7_spill] sm:$0xff] %v4659_v36  ;;  %v3465_v32 = vadd.f32 %v3464_v26, %v3463_v62 }
 0x1b5   : > { %v3466_v20 = vpop.f32.mrf.mxu0  ;;  %v4663_v19 = vpop.f32.mrf.mxu1 }
 0x1b6   : > { %v4666_v46 = vadd.f32 %v3465_v32, %v4555_v8 }
 0x1b7   : > { %v3467_v23 = vpop.f32.mrf.mxu0  ;;  %v4668_v41 = vpop.f32.mrf.mxu1 }
 0x1b8   : > { %4901 = vst [vmem:[#allocation8_spill] sm:$0xff] %v4666_v46  ;;  %v3468_v10 = vadd.f32 %v3467_v23, %v3466_v20 }
 0x1b9   : > { %v3469_v43 = vpop.f32.mrf.mxu0  ;;  %v4670_v4 = vpop.f32.mrf.mxu1 }
 0x1ba   : > { %v4673_v60 = vadd.f32 %v3468_v10, %v4561_v21 }
 0x1bb   : > { %v3470_v50 = vpop.f32.mrf.mxu0  ;;  %v4675_v36 = vpop.f32.mrf.mxu1 }
 0x1bc   : > { %4902 = vst [vmem:[#allocation9_spill] sm:$0xff] %v4673_v60  ;;  %v3471_v62 = vadd.f32 %v3470_v50, %v3469_v43 }
 0x1bd   : > { %v3472_v26 = vpop.f32.mrf.mxu0  ;;  %v4677_v24 = vpop.f32.mrf.mxu1 }
 0x1be   : > { %v4680_v8 = vadd.f32 %v3471_v62, %v4567_v34 }
 0x1bf   : > { %v3473_v32 = vpop.f32.mrf.mxu0  ;;  %v4682_v46 = vpop.f32.mrf.mxu1 }
 0x1c0   : > { %4903 = vst [vmem:[#allocation10_spill] sm:$0xff] %v4680_v8  ;;  %v3474_v20 = vadd.f32 %v3473_v32, %v3472_v26  ;;  %v3508_v26 = vadd.f32 %v4612_v29, %v4607_v42  ;;  %v3505_v29 = vadd.f32 %v4605_v18, %v4600_v33  ;;  %v3520_v33 = vadd.f32 %v4640_v31, %v4635_v5 }
 0x1c1   : > { %v3475_v23 = vpop.f32.mrf.mxu0  ;;  %v4684_v55 = vpop.f32.mrf.mxu1  ;;  %v3514_v5 = vadd.f32 %v4626_v16, %v4621_v38  ;;  %v3517_v38 = vadd.f32 %v4633_v59, %v4628_v54 }
 0x1c2   : > { %v4687_v21 = vadd.f32 %v3474_v20, %v4573_v45  ;;  %v2314_v42 = vadd.f32 %v3508_v26, %v4516_v57 }
 0x1c3   : > { %v3476_v10 = vpop.f32.mrf.mxu0  ;;  %v4689_v60 = vpop.f32.mrf.mxu1 }
 0x1c4   : > { %4904 = vst [vmem:[#allocation11_spill] sm:$0xff] %v4687_v21  ;;  %v3477_v43 = vadd.f32 %v3476_v10, %v3475_v23  ;;  %v3502_v23 = vadd.f32 %v4598_v58, %v4590_v47 }
 0x1c5   : > { %v3478_v50 = vpop.f32.mrf.mxu0  ;;  %v4691_v14 = vpop.f32.mrf.mxu1 }
 0x1c6   : > { %v4694_v34 = vadd.f32 %v3477_v43, %v4579_v61  ;;  %v3511_v43 = vadd.f32 %v4619_v35, %v4614_v30  ;;  %v2306_v30 = vadd.f32 %v3502_v23, %v4504_v51 }
 0x1c7   : > { %v3479_v62 = vpop.f32.mrf.mxu0  ;;  %v4696_v8 = vpop.f32.mrf.mxu1 }
 0x1c8   : > { %4905 = vst [vmem:[#allocation12_spill] sm:$0xff] %v4694_v34  ;;  %v3480_v32 = vadd.f32 %v3479_v62, %v3478_v50  ;;  %v2317_v26 = vadd.f32 %v3511_v43, %v4522_v49  ;;  %v3523_v49 = vadd.f32 %v4647_v28, %v4642_v0 }
 0x1c9   : > { %v3481_v45 = vpop.f32.mrf.mxu0  ;;  %v4700_v20 = vpop.f32.mrf.mxu1 }
 0x1ca   : > { %v4705_v10 = vadd.f32 %v3480_v32, %v4585_v11  ;;  %v4719_v11 = vld [vmem:[%s4894_s2] ss:$0 sm:$0xff] }
 0x1cb   : > { %v3482_v21 = vpop.f32.mrf.mxu0  ;;  %v4707_v61 = vpop.f32.mrf.mxu1 }
 0x1cc   : > { %v3483_v34 = vadd.f32 %v3482_v21, %v3481_v45 }
 0x1cd   : > { %v4714_v50 = vpop.f32.mrf.mxu1  ;;  %v3617_v62 = vpop.f32.mrf.mxu0 }
 0x1ce   : > { %v4722_v47 = vadd.f32 %v3483_v34, %v4593_v22  ;;  %v2475_v58 = vadd.f32 %v3617_v62, %v2314_v42  ;;  %v2309_v34 = vadd.f32 %v3505_v29, %v4510_v7  ;;  %v2330_v29 = vadd.f32 %v3520_v33, %v4540_v13 }
 0x1cf   : > { %v4726_v35 = vpop.f32.mrf.mxu1  ;;  %v2466_v57 = vpop.f32.mrf.mxu0  ;;  %v3532_v13 = vadd.f32 %v4668_v41, %v4663_v19  ;;  %v3535_v41 = vadd.f32 %v4675_v36, %v4670_v4 }
 0x1d0   : > { %v2701_v18 = vadd.f32 %v4719_v11, %v2475_v58  ;;  %v2467_v21 = vadd.f32 %v2466_v57, %v2306_v30  ;;  %v2322_v57 = vadd.f32 %v3514_v5, %v4528_v15  ;;  %v3526_v15 = vadd.f32 %v4654_v44, %v4649_v9 }
 0x1d1   : > { %v4737_v22 = vpop.f32.mrf.mxu1  ;;  %v3618_v51 = vpop.f32.mrf.mxu0  ;;  %v2346_v9 = vadd.f32 %v3532_v13, %v4564_v25  ;;  %v3529_v44 = vadd.f32 %v4661_v1, %v4656_v48  ;;  %v3544_v25 = vadd.f32 %v4696_v8, %v4691_v14  ;;  %v3547_v8 = vadd.f32 %v4707_v61, %v4700_v20 }
 0x1d2   : > { %v2733_v31 = vmax.f32 %v2701_v18, 0.0  ;;  %v2699_v32 = vadd.f32 %v4719_v11, %v2467_v21  ;;  %v2478_v45 = vadd.f32 %v3618_v51, %v2317_v26  ;;  %v2333_v26 = vadd.f32 %v3523_v49, %v4546_v63 }
 0x1d3   : > { %v4745_v23 = vpop.f32.mrf.mxu1  ;;  %v2469_v43 = vpop.f32.mrf.mxu0 }
 0x1d4   : > { %2765 = vst [vmem:[%s4735_s22 + $0x10] sm:$0xff] %v2733_v31  ;;  %v2731_v42 = vmax.f32 %v2699_v32, 0.0  ;;  %v2702_v62 = vadd.f32 %v4719_v11, %v2478_v45  ;;  %v2470_v7 = vadd.f32 %v2469_v43, %v2309_v34  ;;  %v2325_v31 = vadd.f32 %v3517_v38, %v4534_v6 }
 0x1d5   : > { %v4752_v16 = vpop.f32.mrf.mxu1  ;;  %v3621_v58 = vpop.f32.mrf.mxu0 }
 0x1d6   : > { %2763 = vst [vmem:[%s4735_s22] sm:$0xff] %v2731_v42  ;;  %v2734_v30 = vmax.f32 %v2702_v62, 0.0  ;;  %v2700_v0 = vadd.f32 %v4719_v11, %v2470_v7  ;;  %v2491_v28 = vadd.f32 %v3621_v58, %v2330_v29  ;;  %v2338_v29 = vadd.f32 %v3526_v15, %v4552_v39 }
 0x1d7   : > { %v4757_v18 = vpop.f32.mrf.mxu1  ;;  %v2482_v21 = vpop.f32.mrf.mxu0  ;;  %v3538_v39 = vadd.f32 %v4682_v46, %v4677_v24  ;;  %v2362_v24 = vadd.f32 %v3544_v25, %v4588_v53  ;;  %v3541_v46 = vadd.f32 %v4689_v60, %v4684_v55 }
 0x1d8   : > { %2766 = vst [vmem:[%s4735_s22 + $0x18] sm:$0xff] %v2734_v30  ;;  %v2732_v54 = vmax.f32 %v2700_v0, 0.0  ;;  %v2705_v59 = vadd.f32 %v4719_v11, %v2491_v28  ;;  %v2483_v33 = vadd.f32 %v2482_v21, %v2322_v57  ;;  %v2349_v30 = vadd.f32 %v3535_v41, %v4570_v12 }
 0x1d9   : > { %v4764_v51 = vpop.f32.mrf.mxu1  ;;  %v3622_v34 = vpop.f32.mrf.mxu0  ;;  %v2341_v21 = vadd.f32 %v3529_v44, %v4558_v52  ;;  %v2365_v41 = vadd.f32 %v3547_v8, %v4596_v2  ;;  %v3556_v53 = vadd.f32 %v4757_v18, %v4752_v16 }
 0x1da   : > { %2764 = vst [vmem:[%s4735_s22 + $0x8] sm:$0xff] %v2732_v54  ;;  %v2737_v63 = vmax.f32 %v2705_v59, 0.0  ;;  %v2703_v5 = vadd.f32 %v4719_v11, %v2483_v33  ;;  %v2494_v19 = vadd.f32 %v3622_v34, %v2333_v26 }
 0x1db   : > { %v4773_v32 = vpop.f32.mrf.mxu1  ;;  %v2485_v45 = vpop.f32.mrf.mxu0 }
 0x1dc   : > { %2769 = vst [vmem:[%s4735_s22 + $0x30] sm:$0xff] %v2737_v63  ;;  %v2735_v49 = vmax.f32 %v2703_v5, 0.0  ;;  %v2706_v6 = vadd.f32 %v4719_v11, %v2494_v19  ;;  %v2486_v43 = vadd.f32 %v2485_v45, %v2325_v31  ;;  %v2354_v63 = vadd.f32 %v3538_v39, %v4576_v27 }
 0x1dd   : > { %v4780_v42 = vpop.f32.mrf.mxu1  ;;  %v3625_v62 = vpop.f32.mrf.mxu0  ;;  %v3550_v27 = vadd.f32 %v4726_v35, %v4714_v50  ;;  %v3559_v16 = vadd.f32 %v4773_v32, %v4764_v51  ;;  %v3553_v50 = vadd.f32 %v4745_v23, %v4737_v22 }
 0x1de   : > { %2767 = vst [vmem:[%s4735_s22 + $0x20] sm:$0xff] %v2735_v49  ;;  %v2738_v7 = vmax.f32 %v2706_v6, 0.0  ;;  %v2704_v4 = vadd.f32 %v4719_v11, %v2486_v43  ;;  %v2507_v36 = vadd.f32 %v3625_v62, %v2346_v9  ;;  %v2357_v43 = vadd.f32 %v3541_v46, %v4582_v37 }
 0x1df   : > { %v4785_v38 = vpop.f32.mrf.mxu1  ;;  %v2498_v58 = vpop.f32.mrf.mxu0  ;;  %v2373_v39 = vadd.f32 %v3553_v50, %v4610_v40 }
 0x1e0   : > { %2770 = vst [vmem:[%s4735_s22 + $0x38] sm:$0xff] %v2738_v7  ;;  %v2736_v48 = vmax.f32 %v2704_v4, 0.0  ;;  %v2709_v1 = vadd.f32 %v4719_v11, %v2507_v36  ;;  %v2499_v0 = vadd.f32 %v2498_v58, %v2338_v29  ;;  %v2378_v36 = vadd.f32 %v3556_v53, %v4617_v56 }
 0x1e1   : > { %v4792_v28 = vpop.f32.mrf.mxu1  ;;  %v3626_v57 = vpop.f32.mrf.mxu0 }
 0x1e2   : > { %2768 = vst [vmem:[%s4735_s22 + $0x28] sm:$0xff] %v2736_v48  ;;  %v2741_v12 = vmax.f32 %v2709_v1, 0.0  ;;  %v2707_v26 = vadd.f32 %v4719_v11, %v2499_v0  ;;  %v2510_v14 = vadd.f32 %v3626_v57, %v2349_v30  ;;  %v2370_v30 = vadd.f32 %v3550_v27, %v4603_v17 }
 0x1e3   : > { %v4801_v13 = vpop.f32.mrf.mxu1  ;;  %v2501_v54 = vpop.f32.mrf.mxu0  ;;  %v2381_v1 = vadd.f32 %v3559_v16, %v4624_v3 }
 0x1e4   : > { %2773 = vst [vmem:[%s4735_s22 + $0x50] sm:$0xff] %v2741_v12  ;;  %v2739_v59 = vmax.f32 %v2707_v26, 0.0  ;;  %v2710_v52 = vadd.f32 %v4719_v11, %v2510_v14  ;;  %v2502_v33 = vadd.f32 %v2501_v54, %v2341_v21  ;;  %v3562_v12 = vadd.f32 %v4785_v38, %v4780_v42 }
 0x1e5   : > { %v3566_v34 = vpop.f32.mrf.mxu1  ;;  %v3629_v31 = vpop.f32.mrf.mxu0  ;;  %v3565_v42 = vadd.f32 %v4801_v13, %v4792_v28 }
 0x1e6   : > { %2771 = vst [vmem:[%s4735_s22 + $0x40] sm:$0xff] %v2739_v59  ;;  %v2742_v15 = vmax.f32 %v2710_v52, 0.0  ;;  %v2708_v20 = vadd.f32 %v4719_v11, %v2502_v33  ;;  %v2523_v61 = vadd.f32 %v3629_v31, %v2362_v24  ;;  %v4906_v24 = vld [vmem:[#allocation5_spill] sm:$0xff] }
 0x1e7   : > { %v3567_v5 = vpop.f32.mrf.mxu1  ;;  %v2514_v19 = vpop.f32.mrf.mxu0 }
 0x1e8   : > { %2774 = vst [vmem:[%s4735_s22 + $0x58] sm:$0xff] %v2742_v15  ;;  %v2740_v55 = vmax.f32 %v2708_v20, 0.0  ;;  %v2713_v60 = vadd.f32 %v4719_v11, %v2523_v61  ;;  %v2515_v45 = vadd.f32 %v2514_v19, %v2354_v63  ;;  %v3568_v0 = vadd.f32 %v3567_v5, %v3566_v34  ;;  %v4907_v20 = vld [vmem:[#allocation3_spill] sm:$0xff]  ;;  %v4908_v19 = vld [vmem:[#allocation6_spill] sm:$0xff] }
 0x1e9   : > { %v3569_v49 = vpop.f32.mrf.mxu1  ;;  %v3630_v6 = vpop.f32.mrf.mxu0  ;;  %v2386_v61 = vadd.f32 %v3562_v12, %v4907_v20  ;;  %v4913_v12 = vld [vmem:[#allocation8_spill] sm:$0xff] }
 0x1ea   : > { %2772 = vst [vmem:[%s4735_s22 + $0x48] sm:$0xff] %v2740_v55  ;;  %v2745_v9 = vmax.f32 %v2713_v60, 0.0  ;;  %v2711_v2 = vadd.f32 %v4719_v11, %v2515_v45  ;;  %v2526_v44 = vadd.f32 %v3630_v6, %v2365_v41  ;;  %v2394_v40 = vadd.f32 %v3568_v0, %v4906_v24 }
 0x1eb   : > { %v3570_v18 = vpop.f32.mrf.mxu1  ;;  %v2517_v62 = vpop.f32.mrf.mxu0 }
 0x1ec   : > { %2777 = vst [vmem:[%s4735_s22 + $0x70] sm:$0xff] %v2745_v9  ;;  %v2743_v7 = vmax.f32 %v2711_v2, 0.0  ;;  %v2714_v4 = vadd.f32 %v4719_v11, %v2526_v44  ;;  %v2518_v37 = vadd.f32 %v2517_v62, %v2357_v43  ;;  %v3571_v14 = vadd.f32 %v3570_v18, %v3569_v49  ;;  %v4909_v49 = vld [vmem:[#allocation4_spill] sm:$0xff]  ;;  %v4910_v18 = vld [vmem:[#allocation9_spill] sm:$0xff] }
 0x1ed   : > { %v3572_v35 = vpop.f32.mrf.mxu1  ;;  %v3633_v29 = vpop.f32.mrf.mxu0  ;;  %v2389_v6 = vadd.f32 %v3565_v42, %v4909_v49 }
 0x1ee   : > { %2775 = vst [vmem:[%s4735_s22 + $0x60] sm:$0xff] %v2743_v7  ;;  %v2746_v58 = vmax.f32 %v2714_v4, 0.0  ;;  %v2712_v51 = vadd.f32 %v4719_v11, %v2518_v37  ;;  %v2539_v32 = vadd.f32 %v3633_v29, %v2378_v36  ;;  %v2397_v41 = vadd.f32 %v3571_v14, %v4908_v19 }
 0x1ef   : > { %v3573_v25 = vpop.f32.mrf.mxu1  ;;  %v2530_v48 = vpop.f32.mrf.mxu0 }
 0x1f0   : > { %2778 = vst [vmem:[%s4735_s22 + $0x78] sm:$0xff] %v2746_v58  ;;  %v2744_v56 = vmax.f32 %v2712_v51, 0.0  ;;  %v2717_v22 = vadd.f32 %v4719_v11, %v2539_v32  ;;  %v2531_v23 = vadd.f32 %v2530_v48, %v2370_v30  ;;  %v3574_v43 = vadd.f32 %v3573_v25, %v3572_v35  ;;  %v4911_v30 = vld [vmem:[#allocation7_spill] sm:$0xff] }
 0x1f1   : > { %v3575_v57 = vpop.f32.mrf.mxu1  ;;  %v3634_v21 = vpop.f32.mrf.mxu0 }
 0x1f2   : > { %2776 = vst [vmem:[%s4735_s22 + $0x68] sm:$0xff] %v2744_v56  ;;  %v2749_v17 = vmax.f32 %v2717_v22, 0.0  ;;  %v2715_v26 = vadd.f32 %v4719_v11, %v2531_v23  ;;  %v2542_v3 = vadd.f32 %v3634_v21, %v2381_v1  ;;  %v2402_v25 = vadd.f32 %v3574_v43, %v4911_v30  ;;  %v4912_v23 = vld [vmem:[#allocation10_spill] sm:$0xff] }
 0x1f3   : > { %v3576_v8 = vpop.f32.mrf.mxu1  ;;  %v2533_v54 = vpop.f32.mrf.mxu0 }
 0x1f4   : > { %2781 = vst [vmem:[%s4735_s22 + $0x90] sm:$0xff] %v2749_v17  ;;  %v2747_v59 = vmax.f32 %v2715_v26, 0.0  ;;  %v2718_v52 = vadd.f32 %v4719_v11, %v2542_v3  ;;  %v2534_v33 = vadd.f32 %v2533_v54, %v2373_v39  ;;  %v3577_v50 = vadd.f32 %v3576_v8, %v3575_v57 }
 0x1f5   : > { %v3578_v38 = vpop.f32.mrf.mxu1  ;;  %v3637_v46 = vpop.f32.mrf.mxu0 }
 0x1f6   : > { %2779 = vst [vmem:[%s4735_s22 + $0x80] sm:$0xff] %v2747_v59  ;;  %v2750_v34 = vmax.f32 %v2718_v52, 0.0  ;;  %v2716_v31 = vadd.f32 %v4719_v11, %v2534_v33  ;;  %v2555_v15 = vadd.f32 %v3637_v46, %v2394_v40  ;;  %v2405_v17 = vadd.f32 %v3577_v50, %v4913_v12 }
 0x1f7   : > { %v3579_v63 = vpop.f32.mrf.mxu1  ;;  %v2546_v5 = vpop.f32.mrf.mxu0 }
 0x1f8   : > { %2782 = vst [vmem:[%s4735_s22 + $0x98] sm:$0xff] %v2750_v34  ;;  %v2748_v53 = vmax.f32 %v2716_v31, 0.0  ;;  %v2721_v55 = vadd.f32 %v4719_v11, %v2555_v15  ;;  %v3580_v28 = vadd.f32 %v3579_v63, %v3578_v38  ;;  %v2547_v13 = vadd.f32 %v2546_v5, %v2386_v61  ;;  %v4914_v31 = vld [vmem:[#allocation11_spill] sm:$0xff] }
 0x1f9   : > { %v3581_v60 = vpop.f32.mrf.mxu1  ;;  %v3638_v45 = vpop.f32.mrf.mxu0 }
 0x1fa   : > { %2780 = vst [vmem:[%s4735_s22 + $0x88] sm:$0xff] %v2748_v53  ;;  %v2753_v27 = vmax.f32 %v2721_v55, 0.0  ;;  %v2719_v9 = vadd.f32 %v4719_v11, %v2547_v13  ;;  %v2558_v2 = vadd.f32 %v3638_v45, %v2397_v41  ;;  %v2410_v62 = vadd.f32 %v3580_v28, %v4910_v18  ;;  %v4915_v13 = vld [vmem:[#allocation12_spill] sm:$0xff] }
 0x1fb   : > { %v3582_v44 = vpop.f32.mrf.mxu1  ;;  %v2549_v16 = vpop.f32.mrf.mxu0 }
 0x1fc   : > { %2785 = vst [vmem:[%s4735_s22 + $0xb0] sm:$0xff] %v2753_v27  ;;  %v2751_v7 = vmax.f32 %v2719_v9, 0.0  ;;  %v2722_v4 = vadd.f32 %v4719_v11, %v2558_v2  ;;  %v3583_v37 = vadd.f32 %v3582_v44, %v3581_v60  ;;  %v2550_v36 = vadd.f32 %v2549_v16, %v2389_v6 }
 0x1fd   : > { %v3584_v29 = vpop.f32.mrf.mxu1  ;;  %v3641_v35 = vpop.f32.mrf.mxu0 }
 0x1fe   : > { %2783 = vst [vmem:[%s4735_s22 + $0xa0] sm:$0xff] %v2751_v7  ;;  %v2754_v58 = vmax.f32 %v2722_v4, 0.0  ;;  %v2720_v51 = vadd.f32 %v4719_v11, %v2550_v36  ;;  %v2571_v32 = vadd.f32 %v3641_v35, %v2410_v62  ;;  %v2413_v57 = vadd.f32 %v3583_v37, %v4912_v23 }
 0x1ff   : > { %v3585_v48 = vpop.f32.mrf.mxu1  ;;  %v2562_v1 = vpop.f32.mrf.mxu0 }
 0x200   : > { %2786 = vst [vmem:[%s4735_s22 + $0xb8] sm:$0xff] %v2754_v58  ;;  %v2752_v0 = vmax.f32 %v2720_v51, 0.0  ;;  %v2725_v56 = vadd.f32 %v4719_v11, %v2571_v32  ;;  %v2563_v22 = vadd.f32 %v2562_v1, %v2402_v25  ;;  %v3586_v3 = vadd.f32 %v3585_v48, %v3584_v29 }
 0x201   : > { %v3587_v21 = vpop.f32.mrf.mxu1  ;;  %v3642_v39 = vpop.f32.mrf.mxu0 }
 0x202   : > { %2784 = vst [vmem:[%s4735_s22 + $0xa8] sm:$0xff] %v2752_v0  ;;  %v2757_v26 = vmax.f32 %v2725_v56, 0.0  ;;  %v2723_v14 = vadd.f32 %v4719_v11, %v2563_v22  ;;  %v2574_v8 = vadd.f32 %v3642_v39, %v2413_v57  ;;  %v2418_v15 = vadd.f32 %v3586_v3, %v4914_v31 }
 0x203   : > { %v3588_v54 = vpop.f32.mrf.mxu1  ;;  %v2565_v59 = vpop.f32.mrf.mxu0 }
 0x204   : > { %2789 = vst [vmem:[%s4735_s22 + $0xd0] sm:$0xff] %v2757_v26  ;;  %v2755_v52 = vmax.f32 %v2723_v14, 0.0  ;;  %v2726_v33 = vadd.f32 %v4719_v11, %v2574_v8  ;;  %v2566_v24 = vadd.f32 %v2565_v59, %v2405_v17  ;;  %v3589_v46 = vadd.f32 %v3588_v54, %v3587_v21 }
 0x205   : > { %v3590_v40 = vpop.f32.mrf.mxu1  ;;  %v3645_v42 = vpop.f32.mrf.mxu0 }
 0x206   : > { %2787 = vst [vmem:[%s4735_s22 + $0xc0] sm:$0xff] %v2755_v52  ;;  %v2758_v38 = vmax.f32 %v2726_v33, 0.0  ;;  %v2724_v34 = vadd.f32 %v4719_v11, %v2566_v24  ;;  %v2421_v60 = vadd.f32 %v3589_v46, %v4915_v13 }
 0x207   : > { %v3591_v20 = vpop.f32.mrf.mxu1  ;;  %v2578_v61 = vpop.f32.mrf.mxu0 }
 0x208   : > { %2790 = vst [vmem:[%s4735_s22 + $0xd8] sm:$0xff] %v2758_v38  ;;  %v2756_v63 = vmax.f32 %v2724_v34, 0.0  ;;  %v3592_v5 = vadd.f32 %v3591_v20, %v3590_v40  ;;  %v2579_v19 = vadd.f32 %v2578_v61, %v2418_v15 }
 0x209   : > { %v3593_v41 = vpop.f32.mrf.mxu1  ;;  %v3646_v53 = vpop.f32.mrf.mxu0 }
 0x20a   : > { %2788 = vst [vmem:[%s4735_s22 + $0xc8] sm:$0xff] %v2756_v63  ;;  %v2426_v55 = vadd.f32 %v3592_v5, %v4705_v10  ;;  %v2727_v28 = vadd.f32 %v4719_v11, %v2579_v19 }
 0x20b   : > { %v3594_v45 = vpop.f32.mrf.mxu1  ;;  %v2581_v49 = vpop.f32.mrf.mxu0 }
 0x20c   : > { %v2587_v6 = vadd.f32 %v3645_v42, %v2426_v55  ;;  %v2759_v43 = vmax.f32 %v2727_v28, 0.0  ;;  %v3595_v27 = vadd.f32 %v3594_v45, %v3593_v41  ;;  %v2582_v9 = vadd.f32 %v2581_v49, %v2421_v60 }
 0x20e   : > { %v2729_v2 = vadd.f32 %v4719_v11, %v2587_v6  ;;  %2791 = vst [vmem:[%s4735_s22 + $0xe0] sm:$0xff] %v2759_v43  ;;  %v2429_v44 = vadd.f32 %v3595_v27, %v4722_v47  ;;  %v2728_v10 = vadd.f32 %v4719_v11, %v2582_v9 }
 0x210   : > { %v2761_v16 = vmax.f32 %v2729_v2, 0.0  ;;  %v2590_v18 = vadd.f32 %v3646_v53, %v2429_v44  ;;  %v2760_v62 = vmax.f32 %v2728_v10, 0.0 }
 0x212   : > { %2793 = vst [vmem:[%s4735_s22 + $0xf0] sm:$0xff] %v2761_v16  ;;  %v2730_v7 = vadd.f32 %v4719_v11, %v2590_v18  ;;  %2792 = vst [vmem:[%s4735_s22 + $0xe8] sm:$0xff] %v2760_v62 }
 0x214   : > { %v2762_v4 = vmax.f32 %v2730_v7, 0.0 }
 0x216   : > { %2794 = vst [vmem:[%s4735_s22 + $0xf8] sm:$0xff] %v2762_v4 }
 0x217 PF: > { %s13_s14 = sadd.s32 1, %s3984_s14   ;;  %s4916_s12 = smov %s3980_s13 }
 0x218   : > { %p10_p5 = scmp.ge.s32.totalorder %s13_s14, 4   ;;  %s4917_s13 = smov %s4919_s15 }
 0x21a   :  { %12 = sbr.rel (!%p10_p5) target bundleno = 2 (0x2), region = 76 }

// kernel: _lambda_.4
= control target key start
LH: loop header
LB: loop body
LE: loop exit
PB: predicated region body
PF: predicated region fallthrough
CT: control target
= control target key end

     0   :  { %vm228_vm0 = vcmask 1046528   ;;  %vm469_vm1 = vcmask 1045504   ;;  %vm614_vm2 = vcmask 1044480   ;;  %vm823_vm3 = vcmask 1043456   ;;  %s8494_s0 = inlined_call_operand.vmem [shape: f32[20,20,128], index: 0, kind: input, shape index: {}]   ;;  %s8495_s1 = inlined_call_operand.vmem [shape: bf16[16,16,128], index: 1, kind: output, shape index: {}]  }
   0x1   :  { %v3488_v0 = vld [vmem:[%s8494_s0] sm:$0xff]  ;;  %v3493_v1 = vld [vmem:[%s8494_s0 + $0x8] sm:$0xff]  ;;  %v3498_v2 = vld [vmem:[%s8494_s0 + $0x18] sm:$0xff] }
   0x2   :  { %9213 = vst [vmem:[#allocation2_spill] sm:$0xff] %v3488_v0  ;;  %9214 = vst [vmem:[#allocation3_spill] sm:$0xff] %v3493_v1  ;;  %v3503_v3 = vld [vmem:[%s8494_s0 + $0x20] sm:$0xff]  ;;  %v3508_v4 = vld [vmem:[%s8494_s0 + $0x30] sm:$0xff]  ;;  %v3511_v5 = vmul.f32 -0.020277822, %v3488_v0 }
   0x3   :  { %9215 = vst [vmem:[#allocation4_spill] sm:$0xff] %v3498_v2  ;;  %9216 = vst [vmem:[#allocation5_spill] sm:$0xff] %v3503_v3  ;;  %v3516_v6 = vld [vmem:[%s8494_s0 + $0x38] sm:$0xff]  ;;  %v3521_v7 = vld [vmem:[%s8494_s0 + $0x48] sm:$0xff]  ;;  %v3529_v9 = vmul.f32 -0.020277822, %v3493_v1 }
   0x4   :  { %9217 = vst [vmem:[#allocation6_spill] sm:$0xff] %v3508_v4  ;;  %9218 = vst [vmem:[#allocation7_spill] sm:$0xff] %v3511_v5  ;;  %v3526_v8 = vld [vmem:[%s8494_s0 + $0x50] sm:$0xff]  ;;  %v3534_v10 = vld [vmem:[%s8494_s0 + $0x60] sm:$0xff]  ;;  %v3542_v12 = vmul.f32 -0.020277822, %v3498_v2 }
   0x5   :  { %9219 = vst [vmem:[#allocation8_spill] sm:$0xff] %v3516_v6  ;;  %9220 = vst [vmem:[#allocation9_spill] sm:$0xff] %v3521_v7  ;;  %v3539_v11 = vld [vmem:[%s8494_s0 + $0x68] sm:$0xff]  ;;  %v3545_v13 = vmul.f32 -0.020277822, %v3503_v3  ;;  %v3550_v14 = vld [vmem:[%s8494_s0 + $0x78] sm:$0xff] }
   0x6   :  { %9221 = vst [vmem:[#allocation10_spill] sm:$0xff] %v3526_v8  ;;  %9222 = vst [vmem:[#allocation11_spill] sm:$0xff] %v3529_v9  ;;  %v3555_v15 = vld [vmem:[%s8494_s0 + $0x80] sm:$0xff]  ;;  %v3560_v16 = vld [vmem:[%s8494_s0 + $0x90] sm:$0xff]  ;;  %v3563_v17 = vmul.f32 -0.020277822, %v3508_v4 }
   0x7   :  { %9223 = vst [vmem:[#allocation12_spill] sm:$0xff] %v3534_v10  ;;  %9224 = vst [vmem:[#allocation13_spill] sm:$0xff] %v3539_v11  ;;  %v3566_v18 = vmul.f32 -0.020277822, %v3516_v6  ;;  %v3571_v19 = vld [vmem:[%s8494_s0 + $0x98] sm:$0xff]  ;;  %v3576_v20 = vld [vmem:[%s8494_s0 + $0xa8] sm:$0xff] }
   0x8   :  { %9225 = vst [vmem:[#allocation14_spill] sm:$0xff] %v3542_v12  ;;  %9226 = vst [vmem:[#allocation15_spill] sm:$0xff] %v3545_v13  ;;  %v3581_v21 = vld [vmem:[%s8494_s0 + $0xb0] sm:$0xff]  ;;  %v3584_v22 = vmul.f32 -0.020277822, %v3521_v7  ;;  %v3592_v24 = vld [vmem:[%s8494_s0 + $0xc0] sm:$0xff] }
   0x9   :  { %9227 = vst [vmem:[#allocation16_spill] sm:$0xff] %v3550_v14  ;;  %9228 = vst [vmem:[#allocation17_spill] sm:$0xff] %v3555_v15  ;;  %v3587_v23 = vmul.f32 -0.020277822, %v3526_v8  ;;  %v3597_v25 = vld [vmem:[%s8494_s0 + $0xc8] sm:$0xff]  ;;  %v3602_v26 = vld [vmem:[%s8494_s0 + $0xd8] sm:$0xff] }
   0xa   :  { %9229 = vst [vmem:[#allocation18_spill] sm:$0xff] %v3560_v16  ;;  %9230 = vst [vmem:[#allocation19_spill] sm:$0xff] %v3563_v17  ;;  %v3605_v27 = vmul.f32 -0.020277822, %v3534_v10  ;;  %v3608_v28 = vmul.f32 -0.020277822, %v3539_v11 }
   0xb   :  { %9231 = vst [vmem:[#allocation20_spill] sm:$0xff] %v3566_v18  ;;  %9232 = vst [vmem:[#allocation21_spill] sm:$0xff] %v3571_v19  ;;  %v3613_v29 = vld [vmem:[%s8494_s0 + $0xe0] sm:$0xff]  ;;  %v3618_v30 = vld [vmem:[%s8494_s0 + $0xf0] sm:$0xff]  ;;  %v3626_v32 = vmul.f32 -0.020277822, %v3550_v14 }
   0xc   :  { %9233 = vst [vmem:[#allocation22_spill] sm:$0xff] %v3576_v20  ;;  %9234 = vst [vmem:[#allocation23_spill] sm:$0xff] %v3581_v21  ;;  %v3623_v31 = vld [vmem:[%s8494_s0 + $0xf8] sm:$0xff]  ;;  %v3629_v33 = vmul.f32 -0.020277822, %v3555_v15  ;;  %v3637_v35 = vld [vmem:[%s8494_s0 + $0x108] sm:$0xff] }
   0xd   :  { %9235 = vst [vmem:[#allocation24_spill] sm:$0xff] %v3584_v22  ;;  %9236 = vst [vmem:[#allocation25_spill] sm:$0xff] %v3587_v23  ;;  %v3632_v34 = vmul.f32 -0.020277822, %v3560_v16  ;;  %v3642_v36 = vld [vmem:[%s8494_s0 + $0x110] sm:$0xff]  ;;  %v3647_v37 = vld [vmem:[%s8494_s0 + $0x120] sm:$0xff] }
   0xe   :  { %9237 = vst [vmem:[#allocation26_spill] sm:$0xff] %v3592_v24  ;;  %9238 = vst [vmem:[#allocation27_spill] sm:$0xff] %v3597_v25  ;;  %v3650_v38 = vmul.f32 -0.020277822, %v3571_v19  ;;  %v3653_v39 = vmul.f32 -0.020277822, %v3576_v20 }
   0xf   :  { %9239 = vst [vmem:[#allocation28_spill] sm:$0xff] %v3602_v26  ;;  %9240 = vst [vmem:[#allocation29_spill] sm:$0xff] %v3605_v27  ;;  %v3656_v40 = vmul.f32 -0.020277822, %v3581_v21  ;;  %v3661_v41 = vld [vmem:[%s8494_s0 + $0x128] sm:$0xff]  ;;  %v3666_v42 = vld [vmem:[%s8494_s0 + $0x138] sm:$0xff] }
  0x10   :  { %9241 = vst [vmem:[#allocation30_spill] sm:$0xff] %v3608_v28  ;;  %9242 = vst [vmem:[#allocation31_spill] sm:$0xff] %v3613_v29  ;;  %v3671_v43 = vld [vmem:[%s8494_s0 + $0x140] sm:$0xff]  ;;  %v3674_v44 = vmul.f32 -0.020277822, %v3592_v24  ;;  %v3690_v48 = vld [vmem:[%s8494_s0 + $0x150] sm:$0xff] }
  0x11   :  { %9243 = vst [vmem:[#allocation32_spill] sm:$0xff] %v3618_v30  ;;  %9244 = vst [vmem:[#allocation33_spill] sm:$0xff] %v3623_v31  ;;  %v3677_v45 = vmul.f32 -0.020277822, %v3597_v25  ;;  %v3680_v46 = vmul.f32 -0.020277822, %v3602_v26 }
  0x12   :  { %9245 = vst [vmem:[#allocation34_spill] sm:$0xff] %v3626_v32  ;;  %9246 = vst [vmem:[#allocation35_spill] sm:$0xff] %v3629_v33  ;;  %v3685_v47 = vld [vmem:[%s8494_s0 + $0x10] sm:$0xf]  ;;  %v3695_v49 = vld [vmem:[%s8494_s0 + $0x158] sm:$0xff] }
  0x13   :  { %9247 = vst [vmem:[#allocation36_spill] sm:$0xff] %v3632_v34  ;;  %9248 = vst [vmem:[#allocation37_spill] sm:$0xff] %v3637_v35  ;;  %v3700_v50 = vld [vmem:[%s8494_s0 + $0x168] sm:$0xff]  ;;  %v3703_v51 = vmul.f32 -0.020277822, %v3613_v29  ;;  %v3719_v55 = vld [vmem:[%s8494_s0 + $0x170] sm:$0xff] }
  0x14   :  { %9249 = vst [vmem:[#allocation38_spill] sm:$0xff] %v3642_v36  ;;  %9250 = vst [vmem:[#allocation39_spill] sm:$0xff] %v3647_v37  ;;  %v3706_v52 = vmul.f32 -0.020277822, %v3618_v30  ;;  %v3709_v53 = vmul.f32 -0.020277822, %v3623_v31 }
  0x15   :  { %9251 = vst [vmem:[#allocation40_spill] sm:$0xff] %v3650_v38  ;;  %9252 = vst [vmem:[#allocation41_spill] sm:$0xff] %v3653_v39  ;;  %v3714_v54 = vld [vmem:[%s8494_s0 + $0x28] sm:$0xf]  ;;  %v3722_v56 = vmul.f32 -0.020277822, %v3637_v35 }
  0x16   :  { %9253 = vst [vmem:[#allocation42_spill] sm:$0xff] %v3656_v40  ;;  %9254 = vst [vmem:[#allocation43_spill] sm:$0xff] %v3661_v41  ;;  %v3725_v57 = vmul.f32 -0.020277822, %v3642_v36  ;;  %v3728_v58 = vmul.f32 -0.020277822, %v3647_v37 }
  0x17   :  { %9255 = vst [vmem:[#allocation44_spill] sm:$0xff] %v3666_v42  ;;  %9256 = vst [vmem:[#allocation45_spill] sm:$0xff] %v3671_v43  ;;  %v3733_v59 = vld [vmem:[%s8494_s0 + $0x40] sm:$0xf]  ;;  %v3736_v60 = vmul.f32 -0.020277822, %v3661_v41 }
  0x18   :  { %9257 = vst [vmem:[#allocation46_spill] sm:$0xff] %v3674_v44  ;;  %9258 = vst [vmem:[#allocation47_spill] sm:$0xff] %v3677_v45  ;;  %v3739_v61 = vmul.f32 -0.020277822, %v3666_v42  ;;  %v3742_v62 = vmul.f32 -0.020277822, %v3671_v43 }
  0x19   :  { %9259 = vst [vmem:[#allocation48_spill] sm:$0xff] %v3680_v46  ;;  %9260 = vst [vmem:[#allocation49_spill] sm:$0xff] %v3685_v47  ;;  %v3747_v63 = vld [vmem:[%s8494_s0 + $0x58] sm:$0xf]  ;;  %v3809_v46 = vmul.f32 -0.020517742, %v3521_v7 }
  0x1a   :  { %9261 = vst [vmem:[#allocation50_spill] sm:$0xff] %v3690_v48  ;;  %9262 = vst [vmem:[#allocation51_spill] sm:$0xff] %v3695_v49  ;;  %v3831_v7 = vld [vmem:[%s8494_s0 + $0xe8] sm:$0xf]  ;;  %v3837_v45 = vmul.f32 -0.020517742, %v3550_v14 }
  0x1b   :  { %9263 = vst [vmem:[#allocation52_spill] sm:$0xff] %v3700_v50  ;;  %9264 = vst [vmem:[#allocation53_spill] sm:$0xff] %v3703_v51  ;;  %v3792_v51 = vmul.f32 -0.020517742, %v3714_v54  ;;  %v3851_v44 = vmul.f32 -0.020517742, %v3560_v16 }
  0x1c   :  { %9265 = vst [vmem:[#allocation54_spill] sm:$0xff] %v3706_v52  ;;  %9266 = vst [vmem:[#allocation55_spill] sm:$0xff] %v3709_v53  ;;  %v3770_v53 = vmul.f32 -0.020517742, %v3493_v1  ;;  %v3784_v52 = vmul.f32 -0.020517742, %v3503_v3 }
  0x1d   :  { %9267 = vst [vmem:[#allocation56_spill] sm:$0xff] %v3714_v54  ;;  %9268 = vst [vmem:[#allocation57_spill] sm:$0xff] %v3719_v55  ;;  %v3795_v1 = vmul.f32 -0.020517742, %v3508_v4  ;;  %v3806_v3 = vmul.f32 -0.020517742, %v3733_v59 }
  0x1e   :  { %9269 = vst [vmem:[#allocation58_spill] sm:$0xff] %v3722_v56  ;;  %9270 = vst [vmem:[#allocation59_spill] sm:$0xff] %v3725_v57  ;;  %v3753_v57 = vmul.f32 -0.020277822, %v3695_v49  ;;  %v3756_v56 = vmul.f32 -0.020277822, %v3700_v50 }
  0x1f   :  { %9271 = vst [vmem:[#allocation60_spill] sm:$0xff] %v3728_v58  ;;  %9272 = vst [vmem:[#allocation61_spill] sm:$0xff] %v3733_v59  ;;  %v3750_v58 = vmul.f32 -0.020277822, %v3690_v48  ;;  %v3812_v54 = vmul.f32 -0.020517742, %v3526_v8 }
  0x20   :  { %9273 = vst [vmem:[#allocation62_spill] sm:$0xff] %v3736_v60  ;;  %9274 = vst [vmem:[#allocation63_spill] sm:$0xff] %v3739_v61  ;;  %v3761_v61 = vld [vmem:[%s8494_s0 + $0x70] sm:$0xf]  ;;  %v3767_v60 = vmul.f32 -0.020517742, %v3488_v0 }
  0x21   :  { %9275 = vst [vmem:[#allocation64_spill] sm:$0xff] %v3742_v62  ;;  %9276 = vst [vmem:[#allocation65_spill] sm:$0xff] %v3747_v63  ;;  %v3764_v62 = vmul.f32 -0.020277822, %v3719_v55  ;;  %v3817_v4 = vld [vmem:[%s8494_s0 + $0xd0] sm:$0xf] }
  0x22   :  { %9277 = vst [vmem:[#allocation66_spill] sm:$0xff] %v3750_v58  ;;  %9278 = vst [vmem:[#allocation67_spill] sm:$0xff] %v3753_v57  ;;  %v3775_v57 = vld [vmem:[%s8494_s0 + $0x88] sm:$0xf]  ;;  %v3781_v58 = vmul.f32 -0.020517742, %v3498_v2 }
  0x23   :  { %9279 = vst [vmem:[#allocation68_spill] sm:$0xff] %v3756_v56  ;;  %9280 = vst [vmem:[#allocation69_spill] sm:$0xff] %v3761_v61  ;;  %v3778_v56 = vmul.f32 -0.020517742, %v3685_v47  ;;  %v3798_v47 = vmul.f32 -0.020517742, %v3516_v6 }
  0x24   :  { %9281 = vst [vmem:[#allocation70_spill] sm:$0xff] %v3764_v62  ;;  %9282 = vst [vmem:[#allocation71_spill] sm:$0xff] %v3767_v60  ;;  %v3789_v62 = vld [vmem:[%s8494_s0 + $0xa0] sm:$0xf]  ;;  %v3803_v2 = vld [vmem:[%s8494_s0 + $0xb8] sm:$0xf] }
  0x25   :  { %9283 = vst [vmem:[#allocation72_spill] sm:$0xff] %v3770_v53  ;;  %9284 = vst [vmem:[#allocation73_spill] sm:$0xff] %v3775_v57  ;;  %v3820_v6 = vmul.f32 -0.020517742, %v3747_v63  ;;  %v3823_v0 = vmul.f32 -0.020517742, %v3534_v10 }
  0x26   :  { %9285 = vst [vmem:[#allocation74_spill] sm:$0xff] %v3778_v56  ;;  %9286 = vst [vmem:[#allocation75_spill] sm:$0xff] %v3781_v58  ;;  %v3826_v59 = vmul.f32 -0.020517742, %v3539_v11  ;;  %v3834_v8 = vmul.f32 -0.020517742, %v3761_v61 }
  0x27   :  { %9287 = vst [vmem:[#allocation76_spill] sm:$0xff] %v3784_v52  ;;  %9288 = vst [vmem:[#allocation77_spill] sm:$0xff] %v3789_v62  ;;  %v3840_v63 = vmul.f32 -0.020517742, %v3555_v15  ;;  %v3845_v10 = vld [vmem:[%s8494_s0 + $0x100] sm:$0xf] }
  0x28   :  { %9289 = vst [vmem:[#allocation78_spill] sm:$0xff] %v3792_v51  ;;  %9290 = vst [vmem:[#allocation79_spill] sm:$0xff] %v3795_v1  ;;  %v3848_v11 = vmul.f32 -0.020517742, %v3775_v57  ;;  %v3854_v61 = vmul.f32 -0.020517742, %v3571_v19 }
  0x29   :  { %9291 = vst [vmem:[#allocation80_spill] sm:$0xff] %v3798_v47  ;;  %9292 = vst [vmem:[#allocation81_spill] sm:$0xff] %v3803_v2  ;;  %v3859_v14 = vld [vmem:[%s8494_s0 + $0x118] sm:$0xf]  ;;  %v3862_v15 = vmul.f32 -0.020517742, %v3789_v62 }
  0x2a   :  { %9293 = vst [vmem:[#allocation82_spill] sm:$0xff] %v3806_v3  ;;  %9294 = vst [vmem:[#allocation83_spill] sm:$0xff] %v3809_v46  ;;  %v3865_v40 = vmul.f32 -0.020517742, %v3576_v20  ;;  %v3868_v57 = vmul.f32 -0.020517742, %v3581_v21 }
  0x2b   :  { %9295 = vst [vmem:[#allocation84_spill] sm:$0xff] %v3812_v54  ;;  %9296 = vst [vmem:[#allocation85_spill] sm:$0xff] %v3817_v4  ;;  %v3873_v19 = vld [vmem:[%s8494_s0 + $0x130] sm:$0xf]  ;;  %v3876_v16 = vmul.f32 -0.020517742, %v3803_v2 }
  0x2c   :  { %9297 = vst [vmem:[#allocation86_spill] sm:$0xff] %v3820_v6  ;;  %9298 = vst [vmem:[#allocation87_spill] sm:$0xff] %v3823_v0  ;;  %v3879_v39 = vmul.f32 -0.020517742, %v3592_v24  ;;  %v3882_v62 = vmul.f32 -0.020517742, %v3597_v25 }
  0x2d   :  { %9299 = vst [vmem:[#allocation88_spill] sm:$0xff] %v3826_v59  ;;  %9300 = vst [vmem:[#allocation89_spill] sm:$0xff] %v3831_v7  ;;  %v3887_v21 = vld [vmem:[%s8494_s0 + $0x148] sm:$0xf]  ;;  %v3890_v20 = vmul.f32 -0.020517742, %v3817_v4 }
  0x2e   :  { %9301 = vst [vmem:[#allocation90_spill] sm:$0xff] %v3834_v8  ;;  %9302 = vst [vmem:[#allocation91_spill] sm:$0xff] %v3837_v45  ;;  %v3893_v38 = vmul.f32 -0.020517742, %v3602_v26  ;;  %v3896_v2 = vmul.f32 -0.020517742, %v3613_v29 }
  0x2f   :  { %9303 = vst [vmem:[#allocation92_spill] sm:$0xff] %v3840_v63  ;;  %9304 = vst [vmem:[#allocation93_spill] sm:$0xff] %v3845_v10  ;;  %v3899_v24 = vmul.f32 -0.020517742, %v3831_v7  ;;  %v3902_v25 = vmul.f32 -0.020517742, %v3618_v30 }
  0x30   :  { %9305 = vst [vmem:[#allocation94_spill] sm:$0xff] %v3848_v11  ;;  %9306 = vst [vmem:[#allocation95_spill] sm:$0xff] %v3851_v44  ;;  %v3905_v34 = vmul.f32 -0.020517742, %v3623_v31  ;;  %v3910_v4 = vld [vmem:[%s8494_s0 + $0x160] sm:$0xf] }
  0x31   :  { %9307 = vst [vmem:[#allocation96_spill] sm:$0xff] %v3854_v61  ;;  %9308 = vst [vmem:[#allocation97_spill] sm:$0xff] %v3859_v14  ;;  %v3913_v26 = vmul.f32 -0.020517742, %v3845_v10  ;;  %v3916_v29 = vmul.f32 -0.020517742, %v3637_v35 }
  0x32   :  { %9309 = vst [vmem:[#allocation98_spill] sm:$0xff] %v3862_v15  ;;  %9310 = vst [vmem:[#allocation99_spill] sm:$0xff] %v3865_v40  ;;  %v3919_v7 = vmul.f32 -0.020517742, %v3642_v36  ;;  %v3924_v30 = vld [vmem:[%s8494_s0 + $0x178] sm:$0xf] }
  0x33   :  { %9311 = vst [vmem:[#allocation100_spill] sm:$0xff] %v3868_v57  ;;  %9312 = vst [vmem:[#allocation101_spill] sm:$0xff] %v3873_v19  ;;  %v3927_v31 = vmul.f32 -0.020517742, %v3859_v14  ;;  %v3930_v33 = vmul.f32 -0.020517742, %v3647_v37 }
  0x34   :  { %9313 = vst [vmem:[#allocation102_spill] sm:$0xff] %v3876_v16  ;;  %9314 = vst [vmem:[#allocation103_spill] sm:$0xff] %v3879_v39  ;;  %v3933_v10 = vmul.f32 -0.020517742, %v3661_v41  ;;  %v3936_v35 = vmul.f32 -0.020517742, %v3873_v19 }
  0x35   :  { %9315 = vst [vmem:[#allocation104_spill] sm:$0xff] %v3882_v62  ;;  %9316 = vst [vmem:[#allocation105_spill] sm:$0xff] %v3887_v21  ;;  %v3939_v36 = vmul.f32 -0.020517742, %v3666_v42  ;;  %v3942_v32 = vmul.f32 -0.020517742, %v3671_v43 }
  0x36   :  { %9317 = vst [vmem:[#allocation106_spill] sm:$0xff] %v3890_v20  ;;  %9318 = vst [vmem:[#allocation107_spill] sm:$0xff] %v3893_v38  ;;  %v3945_v28 = vmul.f32 -0.020517742, %v3887_v21  ;;  %v229_v14 = vrot.slane %v3767_v60, 1  ;;  %v230_v37 = vrot.slane %v3770_v53, 1 }
  0x37   :  { %9319 = vst [vmem:[#allocation108_spill] sm:$0xff] %v3896_v2  ;;  %9320 = vst [vmem:[#allocation109_spill] sm:$0xff] %v3899_v24  ;;  %v232_v27 = vrot.slane %v3778_v56, 1  ;;  %v3951_v41 = vmul.f32 -0.020517742, %v3690_v48  ;;  %v234_v19 = vrot.slane %v3781_v58, 1 }
  0x38   :  { %9321 = vst [vmem:[#allocation110_spill] sm:$0xff] %v3902_v25  ;;  %9322 = vst [vmem:[#allocation111_spill] sm:$0xff] %v3905_v34  ;;  %v235_v42 = vrot.slane %v3784_v52, 1  ;;  %v237_v23 = vrot.slane %v3792_v51, 1  ;;  %v3957_v43 = vmul.f32 -0.020517742, %v3695_v49  ;;  %v3973_v52 = vsel %vm228_vm0, %v229_v14, %v230_v37 }
  0x39   :  { %9323 = vst [vmem:[#allocation112_spill] sm:$0xff] %v3910_v4  ;;  %9324 = vst [vmem:[#allocation113_spill] sm:$0xff] %v3913_v26  ;;  %v3960_v21 = vmul.f32 -0.020517742, %v3910_v4  ;;  %v3963_v60 = vmul.f32 -0.020517742, %v3700_v50  ;;  %v3976_v51 = vsel %vm228_vm0, %v230_v37, %v232_v27 }
  0x3a   :  { %9325 = vst [vmem:[#allocation114_spill] sm:$0xff] %v3916_v29  ;;  %9326 = vst [vmem:[#allocation115_spill] sm:$0xff] %v3919_v7  ;;  %v3966_v56 = vmul.f32 -0.020517742, %v3719_v55  ;;  %v3969_v53 = vmul.f32 -0.020517742, %v3924_v30  ;;  %v3981_v50 = vsel %vm228_vm0, %v234_v19, %v235_v42  ;;  %v3984_v55 = vsel %vm228_vm0, %v235_v42, %v237_v23 }
  0x3b   :  { %9327 = vst [vmem:[#allocation116_spill] sm:$0xff] %v3924_v30  ;;  %9328 = vst [vmem:[#allocation117_spill] sm:$0xff] %v3927_v31  ;;  %v239_v58 = vrot.slane %v3795_v1, 1  ;;  %v240_v4 = vrot.slane %v3798_v47, 1  ;;  %v242_v49 = vrot.slane %v3806_v3, 1  ;;  %v244_v30 = vrot.slane %v3809_v46, 1 }
  0x3c   :  { %9329 = vst [vmem:[#allocation118_spill] sm:$0xff] %v3930_v33  ;;  %9330 = vst [vmem:[#allocation119_spill] sm:$0xff] %v3933_v10  ;;  %v245_v1 = vrot.slane %v3812_v54, 1  ;;  %v247_v14 = vrot.slane %v3820_v6, 1  ;;  %v249_v48 = vrot.slane %v3823_v0, 1  ;;  %v250_v27 = vrot.slane %v3826_v59, 1 }
  0x3d   :  { %9331 = vst [vmem:[#allocation120_spill] sm:$0xff] %v3936_v35  ;;  %9332 = vst [vmem:[#allocation121_spill] sm:$0xff] %v3939_v36  ;;  %v252_v37 = vrot.slane %v3834_v8, 1  ;;  %v254_v3 = vrot.slane %v3837_v45, 1  ;;  %v255_v19 = vrot.slane %v3840_v63, 1  ;;  %v257_v47 = vrot.slane %v3848_v11, 1 }
  0x3e   :  { %9333 = vst [vmem:[#allocation122_spill] sm:$0xff] %v3942_v32  ;;  %9334 = vst [vmem:[#allocation123_spill] sm:$0xff] %v3945_v28  ;;  %v259_v23 = vrot.slane %v3851_v44, 1  ;;  %v260_v42 = vrot.slane %v3854_v61, 1  ;;  %v262_v54 = vrot.slane %v3862_v15, 1  ;;  %v264_v6 = vrot.slane %v3865_v40, 1 }
  0x3f   :  { %9335 = vst [vmem:[#allocation124_spill] sm:$0xff] %v3951_v41  ;;  %9336 = vst [vmem:[#allocation125_spill] sm:$0xff] %v3957_v43  ;;  %v265_v0 = vrot.slane %v3868_v57, 1  ;;  %v241_v59 = vsel %vm228_vm0, %v239_v58, %v240_v4  ;;  %v243_v8 = vsel %vm228_vm0, %v240_v4, %v242_v49  ;;  %v246_v45 = vsel %vm228_vm0, %v244_v30, %v245_v1  ;;  %v9443_v46 = vld [vmem:[#allocation81_spill] sm:$0xff] }
  0x40   :  { %9337 = vst [vmem:[#allocation126_spill] sm:$0xff] %v3960_v21  ;;  %9338 = vst [vmem:[#allocation127_spill] sm:$0xff] %v3963_v60  ;;  %v267_v63 = vrot.slane %v3876_v16, 1  ;;  %v248_v11 = vsel %vm228_vm0, %v245_v1, %v247_v14  ;;  %v269_v44 = vrot.slane %v3879_v39, 1  ;;  %v270_v61 = vrot.slane %v3882_v62, 1  ;;  %v9435_v62 = vld [vmem:[#allocation77_spill] sm:$0xff] }
  0x41   :  { %9339 = vst [vmem:[#allocation128_spill] sm:$0xff] %v3966_v56  ;;  %9340 = vst [vmem:[#allocation129_spill] sm:$0xff] %v3969_v53  ;;  %v272_v15 = vrot.slane %v3890_v20, 1  ;;  %v4009_v40 = vsel %vm228_vm0, %v249_v48, %v250_v27  ;;  %v4012_v57 = vsel %vm228_vm0, %v250_v27, %v252_v37  ;;  %v4015_v4 = vsel %vm228_vm0, %v254_v3, %v255_v19  ;;  %v9433_v20 = vld [vmem:[#allocation21_spill] sm:$0xff] }
  0x42   :  { %9341 = vst [vmem:[#allocation130_spill] sm:$0xff] %v4009_v40  ;;  %9342 = vst [vmem:[#allocation131_spill] sm:$0xff] %v4012_v57  ;;  %v4018_v30 = vsel %vm228_vm0, %v255_v19, %v257_v47  ;;  %v4021_v1 = vsel %vm228_vm0, %v259_v23, %v260_v42  ;;  %v4024_v49 = vsel %vm228_vm0, %v260_v42, %v262_v54  ;;  %v274_v48 = vrot.slane %v3893_v38, 1 }
  0x43   :  { %9343 = vst [vmem:[#allocation132_spill] sm:$0xff] %v4015_v4  ;;  %9344 = vst [vmem:[#allocation133_spill] sm:$0xff] %v4018_v30  ;;  %v4027_v58 = vsel %vm228_vm0, %v264_v6, %v265_v0  ;;  %v4031_v14 = vsel %vm228_vm0, %v265_v0, %v267_v63  ;;  %v275_v3 = vrot.slane %v3896_v2, 1  ;;  %v277_v27 = vrot.slane %v3899_v24, 1  ;;  %v9427_v2 = vld [vmem:[#allocation73_spill] sm:$0xff] }
  0x44   :  { %9345 = vst [vmem:[#allocation134_spill] sm:$0xff] %v4021_v1  ;;  %9346 = vst [vmem:[#allocation135_spill] sm:$0xff] %v4024_v49  ;;  %v279_v47 = vrot.slane %v3902_v25, 1  ;;  %v4037_v37 = vsel %vm228_vm0, %v269_v44, %v270_v61  ;;  %v4040_v54 = vsel %vm228_vm0, %v270_v61, %v272_v15  ;;  %v280_v6 = vrot.slane %v3905_v34, 1  ;;  %v9425_v34 = vld [vmem:[#allocation17_spill] sm:$0xff] }
  0x45   :  { %9347 = vst [vmem:[#allocation136_spill] sm:$0xff] %v4027_v58  ;;  %9348 = vst [vmem:[#allocation137_spill] sm:$0xff] %v4031_v14  ;;  %v282_v19 = vrot.slane %v3913_v26, 1  ;;  %v284_v23 = vrot.slane %v3916_v29, 1  ;;  %v285_v0 = vrot.slane %v3919_v7, 1  ;;  %v287_v63 = vrot.slane %v3927_v31, 1 }
  0x46   :  { %9349 = vst [vmem:[#allocation138_spill] sm:$0xff] %v4037_v37  ;;  %9350 = vst [vmem:[#allocation139_spill] sm:$0xff] %v4040_v54  ;;  %v289_v42 = vrot.slane %v3930_v33, 1  ;;  %v290_v25 = vrot.slane %v3933_v10, 1  ;;  %v292_v44 = vrot.slane %v3936_v35, 1  ;;  %v294_v24 = vrot.slane %v3939_v36, 1 }
  0x47   :  { %v295_v15 = vrot.slane %v3942_v32, 1  ;;  %v297_v61 = vrot.slane %v3945_v28, 1  ;;  %v299_v26 = vrot.slane %v3951_v41, 1  ;;  %v300_v29 = vrot.slane %v3957_v43, 1  ;;  %v9419_v41 = vld [vmem:[#allocation69_spill] sm:$0xff] }
  0x48   :  { %v302_v7 = vrot.slane %v3960_v21, 1  ;;  %v4057_v31 = vsel %vm228_vm0, %v274_v48, %v275_v3  ;;  %v4060_v33 = vsel %vm228_vm0, %v275_v3, %v277_v27  ;;  %v304_v35 = vrot.slane %v3963_v60, 1  ;;  %v9417_v60 = vld [vmem:[#allocation13_spill] sm:$0xff] }
  0x49   :  { %9351 = vst [vmem:[#allocation140_spill] sm:$0xff] %v4057_v31  ;;  %9352 = vst [vmem:[#allocation141_spill] sm:$0xff] %v4060_v33  ;;  %v305_v36 = vrot.slane %v3966_v56, 1  ;;  %v4065_v32 = vsel %vm228_vm0, %v279_v47, %v280_v6  ;;  %v4068_v28 = vsel %vm228_vm0, %v280_v6, %v282_v19  ;;  %v4071_v43 = vsel %vm228_vm0, %v284_v23, %v285_v0 }
  0x4a   :  { %9353 = vst [vmem:[#allocation142_spill] sm:$0xff] %v4065_v32  ;;  %9354 = vst [vmem:[#allocation143_spill] sm:$0xff] %v4068_v28  ;;  %v307_v21 = vrot.slane %v3969_v53, 1  ;;  %v4075_v48 = vsel %vm228_vm0, %v285_v0, %v287_v63  ;;  %v4078_v3 = vsel %vm228_vm0, %v289_v42, %v290_v25  ;;  %v4081_v27 = vsel %vm228_vm0, %v290_v25, %v292_v44  ;;  %v9411_v53 = vld [vmem:[#allocation65_spill] sm:$0xff] }
  0x4b   :  { %9355 = vst [vmem:[#allocation144_spill] sm:$0xff] %v4071_v43  ;;  %9356 = vst [vmem:[#allocation145_spill] sm:$0xff] %v4075_v48  ;;  %v4084_v47 = vsel %vm228_vm0, %v294_v24, %v295_v15  ;;  %v4087_v6 = vsel %vm228_vm0, %v295_v15, %v297_v61  ;;  %v4090_v19 = vsel %vm228_vm0, %v299_v26, %v300_v29  ;;  %v9377_v61 = vld [vmem:[#allocation40_spill] sm:$0xff]  ;;  %v4219_v56 = vmul.f32 -0.016389329, %v9411_v53 }
  0x4c   :  { %9357 = vst [vmem:[#allocation146_spill] sm:$0xff] %v4078_v3  ;;  %9358 = vst [vmem:[#allocation147_spill] sm:$0xff] %v4081_v27  ;;  %v4093_v23 = vsel %vm228_vm0, %v300_v29, %v302_v7  ;;  %v4097_v0 = vadd.f32 %v3973_v52, %v3511_v5  ;;  %v4100_v63 = vsel %vm228_vm0, %v304_v35, %v305_v36  ;;  %v9365_v52 = vld [vmem:[#allocation25_spill] sm:$0xff]  ;;  %v4232_v10 = vmul.f32 -0.016389329, %v9419_v41 }
  0x4d   :  { %9359 = vst [vmem:[#allocation148_spill] sm:$0xff] %v4084_v47  ;;  %9360 = vst [vmem:[#allocation149_spill] sm:$0xff] %v4087_v6  ;;  %v4104_v24 = vadd.f32 %v3976_v51, %v3529_v9  ;;  %v4108_v25 = vadd.f32 %v3981_v50, %v3542_v12  ;;  %v4112_v26 = vadd.f32 %v3984_v55, %v3545_v13  ;;  %v9367_v50 = vld [vmem:[#allocation29_spill] sm:$0xff]  ;;  %v9369_v55 = vld [vmem:[#allocation30_spill] sm:$0xff]  ;;  %v4245_v38 = vmul.f32 -0.016389329, %v9427_v2 }
  0x4e   :  { %9361 = vst [vmem:[#allocation150_spill] sm:$0xff] %v4090_v19  ;;  %9362 = vst [vmem:[#allocation151_spill] sm:$0xff] %v4093_v23  ;;  %v4115_v7 = vsel %vm228_vm0, %v305_v36, %v307_v21  ;;  %v4118_v29 = vadd.f32 %v241_v59, %v3563_v17  ;;  %v4121_v35 = vadd.f32 %v243_v8, %v3566_v18  ;;  %v9371_v36 = vld [vmem:[#allocation34_spill] sm:$0xff]  ;;  %v9373_v8 = vld [vmem:[#allocation35_spill] sm:$0xff]  ;;  %v4258_v39 = vmul.f32 -0.016389329, %v9435_v62 }
  0x4f   :  { %9363 = vst [vmem:[#allocation152_spill] sm:$0xff] %v4100_v63  ;;  %9364 = vst [vmem:[#allocation153_spill] sm:$0xff] %v4115_v7  ;;  %v4124_v51 = vadd.f32 %v246_v45, %v3584_v22  ;;  %v4127_v42 = vadd.f32 %v248_v11, %v9365_v52  ;;  %v4131_v44 = vadd.f32 %v4009_v40, %v9367_v50  ;;  %v9375_v45 = vld [vmem:[#allocation36_spill] sm:$0xff]  ;;  %v9379_v50 = vld [vmem:[#allocation41_spill] sm:$0xff] }
  0x50   :  { %v4135_v21 = vadd.f32 %v4012_v57, %v9369_v55  ;;  %v4139_v59 = vadd.f32 %v4015_v4, %v9371_v36  ;;  %v4143_v15 = vadd.f32 %v4018_v30, %v9373_v8  ;;  %v4147_v11 = vadd.f32 %v4021_v1, %v9375_v45  ;;  %v9381_v55 = vld [vmem:[#allocation42_spill] sm:$0xff]  ;;  %v9385_v8 = vld [vmem:[#allocation47_spill] sm:$0xff]  ;;  %v9392_v22 = vld [vmem:[#allocation4_spill] sm:$0xff]  ;;  %9412 = vst [vmem:[#allocation166_spill] sm:$0xff] %v4219_v56 }
  0x51   :  { %9366 = vst [vmem:[#allocation154_spill] sm:$0xff] %v4127_v42  ;;  %9368 = vst [vmem:[#allocation155_spill] sm:$0xff] %v4131_v44  ;;  %v4151_v40 = vadd.f32 %v4024_v49, %v9377_v61  ;;  %v4155_v57 = vadd.f32 %v4027_v58, %v9379_v50  ;;  %v4159_v4 = vadd.f32 %v4031_v14, %v9381_v55  ;;  %v9383_v36 = vld [vmem:[#allocation46_spill] sm:$0xff]  ;;  %v9388_v49 = vld [vmem:[#allocation48_spill] sm:$0xff] }
  0x52   :  { %9370 = vst [vmem:[#allocation156_spill] sm:$0xff] %v4135_v21  ;;  %9372 = vst [vmem:[#allocation157_spill] sm:$0xff] %v4139_v59  ;;  %v4163_v30 = vadd.f32 %v4037_v37, %v9383_v36  ;;  %v4167_v1 = vadd.f32 %v4040_v54, %v9385_v8  ;;  %v9387_v45 = vld [vmem:[#allocation2_spill] sm:$0xff]  ;;  %v4174_v61 = vadd.f32 %v4057_v31, %v9388_v49  ;;  %v9390_v58 = vld [vmem:[#allocation3_spill] sm:$0xff]  ;;  %v4183_v37 = vmul.f32 -0.016389329, %v9392_v22 }
  0x53   :  { %9374 = vst [vmem:[#allocation158_spill] sm:$0xff] %v4143_v15  ;;  %9376 = vst [vmem:[#allocation159_spill] sm:$0xff] %v4147_v11  ;;  %v4170_v52 = vmul.f32 -0.016389329, %v9387_v45  ;;  %v4177_v50 = vmul.f32 -0.016389329, %v9390_v58 }
  0x54   :  { %9378 = vst [vmem:[#allocation160_spill] sm:$0xff] %v4151_v40  ;;  %9380 = vst [vmem:[#allocation161_spill] sm:$0xff] %v4155_v57  ;;  %v9391_v14 = vld [vmem:[#allocation49_spill] sm:$0xff]  ;;  %v9396_v18 = vld [vmem:[#allocation56_spill] sm:$0xff] }
  0x55   :  { %9382 = vst [vmem:[#allocation162_spill] sm:$0xff] %v4159_v4  ;;  %9384 = vst [vmem:[#allocation163_spill] sm:$0xff] %v4163_v30  ;;  %v4180_v55 = vmul.f32 -0.016389329, %v9391_v14  ;;  %v9393_v36 = vld [vmem:[#allocation53_spill] sm:$0xff]  ;;  %v9397_v31 = vld [vmem:[#allocation6_spill] sm:$0xff] }
  0x56   :  { %9386 = vst [vmem:[#allocation164_spill] sm:$0xff] %v4167_v1  ;;  %9389 = vst [vmem:[#allocation2_spill] sm:$0xff] %v4174_v61  ;;  %v4187_v54 = vadd.f32 %v4060_v33, %v9393_v36  ;;  %v9395_v8 = vld [vmem:[#allocation5_spill] sm:$0xff]  ;;  %v4193_v17 = vmul.f32 -0.016389329, %v9396_v18  ;;  %v9399_v58 = vld [vmem:[#allocation54_spill] sm:$0xff] }
  0x57   :  { %v4190_v45 = vmul.f32 -0.016389329, %v9395_v8  ;;  %v4196_v49 = vmul.f32 -0.016389329, %v9397_v31  ;;  %v4200_v13 = vadd.f32 %v4065_v32, %v9399_v58  ;;  %v9401_v12 = vld [vmem:[#allocation8_spill] sm:$0xff]  ;;  %v9403_v9 = vld [vmem:[#allocation61_spill] sm:$0xff] }
  0x58   :  { %9394 = vst [vmem:[#allocation3_spill] sm:$0xff] %v4187_v54  ;;  %v4203_v22 = vmul.f32 -0.016389329, %v9401_v12  ;;  %v4206_v5 = vmul.f32 -0.016389329, %v9403_v9  ;;  %v9405_v33 = vld [vmem:[#allocation9_spill] sm:$0xff] }
  0x59   :  { %9398 = vst [vmem:[#allocation4_spill] sm:$0xff] %v4196_v49  ;;  %9400 = vst [vmem:[#allocation5_spill] sm:$0xff] %v4200_v13  ;;  %v4209_v36 = vmul.f32 -0.016389329, %v9405_v33  ;;  %v9407_v8 = vld [vmem:[#allocation55_spill] sm:$0xff]  ;;  %v9409_v14 = vld [vmem:[#allocation10_spill] sm:$0xff] }
  0x5a   :  { %9402 = vst [vmem:[#allocation6_spill] sm:$0xff] %v4203_v22  ;;  %9404 = vst [vmem:[#allocation8_spill] sm:$0xff] %v4206_v5  ;;  %v4213_v18 = vadd.f32 %v4068_v28, %v9407_v8  ;;  %v4216_v31 = vmul.f32 -0.016389329, %v9409_v14  ;;  %v9413_v32 = vld [vmem:[#allocation12_spill] sm:$0xff]  ;;  %v9415_v12 = vld [vmem:[#allocation58_spill] sm:$0xff] }
  0x5b   :  { %9406 = vst [vmem:[#allocation9_spill] sm:$0xff] %v4209_v36  ;;  %v4222_v58 = vmul.f32 -0.016389329, %v9413_v32  ;;  %v4226_v9 = vadd.f32 %v4071_v43, %v9415_v12  ;;  %v4229_v33 = vmul.f32 -0.016389329, %v9417_v60  ;;  %9420 = vst [vmem:[#allocation168_spill] sm:$0xff] %v4232_v10 }
  0x5c   :  { %9408 = vst [vmem:[#allocation165_spill] sm:$0xff] %v4213_v18  ;;  %9410 = vst [vmem:[#allocation10_spill] sm:$0xff] %v4216_v31  ;;  %v9421_v28 = vld [vmem:[#allocation16_spill] sm:$0xff]  ;;  %v9423_v14 = vld [vmem:[#allocation59_spill] sm:$0xff]  ;;  %v4242_v32 = vmul.f32 -0.016389329, %v9425_v34 }
  0x5d   :  { %9414 = vst [vmem:[#allocation12_spill] sm:$0xff] %v4222_v58  ;;  %9416 = vst [vmem:[#allocation167_spill] sm:$0xff] %v4226_v9  ;;  %v4235_v8 = vmul.f32 -0.016389329, %v9421_v28  ;;  %v4239_v53 = vadd.f32 %v4075_v48, %v9423_v14  ;;  %v9429_v43 = vld [vmem:[#allocation18_spill] sm:$0xff]  ;;  %v9431_v60 = vld [vmem:[#allocation60_spill] sm:$0xff] }
  0x5e   :  { %9418 = vst [vmem:[#allocation13_spill] sm:$0xff] %v4229_v33  ;;  %9426 = vst [vmem:[#allocation17_spill] sm:$0xff] %v4242_v32  ;;  %v4248_v12 = vmul.f32 -0.016389329, %v9429_v43  ;;  %v4252_v41 = vadd.f32 %v4078_v3, %v9431_v60  ;;  %v4255_v28 = vmul.f32 -0.016389329, %v9433_v20 }
  0x5f   :  { %9422 = vst [vmem:[#allocation16_spill] sm:$0xff] %v4235_v8  ;;  %9424 = vst [vmem:[#allocation169_spill] sm:$0xff] %v4239_v53  ;;  %v9437_v48 = vld [vmem:[#allocation22_spill] sm:$0xff]  ;;  %v9441_v43 = vld [vmem:[#allocation23_spill] sm:$0xff]  ;;  %v4271_v3 = vmul.f32 -0.016389329, %v9443_v46 }
  0x60   :  { %9428 = vst [vmem:[#allocation170_spill] sm:$0xff] %v4245_v38  ;;  %9430 = vst [vmem:[#allocation18_spill] sm:$0xff] %v4248_v12  ;;  %v4261_v14 = vmul.f32 -0.016389329, %v9437_v48  ;;  %v9439_v34 = vld [vmem:[#allocation62_spill] sm:$0xff]  ;;  %v9449_v48 = vld [vmem:[#allocation27_spill] sm:$0xff] }
  0x61   :  { %9432 = vst [vmem:[#allocation171_spill] sm:$0xff] %v4252_v41  ;;  %9434 = vst [vmem:[#allocation21_spill] sm:$0xff] %v4255_v28  ;;  %v4265_v2 = vadd.f32 %v4081_v27, %v9439_v34  ;;  %v4268_v16 = vmul.f32 -0.016389329, %v9441_v43  ;;  %v9445_v60 = vld [vmem:[#allocation26_spill] sm:$0xff]  ;;  %v9447_v41 = vld [vmem:[#allocation63_spill] sm:$0xff] }
  0x62   :  { %9436 = vst [vmem:[#allocation172_spill] sm:$0xff] %v4258_v39  ;;  %9438 = vst [vmem:[#allocation22_spill] sm:$0xff] %v4261_v14  ;;  %v4274_v20 = vmul.f32 -0.016389329, %v9445_v60  ;;  %v4278_v62 = vadd.f32 %v4084_v47, %v9447_v41  ;;  %v4281_v53 = vmul.f32 -0.016389329, %v9449_v48 }
  0x63   :  { %9440 = vst [vmem:[#allocation173_spill] sm:$0xff] %v4265_v2  ;;  %9442 = vst [vmem:[#allocation23_spill] sm:$0xff] %v4268_v16  ;;  %v9451_v9 = vld [vmem:[#allocation85_spill] sm:$0xff]  ;;  %v9453_v27 = vld [vmem:[#allocation28_spill] sm:$0xff]  ;;  %v473_v11 = vrot.slane %v4180_v55, 2 }
  0x64   :  { %9444 = vst [vmem:[#allocation174_spill] sm:$0xff] %v4271_v3  ;;  %9446 = vst [vmem:[#allocation26_spill] sm:$0xff] %v4274_v20  ;;  %v4284_v18 = vmul.f32 -0.016389329, %v9451_v9  ;;  %v4287_v34 = vmul.f32 -0.016389329, %v9453_v27 }
  0x65   :  { %9448 = vst [vmem:[#allocation175_spill] sm:$0xff] %v4278_v62  ;;  %9450 = vst [vmem:[#allocation27_spill] sm:$0xff] %v4281_v53  ;;  %v9455_v43 = vld [vmem:[#allocation64_spill] sm:$0xff]  ;;  %v9457_v2 = vld [vmem:[#allocation31_spill] sm:$0xff] }
  0x66   :  { %9452 = vst [vmem:[#allocation176_spill] sm:$0xff] %v4284_v18  ;;  %9454 = vst [vmem:[#allocation28_spill] sm:$0xff] %v4287_v34  ;;  %v4291_v46 = vadd.f32 %v4087_v6, %v9455_v43  ;;  %v4294_v60 = vmul.f32 -0.016389329, %v9457_v2  ;;  %v9459_v13 = vld [vmem:[#allocation89_spill] sm:$0xff]  ;;  %v9461_v47 = vld [vmem:[#allocation32_spill] sm:$0xff] }
  0x67   :  { %v4297_v54 = vmul.f32 -0.016389329, %v9459_v13  ;;  %v4300_v41 = vmul.f32 -0.016389329, %v9461_v47  ;;  %v9463_v48 = vld [vmem:[#allocation66_spill] sm:$0xff]  ;;  %v9465_v62 = vld [vmem:[#allocation33_spill] sm:$0xff] }
  0x68   :  { %9456 = vst [vmem:[#allocation177_spill] sm:$0xff] %v4291_v46  ;;  %9458 = vst [vmem:[#allocation31_spill] sm:$0xff] %v4294_v60  ;;  %v4304_v9 = vadd.f32 %v4090_v19, %v9463_v48  ;;  %v4307_v27 = vmul.f32 -0.016389329, %v9465_v62  ;;  %v9467_v61 = vld [vmem:[#allocation93_spill] sm:$0xff]  ;;  %v9471_v2 = vld [vmem:[#allocation67_spill] sm:$0xff] }
  0x69   :  { %9460 = vst [vmem:[#allocation178_spill] sm:$0xff] %v4297_v54  ;;  %9462 = vst [vmem:[#allocation32_spill] sm:$0xff] %v4300_v41  ;;  %v4310_v1 = vmul.f32 -0.016389329, %v9467_v61  ;;  %v9469_v6 = vld [vmem:[#allocation37_spill] sm:$0xff]  ;;  %v4317_v13 = vadd.f32 %v4093_v23, %v9471_v2  ;;  %v9473_v46 = vld [vmem:[#allocation38_spill] sm:$0xff] }
  0x6a   :  { %9464 = vst [vmem:[#allocation179_spill] sm:$0xff] %v4304_v9  ;;  %9466 = vst [vmem:[#allocation33_spill] sm:$0xff] %v4307_v27  ;;  %v4313_v43 = vmul.f32 -0.016389329, %v9469_v6  ;;  %v4320_v47 = vmul.f32 -0.016389329, %v9473_v46 }
  0x6b   :  { %9468 = vst [vmem:[#allocation180_spill] sm:$0xff] %v4310_v1  ;;  %9472 = vst [vmem:[#allocation181_spill] sm:$0xff] %v4317_v13  ;;  %v9475_v30 = vld [vmem:[#allocation97_spill] sm:$0xff]  ;;  %v9477_v19 = vld [vmem:[#allocation39_spill] sm:$0xff] }
  0x6c   :  { %9470 = vst [vmem:[#allocation37_spill] sm:$0xff] %v4313_v43  ;;  %9474 = vst [vmem:[#allocation38_spill] sm:$0xff] %v4320_v47  ;;  %v4323_v4 = vmul.f32 -0.016389329, %v9475_v30  ;;  %v4326_v48 = vmul.f32 -0.016389329, %v9477_v19 }
  0x6d   :  { %v9479_v62 = vld [vmem:[#allocation68_spill] sm:$0xff]  ;;  %v9481_v9 = vld [vmem:[#allocation43_spill] sm:$0xff]  ;;  %v9483_v57 = vld [vmem:[#allocation101_spill] sm:$0xff]  ;;  %v470_v30 = vrot.slane %v4170_v52, 2  ;;  %v471_v19 = vrot.slane %v4177_v50, 2 }
  0x6e   :  { %9476 = vst [vmem:[#allocation182_spill] sm:$0xff] %v4323_v4  ;;  %9478 = vst [vmem:[#allocation39_spill] sm:$0xff] %v4326_v48  ;;  %v4330_v61 = vadd.f32 %v4100_v63, %v9479_v62  ;;  %v4333_v6 = vmul.f32 -0.016389329, %v9481_v9  ;;  %v4336_v40 = vmul.f32 -0.016389329, %v9483_v57 }
  0x6f   :  { %v9485_v23 = vld [vmem:[#allocation44_spill] sm:$0xff]  ;;  %v9487_v46 = vld [vmem:[#allocation45_spill] sm:$0xff]  ;;  %v9491_v9 = vld [vmem:[#allocation50_spill] sm:$0xff]  ;;  %v475_v57 = vrot.slane %v4183_v37, 2 }
  0x70   :  { %9480 = vst [vmem:[#allocation183_spill] sm:$0xff] %v4330_v61  ;;  %9482 = vst [vmem:[#allocation43_spill] sm:$0xff] %v4333_v6  ;;  %v4339_v2 = vmul.f32 -0.016389329, %v9485_v23  ;;  %v4342_v13 = vmul.f32 -0.016389329, %v9487_v46 }
  0x71   :  { %9484 = vst [vmem:[#allocation184_spill] sm:$0xff] %v4336_v40  ;;  %v9489_v63 = vld [vmem:[#allocation105_spill] sm:$0xff]  ;;  %v4351_v61 = vmul.f32 -0.016389329, %v9491_v9  ;;  %v476_v23 = vrot.slane %v4190_v45, 2  ;;  %v9493_v15 = vld [vmem:[#allocation70_spill] sm:$0xff] }
  0x72   :  { %9486 = vst [vmem:[#allocation44_spill] sm:$0xff] %v4339_v2  ;;  %9488 = vst [vmem:[#allocation45_spill] sm:$0xff] %v4342_v13  ;;  %v4348_v62 = vmul.f32 -0.016389329, %v9489_v63  ;;  %v4357_v46 = vadd.f32 %v4115_v7, %v9493_v15  ;;  %v9495_v59 = vld [vmem:[#allocation51_spill] sm:$0xff]  ;;  %v9497_v50 = vld [vmem:[#allocation112_spill] sm:$0xff]  ;;  %v4377_v15 = vsel %vm469_vm1, %v470_v30, %v471_v19 }
  0x73   :  { %9492 = vst [vmem:[#allocation50_spill] sm:$0xff] %v4351_v61  ;;  %v4360_v52 = vmul.f32 -0.016389329, %v9495_v59  ;;  %v4363_v21 = vmul.f32 -0.016389329, %v9497_v50  ;;  %v9499_v55 = vld [vmem:[#allocation52_spill] sm:$0xff]  ;;  %v4380_v59 = vsel %vm469_vm1, %v471_v19, %v473_v11 }
  0x74   :  { %9490 = vst [vmem:[#allocation185_spill] sm:$0xff] %v4348_v62  ;;  %9494 = vst [vmem:[#allocation186_spill] sm:$0xff] %v4357_v46  ;;  %v4366_v63 = vmul.f32 -0.016389329, %v9499_v55  ;;  %v9501_v44 = vld [vmem:[#allocation57_spill] sm:$0xff]  ;;  %v9503_v42 = vld [vmem:[#allocation116_spill] sm:$0xff] }
  0x75   :  { %9496 = vst [vmem:[#allocation51_spill] sm:$0xff] %v4360_v52  ;;  %9498 = vst [vmem:[#allocation187_spill] sm:$0xff] %v4363_v21  ;;  %v4369_v9 = vmul.f32 -0.016389329, %v9501_v44  ;;  %v4372_v37 = vmul.f32 -0.016389329, %v9503_v42  ;;  %v4385_v44 = vsel %vm469_vm1, %v475_v57, %v476_v23 }
  0x76   :  { %9500 = vst [vmem:[#allocation52_spill] sm:$0xff] %v4366_v63  ;;  %v478_v45 = vrot.slane %v4193_v17, 2  ;;  %v480_v7 = vrot.slane %v4196_v49, 2  ;;  %v481_v50 = vrot.slane %v4203_v22, 2  ;;  %v483_v55 = vrot.slane %v4206_v5, 2 }
  0x77   :  { %9502 = vst [vmem:[#allocation57_spill] sm:$0xff] %v4369_v9  ;;  %9504 = vst [vmem:[#allocation188_spill] sm:$0xff] %v4372_v37  ;;  %v485_v42 = vrot.slane %v4209_v36, 2  ;;  %v486_v46 = vrot.slane %v4216_v31, 2  ;;  %v488_v17 = vrot.slane %v4219_v56, 2  ;;  %v490_v49 = vrot.slane %v4222_v58, 2 }
  0x78   :  { %v491_v30 = vrot.slane %v4229_v33, 2  ;;  %v493_v11 = vrot.slane %v4232_v10, 2  ;;  %v495_v19 = vrot.slane %v4235_v8, 2  ;;  %v496_v22 = vrot.slane %v4242_v32, 2 }
  0x79   :  { %v498_v5 = vrot.slane %v4245_v38, 2  ;;  %v500_v57 = vrot.slane %v4248_v12, 2  ;;  %v501_v36 = vrot.slane %v4255_v28, 2  ;;  %v503_v31 = vrot.slane %v4258_v39, 2 }
  0x7a   :  { %v505_v56 = vrot.slane %v4261_v14, 2  ;;  %v506_v58 = vrot.slane %v4268_v16, 2  ;;  %v508_v33 = vrot.slane %v4271_v3, 2  ;;  %v479_v10 = vsel %vm469_vm1, %v476_v23, %v478_v45 }
  0x7b   :  { %v482_v8 = vsel %vm469_vm1, %v480_v7, %v481_v50  ;;  %v510_v32 = vrot.slane %v4274_v20, 2  ;;  %v511_v38 = vrot.slane %v4281_v53, 2  ;;  %v484_v12 = vsel %vm469_vm1, %v481_v50, %v483_v55  ;;  %v9586_v20 = vld [vmem:[#allocation94_spill] sm:$0xff] }
  0x7c   :  { %v487_v28 = vsel %vm469_vm1, %v485_v42, %v486_v46  ;;  %v489_v39 = vsel %vm469_vm1, %v486_v46, %v488_v17  ;;  %v513_v14 = vrot.slane %v4284_v18, 2  ;;  %v4411_v16 = vsel %vm469_vm1, %v490_v49, %v491_v30 }
  0x7d   :  { %9505 = vst [vmem:[#allocation189_spill] sm:$0xff] %v4411_v16  ;;  %v4414_v3 = vsel %vm469_vm1, %v491_v30, %v493_v11  ;;  %v4417_v7 = vsel %vm469_vm1, %v495_v19, %v496_v22  ;;  %v4420_v23 = vsel %vm469_vm1, %v496_v22, %v498_v5  ;;  %v4423_v50 = vsel %vm469_vm1, %v500_v57, %v501_v36 }
  0x7e   :  { %9506 = vst [vmem:[#allocation190_spill] sm:$0xff] %v4414_v3  ;;  %9507 = vst [vmem:[#allocation191_spill] sm:$0xff] %v4417_v7  ;;  %v4426_v42 = vsel %vm469_vm1, %v501_v36, %v503_v31  ;;  %v4429_v46 = vsel %vm469_vm1, %v505_v56, %v506_v58  ;;  %v4432_v49 = vsel %vm469_vm1, %v506_v58, %v508_v33  ;;  %v515_v55 = vrot.slane %v4287_v34, 2  ;;  %v9585_v34 = vld [vmem:[#allocation92_spill] sm:$0xff] }
  0x7f   :  { %9508 = vst [vmem:[#allocation192_spill] sm:$0xff] %v4420_v23  ;;  %9509 = vst [vmem:[#allocation193_spill] sm:$0xff] %v4423_v50  ;;  %v4435_v45 = vsel %vm469_vm1, %v510_v32, %v511_v38  ;;  %v516_v5 = vrot.slane %v4294_v60, 2  ;;  %v518_v22 = vrot.slane %v4297_v54, 2  ;;  %v4441_v17 = vsel %vm469_vm1, %v511_v38, %v513_v14 }
  0x80   :  { %9510 = vst [vmem:[#allocation194_spill] sm:$0xff] %v4426_v42  ;;  %9511 = vst [vmem:[#allocation195_spill] sm:$0xff] %v4429_v46  ;;  %v520_v36 = vrot.slane %v4300_v41, 2  ;;  %v521_v56 = vrot.slane %v4307_v27, 2  ;;  %v523_v31 = vrot.slane %v4310_v1, 2  ;;  %v525_v58 = vrot.slane %v4313_v43, 2 }
  0x81   :  { %9512 = vst [vmem:[#allocation196_spill] sm:$0xff] %v4432_v49  ;;  %9513 = vst [vmem:[#allocation197_spill] sm:$0xff] %v4435_v45  ;;  %v526_v33 = vrot.slane %v4320_v47, 2  ;;  %v528_v32 = vrot.slane %v4323_v4, 2  ;;  %v530_v30 = vrot.slane %v4326_v48, 2  ;;  %v531_v11 = vrot.slane %v4333_v6, 2 }
  0x82   :  { %9514 = vst [vmem:[#allocation198_spill] sm:$0xff] %v4441_v17  ;;  %v533_v19 = vrot.slane %v4336_v40, 2  ;;  %v535_v38 = vrot.slane %v4339_v2, 2  ;;  %v536_v14 = vrot.slane %v4342_v13, 2  ;;  %v538_v57 = vrot.slane %v4348_v62, 2  ;;  %v9581_v47 = vld [vmem:[#allocation87_spill] sm:$0xff] }
  0x83   :  { %v540_v1 = vrot.slane %v4351_v61, 2  ;;  %v541_v54 = vrot.slane %v4360_v52, 2  ;;  %v543_v18 = vrot.slane %v4363_v21, 2  ;;  %v4459_v4 = vsel %vm469_vm1, %v515_v55, %v516_v5  ;;  %v9580_v52 = vld [vmem:[#allocation86_spill] sm:$0xff] }
  0x84   :  { %9515 = vst [vmem:[#allocation199_spill] sm:$0xff] %v4459_v4  ;;  %v545_v48 = vrot.slane %v4366_v63, 2  ;;  %v546_v6 = vrot.slane %v4369_v9, 2  ;;  %v548_v40 = vrot.slane %v4372_v37, 2  ;;  %v4465_v2 = vsel %vm469_vm1, %v516_v5, %v518_v22  ;;  %v9583_v41 = vld [vmem:[#allocation90_spill] sm:$0xff] }
  0x85   :  { %9516 = vst [vmem:[#allocation200_spill] sm:$0xff] %v4465_v2  ;;  %v4468_v62 = vsel %vm469_vm1, %v520_v36, %v521_v56  ;;  %v4471_v61 = vsel %vm469_vm1, %v521_v56, %v523_v31  ;;  %v4474_v21 = vsel %vm469_vm1, %v525_v58, %v526_v33  ;;  %v4477_v55 = vsel %vm469_vm1, %v526_v33, %v528_v32 }
  0x86   :  { %9517 = vst [vmem:[#allocation201_spill] sm:$0xff] %v4468_v62  ;;  %9518 = vst [vmem:[#allocation202_spill] sm:$0xff] %v4471_v61  ;;  %v4480_v63 = vsel %vm469_vm1, %v530_v30, %v531_v11  ;;  %v4483_v37 = vsel %vm469_vm1, %v531_v11, %v533_v19  ;;  %v4486_v5 = vsel %vm469_vm1, %v535_v38, %v536_v14  ;;  %v9537_v30 = vld [vmem:[#allocation162_spill] sm:$0xff]  ;;  %v9538_v19 = vld [vmem:[#allocation163_spill] sm:$0xff]  ;;  %v633_v13 = vrot.slane %v9580_v52, 3 }
  0x87   :  { %9519 = vst [vmem:[#allocation203_spill] sm:$0xff] %v4474_v21  ;;  %9520 = vst [vmem:[#allocation204_spill] sm:$0xff] %v4477_v55  ;;  %v4489_v22 = vsel %vm469_vm1, %v536_v14, %v538_v57  ;;  %v4492_v36 = vsel %vm469_vm1, %v540_v1, %v541_v54  ;;  %v4495_v56 = vsel %vm469_vm1, %v541_v54, %v543_v18  ;;  %v9539_v14 = vld [vmem:[#allocation164_spill] sm:$0xff]  ;;  %v635_v43 = vrot.slane %v9581_v47, 3 }
  0x88   :  { %9521 = vst [vmem:[#allocation205_spill] sm:$0xff] %v4480_v63  ;;  %9522 = vst [vmem:[#allocation206_spill] sm:$0xff] %v4483_v37  ;;  %v4499_v31 = vadd.f32 %v4377_v15, %v4097_v0  ;;  %v4502_v58 = vsel %vm469_vm1, %v545_v48, %v546_v6  ;;  %v4505_v33 = vsel %vm469_vm1, %v546_v6, %v548_v40  ;;  %v9529_v15 = vld [vmem:[#allocation154_spill] sm:$0xff]  ;;  %v641_v53 = vrot.slane %v9585_v34, 3 }
  0x89   :  { %9523 = vst [vmem:[#allocation207_spill] sm:$0xff] %v4486_v5  ;;  %9524 = vst [vmem:[#allocation208_spill] sm:$0xff] %v4489_v22  ;;  %v4509_v32 = vadd.f32 %v4380_v59, %v4104_v24  ;;  %v4513_v1 = vadd.f32 %v4385_v44, %v4108_v25  ;;  %v4516_v18 = vadd.f32 %v479_v10, %v4112_v26  ;;  %v9530_v24 = vld [vmem:[#allocation155_spill] sm:$0xff]  ;;  %v9531_v25 = vld [vmem:[#allocation156_spill] sm:$0xff] }
  0x8a   :  { %9525 = vst [vmem:[#allocation209_spill] sm:$0xff] %v4492_v36  ;;  %9526 = vst [vmem:[#allocation210_spill] sm:$0xff] %v4495_v56  ;;  %v4519_v54 = vadd.f32 %v482_v8, %v4118_v29  ;;  %v4522_v0 = vadd.f32 %v484_v12, %v4121_v35  ;;  %v4525_v40 = vadd.f32 %v487_v28, %v4124_v51  ;;  %v9532_v26 = vld [vmem:[#allocation157_spill] sm:$0xff]  ;;  %v9533_v35 = vld [vmem:[#allocation158_spill] sm:$0xff] }
  0x8b   :  { %9527 = vst [vmem:[#allocation211_spill] sm:$0xff] %v4502_v58  ;;  %9528 = vst [vmem:[#allocation212_spill] sm:$0xff] %v4505_v33  ;;  %v4528_v48 = vadd.f32 %v489_v39, %v9529_v15  ;;  %v4532_v6 = vadd.f32 %v4411_v16, %v9530_v24  ;;  %v4536_v10 = vadd.f32 %v4414_v3, %v9531_v25  ;;  %v9534_v51 = vld [vmem:[#allocation159_spill] sm:$0xff]  ;;  %v9535_v12 = vld [vmem:[#allocation160_spill] sm:$0xff] }
  0x8c   :  { %v4540_v29 = vadd.f32 %v4417_v7, %v9532_v26  ;;  %v4544_v8 = vadd.f32 %v4420_v23, %v9533_v35  ;;  %v4548_v39 = vadd.f32 %v4423_v50, %v9534_v51  ;;  %v4552_v28 = vadd.f32 %v4426_v42, %v9535_v12  ;;  %v9536_v59 = vld [vmem:[#allocation161_spill] sm:$0xff]  ;;  %v9541_v15 = vld [vmem:[#allocation2_spill] sm:$0xff]  ;;  %v9543_v25 = vld [vmem:[#allocation3_spill] sm:$0xff] }
  0x8d   :  { %v4556_v44 = vadd.f32 %v4429_v46, %v9536_v59  ;;  %v4560_v11 = vadd.f32 %v4432_v49, %v9537_v30  ;;  %v4564_v38 = vadd.f32 %v4435_v45, %v9538_v19  ;;  %v4568_v57 = vadd.f32 %v4441_v17, %v9539_v14  ;;  %v9545_v35 = vld [vmem:[#allocation5_spill] sm:$0xff]  ;;  %v9549_v30 = vld [vmem:[#allocation167_spill] sm:$0xff]  ;;  %v9555_v45 = vld [vmem:[#allocation74_spill] sm:$0xff] }
  0x8e   :  { %v4572_v24 = vadd.f32 %v4459_v4, %v9541_v15  ;;  %v4576_v26 = vadd.f32 %v4465_v2, %v9543_v25  ;;  %v4580_v51 = vadd.f32 %v4468_v62, %v9545_v35  ;;  %v9547_v12 = vld [vmem:[#allocation165_spill] sm:$0xff]  ;;  %v4588_v19 = vadd.f32 %v4474_v21, %v9549_v30  ;;  %v9553_v4 = vld [vmem:[#allocation71_spill] sm:$0xff]  ;;  %v9554_v25 = vld [vmem:[#allocation72_spill] sm:$0xff] }
  0x8f   :  { %9540 = vst [vmem:[#allocation154_spill] sm:$0xff] %v4568_v57  ;;  %v4584_v59 = vadd.f32 %v4471_v61, %v9547_v12  ;;  %v9551_v14 = vld [vmem:[#allocation169_spill] sm:$0xff]  ;;  %v615_v17 = vrot.slane %v9553_v4, 3  ;;  %v616_v2 = vrot.slane %v9554_v25, 3  ;;  %v618_v49 = vrot.slane %v9555_v45, 3  ;;  %v9556_v35 = vld [vmem:[#allocation171_spill] sm:$0xff] }
  0x90   :  { %9542 = vst [vmem:[#allocation155_spill] sm:$0xff] %v4572_v24  ;;  %9544 = vst [vmem:[#allocation156_spill] sm:$0xff] %v4576_v26  ;;  %v4592_v15 = vadd.f32 %v4477_v55, %v9551_v14  ;;  %v4599_v62 = vadd.f32 %v4480_v63, %v9556_v35  ;;  %v9558_v12 = vld [vmem:[#allocation173_spill] sm:$0xff]  ;;  %v9560_v30 = vld [vmem:[#allocation75_spill] sm:$0xff] }
  0x91   :  { %9546 = vst [vmem:[#allocation157_spill] sm:$0xff] %v4580_v51  ;;  %9548 = vst [vmem:[#allocation158_spill] sm:$0xff] %v4584_v59  ;;  %v4603_v61 = vadd.f32 %v4483_v37, %v9558_v12  ;;  %v620_v21 = vrot.slane %v9560_v30, 3  ;;  %v9561_v46 = vld [vmem:[#allocation76_spill] sm:$0xff]  ;;  %v9562_v14 = vld [vmem:[#allocation175_spill] sm:$0xff]  ;;  %v4634_v3 = vsel %vm614_vm2, %v615_v17, %v616_v2 }
  0x92   :  { %9550 = vst [vmem:[#allocation159_spill] sm:$0xff] %v4588_v19  ;;  %9552 = vst [vmem:[#allocation160_spill] sm:$0xff] %v4592_v15  ;;  %v621_v42 = vrot.slane %v9561_v46, 3  ;;  %v4609_v55 = vadd.f32 %v4486_v5, %v9562_v14  ;;  %v9564_v4 = vld [vmem:[#allocation177_spill] sm:$0xff]  ;;  %v9566_v45 = vld [vmem:[#allocation179_spill] sm:$0xff] }
  0x93   :  { %9557 = vst [vmem:[#allocation161_spill] sm:$0xff] %v4599_v62  ;;  %9559 = vst [vmem:[#allocation162_spill] sm:$0xff] %v4603_v61  ;;  %v4613_v25 = vadd.f32 %v4489_v22, %v9564_v4  ;;  %v4617_v35 = vadd.f32 %v4492_v36, %v9566_v45  ;;  %v9568_v63 = vld [vmem:[#allocation181_spill] sm:$0xff]  ;;  %v9570_v37 = vld [vmem:[#allocation183_spill] sm:$0xff]  ;;  %v4637_v45 = vsel %vm614_vm2, %v616_v2, %v618_v49  ;;  %v638_v2 = vrot.slane %v9583_v41, 3 }
  0x94   :  { %9563 = vst [vmem:[#allocation163_spill] sm:$0xff] %v4609_v55  ;;  %v4621_v12 = vadd.f32 %v4495_v56, %v9568_v63  ;;  %v4625_v50 = vadd.f32 %v4502_v58, %v9570_v37  ;;  %v9572_v23 = vld [vmem:[#allocation186_spill] sm:$0xff]  ;;  %v9575_v4 = vld [vmem:[#allocation79_spill] sm:$0xff]  ;;  %v9576_v63 = vld [vmem:[#allocation80_spill] sm:$0xff]  ;;  %v4642_v37 = vsel %vm614_vm2, %v620_v21, %v621_v42 }
  0x95   :  { %9565 = vst [vmem:[#allocation164_spill] sm:$0xff] %v4613_v25  ;;  %9567 = vst [vmem:[#allocation2_spill] sm:$0xff] %v4617_v35  ;;  %v4629_v14 = vadd.f32 %v4505_v33, %v9572_v23  ;;  %v9574_v5 = vld [vmem:[#allocation78_spill] sm:$0xff]  ;;  %v625_v22 = vrot.slane %v9575_v4, 3  ;;  %v626_v56 = vrot.slane %v9576_v63, 3  ;;  %v9578_v58 = vld [vmem:[#allocation83_spill] sm:$0xff] }
  0x96   :  { %9569 = vst [vmem:[#allocation3_spill] sm:$0xff] %v4621_v12  ;;  %9571 = vst [vmem:[#allocation5_spill] sm:$0xff] %v4625_v50  ;;  %v623_v7 = vrot.slane %v9574_v5, 3  ;;  %v9577_v36 = vld [vmem:[#allocation82_spill] sm:$0xff]  ;;  %v630_v23 = vrot.slane %v9578_v58, 3  ;;  %v9579_v33 = vld [vmem:[#allocation84_spill] sm:$0xff] }
  0x97   :  { %9573 = vst [vmem:[#allocation165_spill] sm:$0xff] %v4629_v14  ;;  %v628_v16 = vrot.slane %v9577_v36, 3  ;;  %v631_v9 = vrot.slane %v9579_v33, 3  ;;  %v9582_v17 = vld [vmem:[#allocation88_spill] sm:$0xff]  ;;  %v9584_v49 = vld [vmem:[#allocation91_spill] sm:$0xff]  ;;  %v643_v36 = vrot.slane %v9586_v20, 3 }
  0x98   :  { %v636_v27 = vrot.slane %v9582_v17, 3  ;;  %v640_v60 = vrot.slane %v9584_v49, 3  ;;  %v9587_v21 = vld [vmem:[#allocation95_spill] sm:$0xff]  ;;  %v9588_v63 = vld [vmem:[#allocation96_spill] sm:$0xff]  ;;  %v9589_v4 = vld [vmem:[#allocation98_spill] sm:$0xff]  ;;  %v624_v41 = vsel %vm614_vm2, %v621_v42, %v623_v7  ;;  %v627_v49 = vsel %vm614_vm2, %v625_v22, %v626_v56 }
  0x99   :  { %v645_v5 = vrot.slane %v9587_v21, 3  ;;  %v646_v58 = vrot.slane %v9588_v63, 3  ;;  %v648_v33 = vrot.slane %v9589_v4, 3  ;;  %v9590_v46 = vld [vmem:[#allocation99_spill] sm:$0xff]  ;;  %v9591_v30 = vld [vmem:[#allocation100_spill] sm:$0xff]  ;;  %v9592_v14 = vld [vmem:[#allocation102_spill] sm:$0xff]  ;;  %v629_v21 = vsel %vm614_vm2, %v626_v56, %v628_v16 }
  0x9a   :  { %v650_v52 = vrot.slane %v9590_v46, 3  ;;  %v651_v47 = vrot.slane %v9591_v30, 3  ;;  %v653_v17 = vrot.slane %v9592_v14, 3  ;;  %v9593_v50 = vld [vmem:[#allocation103_spill] sm:$0xff]  ;;  %v9594_v12 = vld [vmem:[#allocation104_spill] sm:$0xff]  ;;  %v632_v63 = vsel %vm614_vm2, %v630_v23, %v631_v9  ;;  %v9595_v35 = vld [vmem:[#allocation106_spill] sm:$0xff] }
  0x9b   :  { %v655_v34 = vrot.slane %v9593_v50, 3  ;;  %v656_v20 = vrot.slane %v9594_v12, 3  ;;  %v634_v4 = vsel %vm614_vm2, %v631_v9, %v633_v13  ;;  %v658_v46 = vrot.slane %v9595_v35, 3  ;;  %v9606_v56 = vld [vmem:[#allocation108_spill] sm:$0xff]  ;;  %v9611_v35 = vld [vmem:[#allocation113_spill] sm:$0xff]  ;;  %v9613_v50 = vld [vmem:[#allocation115_spill] sm:$0xff] }
  0x9c   :  { %v4668_v30 = vsel %vm614_vm2, %v635_v43, %v636_v27  ;;  %v4671_v14 = vsel %vm614_vm2, %v636_v27, %v638_v2  ;;  %v4674_v7 = vsel %vm614_vm2, %v640_v60, %v641_v53  ;;  %v4677_v42 = vsel %vm614_vm2, %v641_v53, %v643_v36  ;;  %v9605_v60 = vld [vmem:[#allocation107_spill] sm:$0xff]  ;;  %v9607_v36 = vld [vmem:[#allocation109_spill] sm:$0xff]  ;;  %v9619_v19 = vld [vmem:[#allocation122_spill] sm:$0xff] }
  0x9d   :  { %9596 = vst [vmem:[#allocation167_spill] sm:$0xff] %v4668_v30  ;;  %9597 = vst [vmem:[#allocation169_spill] sm:$0xff] %v4671_v14  ;;  %v4680_v16 = vsel %vm614_vm2, %v645_v5, %v646_v58  ;;  %v4683_v22 = vsel %vm614_vm2, %v646_v58, %v648_v33  ;;  %v4686_v13 = vsel %vm614_vm2, %v650_v52, %v651_v47  ;;  %v660_v9 = vrot.slane %v9605_v60, 3  ;;  %v9609_v58 = vld [vmem:[#allocation110_spill] sm:$0xff]  ;;  %v9610_v2 = vld [vmem:[#allocation111_spill] sm:$0xff] }
  0x9e   :  { %9598 = vst [vmem:[#allocation71_spill] sm:$0xff] %v4674_v7  ;;  %9599 = vst [vmem:[#allocation72_spill] sm:$0xff] %v4677_v42  ;;  %v4689_v43 = vsel %vm614_vm2, %v651_v47, %v653_v17  ;;  %v4692_v27 = vsel %vm614_vm2, %v655_v34, %v656_v20  ;;  %v661_v53 = vrot.slane %v9606_v56, 3  ;;  %v663_v23 = vrot.slane %v9607_v36, 3  ;;  %v9612_v47 = vld [vmem:[#allocation114_spill] sm:$0xff]  ;;  %v9614_v25 = vld [vmem:[#allocation117_spill] sm:$0xff] }
  0x9f   :  { %9600 = vst [vmem:[#allocation74_spill] sm:$0xff] %v4680_v16  ;;  %9601 = vst [vmem:[#allocation171_spill] sm:$0xff] %v4683_v22  ;;  %v4698_v5 = vsel %vm614_vm2, %v656_v20, %v658_v46  ;;  %v665_v33 = vrot.slane %v9609_v58, 3  ;;  %v666_v52 = vrot.slane %v9610_v2, 3  ;;  %v668_v12 = vrot.slane %v9611_v35, 3  ;;  %v9615_v60 = vld [vmem:[#allocation118_spill] sm:$0xff] }
  0xa0   :  { %9602 = vst [vmem:[#allocation173_spill] sm:$0xff] %v4686_v13  ;;  %9603 = vst [vmem:[#allocation175_spill] sm:$0xff] %v4689_v43  ;;  %v670_v17 = vrot.slane %v9612_v47, 3  ;;  %v671_v34 = vrot.slane %v9613_v50, 3  ;;  %v673_v55 = vrot.slane %v9614_v25, 3  ;;  %v675_v61 = vrot.slane %v9615_v60, 3 }
  0xa1   :  { %9604 = vst [vmem:[#allocation177_spill] sm:$0xff] %v4692_v27  ;;  %9608 = vst [vmem:[#allocation179_spill] sm:$0xff] %v4698_v5  ;;  %v9616_v56 = vld [vmem:[#allocation119_spill] sm:$0xff]  ;;  %v9617_v36 = vld [vmem:[#allocation120_spill] sm:$0xff]  ;;  %v681_v58 = vrot.slane %v9619_v19, 3  ;;  %v4716_v25 = vsel %vm614_vm2, %v660_v9, %v661_v53 }
  0xa2   :  { %v676_v62 = vrot.slane %v9616_v56, 3  ;;  %v678_v15 = vrot.slane %v9617_v36, 3  ;;  %v9618_v20 = vld [vmem:[#allocation121_spill] sm:$0xff]  ;;  %v9620_v59 = vld [vmem:[#allocation123_spill] sm:$0xff]  ;;  %v9621_v51 = vld [vmem:[#allocation124_spill] sm:$0xff]  ;;  %9624 = vst [vmem:[#allocation181_spill] sm:$0xff] %v4716_v25  ;;  %v4734_v9 = vsel %vm614_vm2, %v671_v34, %v673_v55  ;;  %v4756_v55 = vadd.f32 %v4634_v3, %v4499_v31 }
  0xa3   :  { %v680_v46 = vrot.slane %v9618_v20, 3  ;;  %v683_v2 = vrot.slane %v9620_v59, 3  ;;  %v685_v35 = vrot.slane %v9621_v51, 3  ;;  %v9622_v26 = vld [vmem:[#allocation125_spill] sm:$0xff]  ;;  %v9623_v24 = vld [vmem:[#allocation126_spill] sm:$0xff]  ;;  %v9625_v60 = vld [vmem:[#allocation127_spill] sm:$0xff]  ;;  %v4722_v20 = vsel %vm614_vm2, %v661_v53, %v663_v23 }
  0xa4   :  { %v686_v47 = vrot.slane %v9622_v26, 3  ;;  %v688_v50 = vrot.slane %v9623_v24, 3  ;;  %v690_v5 = vrot.slane %v9625_v60, 3  ;;  %v9626_v56 = vld [vmem:[#allocation128_spill] sm:$0xff]  ;;  %v9627_v36 = vld [vmem:[#allocation129_spill] sm:$0xff]  ;;  %9628 = vst [vmem:[#allocation183_spill] sm:$0xff] %v4722_v20  ;;  %v4725_v59 = vsel %vm614_vm2, %v665_v33, %v666_v52 }
  0xa5   :  { %v691_v57 = vrot.slane %v9626_v56, 3  ;;  %v693_v27 = vrot.slane %v9627_v36, 3  ;;  %9629 = vst [vmem:[#allocation186_spill] sm:$0xff] %v4725_v59  ;;  %v4728_v51 = vsel %vm614_vm2, %v666_v52, %v668_v12  ;;  %v4731_v24 = vsel %vm614_vm2, %v670_v17, %v671_v34  ;;  %9632 = vst [vmem:[#allocation215_spill] sm:$0xff] %v4734_v9  ;;  %v9660_v34 = vld [vmem:[#allocation163_spill] sm:$0xff]  ;;  %v9693_v56 = vld [vmem:[#allocation116_spill] sm:$0xff] }
  0xa6   :  { %9630 = vst [vmem:[#allocation213_spill] sm:$0xff] %v4728_v51  ;;  %9631 = vst [vmem:[#allocation214_spill] sm:$0xff] %v4731_v24  ;;  %v4737_v60 = vsel %vm614_vm2, %v675_v61, %v676_v62  ;;  %v4740_v36 = vsel %vm614_vm2, %v676_v62, %v678_v15  ;;  %v4743_v53 = vsel %vm614_vm2, %v680_v46, %v681_v58 }
  0xa7   :  { %9633 = vst [vmem:[#allocation216_spill] sm:$0xff] %v4737_v60  ;;  %9634 = vst [vmem:[#allocation217_spill] sm:$0xff] %v4740_v36  ;;  %v4746_v23 = vsel %vm614_vm2, %v681_v58, %v683_v2  ;;  %v4749_v12 = vsel %vm614_vm2, %v685_v35, %v686_v47  ;;  %v4752_v33 = vsel %vm614_vm2, %v686_v47, %v688_v50  ;;  %v9656_v2 = vld [vmem:[#allocation161_spill] sm:$0xff]  ;;  %v9658_v47 = vld [vmem:[#allocation162_spill] sm:$0xff] }
  0xa8   :  { %9635 = vst [vmem:[#allocation218_spill] sm:$0xff] %v4743_v53  ;;  %9636 = vst [vmem:[#allocation219_spill] sm:$0xff] %v4746_v23  ;;  %v4759_v61 = vsel %vm614_vm2, %v690_v5, %v691_v57  ;;  %v4762_v62 = vsel %vm614_vm2, %v691_v57, %v693_v27  ;;  %v4766_v15 = vadd.f32 %v4637_v45, %v4509_v32  ;;  %v9646_v45 = vld [vmem:[#allocation156_spill] sm:$0xff] }
  0xa9   :  { %9637 = vst [vmem:[#allocation220_spill] sm:$0xff] %v4749_v12  ;;  %9638 = vst [vmem:[#allocation221_spill] sm:$0xff] %v4752_v33  ;;  %v4770_v35 = vadd.f32 %v4642_v37, %v4513_v1  ;;  %v4773_v50 = vadd.f32 %v624_v41, %v4516_v18  ;;  %v4776_v3 = vadd.f32 %v627_v49, %v4519_v54  ;;  %v9650_v37 = vld [vmem:[#allocation158_spill] sm:$0xff]  ;;  %v9652_v49 = vld [vmem:[#allocation159_spill] sm:$0xff] }
  0xaa   :  { %9639 = vst [vmem:[#allocation222_spill] sm:$0xff] %v4759_v61  ;;  %9640 = vst [vmem:[#allocation223_spill] sm:$0xff] %v4762_v62  ;;  %v4779_v31 = vadd.f32 %v629_v21, %v4522_v0  ;;  %v4782_v57 = vadd.f32 %v632_v63, %v4525_v40  ;;  %v4785_v27 = vadd.f32 %v634_v4, %v4528_v48  ;;  %v9644_v4 = vld [vmem:[#allocation155_spill] sm:$0xff]  ;;  %v9648_v63 = vld [vmem:[#allocation157_spill] sm:$0xff] }
  0xab   :  { %v4789_v32 = vadd.f32 %v4668_v30, %v4532_v6  ;;  %v4793_v41 = vadd.f32 %v4671_v14, %v4536_v10  ;;  %v4797_v1 = vadd.f32 %v4674_v7, %v4540_v29  ;;  %v4801_v18 = vadd.f32 %v4677_v42, %v4544_v8  ;;  %v9641_v6 = vld [vmem:[#allocation177_spill] sm:$0xff]  ;;  %v9642_v29 = vld [vmem:[#allocation154_spill] sm:$0xff]  ;;  %v9643_v8 = vld [vmem:[#allocation179_spill] sm:$0xff] }
  0xac   :  { %v4805_v54 = vadd.f32 %v4680_v16, %v4548_v39  ;;  %v4809_v0 = vadd.f32 %v4683_v22, %v4552_v28  ;;  %v4813_v40 = vadd.f32 %v4686_v13, %v4556_v44  ;;  %v4817_v48 = vadd.f32 %v4689_v43, %v4560_v11  ;;  %v9654_v5 = vld [vmem:[#allocation160_spill] sm:$0xff]  ;;  %v9681_v43 = vld [vmem:[#allocation14_spill] sm:$0xff]  ;;  %v9682_v13 = vld [vmem:[#allocation15_spill] sm:$0xff] }
  0xad   :  { %v4821_v10 = vadd.f32 %v9641_v6, %v4564_v38  ;;  %v4825_v39 = vadd.f32 %v9643_v8, %v9642_v29  ;;  %v4829_v28 = vadd.f32 %v4716_v25, %v9644_v4  ;;  %v4833_v44 = vadd.f32 %v4722_v20, %v9646_v45  ;;  %v9662_v29 = vld [vmem:[#allocation164_spill] sm:$0xff]  ;;  %v9664_v45 = vld [vmem:[#allocation2_spill] sm:$0xff]  ;;  %v9677_v20 = vld [vmem:[#allocation81_spill] sm:$0xff] }
  0xae   :  { %v4837_v11 = vadd.f32 %v4725_v59, %v9648_v63  ;;  %v4841_v38 = vadd.f32 %v4728_v51, %v9650_v37  ;;  %v4845_v21 = vadd.f32 %v4731_v24, %v9652_v49  ;;  %v4849_v58 = vadd.f32 %v4734_v9, %v9654_v5  ;;  %v9666_v37 = vld [vmem:[#allocation49_spill] sm:$0xff]  ;;  %v9667_v5 = vld [vmem:[#allocation56_spill] sm:$0xff] }
  0xaf   :  { %9645 = vst [vmem:[#allocation154_spill] sm:$0xff] %v4829_v28  ;;  %9647 = vst [vmem:[#allocation155_spill] sm:$0xff] %v4833_v44  ;;  %v4853_v52 = vadd.f32 %v4737_v60, %v9656_v2  ;;  %v4857_v17 = vadd.f32 %v4740_v36, %v9658_v47  ;;  %v4861_v46 = vadd.f32 %v4743_v53, %v9660_v34  ;;  %v759_v49 = vmul.f32 -0.020277822, %v9666_v37  ;;  %v9668_v60 = vld [vmem:[#allocation3_spill] sm:$0xff]  ;;  %v9670_v36 = vld [vmem:[#allocation61_spill] sm:$0xff] }
  0xb0   :  { %9649 = vst [vmem:[#allocation156_spill] sm:$0xff] %v4837_v11  ;;  %9651 = vst [vmem:[#allocation157_spill] sm:$0xff] %v4841_v38  ;;  %v4865_v4 = vadd.f32 %v4746_v23, %v9662_v29  ;;  %v4869_v63 = vadd.f32 %v4749_v12, %v9664_v45  ;;  %v760_v2 = vmul.f32 -0.020277822, %v9667_v5  ;;  %v4875_v47 = vadd.f32 %v4752_v33, %v9668_v60  ;;  %v9671_v34 = vld [vmem:[#allocation65_spill] sm:$0xff]  ;;  %v9679_v60 = vld [vmem:[#allocation7_spill] sm:$0xff] }
  0xb1   :  { %9653 = vst [vmem:[#allocation158_spill] sm:$0xff] %v4845_v21  ;;  %9655 = vst [vmem:[#allocation159_spill] sm:$0xff] %v4849_v58  ;;  %v761_v9 = vmul.f32 -0.020277822, %v9670_v36  ;;  %v762_v53 = vmul.f32 -0.020277822, %v9671_v34 }
  0xb2   :  { %9657 = vst [vmem:[#allocation160_spill] sm:$0xff] %v4853_v52  ;;  %9659 = vst [vmem:[#allocation161_spill] sm:$0xff] %v4857_v17  ;;  %v9672_v24 = vld [vmem:[#allocation69_spill] sm:$0xff]  ;;  %v766_v5 = vmul.f32 -0.020277822, %v9677_v20  ;;  %v824_v33 = vrot.slane %v9679_v60, 4 }
  0xb3   :  { %9661 = vst [vmem:[#allocation162_spill] sm:$0xff] %v4861_v46  ;;  %9663 = vst [vmem:[#allocation163_spill] sm:$0xff] %v4865_v4  ;;  %v763_v51 = vmul.f32 -0.020277822, %v9672_v24  ;;  %v9673_v29 = vld [vmem:[#allocation5_spill] sm:$0xff]  ;;  %v9680_v36 = vld [vmem:[#allocation11_spill] sm:$0xff] }
  0xb4   :  { %9665 = vst [vmem:[#allocation164_spill] sm:$0xff] %v4869_v63  ;;  %9669 = vst [vmem:[#allocation2_spill] sm:$0xff] %v4875_v47  ;;  %v4882_v23 = vadd.f32 %v4759_v61, %v9673_v29  ;;  %v9675_v45 = vld [vmem:[#allocation73_spill] sm:$0xff]  ;;  %v825_v6 = vrot.slane %v9680_v36, 4  ;;  %v827_v34 = vrot.slane %v759_v49, 4  ;;  %v829_v24 = vrot.slane %v9681_v43, 4 }
  0xb5   :  { %v764_v12 = vmul.f32 -0.020277822, %v9675_v45  ;;  %v9676_v59 = vld [vmem:[#allocation77_spill] sm:$0xff]  ;;  %v830_v22 = vrot.slane %v9682_v13, 4  ;;  %v832_v29 = vrot.slane %v760_v2, 4  ;;  %v9685_v20 = vld [vmem:[#allocation19_spill] sm:$0xff] }
  0xb6   :  { %9674 = vst [vmem:[#allocation49_spill] sm:$0xff] %v4882_v23  ;;  %v765_v37 = vmul.f32 -0.020277822, %v9676_v59  ;;  %v9678_v25 = vld [vmem:[#allocation85_spill] sm:$0xff]  ;;  %v834_v42 = vrot.slane %v9685_v20, 4  ;;  %v9692_v30 = vld [vmem:[#allocation112_spill] sm:$0xff] }
  0xb7   :  { %v767_v8 = vmul.f32 -0.020277822, %v9678_v25  ;;  %v9683_v61 = vld [vmem:[#allocation89_spill] sm:$0xff]  ;;  %v9686_v25 = vld [vmem:[#allocation20_spill] sm:$0xff]  ;;  %v4917_v20 = vmul.f32 -0.020277822, %v9693_v56 }
  0xb8   :  { %v4893_v16 = vmul.f32 -0.020277822, %v9683_v61  ;;  %v9684_v45 = vld [vmem:[#allocation93_spill] sm:$0xff]  ;;  %v835_v7 = vrot.slane %v9686_v25, 4  ;;  %v4920_v25 = vsel %vm823_vm3, %v824_v33, %v825_v6  ;;  %v852_v46 = vrot.slane %v764_v12, 4  ;;  %v9701_v17 = vld [vmem:[#allocation40_spill] sm:$0xff] }
  0xb9   :  { %v4896_v59 = vmul.f32 -0.020277822, %v9684_v45  ;;  %v9687_v14 = vld [vmem:[#allocation165_spill] sm:$0xff]  ;;  %v4914_v45 = vmul.f32 -0.020277822, %v9692_v30  ;;  %v857_v52 = vrot.slane %v765_v37, 4 }
  0xba   :  { %v4902_v60 = vadd.f32 %v4762_v62, %v9687_v14  ;;  %v9689_v49 = vld [vmem:[#allocation97_spill] sm:$0xff]  ;;  %v837_v14 = vrot.slane %v761_v9, 4  ;;  %v4923_v62 = vsel %vm823_vm3, %v825_v6, %v827_v34  ;;  %v4933_v30 = vsel %vm823_vm3, %v834_v42, %v835_v7  ;;  %v9697_v9 = vld [vmem:[#allocation30_spill] sm:$0xff]  ;;  %v9725_v44 = vld [vmem:[#allocation64_spill] sm:$0xff] }
  0xbb   :  { %v4905_v36 = vmul.f32 -0.020277822, %v9689_v49  ;;  %v9690_v43 = vld [vmem:[#allocation101_spill] sm:$0xff]  ;;  %v4926_v49 = vsel %vm823_vm3, %v829_v24, %v830_v22  ;;  %v845_v47 = vrot.slane %v9697_v9, 4  ;;  %v847_v6 = vrot.slane %v763_v51, 4  ;;  %v9698_v34 = vld [vmem:[#allocation34_spill] sm:$0xff] }
  0xbc   :  { %9688 = vst [vmem:[#allocation56_spill] sm:$0xff] %v4902_v60  ;;  %v4908_v13 = vmul.f32 -0.020277822, %v9690_v43  ;;  %v9691_v2 = vld [vmem:[#allocation105_spill] sm:$0xff]  ;;  %v4929_v43 = vsel %vm823_vm3, %v830_v22, %v832_v29  ;;  %v842_v60 = vrot.slane %v762_v53, 4  ;;  %v849_v63 = vrot.slane %v9698_v34, 4 }
  0xbd   :  { %v4911_v61 = vmul.f32 -0.020277822, %v9691_v2  ;;  %v9694_v2 = vld [vmem:[#allocation24_spill] sm:$0xff]  ;;  %v9695_v56 = vld [vmem:[#allocation25_spill] sm:$0xff]  ;;  %v9699_v24 = vld [vmem:[#allocation35_spill] sm:$0xff]  ;;  %v838_v42 = vsel %vm823_vm3, %v835_v7, %v837_v14  ;;  %v4953_v37 = vsel %vm823_vm3, %v845_v47, %v847_v6  ;;  %v872_v6 = vrot.slane %v4893_v16, 4 }
  0xbe   :  { %v839_v26 = vrot.slane %v9694_v2, 4  ;;  %v840_v19 = vrot.slane %v9695_v56, 4  ;;  %v9696_v33 = vld [vmem:[#allocation29_spill] sm:$0xff]  ;;  %v850_v4 = vrot.slane %v9699_v24, 4  ;;  %v9700_v22 = vld [vmem:[#allocation36_spill] sm:$0xff]  ;;  %v855_v2 = vrot.slane %v9701_v17, 4 }
  0xbf   :  { %v844_v23 = vrot.slane %v9696_v33, 4  ;;  %v854_v29 = vrot.slane %v9700_v22, 4  ;;  %v9702_v58 = vld [vmem:[#allocation41_spill] sm:$0xff]  ;;  %v9703_v53 = vld [vmem:[#allocation42_spill] sm:$0xff]  ;;  %v862_v33 = vrot.slane %v766_v5, 4  ;;  %v9705_v34 = vld [vmem:[#allocation47_spill] sm:$0xff] }
  0xc0   :  { %v859_v56 = vrot.slane %v9702_v58, 4  ;;  %v860_v21 = vrot.slane %v9703_v53, 4  ;;  %v841_v9 = vsel %vm823_vm3, %v839_v26, %v840_v19  ;;  %v9704_v51 = vld [vmem:[#allocation46_spill] sm:$0xff]  ;;  %v865_v11 = vrot.slane %v9705_v34, 4  ;;  %9707 = vst [vmem:[#allocation61_spill] sm:$0xff] %v4953_v37  ;;  %v9722_v53 = vld [vmem:[#allocation60_spill] sm:$0xff] }
  0xc1   :  { %v864_v38 = vrot.slane %v9704_v51, 4  ;;  %v867_v24 = vrot.slane %v767_v8, 4  ;;  %v843_v12 = vsel %vm823_vm3, %v840_v19, %v842_v60  ;;  %v4950_v22 = vsel %vm823_vm3, %v844_v23, %v845_v47  ;;  %v9712_v8 = vld [vmem:[#allocation48_spill] sm:$0xff]  ;;  %v9715_v60 = vld [vmem:[#allocation53_spill] sm:$0xff]  ;;  %v9720_v34 = vld [vmem:[#allocation58_spill] sm:$0xff] }
  0xc2   :  { %9706 = vst [vmem:[#allocation3_spill] sm:$0xff] %v4950_v22  ;;  %v4956_v7 = vsel %vm823_vm3, %v849_v63, %v850_v4  ;;  %v4959_v5 = vsel %vm823_vm3, %v850_v4, %v852_v46  ;;  %v4962_v26 = vsel %vm823_vm3, %v854_v29, %v855_v2  ;;  %v4965_v14 = vsel %vm823_vm3, %v855_v2, %v857_v52  ;;  %v9718_v52 = vld [vmem:[#allocation54_spill] sm:$0xff]  ;;  %v9719_v2 = vld [vmem:[#allocation55_spill] sm:$0xff] }
  0xc3   :  { %9708 = vst [vmem:[#allocation65_spill] sm:$0xff] %v4956_v7  ;;  %9709 = vst [vmem:[#allocation69_spill] sm:$0xff] %v4959_v5  ;;  %v869_v19 = vrot.slane %v9712_v8, 4  ;;  %v4969_v23 = vsel %vm823_vm3, %v859_v56, %v860_v21  ;;  %v4972_v47 = vsel %vm823_vm3, %v860_v21, %v862_v33  ;;  %v870_v63 = vrot.slane %v9715_v60, 4  ;;  %v9721_v21 = vld [vmem:[#allocation59_spill] sm:$0xff]  ;;  %v9723_v58 = vld [vmem:[#allocation62_spill] sm:$0xff] }
  0xc4   :  { %9710 = vst [vmem:[#allocation5_spill] sm:$0xff] %v4962_v26  ;;  %9711 = vst [vmem:[#allocation73_spill] sm:$0xff] %v4965_v14  ;;  %v4977_v46 = vsel %vm823_vm3, %v864_v38, %v865_v11  ;;  %v4980_v4 = vsel %vm823_vm3, %v865_v11, %v867_v24  ;;  %v874_v29 = vrot.slane %v9718_v52, 4  ;;  %v875_v8 = vrot.slane %v9719_v2, 4  ;;  %v9724_v11 = vld [vmem:[#allocation63_spill] sm:$0xff]  ;;  %v9726_v28 = vld [vmem:[#allocation66_spill] sm:$0xff] }
  0xc5   :  { %9713 = vst [vmem:[#allocation77_spill] sm:$0xff] %v4969_v23  ;;  %9714 = vst [vmem:[#allocation81_spill] sm:$0xff] %v4972_v47  ;;  %v877_v56 = vrot.slane %v4896_v59, 4  ;;  %v879_v51 = vrot.slane %v9720_v34, 4  ;;  %v880_v33 = vrot.slane %v9721_v21, 4  ;;  %v882_v60 = vrot.slane %v4905_v36, 4 }
  0xc6   :  { %9716 = vst [vmem:[#allocation85_spill] sm:$0xff] %v4977_v46  ;;  %9717 = vst [vmem:[#allocation7_spill] sm:$0xff] %v4980_v4  ;;  %v884_v16 = vrot.slane %v9722_v53, 4  ;;  %v885_v38 = vrot.slane %v9723_v58, 4  ;;  %v887_v17 = vrot.slane %v4908_v13, 4  ;;  %v889_v24 = vrot.slane %v9724_v11, 4 }
  0xc7   :  { %v890_v52 = vrot.slane %v9725_v44, 4  ;;  %v892_v2 = vrot.slane %v4911_v61, 4  ;;  %v894_v59 = vrot.slane %v9726_v28, 4  ;;  %v9727_v4 = vld [vmem:[#allocation67_spill] sm:$0xff]  ;;  %v4997_v21 = vsel %vm823_vm3, %v869_v19, %v870_v63  ;;  %v9732_v44 = vld [vmem:[#allocation68_spill] sm:$0xff]  ;;  %v9733_v53 = vld [vmem:[#allocation70_spill] sm:$0xff] }
  0xc8   :  { %v895_v34 = vrot.slane %v9727_v4, 4  ;;  %9728 = vst [vmem:[#allocation11_spill] sm:$0xff] %v4997_v21  ;;  %v5000_v36 = vsel %vm823_vm3, %v870_v63, %v872_v6  ;;  %v5003_v58 = vsel %vm823_vm3, %v874_v29, %v875_v8  ;;  %v897_v13 = vrot.slane %v4914_v45, 4 }
  0xc9   :  { %9729 = vst [vmem:[#allocation14_spill] sm:$0xff] %v5000_v36  ;;  %9730 = vst [vmem:[#allocation15_spill] sm:$0xff] %v5003_v58  ;;  %v5007_v11 = vsel %vm823_vm3, %v875_v8, %v877_v56  ;;  %v899_v61 = vrot.slane %v9732_v44, 4  ;;  %v900_v28 = vrot.slane %v9733_v53, 4  ;;  %v902_v4 = vrot.slane %v4917_v20, 4  ;;  %v5221_v53 = vld [vmem:[%s8494_s0 + $0x30] sm:$0xff] }
  0xca   :  { %9731 = vst [vmem:[#allocation89_spill] sm:$0xff] %v5007_v11  ;;  %v5013_v19 = vsel %vm823_vm3, %v879_v51, %v880_v33  ;;  %v5016_v63 = vsel %vm823_vm3, %v880_v33, %v882_v60  ;;  %v5019_v6 = vsel %vm823_vm3, %v884_v16, %v885_v38  ;;  %v5022_v45 = vsel %vm823_vm3, %v885_v38, %v887_v17  ;;  %v9753_v16 = vld [vmem:[#allocation160_spill] sm:$0xff] }
  0xcb   :  { %9734 = vst [vmem:[#allocation93_spill] sm:$0xff] %v5013_v19  ;;  %9735 = vst [vmem:[#allocation19_spill] sm:$0xff] %v5016_v63  ;;  %v5025_v8 = vsel %vm823_vm3, %v889_v24, %v890_v52  ;;  %v5028_v29 = vsel %vm823_vm3, %v890_v52, %v892_v2  ;;  %v5031_v20 = vsel %vm823_vm3, %v894_v59, %v895_v34  ;;  %v9754_v24 = vld [vmem:[#allocation161_spill] sm:$0xff]  ;;  %v5224_v44 = vmul.f32 0.010420735, %v5221_v53 }
  0xcc   :  { %9736 = vst [vmem:[#allocation20_spill] sm:$0xff] %v5019_v6  ;;  %9737 = vst [vmem:[#allocation165_spill] sm:$0xff] %v5022_v45  ;;  %v936_v51 = vadd.f32 %v4920_v25, %v4756_v55  ;;  %v5036_v60 = vsel %vm823_vm3, %v895_v34, %v897_v13  ;;  %v937_v56 = vadd.f32 %v4923_v62, %v4766_v15  ;;  %v9755_v13 = vld [vmem:[#allocation162_spill] sm:$0xff] }
  0xcd   :  { %9738 = vst [vmem:[#allocation97_spill] sm:$0xff] %v5025_v8  ;;  %9739 = vst [vmem:[#allocation101_spill] sm:$0xff] %v5028_v29  ;;  %v938_v17 = vadd.f32 %v4926_v49, %v4770_v35  ;;  %v939_v33 = vadd.f32 %v4929_v43, %v4773_v50  ;;  %v5045_v52 = vsel %vm823_vm3, %v899_v61, %v900_v28 }
  0xce   :  { %9740 = vst [vmem:[#allocation105_spill] sm:$0xff] %v5031_v20  ;;  %9741 = vst [vmem:[#allocation112_spill] sm:$0xff] %v5036_v60  ;;  %v5048_v2 = vsel %vm823_vm3, %v900_v28, %v902_v4  ;;  %v940_v55 = vadd.f32 %v4933_v30, %v4776_v3  ;;  %v941_v25 = vadd.f32 %v838_v42, %v4779_v31 }
  0xcf   :  { %9742 = vst [vmem:[#allocation116_spill] sm:$0xff] %v5045_v52  ;;  %9743 = vst [vmem:[#allocation24_spill] sm:$0xff] %v5048_v2  ;;  %v942_v34 = vadd.f32 %v841_v9, %v4782_v57  ;;  %v943_v62 = vadd.f32 %v843_v12, %v4785_v27  ;;  %v944_v15 = vadd.f32 %v4950_v22, %v4789_v32  ;;  %v9751_v9 = vld [vmem:[#allocation158_spill] sm:$0xff]  ;;  %v9752_v12 = vld [vmem:[#allocation159_spill] sm:$0xff] }
  0xd0   :  { %v945_v35 = vadd.f32 %v4953_v37, %v4793_v41  ;;  %v946_v50 = vadd.f32 %v4956_v7, %v4797_v1  ;;  %v947_v28 = vadd.f32 %v4959_v5, %v4801_v18  ;;  %v948_v3 = vadd.f32 %v4962_v26, %v4805_v54  ;;  %v9744_v41 = vld [vmem:[#allocation7_spill] sm:$0xff]  ;;  %v5078_v18 = vld [vmem:[%s8494_s0 + $0x180] sm:$0xff]  ;;  %9800 = vst [vmem:[#allocation231_spill] sm:$0xff] %v5221_v53  ;;  %v5441_v53 = vld [vmem:[%s8494_s0 + $0xf0] sm:$0xff] }
  0xd1   :  { %v949_v31 = vadd.f32 %v4965_v14, %v4809_v0  ;;  %v950_v57 = vadd.f32 %v4969_v23, %v4813_v40  ;;  %v951_v27 = vadd.f32 %v4972_v47, %v4817_v48  ;;  %v952_v32 = vadd.f32 %v4977_v46, %v4821_v10  ;;  %9745 = vst [vmem:[#allocation25_spill] sm:$0xff] %v5078_v18  ;;  %v5083_v54 = vld [vmem:[%s8494_s0 + $0x188] sm:$0xff]  ;;  %v9747_v0 = vld [vmem:[#allocation154_spill] sm:$0xff]  ;;  %v9749_v10 = vld [vmem:[#allocation156_spill] sm:$0xff] }
  0xd2   :  { %v953_v1 = vadd.f32 %v9744_v41, %v4825_v39  ;;  %9746 = vst [vmem:[#allocation224_spill] sm:$0xff] %v5083_v54  ;;  %v954_v40 = vadd.f32 %v4997_v21, %v9747_v0  ;;  %v9748_v48 = vld [vmem:[#allocation155_spill] sm:$0xff]  ;;  %v956_v43 = vadd.f32 %v5003_v58, %v9749_v10  ;;  %v9750_v39 = vld [vmem:[#allocation157_spill] sm:$0xff]  ;;  %v958_v42 = vadd.f32 %v5013_v19, %v9751_v9  ;;  %v9757_v10 = vld [vmem:[#allocation164_spill] sm:$0xff] }
  0xd3   :  { %v955_v49 = vadd.f32 %v5000_v36, %v9748_v48  ;;  %v957_v30 = vadd.f32 %v5007_v11, %v9750_v39  ;;  %v5097_v4 = vadd.f32 %v5016_v63, %v9752_v12  ;;  %v5101_v38 = vadd.f32 %v5019_v6, %v9753_v16  ;;  %v9756_v0 = vld [vmem:[#allocation163_spill] sm:$0xff]  ;;  %v9758_v9 = vld [vmem:[#allocation2_spill] sm:$0xff]  ;;  %v9759_v16 = vld [vmem:[#allocation49_spill] sm:$0xff]  ;;  %9801 = vst [vmem:[#allocation232_spill] sm:$0xff] %v5224_v44 }
  0xd4   :  { %v5105_v59 = vadd.f32 %v5022_v45, %v9754_v24  ;;  %v5109_v61 = vadd.f32 %v5025_v8, %v9755_v13  ;;  %v5113_v48 = vadd.f32 %v5028_v29, %v9756_v0  ;;  %v5117_v39 = vadd.f32 %v5031_v20, %v9757_v10  ;;  %v9760_v45 = vld [vmem:[#allocation56_spill] sm:$0xff]  ;;  %v9763_v10 = vld [vmem:[#allocation75_spill] sm:$0xff]  ;;  %9864 = vst [vmem:[#allocation287_spill] sm:$0xff] %v5441_v53 }
  0xd5   :  { %v5121_v12 = vadd.f32 %v5036_v60, %v9758_v9  ;;  %v5125_v24 = vadd.f32 %v5045_v52, %v9759_v16  ;;  %v5129_v13 = vadd.f32 %v5048_v2, %v9760_v45  ;;  %v5132_v8 = vmul.f32 -0.020517742, %v5078_v18  ;;  %v9764_v29 = vld [vmem:[#allocation76_spill] sm:$0xff]  ;;  %v9765_v60 = vld [vmem:[#allocation79_spill] sm:$0xff] }
  0xd6   :  { %v5135_v0 = vmul.f32 -0.020517742, %v5083_v54  ;;  %v5138_v20 = vadd.f32 %v936_v51, %v9763_v10  ;;  %v5141_v9 = vadd.f32 %v937_v56, %v9764_v29  ;;  %v5144_v6 = vadd.f32 %v938_v17, %v9765_v60  ;;  %v9766_v16 = vld [vmem:[#allocation80_spill] sm:$0xff]  ;;  %v9767_v45 = vld [vmem:[#allocation83_spill] sm:$0xff]  ;;  %v5302_v29 = vld [vmem:[%s8494_s0 + $0x78] sm:$0xff] }
  0xd7   :  { %9761 = vst [vmem:[#allocation154_spill] sm:$0xff] %v5132_v8  ;;  %v5147_v52 = vadd.f32 %v939_v33, %v9766_v16  ;;  %v5150_v2 = vadd.f32 %v940_v55, %v9767_v45  ;;  %v9768_v63 = vld [vmem:[#allocation84_spill] sm:$0xff]  ;;  %v9769_v11 = vld [vmem:[#allocation87_spill] sm:$0xff]  ;;  %9824 = vst [vmem:[#allocation252_spill] sm:$0xff] %v5302_v29  ;;  %v5305_v10 = vmul.f32 0.010420735, %v5302_v29 }
  0xd8   :  { %9762 = vst [vmem:[#allocation155_spill] sm:$0xff] %v5135_v0  ;;  %v5153_v19 = vadd.f32 %v941_v25, %v9768_v63  ;;  %v5156_v58 = vadd.f32 %v942_v34, %v9769_v11  ;;  %v9770_v51 = vld [vmem:[#allocation88_spill] sm:$0xff]  ;;  %v9772_v56 = vld [vmem:[#allocation91_spill] sm:$0xff] }
  0xd9   :  { %v5159_v36 = vadd.f32 %v943_v62, %v9770_v51  ;;  %v5162_v21 = vadd.f32 %v944_v15, %v9772_v56  ;;  %v9774_v17 = vld [vmem:[#allocation92_spill] sm:$0xff]  ;;  %v9776_v33 = vld [vmem:[#allocation95_spill] sm:$0xff]  ;;  %v5275_v51 = vld [vmem:[%s8494_s0 + $0x60] sm:$0xff]  ;;  %9825 = vst [vmem:[#allocation253_spill] sm:$0xff] %v5305_v10 }
  0xda   :  { %v5165_v41 = vadd.f32 %v945_v35, %v9774_v17  ;;  %v5168_v46 = vadd.f32 %v946_v50, %v9776_v33  ;;  %v9778_v55 = vld [vmem:[#allocation96_spill] sm:$0xff]  ;;  %v9780_v25 = vld [vmem:[#allocation99_spill] sm:$0xff]  ;;  %v5267_v17 = vld [vmem:[%s8494_s0 + $0x58] sm:$0xf]  ;;  %9816 = vst [vmem:[#allocation245_spill] sm:$0xff] %v5275_v51 }
  0xdb   :  { %9771 = vst [vmem:[#allocation156_spill] sm:$0xff] %v5159_v36  ;;  %9773 = vst [vmem:[#allocation157_spill] sm:$0xff] %v5162_v21  ;;  %v5171_v47 = vadd.f32 %v947_v28, %v9778_v55  ;;  %v5174_v23 = vadd.f32 %v948_v3, %v9780_v25  ;;  %v9782_v34 = vld [vmem:[#allocation100_spill] sm:$0xff]  ;;  %v9784_v62 = vld [vmem:[#allocation103_spill] sm:$0xff]  ;;  %v5270_v56 = vmul.f32 0.010420735, %v5267_v17 }
  0xdc   :  { %9775 = vst [vmem:[#allocation158_spill] sm:$0xff] %v5165_v41  ;;  %9777 = vst [vmem:[#allocation159_spill] sm:$0xff] %v5168_v46  ;;  %v5177_v14 = vadd.f32 %v949_v31, %v9782_v34  ;;  %v5180_v26 = vadd.f32 %v950_v57, %v9784_v62  ;;  %v9786_v15 = vld [vmem:[#allocation104_spill] sm:$0xff]  ;;  %v9788_v35 = vld [vmem:[#allocation107_spill] sm:$0xff]  ;;  %v5278_v11 = vmul.f32 0.010420735, %v5275_v51 }
  0xdd   :  { %9779 = vst [vmem:[#allocation160_spill] sm:$0xff] %v5171_v47  ;;  %9781 = vst [vmem:[#allocation161_spill] sm:$0xff] %v5174_v23  ;;  %v5183_v5 = vadd.f32 %v951_v27, %v9786_v15  ;;  %v5186_v7 = vadd.f32 %v952_v32, %v9788_v35  ;;  %v9790_v50 = vld [vmem:[#allocation108_spill] sm:$0xff]  ;;  %v5194_v28 = vld [vmem:[%s8494_s0 + $0x18] sm:$0xff]  ;;  %v1103_v46 = vrot.slane %v5224_v44, 1 }
  0xde   :  { %9783 = vst [vmem:[#allocation162_spill] sm:$0xff] %v5177_v14  ;;  %9785 = vst [vmem:[#allocation163_spill] sm:$0xff] %v5180_v26  ;;  %v5189_v37 = vadd.f32 %v953_v1, %v9790_v50  ;;  %v5197_v3 = vmul.f32 0.010420735, %v5194_v28  ;;  %v5202_v31 = vld [vmem:[%s8494_s0 + $0x20] sm:$0xff]  ;;  %v9804_v50 = vld [vmem:[#allocation111_spill] sm:$0xff] }
  0xdf   :  { %9787 = vst [vmem:[#allocation164_spill] sm:$0xff] %v5183_v5  ;;  %9789 = vst [vmem:[#allocation2_spill] sm:$0xff] %v5186_v7  ;;  %v5205_v57 = vmul.f32 0.010420735, %v5202_v31  ;;  %v9796_v27 = vld [vmem:[#allocation110_spill] sm:$0xff]  ;;  %v5235_v35 = vadd.f32 %v955_v49, %v9804_v50  ;;  %v5248_v34 = vld [vmem:[%s8494_s0 + $0x48] sm:$0xff] }
  0xe0   :  { %9791 = vst [vmem:[#allocation49_spill] sm:$0xff] %v5189_v37  ;;  %9792 = vst [vmem:[#allocation56_spill] sm:$0xff] %v5194_v28  ;;  %v5208_v32 = vadd.f32 %v954_v40, %v9796_v27  ;;  %v5213_v1 = vld [vmem:[%s8494_s0 + $0x28] sm:$0xf]  ;;  %v5229_v40 = vld [vmem:[%s8494_s0 + $0x38] sm:$0xff]  ;;  %v1098_v14 = vrot.slane %v5197_v3, 1 }
  0xe1   :  { %9793 = vst [vmem:[#allocation225_spill] sm:$0xff] %v5197_v3  ;;  %9794 = vst [vmem:[#allocation226_spill] sm:$0xff] %v5202_v31  ;;  %v5216_v22 = vmul.f32 0.010420735, %v5213_v1  ;;  %v5232_v27 = vmul.f32 0.010420735, %v5229_v40  ;;  %v5595_v3 = vadd.f32 %v5135_v0, %v5129_v13 }
  0xe2   :  { %9795 = vst [vmem:[#allocation227_spill] sm:$0xff] %v5205_v57  ;;  %9797 = vst [vmem:[#allocation228_spill] sm:$0xff] %v5208_v32  ;;  %v5240_v15 = vld [vmem:[%s8494_s0 + $0x40] sm:$0xf]  ;;  %v5251_v25 = vmul.f32 0.010420735, %v5248_v34 }
  0xe3   :  { %9798 = vst [vmem:[#allocation229_spill] sm:$0xff] %v5213_v1  ;;  %9799 = vst [vmem:[#allocation230_spill] sm:$0xff] %v5216_v22  ;;  %v5243_v62 = vmul.f32 0.010420735, %v5240_v15  ;;  %v5256_v49 = vld [vmem:[%s8494_s0 + $0x50] sm:$0xff]  ;;  %v9812_v55 = vld [vmem:[#allocation114_spill] sm:$0xff] }
  0xe4   :  { %9802 = vst [vmem:[#allocation233_spill] sm:$0xff] %v5229_v40  ;;  %9803 = vst [vmem:[#allocation234_spill] sm:$0xff] %v5232_v27  ;;  %v5259_v50 = vmul.f32 0.010420735, %v5256_v49  ;;  %v5262_v33 = vadd.f32 %v956_v43, %v9812_v55  ;;  %v5283_v43 = vld [vmem:[%s8494_s0 + $0x68] sm:$0xff]  ;;  %v5329_v29 = vld [vmem:[%s8494_s0 + $0x90] sm:$0xff] }
  0xe5   :  { %9805 = vst [vmem:[#allocation235_spill] sm:$0xff] %v5235_v35  ;;  %9806 = vst [vmem:[#allocation236_spill] sm:$0xff] %v5240_v15  ;;  %v5286_v55 = vmul.f32 0.010420735, %v5283_v43  ;;  %v9820_v63 = vld [vmem:[#allocation115_spill] sm:$0xff]  ;;  %v5413_v35 = vld [vmem:[%s8494_s0 + $0xd8] sm:$0xff] }
  0xe6   :  { %9807 = vst [vmem:[#allocation237_spill] sm:$0xff] %v5243_v62  ;;  %9808 = vst [vmem:[#allocation238_spill] sm:$0xff] %v5248_v34  ;;  %v5289_v45 = vadd.f32 %v957_v30, %v9820_v63  ;;  %v5294_v16 = vld [vmem:[%s8494_s0 + $0x70] sm:$0xf]  ;;  %v5310_v30 = vld [vmem:[%s8494_s0 + $0x80] sm:$0xff]  ;;  %v1101_v23 = vrot.slane %v5216_v22, 1 }
  0xe7   :  { %9809 = vst [vmem:[#allocation239_spill] sm:$0xff] %v5251_v25  ;;  %9810 = vst [vmem:[#allocation240_spill] sm:$0xff] %v5256_v49  ;;  %v5297_v60 = vmul.f32 0.010420735, %v5294_v16  ;;  %v5313_v63 = vmul.f32 0.010420735, %v5310_v30 }
  0xe8   :  { %9811 = vst [vmem:[#allocation241_spill] sm:$0xff] %v5259_v50  ;;  %9813 = vst [vmem:[#allocation242_spill] sm:$0xff] %v5262_v33  ;;  %v5357_v33 = vld [vmem:[%s8494_s0 + $0xa8] sm:$0xff]  ;;  %v5377_v49 = vld [vmem:[%s8494_s0 + $0xb8] sm:$0xf]  ;;  %v1104_v41 = vrot.slane %v5232_v27, 1 }
  0xe9   :  { %9814 = vst [vmem:[#allocation243_spill] sm:$0xff] %v5267_v17  ;;  %9815 = vst [vmem:[#allocation244_spill] sm:$0xff] %v5270_v56  ;;  %v5332_v17 = vmul.f32 0.010420735, %v5329_v29  ;;  %v5385_v34 = vld [vmem:[%s8494_s0 + $0xc0] sm:$0xff]  ;;  %v5469_v32 = vld [vmem:[%s8494_s0 + $0x108] sm:$0xff] }
  0xea   :  { %9817 = vst [vmem:[#allocation246_spill] sm:$0xff] %v5278_v11  ;;  %9818 = vst [vmem:[#allocation247_spill] sm:$0xff] %v5283_v43  ;;  %v5405_v15 = vld [vmem:[%s8494_s0 + $0xd0] sm:$0xf]  ;;  %v5433_v40 = vld [vmem:[%s8494_s0 + $0xe8] sm:$0xf] }
  0xeb   :  { %9819 = vst [vmem:[#allocation248_spill] sm:$0xff] %v5286_v55  ;;  %9821 = vst [vmem:[#allocation249_spill] sm:$0xff] %v5289_v45  ;;  %v9828_v45 = vld [vmem:[#allocation118_spill] sm:$0xff]  ;;  %v5489_v31 = vld [vmem:[%s8494_s0 + $0x118] sm:$0xf]  ;;  %v1119_v36 = vrot.slane %v5313_v63, 1 }
  0xec   :  { %9822 = vst [vmem:[#allocation250_spill] sm:$0xff] %v5294_v16  ;;  %9823 = vst [vmem:[#allocation251_spill] sm:$0xff] %v5297_v60  ;;  %v5316_v43 = vadd.f32 %v958_v42, %v9828_v45  ;;  %v5321_v16 = vld [vmem:[%s8494_s0 + $0x88] sm:$0xf]  ;;  %v5337_v42 = vld [vmem:[%s8494_s0 + $0x98] sm:$0xff] }
  0xed   :  { %9826 = vst [vmem:[#allocation254_spill] sm:$0xff] %v5310_v30  ;;  %9827 = vst [vmem:[#allocation255_spill] sm:$0xff] %v5313_v63  ;;  %v5324_v51 = vmul.f32 0.010420735, %v5321_v16  ;;  %v5340_v45 = vmul.f32 0.010420735, %v5337_v42 }
  0xee   :  { %9829 = vst [vmem:[#allocation256_spill] sm:$0xff] %v5316_v43  ;;  %9830 = vst [vmem:[#allocation257_spill] sm:$0xff] %v5321_v16  ;;  %v9836_v43 = vld [vmem:[#allocation119_spill] sm:$0xff]  ;;  %v5349_v30 = vld [vmem:[%s8494_s0 + $0xa0] sm:$0xf] }
  0xef   :  { %9831 = vst [vmem:[#allocation258_spill] sm:$0xff] %v5324_v51  ;;  %9832 = vst [vmem:[#allocation259_spill] sm:$0xff] %v5329_v29  ;;  %v5344_v16 = vadd.f32 %v5097_v4, %v9836_v43  ;;  %v5352_v29 = vmul.f32 0.010420735, %v5349_v30  ;;  %v5365_v4 = vld [vmem:[%s8494_s0 + $0xb0] sm:$0xff]  ;;  %v5497_v28 = vld [vmem:[%s8494_s0 + $0x120] sm:$0xff] }
  0xf0   :  { %9833 = vst [vmem:[#allocation260_spill] sm:$0xff] %v5332_v17  ;;  %9834 = vst [vmem:[#allocation261_spill] sm:$0xff] %v5337_v42  ;;  %v5360_v42 = vmul.f32 0.010420735, %v5357_v33  ;;  %v5368_v43 = vmul.f32 0.010420735, %v5365_v4 }
  0xf1   :  { %9835 = vst [vmem:[#allocation262_spill] sm:$0xff] %v5340_v45  ;;  %9837 = vst [vmem:[#allocation263_spill] sm:$0xff] %v5344_v16  ;;  %v9844_v16 = vld [vmem:[#allocation121_spill] sm:$0xff]  ;;  %v5461_v1 = vld [vmem:[%s8494_s0 + $0x100] sm:$0xf] }
  0xf2   :  { %9838 = vst [vmem:[#allocation264_spill] sm:$0xff] %v5349_v30  ;;  %9839 = vst [vmem:[#allocation265_spill] sm:$0xff] %v5352_v29  ;;  %v5372_v30 = vadd.f32 %v5101_v38, %v9844_v16  ;;  %v5393_v38 = vld [vmem:[%s8494_s0 + $0xc8] sm:$0xff]  ;;  %v5558_v26 = vld [vmem:[%s8494_s0 + $0x150] sm:$0xff]  ;;  %v5617_v13 = vmul.f32 0.010420735, %v5083_v54  ;;  %v5633_v54 = vsel %vm228_vm0, %v1103_v46, %v1104_v41 }
  0xf3   :  { %9840 = vst [vmem:[#allocation266_spill] sm:$0xff] %v5357_v33  ;;  %9841 = vst [vmem:[#allocation267_spill] sm:$0xff] %v5360_v42  ;;  %v5380_v33 = vmul.f32 0.010420735, %v5377_v49  ;;  %v5396_v16 = vmul.f32 0.010420735, %v5393_v38 }
  0xf4   :  { %9842 = vst [vmem:[#allocation268_spill] sm:$0xff] %v5365_v4  ;;  %9843 = vst [vmem:[#allocation269_spill] sm:$0xff] %v5368_v43  ;;  %v5388_v4 = vmul.f32 0.010420735, %v5385_v34  ;;  %v5585_v47 = vld [vmem:[%s8494_s0 + $0x168] sm:$0xff]  ;;  %v5600_v22 = vld [vmem:[%s8494_s0 + $0x170] sm:$0xff] }
  0xf5   :  { %9845 = vst [vmem:[#allocation270_spill] sm:$0xff] %v5372_v30  ;;  %9846 = vst [vmem:[#allocation271_spill] sm:$0xff] %v5377_v49  ;;  %v9852_v30 = vld [vmem:[#allocation122_spill] sm:$0xff]  ;;  %v5608_v44 = vld [vmem:[%s8494_s0 + $0x178] sm:$0xf]  ;;  %v1126_v46 = vrot.slane %v5352_v29, 1 }
  0xf6   :  { %9847 = vst [vmem:[#allocation272_spill] sm:$0xff] %v5380_v33  ;;  %9848 = vst [vmem:[#allocation273_spill] sm:$0xff] %v5385_v34  ;;  %v5400_v49 = vadd.f32 %v5105_v59, %v9852_v30  ;;  %v5408_v34 = vmul.f32 0.010420735, %v5405_v15  ;;  %v5421_v59 = vld [vmem:[%s8494_s0 + $0xe0] sm:$0xff] }
  0xf7   :  { %9849 = vst [vmem:[#allocation274_spill] sm:$0xff] %v5388_v4  ;;  %9850 = vst [vmem:[#allocation275_spill] sm:$0xff] %v5393_v38  ;;  %v5416_v38 = vmul.f32 0.010420735, %v5413_v35  ;;  %v5424_v30 = vmul.f32 0.010420735, %v5421_v59 }
  0xf8   :  { %9851 = vst [vmem:[#allocation276_spill] sm:$0xff] %v5396_v16  ;;  %9853 = vst [vmem:[#allocation277_spill] sm:$0xff] %v5400_v49  ;;  %v9860_v49 = vld [vmem:[#allocation124_spill] sm:$0xff]  ;;  %v5611_v27 = vmul.f32 0.010420735, %v5608_v44  ;;  %v1136_v63 = vrot.slane %v5408_v34, 1 }
  0xf9   :  { %9854 = vst [vmem:[#allocation278_spill] sm:$0xff] %v5405_v15  ;;  %9855 = vst [vmem:[#allocation279_spill] sm:$0xff] %v5408_v34  ;;  %v5428_v15 = vadd.f32 %v5109_v61, %v9860_v49  ;;  %v5449_v61 = vld [vmem:[%s8494_s0 + $0xf8] sm:$0xff]  ;;  %v1138_v29 = vrot.slane %v5416_v38, 1 }
  0xfa   :  { %9856 = vst [vmem:[#allocation280_spill] sm:$0xff] %v5413_v35  ;;  %9857 = vst [vmem:[#allocation281_spill] sm:$0xff] %v5416_v38  ;;  %v5436_v35 = vmul.f32 0.010420735, %v5433_v40  ;;  %v5452_v49 = vmul.f32 0.010420735, %v5449_v61 }
  0xfb   :  { %9858 = vst [vmem:[#allocation282_spill] sm:$0xff] %v5421_v59  ;;  %9859 = vst [vmem:[#allocation283_spill] sm:$0xff] %v5424_v30  ;;  %v5444_v59 = vmul.f32 0.010420735, %v5441_v53  ;;  %v5464_v53 = vmul.f32 0.010420735, %v5461_v1 }
  0xfc   :  { %9861 = vst [vmem:[#allocation284_spill] sm:$0xff] %v5428_v15  ;;  %9862 = vst [vmem:[#allocation285_spill] sm:$0xff] %v5433_v40  ;;  %v9868_v15 = vld [vmem:[#allocation125_spill] sm:$0xff]  ;;  %v1141_v34 = vrot.slane %v5436_v35, 1  ;;  %v10013_v38 = vld [vmem:[#allocation271_spill] sm:$0xff] }
  0xfd   :  { %9863 = vst [vmem:[#allocation286_spill] sm:$0xff] %v5436_v35  ;;  %9865 = vst [vmem:[#allocation288_spill] sm:$0xff] %v5444_v59  ;;  %v5456_v40 = vadd.f32 %v5113_v48, %v9868_v15  ;;  %v5477_v48 = vld [vmem:[%s8494_s0 + $0x110] sm:$0xff]  ;;  %v10007_v35 = vld [vmem:[#allocation266_spill] sm:$0xff] }
  0xfe   :  { %9866 = vst [vmem:[#allocation289_spill] sm:$0xff] %v5449_v61  ;;  %9867 = vst [vmem:[#allocation290_spill] sm:$0xff] %v5452_v49  ;;  %v5472_v61 = vmul.f32 0.010420735, %v5469_v32  ;;  %v5480_v15 = vmul.f32 0.010420735, %v5477_v48 }
  0xff   :  { %9869 = vst [vmem:[#allocation291_spill] sm:$0xff] %v5456_v40  ;;  %9870 = vst [vmem:[#allocation292_spill] sm:$0xff] %v5461_v1  ;;  %v9876_v40 = vld [vmem:[#allocation127_spill] sm:$0xff] }
 0x100   :  { %9871 = vst [vmem:[#allocation293_spill] sm:$0xff] %v5464_v53  ;;  %9872 = vst [vmem:[#allocation294_spill] sm:$0xff] %v5469_v32  ;;  %v5484_v1 = vadd.f32 %v5117_v39, %v9876_v40  ;;  %v5492_v32 = vmul.f32 0.010420735, %v5489_v31  ;;  %v5505_v39 = vld [vmem:[%s8494_s0 + $0x128] sm:$0xff] }
 0x101   :  { %9873 = vst [vmem:[#allocation295_spill] sm:$0xff] %v5472_v61  ;;  %9874 = vst [vmem:[#allocation296_spill] sm:$0xff] %v5477_v48  ;;  %v5500_v48 = vmul.f32 0.010420735, %v5497_v28  ;;  %v5508_v40 = vmul.f32 0.010420735, %v5505_v39 }
 0x102   :  { %9875 = vst [vmem:[#allocation297_spill] sm:$0xff] %v5480_v15  ;;  %9877 = vst [vmem:[#allocation298_spill] sm:$0xff] %v5484_v1  ;;  %v9885_v1 = vld [vmem:[#allocation128_spill] sm:$0xff] }
 0x103   :  { %9878 = vst [vmem:[#allocation299_spill] sm:$0xff] %v5489_v31  ;;  %9879 = vst [vmem:[#allocation300_spill] sm:$0xff] %v5492_v32  ;;  %v5513_v31 = vld [vmem:[%s8494_s0 + $0x190] sm:$0xf]  ;;  %v5517_v37 = vadd.f32 %v5121_v12, %v9885_v1  ;;  %v5538_v12 = vld [vmem:[%s8494_s0 + $0x140] sm:$0xff] }
 0x104   :  { %9880 = vst [vmem:[#allocation301_spill] sm:$0xff] %v5497_v28  ;;  %9881 = vst [vmem:[#allocation302_spill] sm:$0xff] %v5500_v48  ;;  %v5522_v28 = vld [vmem:[%s8494_s0 + $0x130] sm:$0xf]  ;;  %v5541_v1 = vmul.f32 0.010420735, %v5538_v12 }
 0x105   :  { %9882 = vst [vmem:[#allocation303_spill] sm:$0xff] %v5505_v39  ;;  %9883 = vst [vmem:[#allocation304_spill] sm:$0xff] %v5508_v40  ;;  %v5525_v7 = vmul.f32 0.010420735, %v5522_v28  ;;  %v5530_v39 = vld [vmem:[%s8494_s0 + $0x138] sm:$0xff] }
 0x106   :  { %9884 = vst [vmem:[#allocation305_spill] sm:$0xff] %v5513_v31  ;;  %9886 = vst [vmem:[#allocation306_spill] sm:$0xff] %v5517_v37  ;;  %v5533_v5 = vmul.f32 0.010420735, %v5530_v39  ;;  %v5550_v37 = vld [vmem:[%s8494_s0 + $0x148] sm:$0xf] }
 0x107   :  { %9887 = vst [vmem:[#allocation307_spill] sm:$0xff] %v5522_v28  ;;  %9888 = vst [vmem:[#allocation308_spill] sm:$0xff] %v5525_v7  ;;  %v5545_v28 = vadd.f32 %v5132_v8, %v5125_v24  ;;  %v5566_v24 = vld [vmem:[%s8494_s0 + $0x158] sm:$0xff]  ;;  %v5620_v0 = vmul.f32 0.010420735, %v5513_v31 }
 0x108   :  { %9889 = vst [vmem:[#allocation309_spill] sm:$0xff] %v5530_v39  ;;  %9890 = vst [vmem:[#allocation310_spill] sm:$0xff] %v5533_v5  ;;  %v5553_v39 = vmul.f32 0.010420735, %v5550_v37  ;;  %v5569_v8 = vmul.f32 0.010420735, %v5566_v24 }
 0x109   :  { %9891 = vst [vmem:[#allocation311_spill] sm:$0xff] %v5538_v12  ;;  %9892 = vst [vmem:[#allocation312_spill] sm:$0xff] %v5541_v1  ;;  %v5561_v12 = vmul.f32 0.010420735, %v5558_v26 }
 0x10a   :  { %9893 = vst [vmem:[#allocation313_spill] sm:$0xff] %v5545_v28  ;;  %9894 = vst [vmem:[#allocation314_spill] sm:$0xff] %v5550_v37  ;;  %v5574_v37 = vld [vmem:[%s8494_s0 + $0x160] sm:$0xf] }
 0x10b   :  { %9895 = vst [vmem:[#allocation315_spill] sm:$0xff] %v5553_v39  ;;  %9896 = vst [vmem:[#allocation316_spill] sm:$0xff] %v5558_v26  ;;  %v5577_v28 = vmul.f32 0.010420735, %v5574_v37  ;;  %v1099_v26 = vrot.slane %v5205_v57, 1 }
 0x10c   :  { %9897 = vst [vmem:[#allocation317_spill] sm:$0xff] %v5561_v12  ;;  %9898 = vst [vmem:[#allocation318_spill] sm:$0xff] %v5566_v24  ;;  %v5588_v24 = vmul.f32 0.010420735, %v5585_v47  ;;  %v5603_v57 = vmul.f32 0.010420735, %v5600_v22 }
 0x10d   :  { %9899 = vst [vmem:[#allocation319_spill] sm:$0xff] %v5569_v8  ;;  %9900 = vst [vmem:[#allocation320_spill] sm:$0xff] %v5574_v37  ;;  %v1106_v37 = vrot.slane %v5243_v62, 1  ;;  %v5614_v62 = vmul.f32 0.010420735, %v5078_v18  ;;  %v5628_v21 = vsel %vm228_vm0, %v1099_v26, %v1101_v23  ;;  %v1113_v18 = vrot.slane %v5278_v11, 1 }
 0x10e   :  { %9901 = vst [vmem:[#allocation321_spill] sm:$0xff] %v5577_v28  ;;  %9902 = vst [vmem:[#allocation322_spill] sm:$0xff] %v5585_v47  ;;  %v5625_v47 = vsel %vm228_vm0, %v1098_v14, %v1099_v26  ;;  %v1118_v14 = vrot.slane %v5305_v10, 1  ;;  %v1121_v26 = vrot.slane %v5324_v51, 1  ;;  %v1123_v23 = vrot.slane %v5332_v17, 1 }
 0x10f   :  { %9903 = vst [vmem:[#allocation323_spill] sm:$0xff] %v5588_v24  ;;  %9904 = vst [vmem:[#allocation324_spill] sm:$0xff] %v5595_v3  ;;  %v1109_v3 = vrot.slane %v5259_v50, 1  ;;  %v5636_v31 = vsel %vm228_vm0, %v1104_v41, %v1106_v37  ;;  %v1116_v50 = vrot.slane %v5297_v60, 1  ;;  %v1124_v11 = vrot.slane %v5340_v45, 1 }
 0x110   :  { %9905 = vst [vmem:[#allocation325_spill] sm:$0xff] %v5600_v22  ;;  %9906 = vst [vmem:[#allocation326_spill] sm:$0xff] %v5603_v57  ;;  %v1108_v22 = vrot.slane %v5251_v25, 1  ;;  %v1114_v25 = vrot.slane %v5286_v55, 1  ;;  %v1129_v37 = vrot.slane %v5368_v43, 1  ;;  %v1131_v41 = vrot.slane %v5380_v33, 1 }
 0x111   :  { %9907 = vst [vmem:[#allocation327_spill] sm:$0xff] %v5608_v44  ;;  %9908 = vst [vmem:[#allocation328_spill] sm:$0xff] %v5611_v27  ;;  %v1111_v44 = vrot.slane %v5270_v56, 1  ;;  %v1128_v56 = vrot.slane %v5360_v42, 1  ;;  %v1133_v60 = vrot.slane %v5388_v4, 1  ;;  %v1134_v10 = vrot.slane %v5396_v16, 1 }
 0x112   :  { %9909 = vst [vmem:[#allocation329_spill] sm:$0xff] %v5614_v62  ;;  %9910 = vst [vmem:[#allocation330_spill] sm:$0xff] %v5617_v13  ;;  %v5653_v51 = vsel %vm228_vm0, %v1108_v22, %v1109_v3  ;;  %v1139_v42 = vrot.slane %v5424_v30, 1  ;;  %v5661_v43 = vsel %vm228_vm0, %v1113_v18, %v1114_v25  ;;  %v5664_v33 = vsel %vm228_vm0, %v1114_v25, %v1116_v50  ;;  %v10015_v4 = vld [vmem:[#allocation273_spill] sm:$0xff]  ;;  %v10021_v55 = vld [vmem:[#allocation278_spill] sm:$0xff] }
 0x113   :  { %9911 = vst [vmem:[#allocation331_spill] sm:$0xff] %v5620_v0  ;;  %9912 = vst [vmem:[#allocation332_spill] sm:$0xff] %v5653_v51  ;;  %v5656_v17 = vsel %vm228_vm0, %v1109_v3, %v1111_v44  ;;  %v5667_v16 = vsel %vm228_vm0, %v1118_v14, %v1119_v36  ;;  %v5671_v22 = vsel %vm228_vm0, %v1119_v36, %v1121_v26  ;;  %v1143_v36 = vrot.slane %v5444_v59, 1  ;;  %v10005_v59 = vld [vmem:[#allocation264_spill] sm:$0xff] }
 0x114   :  { %9913 = vst [vmem:[#allocation333_spill] sm:$0xff] %v5656_v17  ;;  %9914 = vst [vmem:[#allocation334_spill] sm:$0xff] %v5661_v43  ;;  %v5674_v44 = vsel %vm228_vm0, %v1123_v23, %v1124_v11  ;;  %v5677_v3 = vsel %vm228_vm0, %v1124_v11, %v1126_v46  ;;  %v5680_v18 = vsel %vm228_vm0, %v1128_v56, %v1129_v37  ;;  %v1144_v11 = vrot.slane %v5452_v49, 1 }
 0x115   :  { %9915 = vst [vmem:[#allocation335_spill] sm:$0xff] %v5664_v33  ;;  %9916 = vst [vmem:[#allocation336_spill] sm:$0xff] %v5667_v16  ;;  %v5683_v25 = vsel %vm228_vm0, %v1129_v37, %v1131_v41  ;;  %v5686_v50 = vsel %vm228_vm0, %v1133_v60, %v1134_v10  ;;  %v5689_v14 = vsel %vm228_vm0, %v1134_v10, %v1136_v63  ;;  %v1146_v23 = vrot.slane %v5464_v53, 1 }
 0x116   :  { %9917 = vst [vmem:[#allocation337_spill] sm:$0xff] %v5671_v22  ;;  %9918 = vst [vmem:[#allocation338_spill] sm:$0xff] %v5674_v44  ;;  %v5693_v26 = vsel %vm228_vm0, %v1138_v29, %v1139_v42  ;;  %v1148_v56 = vrot.slane %v5472_v61, 1  ;;  %v5699_v46 = vsel %vm228_vm0, %v1139_v42, %v1141_v34  ;;  %v1149_v60 = vrot.slane %v5480_v15, 1 }
 0x117   :  { %9919 = vst [vmem:[#allocation339_spill] sm:$0xff] %v5677_v3  ;;  %9920 = vst [vmem:[#allocation340_spill] sm:$0xff] %v5680_v18  ;;  %v1151_v37 = vrot.slane %v5492_v32, 1  ;;  %v1153_v63 = vrot.slane %v5500_v48, 1  ;;  %v1154_v10 = vrot.slane %v5508_v40, 1  ;;  %v1156_v29 = vrot.slane %v5525_v7, 1 }
 0x118   :  { %9921 = vst [vmem:[#allocation341_spill] sm:$0xff] %v5683_v25  ;;  %9922 = vst [vmem:[#allocation342_spill] sm:$0xff] %v5686_v50  ;;  %v1158_v41 = vrot.slane %v5533_v5, 1  ;;  %v1159_v49 = vrot.slane %v5541_v1, 1  ;;  %v1161_v53 = vrot.slane %v5553_v39, 1  ;;  %v1163_v61 = vrot.slane %v5561_v12, 1 }
 0x119   :  { %9923 = vst [vmem:[#allocation343_spill] sm:$0xff] %v5689_v14  ;;  %9924 = vst [vmem:[#allocation344_spill] sm:$0xff] %v5693_v26  ;;  %v1164_v34 = vrot.slane %v5569_v8, 1  ;;  %v1166_v42 = vrot.slane %v5577_v28, 1  ;;  %v5713_v32 = vsel %vm228_vm0, %v1143_v36, %v1144_v11  ;;  %v1168_v48 = vrot.slane %v5588_v24, 1  ;;  %v9999_v1 = vld [vmem:[#allocation259_spill] sm:$0xff] }
 0x11a   :  { %9925 = vst [vmem:[#allocation345_spill] sm:$0xff] %v5699_v46  ;;  %9926 = vst [vmem:[#allocation346_spill] sm:$0xff] %v5713_v32  ;;  %v1169_v40 = vrot.slane %v5603_v57, 1  ;;  %v1171_v7 = vrot.slane %v5611_v27, 1  ;;  %v5719_v5 = vsel %vm228_vm0, %v1144_v11, %v1146_v23  ;;  %v1173_v39 = vrot.slane %v5614_v62, 1  ;;  %v9997_v57 = vld [vmem:[#allocation257_spill] sm:$0xff] }
 0x11b   :  { %9927 = vst [vmem:[#allocation347_spill] sm:$0xff] %v5719_v5  ;;  %v1174_v12 = vrot.slane %v5617_v13, 1  ;;  %v1176_v8 = vrot.slane %v5620_v0, 1  ;;  %v5725_v28 = vsel %vm228_vm0, %v1148_v56, %v1149_v60  ;;  %v5728_v36 = vsel %vm228_vm0, %v1149_v60, %v1151_v37  ;;  %v9991_v13 = vld [vmem:[#allocation252_spill] sm:$0xff] }
 0x11c   :  { %9928 = vst [vmem:[#allocation348_spill] sm:$0xff] %v5725_v28  ;;  %9929 = vst [vmem:[#allocation349_spill] sm:$0xff] %v5728_v36  ;;  %v5731_v24 = vsel %vm228_vm0, %v1153_v63, %v1154_v10  ;;  %v5734_v27 = vsel %vm228_vm0, %v1154_v10, %v1156_v29  ;;  %v5737_v11 = vsel %vm228_vm0, %v1158_v41, %v1159_v49  ;;  %v9952_v10 = vld [vmem:[#allocation162_spill] sm:$0xff]  ;;  %v9954_v41 = vld [vmem:[#allocation163_spill] sm:$0xff]  ;;  %v5885_v62 = vmul.f32 0.04255406, %v9991_v13 }
 0x11d   :  { %9930 = vst [vmem:[#allocation350_spill] sm:$0xff] %v5731_v24  ;;  %9931 = vst [vmem:[#allocation351_spill] sm:$0xff] %v5734_v27  ;;  %v5740_v23 = vsel %vm228_vm0, %v1159_v49, %v1161_v53  ;;  %v5743_v0 = vsel %vm228_vm0, %v1163_v61, %v1164_v34  ;;  %v5746_v56 = vsel %vm228_vm0, %v1164_v34, %v1166_v42  ;;  %v9956_v42 = vld [vmem:[#allocation164_spill] sm:$0xff]  ;;  %v5898_v15 = vmul.f32 0.04255406, %v9999_v1 }
 0x11e   :  { %9932 = vst [vmem:[#allocation352_spill] sm:$0xff] %v5737_v11  ;;  %9933 = vst [vmem:[#allocation353_spill] sm:$0xff] %v5740_v23  ;;  %v5749_v60 = vsel %vm228_vm0, %v1168_v48, %v1169_v40  ;;  %v5752_v37 = vsel %vm228_vm0, %v1169_v40, %v1171_v7  ;;  %v5756_v63 = vadd.f32 %v5625_v47, %v5138_v20  ;;  %v9940_v20 = vld [vmem:[#allocation156_spill] sm:$0xff]  ;;  %v5911_v30 = vmul.f32 0.04255406, %v10007_v35 }
 0x11f   :  { %9934 = vst [vmem:[#allocation354_spill] sm:$0xff] %v5743_v0  ;;  %9935 = vst [vmem:[#allocation355_spill] sm:$0xff] %v5746_v56  ;;  %v5760_v53 = vadd.f32 %v5628_v21, %v5141_v9  ;;  %v5763_v49 = vsel %vm228_vm0, %v1173_v39, %v1174_v12  ;;  %v5766_v61 = vsel %vm228_vm0, %v1174_v12, %v1176_v8  ;;  %v9944_v9 = vld [vmem:[#allocation158_spill] sm:$0xff]  ;;  %v9948_v40 = vld [vmem:[#allocation160_spill] sm:$0xff]  ;;  %v5924_v45 = vmul.f32 0.04255406, %v10015_v4 }
 0x120   :  { %9936 = vst [vmem:[#allocation356_spill] sm:$0xff] %v5749_v60  ;;  %9937 = vst [vmem:[#allocation357_spill] sm:$0xff] %v5752_v37  ;;  %v5770_v48 = vadd.f32 %v5633_v54, %v5144_v6  ;;  %v5774_v7 = vadd.f32 %v5636_v31, %v5147_v52  ;;  %v5778_v47 = vadd.f32 %v5653_v51, %v5150_v2  ;;  %v9942_v54 = vld [vmem:[#allocation157_spill] sm:$0xff]  ;;  %v9946_v31 = vld [vmem:[#allocation159_spill] sm:$0xff] }
 0x121   :  { %9938 = vst [vmem:[#allocation358_spill] sm:$0xff] %v5763_v49  ;;  %9939 = vst [vmem:[#allocation359_spill] sm:$0xff] %v5766_v61  ;;  %v5782_v21 = vadd.f32 %v5656_v17, %v5153_v19  ;;  %v5786_v8 = vadd.f32 %v5661_v43, %v5156_v58  ;;  %v5790_v6 = vadd.f32 %v5664_v33, %v9940_v20  ;;  %v9950_v39 = vld [vmem:[#allocation161_spill] sm:$0xff]  ;;  %v9981_v33 = vld [vmem:[#allocation243_spill] sm:$0xff] }
 0x122   :  { %v5794_v52 = vadd.f32 %v5667_v16, %v9942_v54  ;;  %v5798_v2 = vadd.f32 %v5671_v22, %v9944_v9  ;;  %v5802_v19 = vadd.f32 %v5674_v44, %v9946_v31  ;;  %v5806_v58 = vadd.f32 %v5677_v3, %v9948_v40  ;;  %v9958_v54 = vld [vmem:[#allocation2_spill] sm:$0xff]  ;;  %v9960_v31 = vld [vmem:[#allocation49_spill] sm:$0xff]  ;;  %v9967_v3 = vld [vmem:[#allocation231_spill] sm:$0xff] }
 0x123   :  { %9941 = vst [vmem:[#allocation156_spill] sm:$0xff] %v5790_v6  ;;  %v5810_v12 = vadd.f32 %v5680_v18, %v9950_v39  ;;  %v5814_v29 = vadd.f32 %v5683_v25, %v9952_v10  ;;  %v5818_v34 = vadd.f32 %v5686_v50, %v9954_v41  ;;  %v5822_v20 = vadd.f32 %v5689_v14, %v9956_v42  ;;  %v9962_v39 = vld [vmem:[#allocation56_spill] sm:$0xff]  ;;  %v9963_v10 = vld [vmem:[#allocation226_spill] sm:$0xff]  ;;  %v9966_v42 = vld [vmem:[#allocation229_spill] sm:$0xff] }
 0x124   :  { %9943 = vst [vmem:[#allocation157_spill] sm:$0xff] %v5794_v52  ;;  %9945 = vst [vmem:[#allocation158_spill] sm:$0xff] %v5798_v2  ;;  %v5826_v9 = vadd.f32 %v5693_v26, %v9958_v54  ;;  %v5830_v40 = vadd.f32 %v5699_v46, %v9960_v31  ;;  %v5833_v18 = vmul.f32 0.04255406, %v9962_v39  ;;  %v5836_v25 = vmul.f32 0.04255406, %v9963_v10 }
 0x125   :  { %9947 = vst [vmem:[#allocation159_spill] sm:$0xff] %v5802_v19  ;;  %9949 = vst [vmem:[#allocation160_spill] sm:$0xff] %v5806_v58  ;;  %v9964_v41 = vld [vmem:[#allocation228_spill] sm:$0xff]  ;;  %v5843_v14 = vmul.f32 0.04255406, %v9966_v42  ;;  %v9969_v26 = vld [vmem:[#allocation233_spill] sm:$0xff] }
 0x126   :  { %9951 = vst [vmem:[#allocation161_spill] sm:$0xff] %v5810_v12  ;;  %9953 = vst [vmem:[#allocation162_spill] sm:$0xff] %v5814_v29  ;;  %v5840_v50 = vadd.f32 %v5713_v32, %v9964_v41  ;;  %v5846_v54 = vmul.f32 0.04255406, %v9967_v3  ;;  %v5849_v44 = vmul.f32 0.04255406, %v9969_v26 }
 0x127   :  { %9955 = vst [vmem:[#allocation163_spill] sm:$0xff] %v5818_v34  ;;  %9957 = vst [vmem:[#allocation164_spill] sm:$0xff] %v5822_v20  ;;  %v9971_v31 = vld [vmem:[#allocation235_spill] sm:$0xff]  ;;  %v9973_v46 = vld [vmem:[#allocation236_spill] sm:$0xff]  ;;  %v5869_v26 = vmul.f32 0.04255406, %v9981_v33 }
 0x128   :  { %9959 = vst [vmem:[#allocation2_spill] sm:$0xff] %v5826_v9  ;;  %9961 = vst [vmem:[#allocation49_spill] sm:$0xff] %v5830_v40  ;;  %v5853_v39 = vadd.f32 %v5719_v5, %v9971_v31  ;;  %v5856_v10 = vmul.f32 0.04255406, %v9973_v46  ;;  %v9975_v22 = vld [vmem:[#allocation238_spill] sm:$0xff]  ;;  %v9977_v41 = vld [vmem:[#allocation240_spill] sm:$0xff] }
 0x129   :  { %9965 = vst [vmem:[#allocation56_spill] sm:$0xff] %v5840_v50  ;;  %9968 = vst [vmem:[#allocation226_spill] sm:$0xff] %v5846_v54  ;;  %v5859_v16 = vmul.f32 0.04255406, %v9975_v22  ;;  %v5862_v32 = vmul.f32 0.04255406, %v9977_v41 }
 0x12a   :  { %9970 = vst [vmem:[#allocation228_spill] sm:$0xff] %v5849_v44  ;;  %9972 = vst [vmem:[#allocation229_spill] sm:$0xff] %v5853_v39  ;;  %v9979_v42 = vld [vmem:[#allocation242_spill] sm:$0xff]  ;;  %v9983_v43 = vld [vmem:[#allocation245_spill] sm:$0xff]  ;;  %v1341_v58 = vrot.slane %v5843_v14, 2 }
 0x12b   :  { %9974 = vst [vmem:[#allocation231_spill] sm:$0xff] %v5856_v10  ;;  %9976 = vst [vmem:[#allocation233_spill] sm:$0xff] %v5859_v16  ;;  %v5866_v3 = vadd.f32 %v5725_v28, %v9979_v42  ;;  %v5872_v17 = vmul.f32 0.04255406, %v9983_v43  ;;  %v9985_v31 = vld [vmem:[#allocation247_spill] sm:$0xff]  ;;  %v9987_v46 = vld [vmem:[#allocation249_spill] sm:$0xff] }
 0x12c   :  { %9978 = vst [vmem:[#allocation235_spill] sm:$0xff] %v5862_v32  ;;  %9982 = vst [vmem:[#allocation238_spill] sm:$0xff] %v5869_v26  ;;  %v5875_v5 = vmul.f32 0.04255406, %v9985_v31  ;;  %v5879_v22 = vadd.f32 %v5728_v36, %v9987_v46  ;;  %v9989_v51 = vld [vmem:[#allocation250_spill] sm:$0xff]  ;;  %v9995_v33 = vld [vmem:[#allocation256_spill] sm:$0xff] }
 0x12d   :  { %9980 = vst [vmem:[#allocation236_spill] sm:$0xff] %v5866_v3  ;;  %9984 = vst [vmem:[#allocation240_spill] sm:$0xff] %v5872_v17  ;;  %v5882_v41 = vmul.f32 0.04255406, %v9989_v51  ;;  %v9993_v42 = vld [vmem:[#allocation254_spill] sm:$0xff]  ;;  %v5892_v43 = vadd.f32 %v5731_v24, %v9995_v33  ;;  %v10001_v46 = vld [vmem:[#allocation261_spill] sm:$0xff] }
 0x12e   :  { %9986 = vst [vmem:[#allocation242_spill] sm:$0xff] %v5875_v5  ;;  %9988 = vst [vmem:[#allocation243_spill] sm:$0xff] %v5879_v22  ;;  %v5888_v28 = vmul.f32 0.04255406, %v9993_v42  ;;  %v5895_v31 = vmul.f32 0.04255406, %v9997_v57 }
 0x12f   :  { %9990 = vst [vmem:[#allocation245_spill] sm:$0xff] %v5882_v41  ;;  %9992 = vst [vmem:[#allocation247_spill] sm:$0xff] %v5885_v62  ;;  %v5901_v36 = vmul.f32 0.04255406, %v10001_v46  ;;  %v10003_v51 = vld [vmem:[#allocation263_spill] sm:$0xff]  ;;  %v10009_v33 = vld [vmem:[#allocation268_spill] sm:$0xff] }
 0x130   :  { %9994 = vst [vmem:[#allocation249_spill] sm:$0xff] %v5888_v28  ;;  %9996 = vst [vmem:[#allocation250_spill] sm:$0xff] %v5892_v43  ;;  %v5905_v13 = vadd.f32 %v5734_v27, %v10003_v51  ;;  %v5908_v42 = vmul.f32 0.04255406, %v10005_v59  ;;  %v5914_v24 = vmul.f32 0.04255406, %v10009_v33 }
 0x131   :  { %9998 = vst [vmem:[#allocation252_spill] sm:$0xff] %v5895_v31  ;;  %10000 = vst [vmem:[#allocation254_spill] sm:$0xff] %v5898_v15  ;;  %v10011_v57 = vld [vmem:[#allocation270_spill] sm:$0xff]  ;;  %v5921_v46 = vmul.f32 0.04255406, %v10013_v38  ;;  %v10017_v51 = vld [vmem:[#allocation275_spill] sm:$0xff] }
 0x132   :  { %10002 = vst [vmem:[#allocation256_spill] sm:$0xff] %v5901_v36  ;;  %10004 = vst [vmem:[#allocation257_spill] sm:$0xff] %v5905_v13  ;;  %v5918_v1 = vadd.f32 %v5737_v11, %v10011_v57  ;;  %v5927_v27 = vmul.f32 0.04255406, %v10017_v51  ;;  %v10019_v59 = vld [vmem:[#allocation277_spill] sm:$0xff]  ;;  %v10023_v13 = vld [vmem:[#allocation280_spill] sm:$0xff] }
 0x133   :  { %10006 = vst [vmem:[#allocation259_spill] sm:$0xff] %v5908_v42  ;;  %10008 = vst [vmem:[#allocation261_spill] sm:$0xff] %v5911_v30  ;;  %v5931_v35 = vadd.f32 %v5740_v23, %v10019_v59  ;;  %v5934_v33 = vmul.f32 0.04255406, %v10021_v55  ;;  %v5937_v43 = vmul.f32 0.04255406, %v10023_v13 }
 0x134   :  { %10010 = vst [vmem:[#allocation263_spill] sm:$0xff] %v5914_v24  ;;  %10012 = vst [vmem:[#allocation264_spill] sm:$0xff] %v5918_v1  ;;  %v10025_v57 = vld [vmem:[#allocation282_spill] sm:$0xff]  ;;  %v10027_v38 = vld [vmem:[#allocation284_spill] sm:$0xff] }
 0x135   :  { %10014 = vst [vmem:[#allocation266_spill] sm:$0xff] %v5921_v46  ;;  %10016 = vst [vmem:[#allocation268_spill] sm:$0xff] %v5924_v45  ;;  %v5940_v11 = vmul.f32 0.04255406, %v10025_v57  ;;  %v5944_v4 = vadd.f32 %v5743_v0, %v10027_v38  ;;  %v10029_v1 = vld [vmem:[#allocation285_spill] sm:$0xff]  ;;  %v10031_v22 = vld [vmem:[#allocation287_spill] sm:$0xff] }
 0x136   :  { %10018 = vst [vmem:[#allocation270_spill] sm:$0xff] %v5927_v27  ;;  %10020 = vst [vmem:[#allocation271_spill] sm:$0xff] %v5931_v35  ;;  %v5947_v51 = vmul.f32 0.04255406, %v10029_v1  ;;  %v5950_v3 = vmul.f32 0.04255406, %v10031_v22 }
 0x137   :  { %10022 = vst [vmem:[#allocation273_spill] sm:$0xff] %v5934_v33  ;;  %10024 = vst [vmem:[#allocation275_spill] sm:$0xff] %v5937_v43  ;;  %v10033_v59 = vld [vmem:[#allocation289_spill] sm:$0xff]  ;;  %v10035_v55 = vld [vmem:[#allocation291_spill] sm:$0xff] }
 0x138   :  { %10026 = vst [vmem:[#allocation277_spill] sm:$0xff] %v5940_v11  ;;  %10028 = vst [vmem:[#allocation278_spill] sm:$0xff] %v5944_v4  ;;  %v5953_v23 = vmul.f32 0.04255406, %v10033_v59  ;;  %v5957_v13 = vadd.f32 %v5746_v56, %v10035_v55  ;;  %v10037_v35 = vld [vmem:[#allocation292_spill] sm:$0xff]  ;;  %v10039_v39 = vld [vmem:[#allocation294_spill] sm:$0xff] }
 0x139   :  { %10030 = vst [vmem:[#allocation280_spill] sm:$0xff] %v5947_v51  ;;  %10032 = vst [vmem:[#allocation282_spill] sm:$0xff] %v5950_v3  ;;  %v5960_v57 = vmul.f32 0.04255406, %v10037_v35  ;;  %v5963_v50 = vmul.f32 0.04255406, %v10039_v39 }
 0x13a   :  { %10034 = vst [vmem:[#allocation284_spill] sm:$0xff] %v5953_v23  ;;  %10036 = vst [vmem:[#allocation285_spill] sm:$0xff] %v5957_v13  ;;  %v10041_v38 = vld [vmem:[#allocation296_spill] sm:$0xff]  ;;  %v10043_v1 = vld [vmem:[#allocation298_spill] sm:$0xff] }
 0x13b   :  { %10038 = vst [vmem:[#allocation287_spill] sm:$0xff] %v5960_v57  ;;  %10040 = vst [vmem:[#allocation289_spill] sm:$0xff] %v5963_v50  ;;  %v5966_v0 = vmul.f32 0.04255406, %v10041_v38  ;;  %v5970_v22 = vadd.f32 %v5749_v60, %v10043_v1  ;;  %v10045_v4 = vld [vmem:[#allocation299_spill] sm:$0xff]  ;;  %v10047_v40 = vld [vmem:[#allocation301_spill] sm:$0xff] }
 0x13c   :  { %v5973_v59 = vmul.f32 0.04255406, %v10045_v4  ;;  %v5976_v9 = vmul.f32 0.04255406, %v10047_v40  ;;  %v10049_v55 = vld [vmem:[#allocation303_spill] sm:$0xff]  ;;  %v10051_v35 = vld [vmem:[#allocation306_spill] sm:$0xff] }
 0x13d   :  { %10042 = vst [vmem:[#allocation291_spill] sm:$0xff] %v5966_v0  ;;  %10044 = vst [vmem:[#allocation292_spill] sm:$0xff] %v5970_v22  ;;  %v5979_v56 = vmul.f32 0.04255406, %v10049_v55  ;;  %v5983_v39 = vadd.f32 %v5752_v37, %v10051_v35  ;;  %v10053_v13 = vld [vmem:[#allocation307_spill] sm:$0xff]  ;;  %v10055_v20 = vld [vmem:[#allocation309_spill] sm:$0xff] }
 0x13e   :  { %10046 = vst [vmem:[#allocation294_spill] sm:$0xff] %v5973_v59  ;;  %10048 = vst [vmem:[#allocation296_spill] sm:$0xff] %v5976_v9  ;;  %v5986_v38 = vmul.f32 0.04255406, %v10053_v13  ;;  %v5989_v34 = vmul.f32 0.04255406, %v10055_v20 }
 0x13f   :  { %10050 = vst [vmem:[#allocation298_spill] sm:$0xff] %v5979_v56  ;;  %10052 = vst [vmem:[#allocation299_spill] sm:$0xff] %v5983_v39  ;;  %v10057_v1 = vld [vmem:[#allocation311_spill] sm:$0xff]  ;;  %v10059_v4 = vld [vmem:[#allocation313_spill] sm:$0xff]  ;;  %v1338_v20 = vrot.slane %v5833_v18, 2 }
 0x140   :  { %10054 = vst [vmem:[#allocation301_spill] sm:$0xff] %v5986_v38  ;;  %10056 = vst [vmem:[#allocation303_spill] sm:$0xff] %v5989_v34  ;;  %v5992_v60 = vmul.f32 0.04255406, %v10057_v1  ;;  %v5996_v40 = vadd.f32 %v5763_v49, %v10059_v4  ;;  %v10061_v22 = vld [vmem:[#allocation314_spill] sm:$0xff]  ;;  %v10063_v29 = vld [vmem:[#allocation316_spill] sm:$0xff] }
 0x141   :  { %v5999_v55 = vmul.f32 0.04255406, %v10061_v22  ;;  %v6002_v12 = vmul.f32 0.04255406, %v10063_v29  ;;  %v10065_v35 = vld [vmem:[#allocation318_spill] sm:$0xff]  ;;  %v10067_v13 = vld [vmem:[#allocation320_spill] sm:$0xff] }
 0x142   :  { %10058 = vst [vmem:[#allocation306_spill] sm:$0xff] %v5992_v60  ;;  %10060 = vst [vmem:[#allocation307_spill] sm:$0xff] %v5996_v40  ;;  %v6005_v37 = vmul.f32 0.04255406, %v10065_v35  ;;  %v6008_v39 = vmul.f32 0.04255406, %v10067_v13 }
 0x143   :  { %10062 = vst [vmem:[#allocation309_spill] sm:$0xff] %v5999_v55  ;;  %10064 = vst [vmem:[#allocation311_spill] sm:$0xff] %v6002_v12  ;;  %v1339_v1 = vrot.slane %v5836_v25, 2  ;;  %v10069_v4 = vld [vmem:[#allocation322_spill] sm:$0xff]  ;;  %v1343_v22 = vrot.slane %v5846_v54, 2  ;;  %v1344_v29 = vrot.slane %v5849_v44, 2 }
 0x144   :  { %10066 = vst [vmem:[#allocation313_spill] sm:$0xff] %v6005_v37  ;;  %10068 = vst [vmem:[#allocation314_spill] sm:$0xff] %v6008_v39  ;;  %v6014_v49 = vmul.f32 0.04255406, %v10069_v4  ;;  %v1346_v40 = vrot.slane %v5856_v10, 2  ;;  %v10071_v35 = vld [vmem:[#allocation324_spill] sm:$0xff] }
 0x145   :  { %v6021_v19 = vadd.f32 %v5766_v61, %v10071_v35  ;;  %v10073_v13 = vld [vmem:[#allocation325_spill] sm:$0xff]  ;;  %v10075_v18 = vld [vmem:[#allocation327_spill] sm:$0xff]  ;;  %v10079_v4 = vld [vmem:[#allocation224_spill] sm:$0xff]  ;;  %v1348_v10 = vrot.slane %v5859_v16, 2  ;;  %v1349_v35 = vrot.slane %v5862_v32, 2  ;;  %v6041_v61 = vsel %vm469_vm1, %v1338_v20, %v1339_v1 }
 0x146   :  { %10070 = vst [vmem:[#allocation316_spill] sm:$0xff] %v6014_v49  ;;  %v6024_v2 = vmul.f32 0.04255406, %v10073_v13  ;;  %v6027_v25 = vmul.f32 0.04255406, %v10075_v18  ;;  %v10077_v14 = vld [vmem:[#allocation25_spill] sm:$0xff]  ;;  %v6044_v13 = vsel %vm469_vm1, %v1339_v1, %v1341_v58 }
 0x147   :  { %10072 = vst [vmem:[#allocation318_spill] sm:$0xff] %v6021_v19  ;;  %v6030_v52 = vmul.f32 0.04255406, %v10077_v14  ;;  %v6033_v6 = vmul.f32 0.04255406, %v10079_v4  ;;  %v10081_v54 = vld [vmem:[#allocation305_spill] sm:$0xff]  ;;  %v6049_v4 = vsel %vm469_vm1, %v1343_v22, %v1344_v29 }
 0x148   :  { %10074 = vst [vmem:[#allocation320_spill] sm:$0xff] %v6024_v2  ;;  %10076 = vst [vmem:[#allocation322_spill] sm:$0xff] %v6027_v25  ;;  %v6036_v44 = vmul.f32 0.04255406, %v10081_v54  ;;  %v1351_v18 = vrot.slane %v5869_v26, 2  ;;  %v1353_v14 = vrot.slane %v5872_v17, 2  ;;  %v6052_v54 = vsel %vm469_vm1, %v1344_v29, %v1346_v40 }
 0x149   :  { %10078 = vst [vmem:[#allocation324_spill] sm:$0xff] %v6030_v52  ;;  %10080 = vst [vmem:[#allocation325_spill] sm:$0xff] %v6033_v6  ;;  %v1354_v16 = vrot.slane %v5875_v5, 2  ;;  %v1356_v32 = vrot.slane %v5882_v41, 2  ;;  %v1358_v20 = vrot.slane %v5885_v62, 2  ;;  %v1359_v19 = vrot.slane %v5888_v28, 2 }
 0x14a   :  { %10082 = vst [vmem:[#allocation327_spill] sm:$0xff] %v6036_v44  ;;  %v1361_v58 = vrot.slane %v5895_v31, 2  ;;  %v1363_v1 = vrot.slane %v5898_v15, 2  ;;  %v1364_v17 = vrot.slane %v5901_v36, 2  ;;  %v1366_v22 = vrot.slane %v5908_v42, 2  ;;  %v10173_v36 = vld [vmem:[#allocation276_spill] sm:$0xff] }
 0x14b   :  { %v1368_v26 = vrot.slane %v5911_v30, 2  ;;  %v1369_v40 = vrot.slane %v5914_v24, 2  ;;  %v1371_v29 = vrot.slane %v5921_v46, 2  ;;  %v1373_v41 = vrot.slane %v5924_v45, 2  ;;  %v10172_v45 = vld [vmem:[#allocation274_spill] sm:$0xff]  ;;  %v10174_v5 = vld [vmem:[#allocation279_spill] sm:$0xff] }
 0x14c   :  { %v1374_v62 = vrot.slane %v5927_v27, 2  ;;  %v1376_v28 = vrot.slane %v5934_v33, 2  ;;  %v6069_v31 = vsel %vm469_vm1, %v1348_v10, %v1349_v35  ;;  %v6072_v15 = vsel %vm469_vm1, %v1349_v35, %v1351_v18 }
 0x14d   :  { %10083 = vst [vmem:[#allocation25_spill] sm:$0xff] %v6069_v31  ;;  %10084 = vst [vmem:[#allocation224_spill] sm:$0xff] %v6072_v15  ;;  %v1378_v42 = vrot.slane %v5937_v43, 2  ;;  %v1379_v30 = vrot.slane %v5940_v11, 2  ;;  %v6077_v24 = vsel %vm469_vm1, %v1353_v14, %v1354_v16  ;;  %v6080_v46 = vsel %vm469_vm1, %v1354_v16, %v1356_v32  ;;  %v10171_v43 = vld [vmem:[#allocation272_spill] sm:$0xff] }
 0x14e   :  { %10085 = vst [vmem:[#allocation360_spill] sm:$0xff] %v6077_v24  ;;  %10086 = vst [vmem:[#allocation361_spill] sm:$0xff] %v6080_v46  ;;  %v6083_v27 = vsel %vm469_vm1, %v1358_v20, %v1359_v19  ;;  %v1381_v33 = vrot.slane %v5947_v51, 2  ;;  %v6087_v10 = vsel %vm469_vm1, %v1359_v19, %v1361_v58  ;;  %v6090_v35 = vsel %vm469_vm1, %v1363_v1, %v1364_v17  ;;  %v10169_v51 = vld [vmem:[#allocation267_spill] sm:$0xff] }
 0x14f   :  { %10087 = vst [vmem:[#allocation362_spill] sm:$0xff] %v6083_v27  ;;  %10088 = vst [vmem:[#allocation363_spill] sm:$0xff] %v6087_v10  ;;  %v6093_v18 = vsel %vm469_vm1, %v1364_v17, %v1366_v22  ;;  %v6096_v14 = vsel %vm469_vm1, %v1368_v26, %v1369_v40  ;;  %v6099_v16 = vsel %vm469_vm1, %v1369_v40, %v1371_v29  ;;  %v1383_v19 = vrot.slane %v5950_v3, 2  ;;  %v10168_v3 = vld [vmem:[#allocation265_spill] sm:$0xff] }
 0x150   :  { %10089 = vst [vmem:[#allocation364_spill] sm:$0xff] %v6090_v35  ;;  %10090 = vst [vmem:[#allocation365_spill] sm:$0xff] %v6093_v18  ;;  %v6102_v32 = vsel %vm469_vm1, %v1373_v41, %v1374_v62  ;;  %v6105_v20 = vsel %vm469_vm1, %v1374_v62, %v1376_v28  ;;  %v6109_v58 = vsel %vm469_vm1, %v1378_v42, %v1379_v30  ;;  %v1384_v17 = vrot.slane %v5953_v23, 2 }
 0x151   :  { %10091 = vst [vmem:[#allocation366_spill] sm:$0xff] %v6096_v14  ;;  %10092 = vst [vmem:[#allocation367_spill] sm:$0xff] %v6099_v16  ;;  %v1386_v1 = vrot.slane %v5960_v57, 2  ;;  %v1388_v26 = vrot.slane %v5963_v50, 2  ;;  %v6115_v22 = vsel %vm469_vm1, %v1379_v30, %v1381_v33  ;;  %v1389_v41 = vrot.slane %v5966_v0, 2  ;;  %v10167_v0 = vld [vmem:[#allocation262_spill] sm:$0xff] }
 0x152   :  { %10093 = vst [vmem:[#allocation368_spill] sm:$0xff] %v6102_v32  ;;  %10094 = vst [vmem:[#allocation369_spill] sm:$0xff] %v6105_v20  ;;  %v1391_v40 = vrot.slane %v5973_v59, 2  ;;  %v1393_v62 = vrot.slane %v5976_v9, 2  ;;  %v1394_v28 = vrot.slane %v5979_v56, 2  ;;  %v1396_v42 = vrot.slane %v5986_v38, 2 }
 0x153   :  { %10095 = vst [vmem:[#allocation370_spill] sm:$0xff] %v6109_v58  ;;  %10096 = vst [vmem:[#allocation371_spill] sm:$0xff] %v6115_v22  ;;  %v1398_v29 = vrot.slane %v5989_v34, 2  ;;  %v1399_v23 = vrot.slane %v5992_v60, 2  ;;  %v1401_v57 = vrot.slane %v5999_v55, 2  ;;  %v1403_v50 = vrot.slane %v6002_v12, 2 }
 0x154   :  { %v1404_v30 = vrot.slane %v6005_v37, 2  ;;  %v1406_v33 = vrot.slane %v6008_v39, 2  ;;  %v6129_v59 = vsel %vm469_vm1, %v1383_v19, %v1384_v17  ;;  %v1408_v9 = vrot.slane %v6014_v49, 2  ;;  %v10166_v60 = vld [vmem:[#allocation260_spill] sm:$0xff] }
 0x155   :  { %10097 = vst [vmem:[#allocation372_spill] sm:$0xff] %v6129_v59  ;;  %v1409_v56 = vrot.slane %v6024_v2, 2  ;;  %v1411_v38 = vrot.slane %v6027_v25, 2  ;;  %v6135_v34 = vsel %vm469_vm1, %v1384_v17, %v1386_v1  ;;  %v1413_v55 = vrot.slane %v6030_v52, 2  ;;  %v10164_v52 = vld [vmem:[#allocation255_spill] sm:$0xff] }
 0x156   :  { %10098 = vst [vmem:[#allocation373_spill] sm:$0xff] %v6135_v34  ;;  %v1414_v12 = vrot.slane %v6033_v6, 2  ;;  %v1416_v37 = vrot.slane %v6036_v44, 2  ;;  %v6141_v39 = vsel %vm469_vm1, %v1388_v26, %v1389_v41  ;;  %v6144_v19 = vsel %vm469_vm1, %v1389_v41, %v1391_v40  ;;  %v10163_v6 = vld [vmem:[#allocation253_spill] sm:$0xff] }
 0x157   :  { %10099 = vst [vmem:[#allocation374_spill] sm:$0xff] %v6141_v39  ;;  %10100 = vst [vmem:[#allocation375_spill] sm:$0xff] %v6144_v19  ;;  %v6147_v49 = vsel %vm469_vm1, %v1393_v62, %v1394_v28  ;;  %v6150_v25 = vsel %vm469_vm1, %v1394_v28, %v1396_v42  ;;  %v6153_v17 = vsel %vm469_vm1, %v1398_v29, %v1399_v23  ;;  %v10117_v28 = vld [vmem:[#allocation162_spill] sm:$0xff]  ;;  %v10118_v29 = vld [vmem:[#allocation163_spill] sm:$0xff]  ;;  %v1503_v2 = vrot.slane %v10164_v52, 3 }
 0x158   :  { %10101 = vst [vmem:[#allocation376_spill] sm:$0xff] %v6147_v49  ;;  %10102 = vst [vmem:[#allocation377_spill] sm:$0xff] %v6150_v25  ;;  %v6156_v1 = vsel %vm469_vm1, %v1399_v23, %v1401_v57  ;;  %v6159_v44 = vsel %vm469_vm1, %v1403_v50, %v1404_v30  ;;  %v6162_v26 = vsel %vm469_vm1, %v1404_v30, %v1406_v33  ;;  %v10119_v33 = vld [vmem:[#allocation164_spill] sm:$0xff]  ;;  %v1512_v11 = vrot.slane %v10169_v51, 3 }
 0x159   :  { %10103 = vst [vmem:[#allocation378_spill] sm:$0xff] %v6153_v17  ;;  %10104 = vst [vmem:[#allocation379_spill] sm:$0xff] %v6156_v1  ;;  %v6165_v41 = vsel %vm469_vm1, %v1408_v9, %v1409_v56  ;;  %v6168_v40 = vsel %vm469_vm1, %v1409_v56, %v1411_v38  ;;  %v6172_v62 = vadd.f32 %v6041_v61, %v5756_v63  ;;  %v10111_v61 = vld [vmem:[#allocation156_spill] sm:$0xff]  ;;  %v10114_v38 = vld [vmem:[#allocation159_spill] sm:$0xff]  ;;  %v1520_v52 = vrot.slane %v10174_v5, 3 }
 0x15a   :  { %10105 = vst [vmem:[#allocation380_spill] sm:$0xff] %v6159_v44  ;;  %10106 = vst [vmem:[#allocation381_spill] sm:$0xff] %v6162_v26  ;;  %v6176_v23 = vadd.f32 %v6044_v13, %v5760_v53  ;;  %v6179_v50 = vsel %vm469_vm1, %v1413_v55, %v1414_v12  ;;  %v6182_v57 = vsel %vm469_vm1, %v1414_v12, %v1416_v37  ;;  %v10112_v12 = vld [vmem:[#allocation157_spill] sm:$0xff]  ;;  %v10115_v55 = vld [vmem:[#allocation160_spill] sm:$0xff] }
 0x15b   :  { %10107 = vst [vmem:[#allocation382_spill] sm:$0xff] %v6165_v41  ;;  %10108 = vst [vmem:[#allocation383_spill] sm:$0xff] %v6168_v40  ;;  %v6186_v9 = vadd.f32 %v6049_v4, %v5770_v48  ;;  %v6190_v56 = vadd.f32 %v6052_v54, %v5774_v7  ;;  %v6194_v63 = vadd.f32 %v6069_v31, %v5778_v47  ;;  %v10113_v54 = vld [vmem:[#allocation158_spill] sm:$0xff]  ;;  %v10116_v13 = vld [vmem:[#allocation161_spill] sm:$0xff] }
 0x15c   :  { %10109 = vst [vmem:[#allocation384_spill] sm:$0xff] %v6179_v50  ;;  %10110 = vst [vmem:[#allocation385_spill] sm:$0xff] %v6182_v57  ;;  %v6198_v53 = vadd.f32 %v6072_v15, %v5782_v21  ;;  %v6202_v37 = vadd.f32 %v6077_v24, %v5786_v8  ;;  %v6206_v48 = vadd.f32 %v6080_v46, %v10111_v61  ;;  %v10145_v46 = vld [vmem:[#allocation278_spill] sm:$0xff] }
 0x15d   :  { %v6210_v7 = vadd.f32 %v6083_v27, %v10112_v12  ;;  %v6214_v47 = vadd.f32 %v6087_v10, %v10113_v54  ;;  %v6218_v21 = vadd.f32 %v6090_v35, %v10114_v38  ;;  %v6222_v8 = vadd.f32 %v6093_v18, %v10115_v55  ;;  %v10120_v12 = vld [vmem:[#allocation2_spill] sm:$0xff]  ;;  %v10121_v38 = vld [vmem:[#allocation49_spill] sm:$0xff] }
 0x15e   :  { %v6226_v4 = vadd.f32 %v6096_v14, %v10116_v13  ;;  %v6230_v42 = vadd.f32 %v6099_v16, %v10117_v28  ;;  %v6234_v30 = vadd.f32 %v6102_v32, %v10118_v29  ;;  %v6238_v61 = vadd.f32 %v6105_v20, %v10119_v33  ;;  %v10123_v13 = vld [vmem:[#allocation56_spill] sm:$0xff]  ;;  %v10125_v16 = vld [vmem:[#allocation229_spill] sm:$0xff]  ;;  %v10129_v20 = vld [vmem:[#allocation243_spill] sm:$0xff] }
 0x15f   :  { %v6242_v54 = vadd.f32 %v6109_v58, %v10120_v12  ;;  %v6246_v55 = vadd.f32 %v6115_v22, %v10121_v38  ;;  %v6250_v28 = vadd.f32 %v6129_v59, %v10123_v13  ;;  %v6254_v29 = vadd.f32 %v6135_v34, %v10125_v16  ;;  %v10127_v32 = vld [vmem:[#allocation236_spill] sm:$0xff]  ;;  %v10131_v58 = vld [vmem:[#allocation250_spill] sm:$0xff]  ;;  %v10133_v22 = vld [vmem:[#allocation257_spill] sm:$0xff] }
 0x160   :  { %v6258_v33 = vadd.f32 %v6141_v39, %v10127_v32  ;;  %v6262_v12 = vadd.f32 %v6144_v19, %v10129_v20  ;;  %v6266_v38 = vadd.f32 %v6147_v49, %v10131_v58  ;;  %v6270_v13 = vadd.f32 %v6150_v25, %v10133_v22  ;;  %v10135_v59 = vld [vmem:[#allocation264_spill] sm:$0xff]  ;;  %v10137_v34 = vld [vmem:[#allocation225_spill] sm:$0xff]  ;;  %v10138_v32 = vld [vmem:[#allocation227_spill] sm:$0xff] }
 0x161   :  { %10122 = vst [vmem:[#allocation156_spill] sm:$0xff] %v6246_v55  ;;  %10124 = vst [vmem:[#allocation157_spill] sm:$0xff] %v6250_v28  ;;  %v6274_v16 = vadd.f32 %v6153_v17, %v10135_v59  ;;  %v1482_v14 = vrot.slane %v10137_v34, 3  ;;  %v1483_v39 = vrot.slane %v10138_v32, 3  ;;  %v10139_v18 = vld [vmem:[#allocation230_spill] sm:$0xff]  ;;  %v10140_v20 = vld [vmem:[#allocation271_spill] sm:$0xff]  ;;  %v6288_v59 = vadd.f32 %v6159_v44, %v10145_v46 }
 0x162   :  { %10126 = vst [vmem:[#allocation158_spill] sm:$0xff] %v6254_v29  ;;  %10128 = vst [vmem:[#allocation159_spill] sm:$0xff] %v6258_v33  ;;  %v1485_v35 = vrot.slane %v10139_v18, 3  ;;  %v6281_v19 = vadd.f32 %v6156_v1, %v10140_v20  ;;  %v10142_v58 = vld [vmem:[#allocation232_spill] sm:$0xff]  ;;  %v10143_v10 = vld [vmem:[#allocation234_spill] sm:$0xff] }
 0x163   :  { %10130 = vst [vmem:[#allocation160_spill] sm:$0xff] %v6262_v12  ;;  %10132 = vst [vmem:[#allocation161_spill] sm:$0xff] %v6266_v38  ;;  %v1487_v49 = vrot.slane %v10142_v58, 3  ;;  %v1488_v27 = vrot.slane %v10143_v10, 3  ;;  %v10144_v22 = vld [vmem:[#allocation237_spill] sm:$0xff]  ;;  %v10149_v32 = vld [vmem:[#allocation292_spill] sm:$0xff]  ;;  %v6313_v15 = vsel %vm614_vm2, %v1482_v14, %v1483_v39 }
 0x164   :  { %10134 = vst [vmem:[#allocation162_spill] sm:$0xff] %v6270_v13  ;;  %10136 = vst [vmem:[#allocation163_spill] sm:$0xff] %v6274_v16  ;;  %v1490_v25 = vrot.slane %v10144_v22, 3  ;;  %v10147_v17 = vld [vmem:[#allocation285_spill] sm:$0xff]  ;;  %v6296_v18 = vadd.f32 %v6165_v41, %v10149_v32  ;;  %v10151_v20 = vld [vmem:[#allocation299_spill] sm:$0xff]  ;;  %v6316_v32 = vsel %vm614_vm2, %v1483_v39, %v1485_v35  ;;  %v1502_v14 = vrot.slane %v10163_v6, 3 }
 0x165   :  { %10141 = vst [vmem:[#allocation164_spill] sm:$0xff] %v6281_v19  ;;  %10146 = vst [vmem:[#allocation2_spill] sm:$0xff] %v6288_v59  ;;  %v6292_v34 = vadd.f32 %v6162_v26, %v10147_v17  ;;  %v6300_v1 = vadd.f32 %v6168_v40, %v10151_v20  ;;  %v10153_v58 = vld [vmem:[#allocation307_spill] sm:$0xff]  ;;  %v10155_v22 = vld [vmem:[#allocation318_spill] sm:$0xff]  ;;  %v1518_v6 = vrot.slane %v10173_v36, 3 }
 0x166   :  { %10150 = vst [vmem:[#allocation56_spill] sm:$0xff] %v6296_v18  ;;  %v6304_v10 = vadd.f32 %v6179_v50, %v10153_v58  ;;  %v6308_v46 = vadd.f32 %v6182_v57, %v10155_v22  ;;  %v10157_v44 = vld [vmem:[#allocation239_spill] sm:$0xff]  ;;  %v10158_v17 = vld [vmem:[#allocation241_spill] sm:$0xff]  ;;  %v10159_v20 = vld [vmem:[#allocation244_spill] sm:$0xff]  ;;  %v6321_v58 = vsel %vm614_vm2, %v1487_v49, %v1488_v27  ;;  %v6324_v22 = vsel %vm614_vm2, %v1488_v27, %v1490_v25 }
 0x167   :  { %10148 = vst [vmem:[#allocation49_spill] sm:$0xff] %v6292_v34  ;;  %10152 = vst [vmem:[#allocation229_spill] sm:$0xff] %v6300_v1  ;;  %v1492_v24 = vrot.slane %v10157_v44, 3  ;;  %v1493_v26 = vrot.slane %v10158_v17, 3  ;;  %v1495_v40 = vrot.slane %v10159_v20, 3  ;;  %v10160_v41 = vld [vmem:[#allocation246_spill] sm:$0xff] }
 0x168   :  { %10154 = vst [vmem:[#allocation236_spill] sm:$0xff] %v6304_v10  ;;  %10156 = vst [vmem:[#allocation243_spill] sm:$0xff] %v6308_v46  ;;  %v1497_v31 = vrot.slane %v10160_v41, 3  ;;  %v10161_v57 = vld [vmem:[#allocation248_spill] sm:$0xff]  ;;  %v10162_v50 = vld [vmem:[#allocation251_spill] sm:$0xff]  ;;  %v1507_v20 = vrot.slane %v10166_v60, 3 }
 0x169   :  { %v1498_v44 = vrot.slane %v10161_v57, 3  ;;  %v1500_v17 = vrot.slane %v10162_v50, 3  ;;  %v10165_v39 = vld [vmem:[#allocation258_spill] sm:$0xff]  ;;  %v1508_v41 = vrot.slane %v10167_v0, 3  ;;  %v1510_v49 = vrot.slane %v10168_v3, 3  ;;  %v10170_v27 = vld [vmem:[#allocation269_spill] sm:$0xff] }
 0x16a   :  { %v1505_v35 = vrot.slane %v10165_v39, 3  ;;  %v1513_v25 = vrot.slane %v10170_v27, 3  ;;  %v1515_v57 = vrot.slane %v10171_v43, 3  ;;  %v1517_v50 = vrot.slane %v10172_v45, 3  ;;  %v10177_v0 = vld [vmem:[#allocation281_spill] sm:$0xff]  ;;  %v10178_v46 = vld [vmem:[#allocation283_spill] sm:$0xff] }
 0x16b   :  { %v6341_v39 = vsel %vm614_vm2, %v1492_v24, %v1493_v26  ;;  %v6344_v60 = vsel %vm614_vm2, %v1493_v26, %v1495_v40  ;;  %v1522_v3 = vrot.slane %v10177_v0, 3  ;;  %v1523_v51 = vrot.slane %v10178_v46, 3  ;;  %v10182_v5 = vld [vmem:[#allocation286_spill] sm:$0xff]  ;;  %v10197_v10 = vld [vmem:[#allocation300_spill] sm:$0xff]  ;;  %v10206_v12 = vld [vmem:[#allocation321_spill] sm:$0xff] }
 0x16c   :  { %10175 = vst [vmem:[#allocation250_spill] sm:$0xff] %v6341_v39  ;;  %10176 = vst [vmem:[#allocation257_spill] sm:$0xff] %v6344_v60  ;;  %v6349_v27 = vsel %vm614_vm2, %v1497_v31, %v1498_v44  ;;  %v6352_v43 = vsel %vm614_vm2, %v1498_v44, %v1500_v17  ;;  %v6355_v45 = vsel %vm614_vm2, %v1502_v14, %v1503_v2  ;;  %v1525_v36 = vrot.slane %v10182_v5, 3  ;;  %v10199_v18 = vld [vmem:[#allocation304_spill] sm:$0xff]  ;;  %v10201_v59 = vld [vmem:[#allocation310_spill] sm:$0xff] }
 0x16d   :  { %10179 = vst [vmem:[#allocation264_spill] sm:$0xff] %v6349_v27  ;;  %10180 = vst [vmem:[#allocation225_spill] sm:$0xff] %v6352_v43  ;;  %v6359_v24 = vsel %vm614_vm2, %v1503_v2, %v1505_v35  ;;  %v6362_v26 = vsel %vm614_vm2, %v1507_v20, %v1508_v41  ;;  %v6365_v40 = vsel %vm614_vm2, %v1508_v41, %v1510_v49  ;;  %v10190_v2 = vld [vmem:[#allocation288_spill] sm:$0xff]  ;;  %v10192_v20 = vld [vmem:[#allocation290_spill] sm:$0xff]  ;;  %v1535_v1 = vrot.slane %v10197_v10, 3 }
 0x16e   :  { %10181 = vst [vmem:[#allocation227_spill] sm:$0xff] %v6355_v45  ;;  %10183 = vst [vmem:[#allocation230_spill] sm:$0xff] %v6359_v24  ;;  %v6368_v31 = vsel %vm614_vm2, %v1512_v11, %v1513_v25  ;;  %v6371_v46 = vsel %vm614_vm2, %v1513_v25, %v1515_v57  ;;  %v6374_v44 = vsel %vm614_vm2, %v1517_v50, %v1518_v6  ;;  %v1527_v14 = vrot.slane %v10190_v2, 3  ;;  %v10193_v49 = vld [vmem:[#allocation293_spill] sm:$0xff]  ;;  %v10194_v11 = vld [vmem:[#allocation295_spill] sm:$0xff] }
 0x16f   :  { %10184 = vst [vmem:[#allocation271_spill] sm:$0xff] %v6362_v26  ;;  %10185 = vst [vmem:[#allocation232_spill] sm:$0xff] %v6365_v40  ;;  %v6377_v17 = vsel %vm614_vm2, %v1518_v6, %v1520_v52  ;;  %v6381_v35 = vsel %vm614_vm2, %v1522_v3, %v1523_v51  ;;  %v1528_v41 = vrot.slane %v10192_v20, 3  ;;  %v1530_v0 = vrot.slane %v10193_v49, 3  ;;  %v10196_v57 = vld [vmem:[#allocation297_spill] sm:$0xff]  ;;  %v10198_v6 = vld [vmem:[#allocation302_spill] sm:$0xff] }
 0x170   :  { %10186 = vst [vmem:[#allocation234_spill] sm:$0xff] %v6368_v31  ;;  %10187 = vst [vmem:[#allocation237_spill] sm:$0xff] %v6371_v46  ;;  %v1532_v5 = vrot.slane %v10194_v11, 3  ;;  %v6387_v25 = vsel %vm614_vm2, %v1523_v51, %v1525_v36  ;;  %v1533_v50 = vrot.slane %v10196_v57, 3  ;;  %v1537_v52 = vrot.slane %v10198_v6, 3  ;;  %v10200_v34 = vld [vmem:[#allocation308_spill] sm:$0xff] }
 0x171   :  { %10188 = vst [vmem:[#allocation278_spill] sm:$0xff] %v6374_v44  ;;  %10189 = vst [vmem:[#allocation285_spill] sm:$0xff] %v6377_v17  ;;  %v1538_v2 = vrot.slane %v10199_v18, 3  ;;  %v1540_v3 = vrot.slane %v10200_v34, 3  ;;  %v1542_v19 = vrot.slane %v10201_v59, 3  ;;  %v10202_v20 = vld [vmem:[#allocation312_spill] sm:$0xff]  ;;  %v6401_v10 = vsel %vm614_vm2, %v1527_v14, %v1528_v41 }
 0x172   :  { %10191 = vst [vmem:[#allocation292_spill] sm:$0xff] %v6381_v35  ;;  %10195 = vst [vmem:[#allocation299_spill] sm:$0xff] %v6387_v25  ;;  %v1543_v16 = vrot.slane %v10202_v20, 3  ;;  %v10203_v49 = vld [vmem:[#allocation315_spill] sm:$0xff]  ;;  %v10204_v11 = vld [vmem:[#allocation317_spill] sm:$0xff]  ;;  %v1550_v57 = vrot.slane %v10206_v12, 3  ;;  %v6407_v59 = vsel %vm614_vm2, %v1528_v41, %v1530_v0  ;;  %v6413_v12 = vsel %vm614_vm2, %v1532_v5, %v1533_v50 }
 0x173   :  { %v1545_v13 = vrot.slane %v10203_v49, 3  ;;  %v1547_v38 = vrot.slane %v10204_v11, 3  ;;  %v10205_v51 = vld [vmem:[#allocation319_spill] sm:$0xff]  ;;  %10207 = vst [vmem:[#allocation307_spill] sm:$0xff] %v6401_v10  ;;  %v10209_v18 = vld [vmem:[#allocation326_spill] sm:$0xff]  ;;  %v10210_v34 = vld [vmem:[#allocation328_spill] sm:$0xff]  ;;  %v6416_v14 = vsel %vm614_vm2, %v1533_v50, %v1535_v1  ;;  %v6444_v50 = vadd.f32 %v6313_v15, %v6172_v62 }
 0x174   :  { %v1548_v36 = vrot.slane %v10205_v51, 3  ;;  %v10208_v6 = vld [vmem:[#allocation323_spill] sm:$0xff]  ;;  %v1553_v29 = vrot.slane %v10209_v18, 3  ;;  %v1555_v28 = vrot.slane %v10210_v34, 3  ;;  %10211 = vst [vmem:[#allocation318_spill] sm:$0xff] %v6407_v59  ;;  %v10212_v20 = vld [vmem:[#allocation329_spill] sm:$0xff]  ;;  %v6422_v18 = vsel %vm614_vm2, %v1538_v2, %v1540_v3 }
 0x175   :  { %v1552_v33 = vrot.slane %v10208_v6, 3  ;;  %v1557_v49 = vrot.slane %v10212_v20, 3  ;;  %v10213_v25 = vld [vmem:[#allocation330_spill] sm:$0xff]  ;;  %v10214_v55 = vld [vmem:[#allocation331_spill] sm:$0xff]  ;;  %10215 = vst [vmem:[#allocation239_spill] sm:$0xff] %v6413_v12  ;;  %10216 = vst [vmem:[#allocation241_spill] sm:$0xff] %v6416_v14  ;;  %v6419_v6 = vsel %vm614_vm2, %v1537_v52, %v1538_v2  ;;  %v6425_v41 = vsel %vm614_vm2, %v1542_v19, %v1543_v16 }
 0x176   :  { %v1558_v11 = vrot.slane %v10213_v25, 3  ;;  %v1560_v51 = vrot.slane %v10214_v55, 3  ;;  %10217 = vst [vmem:[#allocation244_spill] sm:$0xff] %v6419_v6  ;;  %10218 = vst [vmem:[#allocation246_spill] sm:$0xff] %v6422_v18  ;;  %v6428_v0 = vsel %vm614_vm2, %v1543_v16, %v1545_v13  ;;  %v6431_v55 = vsel %vm614_vm2, %v1547_v38, %v1548_v36  ;;  %v10236_v52 = vld [vmem:[#allocation160_spill] sm:$0xff]  ;;  %v10238_v2 = vld [vmem:[#allocation161_spill] sm:$0xff] }
 0x177   :  { %10219 = vst [vmem:[#allocation248_spill] sm:$0xff] %v6425_v41  ;;  %10220 = vst [vmem:[#allocation251_spill] sm:$0xff] %v6428_v0  ;;  %v6434_v5 = vsel %vm614_vm2, %v1548_v36, %v1550_v57  ;;  %v6437_v1 = vsel %vm614_vm2, %v1552_v33, %v1553_v29  ;;  %v6440_v25 = vsel %vm614_vm2, %v1553_v29, %v1555_v28  ;;  %v10227_v29 = vld [vmem:[#allocation156_spill] sm:$0xff]  ;;  %v10240_v36 = vld [vmem:[#allocation162_spill] sm:$0xff] }
 0x178   :  { %10221 = vst [vmem:[#allocation253_spill] sm:$0xff] %v6431_v55  ;;  %10222 = vst [vmem:[#allocation255_spill] sm:$0xff] %v6434_v5  ;;  %v6448_v19 = vadd.f32 %v6316_v32, %v6176_v23  ;;  %v6451_v38 = vsel %vm614_vm2, %v1557_v49, %v1558_v11  ;;  %v6454_v13 = vsel %vm614_vm2, %v1558_v11, %v1560_v51  ;;  %v10230_v32 = vld [vmem:[#allocation157_spill] sm:$0xff]  ;;  %v10242_v34 = vld [vmem:[#allocation163_spill] sm:$0xff] }
 0x179   :  { %10223 = vst [vmem:[#allocation258_spill] sm:$0xff] %v6437_v1  ;;  %10224 = vst [vmem:[#allocation260_spill] sm:$0xff] %v6440_v25  ;;  %v6458_v33 = vadd.f32 %v6321_v58, %v6186_v9  ;;  %v6462_v28 = vadd.f32 %v6324_v22, %v6190_v56  ;;  %v6466_v15 = vadd.f32 %v6341_v39, %v6194_v63  ;;  %v10228_v16 = vld [vmem:[#allocation299_spill] sm:$0xff]  ;;  %v10232_v58 = vld [vmem:[#allocation158_spill] sm:$0xff] }
 0x17a   :  { %10225 = vst [vmem:[#allocation262_spill] sm:$0xff] %v6451_v38  ;;  %10226 = vst [vmem:[#allocation265_spill] sm:$0xff] %v6454_v13  ;;  %v6470_v62 = vadd.f32 %v6344_v60, %v6198_v53  ;;  %v6474_v23 = vadd.f32 %v6349_v27, %v6202_v37  ;;  %v6478_v9 = vadd.f32 %v6352_v43, %v6206_v48  ;;  %v10234_v22 = vld [vmem:[#allocation159_spill] sm:$0xff]  ;;  %v10245_v51 = vld [vmem:[#allocation76_spill] sm:$0xff] }
 0x17b   :  { %v6482_v56 = vadd.f32 %v6355_v45, %v6210_v7  ;;  %v6486_v63 = vadd.f32 %v6359_v24, %v6214_v47  ;;  %v6490_v53 = vadd.f32 %v6362_v26, %v6218_v21  ;;  %v6494_v37 = vadd.f32 %v6365_v40, %v6222_v8  ;;  %v10244_v49 = vld [vmem:[#allocation75_spill] sm:$0xff]  ;;  %v10274_v40 = vld [vmem:[#allocation94_spill] sm:$0xff]  ;;  %v10276_v45 = vld [vmem:[#allocation96_spill] sm:$0xff] }
 0x17c   :  { %v6498_v48 = vadd.f32 %v6368_v31, %v6226_v4  ;;  %v6502_v7 = vadd.f32 %v6371_v46, %v6230_v42  ;;  %v6506_v47 = vadd.f32 %v6374_v44, %v6234_v30  ;;  %v6510_v21 = vadd.f32 %v6377_v17, %v6238_v61  ;;  %v10271_v44 = vld [vmem:[#allocation90_spill] sm:$0xff]  ;;  %v10272_v46 = vld [vmem:[#allocation91_spill] sm:$0xff]  ;;  %v10279_v60 = vld [vmem:[#allocation100_spill] sm:$0xff] }
 0x17d   :  { %v6514_v8 = vadd.f32 %v6381_v35, %v6242_v54  ;;  %v6518_v4 = vadd.f32 %v10228_v16, %v10227_v29  ;;  %v6522_v42 = vadd.f32 %v6401_v10, %v10230_v32  ;;  %v6526_v30 = vadd.f32 %v6407_v59, %v10232_v58  ;;  %v10246_v32 = vld [vmem:[#allocation78_spill] sm:$0xff]  ;;  %v10270_v35 = vld [vmem:[#allocation88_spill] sm:$0xff]  ;;  %v10275_v24 = vld [vmem:[#allocation95_spill] sm:$0xff] }
 0x17e   :  { %v6530_v61 = vadd.f32 %v6413_v12, %v10234_v22  ;;  %v6534_v54 = vadd.f32 %v6416_v14, %v10236_v52  ;;  %v6538_v3 = vadd.f32 %v6419_v6, %v10238_v2  ;;  %v6542_v57 = vadd.f32 %v6422_v18, %v10240_v36  ;;  %v10247_v22 = vld [vmem:[#allocation164_spill] sm:$0xff]  ;;  %v10249_v2 = vld [vmem:[#allocation79_spill] sm:$0xff]  ;;  %v10251_v36 = vld [vmem:[#allocation82_spill] sm:$0xff] }
 0x17f   :  { %10229 = vst [vmem:[#allocation267_spill] sm:$0xff] %v6518_v4  ;;  %10231 = vst [vmem:[#allocation269_spill] sm:$0xff] %v6522_v42  ;;  %v6546_v20 = vadd.f32 %v6425_v41, %v10242_v34  ;;  %v1630_v11 = vrot.slane %v10244_v49, 4  ;;  %v1631_v29 = vrot.slane %v10245_v51, 4  ;;  %v1633_v58 = vrot.slane %v10246_v32, 4  ;;  %v10250_v14 = vld [vmem:[#allocation80_spill] sm:$0xff] }
 0x180   :  { %10233 = vst [vmem:[#allocation272_spill] sm:$0xff] %v6526_v30  ;;  %10235 = vst [vmem:[#allocation274_spill] sm:$0xff] %v6530_v61  ;;  %v6553_v52 = vadd.f32 %v6428_v0, %v10247_v22  ;;  %v1635_v6 = vrot.slane %v10249_v2, 4  ;;  %v1636_v12 = vrot.slane %v10250_v14, 4  ;;  %v1638_v18 = vrot.slane %v10251_v36, 4  ;;  %v10252_v59 = vld [vmem:[#allocation2_spill] sm:$0xff] }
 0x181   :  { %10237 = vst [vmem:[#allocation276_spill] sm:$0xff] %v6534_v54  ;;  %10239 = vst [vmem:[#allocation279_spill] sm:$0xff] %v6538_v3  ;;  %v6560_v34 = vadd.f32 %v6431_v55, %v10252_v59  ;;  %v10254_v41 = vld [vmem:[#allocation49_spill] sm:$0xff]  ;;  %v10256_v51 = vld [vmem:[#allocation56_spill] sm:$0xff]  ;;  %v1646_v17 = vrot.slane %v10270_v35, 4  ;;  %v1650_v31 = vrot.slane %v10272_v46, 4 }
 0x182   :  { %10241 = vst [vmem:[#allocation281_spill] sm:$0xff] %v6542_v57  ;;  %10243 = vst [vmem:[#allocation283_spill] sm:$0xff] %v6546_v20  ;;  %v6564_v49 = vadd.f32 %v6434_v5, %v10254_v41  ;;  %v6568_v32 = vadd.f32 %v6437_v1, %v10256_v51  ;;  %v10258_v22 = vld [vmem:[#allocation229_spill] sm:$0xff]  ;;  %v10260_v2 = vld [vmem:[#allocation236_spill] sm:$0xff]  ;;  %v6587_v51 = vsel %vm823_vm3, %v1630_v11, %v1631_v29  ;;  %v1648_v11 = vrot.slane %v10271_v44, 4 }
 0x183   :  { %10248 = vst [vmem:[#allocation286_spill] sm:$0xff] %v6553_v52  ;;  %10253 = vst [vmem:[#allocation288_spill] sm:$0xff] %v6560_v34  ;;  %v6572_v0 = vadd.f32 %v6440_v25, %v10258_v22  ;;  %v6576_v14 = vadd.f32 %v6451_v38, %v10260_v2  ;;  %v10262_v36 = vld [vmem:[#allocation243_spill] sm:$0xff]  ;;  %v10264_v55 = vld [vmem:[#allocation305_spill] sm:$0xff]  ;;  %v6590_v1 = vsel %vm823_vm3, %v1631_v29, %v1633_v58  ;;  %v1653_v26 = vrot.slane %v10274_v40, 4 }
 0x184   :  { %10255 = vst [vmem:[#allocation290_spill] sm:$0xff] %v6564_v49  ;;  %10257 = vst [vmem:[#allocation293_spill] sm:$0xff] %v6568_v32  ;;  %v6580_v59 = vadd.f32 %v6454_v13, %v10262_v36  ;;  %v6583_v10 = vmul.f32 -0.020517742, %v10264_v55  ;;  %v10266_v41 = vld [vmem:[#allocation83_spill] sm:$0xff]  ;;  %v10267_v22 = vld [vmem:[#allocation84_spill] sm:$0xff]  ;;  %v6595_v38 = vsel %vm823_vm3, %v1635_v6, %v1636_v12  ;;  %v6598_v36 = vsel %vm823_vm3, %v1636_v12, %v1638_v18 }
 0x185   :  { %10259 = vst [vmem:[#allocation295_spill] sm:$0xff] %v6572_v0  ;;  %10261 = vst [vmem:[#allocation297_spill] sm:$0xff] %v6576_v14  ;;  %v1640_v5 = vrot.slane %v10266_v41, 4  ;;  %v1641_v25 = vrot.slane %v10267_v22, 4  ;;  %v10268_v16 = vld [vmem:[#allocation86_spill] sm:$0xff]  ;;  %v10269_v55 = vld [vmem:[#allocation87_spill] sm:$0xff] }
 0x186   :  { %10263 = vst [vmem:[#allocation300_spill] sm:$0xff] %v6580_v59  ;;  %10265 = vst [vmem:[#allocation302_spill] sm:$0xff] %v6583_v10  ;;  %v1643_v2 = vrot.slane %v10268_v16, 4  ;;  %v1645_v13 = vrot.slane %v10269_v55, 4  ;;  %v10273_v29 = vld [vmem:[#allocation92_spill] sm:$0xff]  ;;  %v1655_v16 = vrot.slane %v10275_v24, 4 }
 0x187   :  { %v1651_v58 = vrot.slane %v10273_v29, 4  ;;  %v1656_v6 = vrot.slane %v10276_v45, 4  ;;  %v10277_v43 = vld [vmem:[#allocation98_spill] sm:$0xff]  ;;  %v10278_v12 = vld [vmem:[#allocation99_spill] sm:$0xff]  ;;  %v1661_v39 = vrot.slane %v10279_v60, 4  ;;  %v10282_v41 = vld [vmem:[#allocation104_spill] sm:$0xff]  ;;  %v6615_v29 = vsel %vm823_vm3, %v1640_v5, %v1641_v25 }
 0x188   :  { %v1658_v27 = vrot.slane %v10277_v43, 4  ;;  %v1660_v18 = vrot.slane %v10278_v12, 4  ;;  %v10280_v55 = vld [vmem:[#allocation102_spill] sm:$0xff]  ;;  %v10281_v22 = vld [vmem:[#allocation103_spill] sm:$0xff]  ;;  %v1666_v46 = vrot.slane %v10282_v41, 4  ;;  %10283 = vst [vmem:[#allocation304_spill] sm:$0xff] %v6615_v29  ;;  %v6618_v40 = vsel %vm823_vm3, %v1641_v25, %v1643_v2 }
 0x189   :  { %v1663_v35 = vrot.slane %v10280_v55, 4  ;;  %v1665_v44 = vrot.slane %v10281_v22, 4  ;;  %10284 = vst [vmem:[#allocation308_spill] sm:$0xff] %v6618_v40  ;;  %v6621_v45 = vsel %vm823_vm3, %v1645_v13, %v1646_v17  ;;  %v10286_v43 = vld [vmem:[#allocation106_spill] sm:$0xff]  ;;  %v6625_v12 = vsel %vm823_vm3, %v1646_v17, %v1648_v11  ;;  %v10288_v60 = vld [vmem:[#allocation107_spill] sm:$0xff]  ;;  %v10289_v59 = vld [vmem:[#allocation108_spill] sm:$0xff] }
 0x18a   :  { %10285 = vst [vmem:[#allocation310_spill] sm:$0xff] %v6621_v45  ;;  %v1668_v24 = vrot.slane %v10286_v43, 4  ;;  %10287 = vst [vmem:[#allocation312_spill] sm:$0xff] %v6625_v12  ;;  %v1670_v55 = vrot.slane %v10288_v60, 4  ;;  %v1671_v22 = vrot.slane %v10289_v59, 4  ;;  %v10290_v14 = vld [vmem:[#allocation109_spill] sm:$0xff]  ;;  %v6631_v5 = vsel %vm823_vm3, %v1650_v31, %v1651_v58 }
 0x18b   :  { %v1673_v41 = vrot.slane %v10290_v14, 4  ;;  %10291 = vst [vmem:[#allocation315_spill] sm:$0xff] %v6631_v5  ;;  %v6634_v25 = vsel %vm823_vm3, %v1651_v58, %v1653_v26  ;;  %v6637_v13 = vsel %vm823_vm3, %v1655_v16, %v1656_v6  ;;  %v6640_v2 = vsel %vm823_vm3, %v1656_v6, %v1658_v27  ;;  %v10298_v31 = vld [vmem:[#allocation110_spill] sm:$0xff]  ;;  %v10300_v58 = vld [vmem:[#allocation111_spill] sm:$0xff]  ;;  %v10301_v59 = vld [vmem:[#allocation113_spill] sm:$0xff] }
 0x18c   :  { %10292 = vst [vmem:[#allocation317_spill] sm:$0xff] %v6634_v25  ;;  %10293 = vst [vmem:[#allocation319_spill] sm:$0xff] %v6637_v13  ;;  %v6643_v17 = vsel %vm823_vm3, %v1660_v18, %v1661_v39  ;;  %v6646_v11 = vsel %vm823_vm3, %v1661_v39, %v1663_v35  ;;  %v6649_v14 = vsel %vm823_vm3, %v1665_v44, %v1666_v46  ;;  %v1675_v43 = vrot.slane %v10298_v31, 4  ;;  %v10302_v27 = vld [vmem:[#allocation114_spill] sm:$0xff]  ;;  %v10305_v35 = vld [vmem:[#allocation115_spill] sm:$0xff] }
 0x18d   :  { %10294 = vst [vmem:[#allocation321_spill] sm:$0xff] %v6640_v2  ;;  %10295 = vst [vmem:[#allocation323_spill] sm:$0xff] %v6643_v17  ;;  %v6653_v26 = vsel %vm823_vm3, %v1666_v46, %v1668_v24  ;;  %v1676_v16 = vrot.slane %v10300_v58, 4  ;;  %v1678_v60 = vrot.slane %v10301_v59, 4  ;;  %v1680_v6 = vrot.slane %v10302_v27, 4  ;;  %v10306_v0 = vld [vmem:[#allocation117_spill] sm:$0xff] }
 0x18e   :  { %10296 = vst [vmem:[#allocation326_spill] sm:$0xff] %v6646_v11  ;;  %10297 = vst [vmem:[#allocation328_spill] sm:$0xff] %v6649_v14  ;;  %v6659_v18 = vsel %vm823_vm3, %v1670_v55, %v1671_v22  ;;  %v6662_v39 = vsel %vm823_vm3, %v1671_v22, %v1673_v41  ;;  %v1681_v44 = vrot.slane %v10305_v35, 4  ;;  %v1683_v32 = vrot.slane %v10306_v0, 4  ;;  %v10307_v31 = vld [vmem:[#allocation118_spill] sm:$0xff]  ;;  %v10308_v24 = vld [vmem:[#allocation119_spill] sm:$0xff] }
 0x18f   :  { %10299 = vst [vmem:[#allocation329_spill] sm:$0xff] %v6653_v26  ;;  %10303 = vst [vmem:[#allocation330_spill] sm:$0xff] %v6659_v18  ;;  %v1685_v49 = vrot.slane %v10307_v31, 4  ;;  %v1686_v46 = vrot.slane %v10308_v24, 4  ;;  %v10309_v34 = vld [vmem:[#allocation120_spill] sm:$0xff]  ;;  %v10310_v52 = vld [vmem:[#allocation121_spill] sm:$0xff] }
 0x190   :  { %10304 = vst [vmem:[#allocation331_spill] sm:$0xff] %v6662_v39  ;;  %v1688_v58 = vrot.slane %v10309_v34, 4  ;;  %v1690_v59 = vrot.slane %v10310_v52, 4  ;;  %v10311_v20 = vld [vmem:[#allocation122_spill] sm:$0xff]  ;;  %v10312_v57 = vld [vmem:[#allocation123_spill] sm:$0xff]  ;;  %v10313_v3 = vld [vmem:[#allocation124_spill] sm:$0xff]  ;;  %v6679_v34 = vsel %vm823_vm3, %v1675_v43, %v1676_v16  ;;  %v6682_v52 = vsel %vm823_vm3, %v1676_v16, %v1678_v60 }
 0x191   :  { %v1691_v27 = vrot.slane %v10311_v20, 4  ;;  %v1693_v55 = vrot.slane %v10312_v57, 4  ;;  %v1695_v54 = vrot.slane %v10313_v3, 4  ;;  %v10314_v41 = vld [vmem:[#allocation125_spill] sm:$0xff]  ;;  %v10315_v61 = vld [vmem:[#allocation126_spill] sm:$0xff]  ;;  %v10316_v30 = vld [vmem:[#allocation127_spill] sm:$0xff] }
 0x192   :  { %v1696_v22 = vrot.slane %v10314_v41, 4  ;;  %v1698_v35 = vrot.slane %v10315_v61, 4  ;;  %v1700_v0 = vrot.slane %v10316_v30, 4  ;;  %v10317_v42 = vld [vmem:[#allocation128_spill] sm:$0xff]  ;;  %v10318_v39 = vld [vmem:[#allocation129_spill] sm:$0xff]  ;;  %10319 = vst [vmem:[#allocation156_spill] sm:$0xff] %v6679_v34  ;;  %v6687_v41 = vsel %vm823_vm3, %v1680_v6, %v1681_v44 }
 0x193   :  { %v1701_v31 = vrot.slane %v10317_v42, 4  ;;  %v1703_v24 = vrot.slane %v10318_v39, 4  ;;  %10320 = vst [vmem:[#allocation157_spill] sm:$0xff] %v6682_v52  ;;  %v10321_v20 = vld [vmem:[#allocation154_spill] sm:$0xff]  ;;  %v10322_v4 = vld [vmem:[#allocation155_spill] sm:$0xff]  ;;  %10323 = vst [vmem:[#allocation158_spill] sm:$0xff] %v6687_v41  ;;  %v6690_v61 = vsel %vm823_vm3, %v1681_v44, %v1683_v32  ;;  %v6693_v42 = vsel %vm823_vm3, %v1685_v49, %v1686_v46 }
 0x194   :  { %v1705_v57 = vrot.slane %v10321_v20, 4  ;;  %v1706_v3 = vrot.slane %v10322_v4, 4  ;;  %10324 = vst [vmem:[#allocation159_spill] sm:$0xff] %v6690_v61  ;;  %10325 = vst [vmem:[#allocation160_spill] sm:$0xff] %v6693_v42  ;;  %v1708_v39 = vrot.slane %v6583_v10, 4  ;;  %v6697_v43 = vsel %vm823_vm3, %v1686_v46, %v1688_v58  ;;  %v10346_v10 = vld [vmem:[#allocation286_spill] sm:$0xff] }
 0x195   :  { %10326 = vst [vmem:[#allocation161_spill] sm:$0xff] %v6697_v43  ;;  %v6700_v60 = vsel %vm823_vm3, %v1690_v59, %v1691_v27  ;;  %v6703_v16 = vsel %vm823_vm3, %v1691_v27, %v1693_v55  ;;  %v6706_v6 = vsel %vm823_vm3, %v1695_v54, %v1696_v22  ;;  %v6709_v32 = vsel %vm823_vm3, %v1696_v22, %v1698_v35  ;;  %v10341_v55 = vld [vmem:[#allocation276_spill] sm:$0xff]  ;;  %v10342_v22 = vld [vmem:[#allocation279_spill] sm:$0xff] }
 0x196   :  { %10327 = vst [vmem:[#allocation162_spill] sm:$0xff] %v6700_v60  ;;  %10328 = vst [vmem:[#allocation163_spill] sm:$0xff] %v6703_v16  ;;  %v6712_v49 = vsel %vm823_vm3, %v1700_v0, %v1701_v31  ;;  %v6715_v44 = vsel %vm823_vm3, %v1701_v31, %v1703_v24  ;;  %v1742_v58 = vadd.f32 %v6587_v51, %v6444_v50  ;;  %v10340_v24 = vld [vmem:[#allocation274_spill] sm:$0xff] }
 0x197   :  { %10329 = vst [vmem:[#allocation75_spill] sm:$0xff] %v6706_v6  ;;  %10330 = vst [vmem:[#allocation76_spill] sm:$0xff] %v6709_v32  ;;  %v6720_v46 = vsel %vm823_vm3, %v1705_v57, %v1706_v3  ;;  %v1743_v27 = vadd.f32 %v6590_v1, %v6448_v19  ;;  %v1744_v54 = vadd.f32 %v6595_v38, %v6458_v33  ;;  %v6777_v57 = vld [vmem:[%s8494_s0 + $0x1a0] sm:$0xff] }
 0x198   :  { %10331 = vst [vmem:[#allocation78_spill] sm:$0xff] %v6712_v49  ;;  %10332 = vst [vmem:[#allocation164_spill] sm:$0xff] %v6715_v44  ;;  %v1745_v35 = vadd.f32 %v6598_v36, %v6462_v28  ;;  %v6729_v59 = vsel %vm823_vm3, %v1706_v3, %v1708_v39  ;;  %v1746_v31 = vadd.f32 %v6615_v29, %v6466_v15  ;;  %v10337_v36 = vld [vmem:[#allocation269_spill] sm:$0xff] }
 0x199   :  { %10333 = vst [vmem:[#allocation79_spill] sm:$0xff] %v6720_v46  ;;  %10334 = vst [vmem:[#allocation80_spill] sm:$0xff] %v6729_v59  ;;  %v1747_v50 = vadd.f32 %v6618_v40, %v6470_v62  ;;  %v1748_v51 = vadd.f32 %v6621_v45, %v6474_v23  ;;  %v1749_v1 = vadd.f32 %v6625_v12, %v6478_v9  ;;  %v10344_v39 = vld [vmem:[#allocation281_spill] sm:$0xff] }
 0x19a   :  { %v1750_v19 = vadd.f32 %v6631_v5, %v6482_v56  ;;  %v1751_v38 = vadd.f32 %v6634_v25, %v6486_v63  ;;  %v1752_v33 = vadd.f32 %v6637_v13, %v6490_v53  ;;  %v1753_v28 = vadd.f32 %v6640_v2, %v6494_v37  ;;  %v10335_v63 = vld [vmem:[#allocation267_spill] sm:$0xff]  ;;  %10343 = vst [vmem:[#allocation2_spill] sm:$0xff] %v6777_v57 }
 0x19b   :  { %v1754_v15 = vadd.f32 %v6643_v17, %v6498_v48  ;;  %v1755_v62 = vadd.f32 %v6646_v11, %v6502_v7  ;;  %v1756_v23 = vadd.f32 %v6649_v14, %v6506_v47  ;;  %v1757_v9 = vadd.f32 %v6653_v26, %v6510_v21  ;;  %v10336_v53 = vld [vmem:[#allocation331_spill] sm:$0xff]  ;;  %v6764_v48 = vld [vmem:[%s8494_s0 + $0x198] sm:$0xff]  ;;  %v10339_v7 = vld [vmem:[#allocation272_spill] sm:$0xff] }
 0x19c   :  { %v1758_v56 = vadd.f32 %v6659_v18, %v6514_v8  ;;  %v1759_v3 = vadd.f32 %v10336_v53, %v10335_v63  ;;  %v1760_v37 = vadd.f32 %v6679_v34, %v10337_v36  ;;  %10338 = vst [vmem:[#allocation82_spill] sm:$0xff] %v6764_v48  ;;  %v1761_v47 = vadd.f32 %v6682_v52, %v10339_v7  ;;  %v10345_v36 = vld [vmem:[#allocation283_spill] sm:$0xff]  ;;  %v10351_v18 = vld [vmem:[#allocation297_spill] sm:$0xff]  ;;  %v10365_v17 = vld [vmem:[#allocation16_spill] sm:$0xff] }
 0x19d   :  { %v1762_v21 = vadd.f32 %v6687_v41, %v10340_v24  ;;  %v1763_v8 = vadd.f32 %v6690_v61, %v10341_v55  ;;  %v1764_v0 = vadd.f32 %v6693_v42, %v10342_v22  ;;  %v1765_v63 = vadd.f32 %v6697_v43, %v10344_v39  ;;  %v10347_v41 = vld [vmem:[#allocation288_spill] sm:$0xff]  ;;  %v10348_v61 = vld [vmem:[#allocation290_spill] sm:$0xff]  ;;  %v10349_v42 = vld [vmem:[#allocation293_spill] sm:$0xff] }
 0x19e   :  { %v1766_v7 = vadd.f32 %v6700_v60, %v10345_v36  ;;  %v1767_v24 = vadd.f32 %v6703_v16, %v10346_v10  ;;  %v1768_v55 = vadd.f32 %v6706_v6, %v10347_v41  ;;  %v1769_v22 = vadd.f32 %v6709_v32, %v10348_v61  ;;  %v10350_v34 = vld [vmem:[#allocation295_spill] sm:$0xff]  ;;  %v10352_v43 = vld [vmem:[#allocation300_spill] sm:$0xff]  ;;  %v6800_v10 = vld [vmem:[%s8494_s0 + $0x180] sm:$0xff] }
 0x19f   :  { %v1770_v52 = vadd.f32 %v6712_v49, %v10349_v42  ;;  %v1771_v53 = vadd.f32 %v6715_v44, %v10350_v34  ;;  %v1772_v39 = vadd.f32 %v6720_v46, %v10351_v18  ;;  %v1773_v36 = vadd.f32 %v6729_v59, %v10352_v43  ;;  %10353 = vst [vmem:[#allocation49_spill] sm:$0xff] %v6800_v10  ;;  %v6808_v42 = vld [vmem:[%s8494_s0 + $0x188] sm:$0xff]  ;;  %v10359_v43 = vld [vmem:[#allocation4_spill] sm:$0xff]  ;;  %v10360_v46 = vld [vmem:[#allocation6_spill] sm:$0xff] }
 0x1a0   :  { %v6803_v41 = vmul.f32 -0.016389329, %v6800_v10  ;;  %10355 = vst [vmem:[#allocation229_spill] sm:$0xff] %v6808_v42  ;;  %v6811_v34 = vmul.f32 -0.016389329, %v6808_v42  ;;  %v6820_v59 = vadd.f32 %v1742_v58, %v10359_v43  ;;  %v6823_v44 = vadd.f32 %v1743_v27, %v10360_v46  ;;  %v10361_v49 = vld [vmem:[#allocation9_spill] sm:$0xff] }
 0x1a1   :  { %v6814_v18 = vmul.f32 -0.016389329, %v6764_v48  ;;  %v6817_v61 = vmul.f32 -0.016389329, %v6777_v57  ;;  %v6826_v32 = vadd.f32 %v1744_v54, %v10361_v49  ;;  %v10362_v6 = vld [vmem:[#allocation10_spill] sm:$0xff]  ;;  %v10363_v60 = vld [vmem:[#allocation12_spill] sm:$0xff]  ;;  %v6838_v2 = vadd.f32 %v1748_v51, %v10365_v17 }
 0x1a2   :  { %10354 = vst [vmem:[#allocation56_spill] sm:$0xff] %v6803_v41  ;;  %10356 = vst [vmem:[#allocation236_spill] sm:$0xff] %v6811_v34  ;;  %v6829_v16 = vadd.f32 %v1745_v35, %v10362_v6  ;;  %v6832_v26 = vadd.f32 %v1746_v31, %v10363_v60  ;;  %v10364_v14 = vld [vmem:[#allocation13_spill] sm:$0xff]  ;;  %v10367_v27 = vld [vmem:[#allocation18_spill] sm:$0xff]  ;;  %v6927_v17 = vmul.f32 0.04255406, %v6764_v48 }
 0x1a3   :  { %10357 = vst [vmem:[#allocation243_spill] sm:$0xff] %v6814_v18  ;;  %10358 = vst [vmem:[#allocation305_spill] sm:$0xff] %v6817_v61  ;;  %v6835_v11 = vadd.f32 %v1747_v50, %v10364_v14  ;;  %v10366_v58 = vld [vmem:[#allocation17_spill] sm:$0xff]  ;;  %v6844_v25 = vadd.f32 %v1750_v19, %v10367_v27  ;;  %v10369_v35 = vld [vmem:[#allocation22_spill] sm:$0xff] }
 0x1a4   :  { %v6841_v13 = vadd.f32 %v1749_v1, %v10366_v58  ;;  %v10368_v54 = vld [vmem:[#allocation21_spill] sm:$0xff]  ;;  %v6850_v12 = vadd.f32 %v1752_v33, %v10369_v35  ;;  %v10370_v31 = vld [vmem:[#allocation23_spill] sm:$0xff]  ;;  %v10371_v50 = vld [vmem:[#allocation26_spill] sm:$0xff]  ;;  %v6918_v58 = vadd.f32 %v6811_v34, %v1771_v53  ;;  %10411 = vst [vmem:[#allocation279_spill] sm:$0xff] %v6927_v17 }
 0x1a5   :  { %v6847_v5 = vadd.f32 %v1751_v38, %v10368_v54  ;;  %v6853_v45 = vadd.f32 %v1753_v28, %v10370_v31  ;;  %v6856_v40 = vadd.f32 %v1754_v15, %v10371_v50  ;;  %v10372_v51 = vld [vmem:[#allocation27_spill] sm:$0xff]  ;;  %v10373_v1 = vld [vmem:[#allocation28_spill] sm:$0xff]  ;;  %v10378_v33 = vld [vmem:[#allocation33_spill] sm:$0xff] }
 0x1a6   :  { %v6859_v29 = vadd.f32 %v1755_v62, %v10372_v51  ;;  %v6862_v4 = vadd.f32 %v1756_v23, %v10373_v1  ;;  %v10374_v19 = vld [vmem:[#allocation31_spill] sm:$0xff]  ;;  %v10376_v38 = vld [vmem:[#allocation32_spill] sm:$0xff]  ;;  %v6871_v35 = vadd.f32 %v1759_v3, %v10378_v33  ;;  %v10380_v28 = vld [vmem:[#allocation37_spill] sm:$0xff]  ;;  %10408 = vst [vmem:[#allocation272_spill] sm:$0xff] %v6918_v58 }
 0x1a7   :  { %v6865_v20 = vadd.f32 %v1757_v9, %v10374_v19  ;;  %v6868_v30 = vadd.f32 %v1758_v56, %v10376_v38  ;;  %v6874_v31 = vadd.f32 %v1760_v37, %v10380_v28  ;;  %v10382_v15 = vld [vmem:[#allocation38_spill] sm:$0xff]  ;;  %v10384_v62 = vld [vmem:[#allocation39_spill] sm:$0xff]  ;;  %v10388_v9 = vld [vmem:[#allocation44_spill] sm:$0xff] }
 0x1a8   :  { %10379 = vst [vmem:[#allocation94_spill] sm:$0xff] %v6871_v35  ;;  %v6877_v50 = vadd.f32 %v1761_v47, %v10382_v15  ;;  %v6880_v51 = vadd.f32 %v1762_v21, %v10384_v62  ;;  %v10386_v23 = vld [vmem:[#allocation43_spill] sm:$0xff]  ;;  %v6886_v19 = vadd.f32 %v1764_v0, %v10388_v9  ;;  %v10390_v56 = vld [vmem:[#allocation45_spill] sm:$0xff]  ;;  %v10392_v3 = vld [vmem:[#allocation50_spill] sm:$0xff] }
 0x1a9   :  { %10375 = vst [vmem:[#allocation86_spill] sm:$0xff] %v6865_v20  ;;  %10377 = vst [vmem:[#allocation90_spill] sm:$0xff] %v6868_v30  ;;  %v6883_v1 = vadd.f32 %v1763_v8, %v10386_v23  ;;  %v6889_v38 = vadd.f32 %v1765_v63, %v10390_v56  ;;  %v6892_v33 = vadd.f32 %v1766_v7, %v10392_v3  ;;  %v10394_v37 = vld [vmem:[#allocation51_spill] sm:$0xff]  ;;  %v10396_v47 = vld [vmem:[#allocation52_spill] sm:$0xff] }
 0x1aa   :  { %10381 = vst [vmem:[#allocation98_spill] sm:$0xff] %v6874_v31  ;;  %10383 = vst [vmem:[#allocation102_spill] sm:$0xff] %v6877_v50  ;;  %v6895_v28 = vadd.f32 %v1767_v24, %v10394_v37  ;;  %v6898_v15 = vadd.f32 %v1768_v55, %v10396_v47  ;;  %v6903_v21 = vld [vmem:[%s8494_s0 + $0x1a8] sm:$0xf]  ;;  %v10399_v8 = vld [vmem:[#allocation57_spill] sm:$0xff]  ;;  %v6912_v24 = vadd.f32 %v6803_v41, %v1770_v52 }
 0x1ab   :  { %10385 = vst [vmem:[#allocation106_spill] sm:$0xff] %v6880_v51  ;;  %10387 = vst [vmem:[#allocation109_spill] sm:$0xff] %v6883_v1  ;;  %v6906_v0 = vadd.f32 %v1769_v22, %v10399_v8  ;;  %v10401_v9 = vld [vmem:[#allocation226_spill] sm:$0xff]  ;;  %v10402_v56 = vld [vmem:[#allocation228_spill] sm:$0xff]  ;;  %v6921_v22 = vadd.f32 %v6814_v18, %v1772_v39  ;;  %v6924_v8 = vadd.f32 %v6817_v61, %v1773_v36  ;;  %v6930_v52 = vmul.f32 0.04255406, %v6777_v57 }
 0x1ac   :  { %10389 = vst [vmem:[#allocation113_spill] sm:$0xff] %v6886_v19  ;;  %10391 = vst [vmem:[#allocation117_spill] sm:$0xff] %v6889_v38  ;;  %v1816_v63 = vrot.slane %v10401_v9, 1  ;;  %v1817_v23 = vrot.slane %v10402_v56, 1  ;;  %v10403_v7 = vld [vmem:[#allocation231_spill] sm:$0xff]  ;;  %v10405_v37 = vld [vmem:[#allocation233_spill] sm:$0xff] }
 0x1ad   :  { %10393 = vst [vmem:[#allocation120_spill] sm:$0xff] %v6892_v33  ;;  %10395 = vst [vmem:[#allocation123_spill] sm:$0xff] %v6895_v28  ;;  %v1819_v3 = vrot.slane %v10403_v7, 1  ;;  %v1821_v55 = vrot.slane %v10405_v37, 1  ;;  %v10406_v47 = vld [vmem:[#allocation235_spill] sm:$0xff]  ;;  %v10407_v54 = vld [vmem:[#allocation238_spill] sm:$0xff] }
 0x1ae   :  { %10397 = vst [vmem:[#allocation126_spill] sm:$0xff] %v6898_v15  ;;  %10398 = vst [vmem:[#allocation129_spill] sm:$0xff] %v6903_v21  ;;  %v1822_v62 = vrot.slane %v10406_v47, 1  ;;  %v1824_v27 = vrot.slane %v10407_v54, 1  ;;  %v6933_v41 = vmul.f32 0.04255406, %v6903_v21  ;;  %v6938_v34 = vsel %vm228_vm0, %v1816_v63, %v1817_v23 }
 0x1af   :  { %10400 = vst [vmem:[#allocation267_spill] sm:$0xff] %v6906_v0  ;;  %10404 = vst [vmem:[#allocation269_spill] sm:$0xff] %v6912_v24  ;;  %v10414_v14 = vld [vmem:[#allocation240_spill] sm:$0xff]  ;;  %v10415_v6 = vld [vmem:[#allocation242_spill] sm:$0xff]  ;;  %v6941_v39 = vsel %vm228_vm0, %v1817_v23, %v1819_v3 }
 0x1b0   :  { %10409 = vst [vmem:[#allocation274_spill] sm:$0xff] %v6921_v22  ;;  %10410 = vst [vmem:[#allocation276_spill] sm:$0xff] %v6924_v8  ;;  %v1826_v60 = vrot.slane %v10414_v14, 1  ;;  %v1827_v53 = vrot.slane %v10415_v6, 1  ;;  %v10416_v36 = vld [vmem:[#allocation245_spill] sm:$0xff]  ;;  %v10417_v18 = vld [vmem:[#allocation247_spill] sm:$0xff]  ;;  %v6946_v46 = vsel %vm228_vm0, %v1821_v55, %v1822_v62  ;;  %v6949_v43 = vsel %vm228_vm0, %v1822_v62, %v1824_v27 }
 0x1b1   :  { %10412 = vst [vmem:[#allocation281_spill] sm:$0xff] %v6930_v52  ;;  %10413 = vst [vmem:[#allocation283_spill] sm:$0xff] %v6933_v41  ;;  %v1829_v61 = vrot.slane %v10416_v36, 1  ;;  %v1831_v49 = vrot.slane %v10417_v18, 1  ;;  %v10418_v54 = vld [vmem:[#allocation249_spill] sm:$0xff]  ;;  %v10419_v47 = vld [vmem:[#allocation252_spill] sm:$0xff] }
 0x1b2   :  { %v1832_v14 = vrot.slane %v10418_v54, 1  ;;  %v1834_v6 = vrot.slane %v10419_v47, 1  ;;  %v10420_v37 = vld [vmem:[#allocation254_spill] sm:$0xff]  ;;  %v10421_v7 = vld [vmem:[#allocation256_spill] sm:$0xff]  ;;  %v10422_v23 = vld [vmem:[#allocation259_spill] sm:$0xff] }
 0x1b3   :  { %v1836_v63 = vrot.slane %v10420_v37, 1  ;;  %v1837_v56 = vrot.slane %v10421_v7, 1  ;;  %v1839_v3 = vrot.slane %v10422_v23, 1  ;;  %v10423_v9 = vld [vmem:[#allocation261_spill] sm:$0xff]  ;;  %v10424_v21 = vld [vmem:[#allocation263_spill] sm:$0xff]  ;;  %v10425_v57 = vld [vmem:[#allocation266_spill] sm:$0xff]  ;;  %v1828_v23 = vsel %vm228_vm0, %v1826_v60, %v1827_v53 }
 0x1b4   :  { %v1841_v36 = vrot.slane %v10423_v9, 1  ;;  %v1842_v18 = vrot.slane %v10424_v21, 1  ;;  %v1844_v55 = vrot.slane %v10425_v57, 1  ;;  %v10426_v48 = vld [vmem:[#allocation268_spill] sm:$0xff]  ;;  %v10427_v27 = vld [vmem:[#allocation270_spill] sm:$0xff]  ;;  %v10428_v42 = vld [vmem:[#allocation273_spill] sm:$0xff]  ;;  %v1830_v9 = vsel %vm228_vm0, %v1827_v53, %v1829_v61 }
 0x1b5   :  { %v1846_v8 = vrot.slane %v10426_v48, 1  ;;  %v1847_v62 = vrot.slane %v10427_v27, 1  ;;  %v1849_v54 = vrot.slane %v10428_v42, 1  ;;  %v10429_v10 = vld [vmem:[#allocation275_spill] sm:$0xff]  ;;  %v10430_v22 = vld [vmem:[#allocation277_spill] sm:$0xff]  ;;  %v10431_v58 = vld [vmem:[#allocation280_spill] sm:$0xff]  ;;  %v1833_v48 = vsel %vm228_vm0, %v1831_v49, %v1832_v14 }
 0x1b6   :  { %v1851_v47 = vrot.slane %v10429_v10, 1  ;;  %v1852_v37 = vrot.slane %v10430_v22, 1  ;;  %v1854_v7 = vrot.slane %v10431_v58, 1  ;;  %v10432_v24 = vld [vmem:[#allocation282_spill] sm:$0xff]  ;;  %v10433_v0 = vld [vmem:[#allocation284_spill] sm:$0xff]  ;;  %v1835_v27 = vsel %vm228_vm0, %v1832_v14, %v1834_v6  ;;  %v10434_v15 = vld [vmem:[#allocation287_spill] sm:$0xff] }
 0x1b7   :  { %v1856_v21 = vrot.slane %v10432_v24, 1  ;;  %v1857_v57 = vrot.slane %v10433_v0, 1  ;;  %v1838_v42 = vsel %vm228_vm0, %v1836_v63, %v1837_v56  ;;  %v1859_v10 = vrot.slane %v10434_v15, 1  ;;  %v10435_v24 = vld [vmem:[#allocation289_spill] sm:$0xff]  ;;  %v10436_v63 = vld [vmem:[#allocation291_spill] sm:$0xff]  ;;  %v10437_v28 = vld [vmem:[#allocation294_spill] sm:$0xff] }
 0x1b8   :  { %v1840_v22 = vsel %vm228_vm0, %v1837_v56, %v1839_v3  ;;  %v1843_v58 = vsel %vm228_vm0, %v1841_v36, %v1842_v18  ;;  %v1845_v60 = vsel %vm228_vm0, %v1842_v18, %v1844_v55  ;;  %v1848_v61 = vsel %vm228_vm0, %v1846_v8, %v1847_v62  ;;  %v10438_v3 = vld [vmem:[#allocation296_spill] sm:$0xff]  ;;  %v10439_v55 = vld [vmem:[#allocation298_spill] sm:$0xff]  ;;  %v10440_v33 = vld [vmem:[#allocation301_spill] sm:$0xff] }
 0x1b9   :  { %v1850_v53 = vsel %vm228_vm0, %v1847_v62, %v1849_v54  ;;  %v1853_v0 = vsel %vm228_vm0, %v1851_v47, %v1852_v37  ;;  %v1855_v49 = vsel %vm228_vm0, %v1852_v37, %v1854_v7  ;;  %v1861_v14 = vrot.slane %v10435_v24, 1  ;;  %v10441_v62 = vld [vmem:[#allocation303_spill] sm:$0xff]  ;;  %v10442_v38 = vld [vmem:[#allocation306_spill] sm:$0xff]  ;;  %v10443_v7 = vld [vmem:[#allocation309_spill] sm:$0xff] }
 0x1ba   :  { %v1858_v6 = vsel %vm228_vm0, %v1856_v21, %v1857_v57  ;;  %v1862_v15 = vrot.slane %v10436_v63, 1  ;;  %v1864_v56 = vrot.slane %v10437_v28, 1  ;;  %v1866_v36 = vrot.slane %v10438_v3, 1  ;;  %v10444_v19 = vld [vmem:[#allocation311_spill] sm:$0xff]  ;;  %v10445_v1 = vld [vmem:[#allocation313_spill] sm:$0xff]  ;;  %v10446_v51 = vld [vmem:[#allocation314_spill] sm:$0xff] }
 0x1bb   :  { %v1860_v18 = vsel %vm228_vm0, %v1857_v57, %v1859_v10  ;;  %v1867_v8 = vrot.slane %v10439_v55, 1  ;;  %v1869_v54 = vrot.slane %v10440_v33, 1  ;;  %v1871_v47 = vrot.slane %v10441_v62, 1  ;;  %v10447_v50 = vld [vmem:[#allocation316_spill] sm:$0xff]  ;;  %v10449_v10 = vld [vmem:[#allocation322_spill] sm:$0xff]  ;;  %v10451_v30 = vld [vmem:[#allocation325_spill] sm:$0xff] }
 0x1bc   :  { %v1872_v37 = vrot.slane %v10442_v38, 1  ;;  %v1874_v24 = vrot.slane %v10443_v7, 1  ;;  %v1876_v21 = vrot.slane %v10444_v19, 1  ;;  %v1877_v63 = vrot.slane %v10445_v1, 1  ;;  %v10448_v31 = vld [vmem:[#allocation320_spill] sm:$0xff]  ;;  %v10452_v20 = vld [vmem:[#allocation327_spill] sm:$0xff] }
 0x1bd   :  { %v1879_v28 = vrot.slane %v10446_v51, 1  ;;  %v1881_v3 = vrot.slane %v10447_v50, 1  ;;  %v1882_v57 = vrot.slane %v10448_v31, 1  ;;  %v1884_v55 = vrot.slane %v10449_v10, 1  ;;  %v10450_v35 = vld [vmem:[#allocation324_spill] sm:$0xff] }
 0x1be   :  { %v1863_v33 = vsel %vm228_vm0, %v1861_v14, %v1862_v15  ;;  %v1886_v62 = vrot.slane %v10450_v35, 1  ;;  %v1887_v38 = vrot.slane %v10451_v30, 1  ;;  %v1889_v7 = vrot.slane %v10452_v20, 1 }
 0x1bf   :  { %v1865_v19 = vsel %vm228_vm0, %v1862_v15, %v1864_v56  ;;  %v1891_v1 = vrot.slane %v6927_v17, 1  ;;  %v1892_v51 = vrot.slane %v6930_v52, 1  ;;  %v1894_v50 = vrot.slane %v6933_v41, 1 }
 0x1c0   :  { %v1868_v31 = vsel %vm228_vm0, %v1866_v36, %v1867_v8  ;;  %v1870_v10 = vsel %vm228_vm0, %v1867_v8, %v1869_v54  ;;  %v7008_v14 = vsel %vm228_vm0, %v1871_v47, %v1872_v37  ;;  %v7011_v35 = vsel %vm228_vm0, %v1872_v37, %v1874_v24  ;;  %v3435_v47 = vld [vmem:[%s8494_s0 + $0x78] sm:$0xff] }
 0x1c1   :  { %v7014_v20 = vsel %vm228_vm0, %v1876_v21, %v1877_v63  ;;  %v7017_v15 = vsel %vm228_vm0, %v1877_v63, %v1879_v28  ;;  %v7020_v56 = vsel %vm228_vm0, %v1881_v3, %v1882_v57  ;;  %v7023_v41 = vsel %vm228_vm0, %v1882_v57, %v1884_v55  ;;  %v3437_v57 = vld [vmem:[%s8494_s0 + $0x88] sm:$0xf] }
 0x1c2   :  { %v7026_v36 = vsel %vm228_vm0, %v1886_v62, %v1887_v38  ;;  %v7029_v8 = vsel %vm228_vm0, %v1887_v38, %v1889_v7  ;;  %v7033_v24 = vadd.f32 %v6938_v34, %v6820_v59  ;;  %v7037_v28 = vadd.f32 %v6941_v39, %v6823_v44  ;;  %v3431_v39 = vld [vmem:[%s8494_s0 + $0x58] sm:$0xf]  ;;  %v3436_v7 = vld [vmem:[%s8494_s0 + $0x80] sm:$0xff] }
 0x1c3   :  { %v7040_v63 = vsel %vm228_vm0, %v1891_v1, %v1892_v51  ;;  %v7043_v3 = vsel %vm228_vm0, %v1892_v51, %v1894_v50  ;;  %v7047_v55 = vadd.f32 %v6946_v46, %v6826_v32  ;;  %v7051_v38 = vadd.f32 %v6949_v43, %v6829_v16  ;;  %v10466_v43 = vld [vmem:[#allocation94_spill] sm:$0xff]  ;;  %v3429_v1 = vld [vmem:[%s8494_s0 + $0x48] sm:$0xff] }
 0x1c4   :  { %v7054_v59 = vadd.f32 %v1828_v23, %v6832_v26  ;;  %v7057_v44 = vadd.f32 %v1830_v9, %v6835_v11  ;;  %v7060_v34 = vadd.f32 %v1833_v48, %v6838_v2  ;;  %v7063_v50 = vadd.f32 %v1835_v27, %v6841_v13  ;;  %v10468_v27 = vld [vmem:[#allocation98_spill] sm:$0xff] }
 0x1c5   :  { %v7066_v51 = vadd.f32 %v1838_v42, %v6844_v25  ;;  %v7069_v32 = vadd.f32 %v1840_v22, %v6847_v5  ;;  %v7072_v16 = vadd.f32 %v1843_v58, %v6850_v12  ;;  %v7075_v26 = vadd.f32 %v1845_v60, %v6853_v45  ;;  %v10462_v25 = vld [vmem:[#allocation86_spill] sm:$0xff]  ;;  %v3426_v45 = vld [vmem:[%s8494_s0 + $0x30] sm:$0xff] }
 0x1c6   :  { %10453 = vst [vmem:[#allocation286_spill] sm:$0xff] %v7060_v34  ;;  %10454 = vst [vmem:[#allocation288_spill] sm:$0xff] %v7063_v50  ;;  %v7078_v11 = vadd.f32 %v1848_v61, %v6856_v40  ;;  %v7081_v2 = vadd.f32 %v1850_v53, %v6859_v29  ;;  %v7084_v13 = vadd.f32 %v1853_v0, %v6862_v4  ;;  %v10464_v5 = vld [vmem:[#allocation90_spill] sm:$0xff]  ;;  %v7095_v12 = vmul.f32 0.09891136, %v3426_v45  ;;  %v3427_v29 = vld [vmem:[%s8494_s0 + $0x38] sm:$0xff] }
 0x1c7   :  { %10455 = vst [vmem:[#allocation290_spill] sm:$0xff] %v7066_v51  ;;  %10456 = vst [vmem:[#allocation293_spill] sm:$0xff] %v7069_v32  ;;  %v7087_v46 = vadd.f32 %v1855_v49, %v10462_v25  ;;  %v7090_v48 = vadd.f32 %v1858_v6, %v10464_v5  ;;  %v7100_v40 = vmul.f32 0.09891136, %v3427_v29  ;;  %v3428_v4 = vld [vmem:[%s8494_s0 + $0x40] sm:$0xf]  ;;  %v7108_v58 = vadd.f32 %v1860_v18, %v10466_v43 }
 0x1c8   :  { %10457 = vst [vmem:[#allocation295_spill] sm:$0xff] %v7072_v16  ;;  %10458 = vst [vmem:[#allocation297_spill] sm:$0xff] %v7075_v26  ;;  %v7105_v42 = vmul.f32 0.09891136, %v3428_v4  ;;  %v7113_v9 = vmul.f32 0.09891136, %v3429_v1  ;;  %v7126_v60 = vadd.f32 %v1863_v33, %v10468_v27 }
 0x1c9   :  { %10459 = vst [vmem:[#allocation300_spill] sm:$0xff] %v7078_v11  ;;  %10460 = vst [vmem:[#allocation386_spill] sm:$0xff] %v7081_v2  ;;  %v3430_v0 = vld [vmem:[%s8494_s0 + $0x50] sm:$0xff]  ;;  %v7123_v23 = vmul.f32 0.09891136, %v3431_v39  ;;  %v3432_v61 = vld [vmem:[%s8494_s0 + $0x60] sm:$0xff] }
 0x1ca   :  { %10461 = vst [vmem:[#allocation387_spill] sm:$0xff] %v7084_v13  ;;  %10463 = vst [vmem:[#allocation86_spill] sm:$0xff] %v7087_v46  ;;  %v7118_v22 = vmul.f32 0.09891136, %v3430_v0  ;;  %v7131_v53 = vmul.f32 0.09891136, %v3432_v61 }
 0x1cb   :  { %10465 = vst [vmem:[#allocation90_spill] sm:$0xff] %v7090_v48  ;;  %10467 = vst [vmem:[#allocation94_spill] sm:$0xff] %v7108_v58  ;;  %v3433_v49 = vld [vmem:[%s8494_s0 + $0x68] sm:$0xff]  ;;  %v3434_v18 = vld [vmem:[%s8494_s0 + $0x70] sm:$0xf]  ;;  %v2056_v51 = vrot.slane %v7095_v12, 2 }
 0x1cc   :  { %10469 = vst [vmem:[#allocation98_spill] sm:$0xff] %v7126_v60  ;;  %v7136_v6 = vmul.f32 0.09891136, %v3433_v49  ;;  %v7141_v54 = vmul.f32 0.09891136, %v3434_v18  ;;  %v10470_v33 = vld [vmem:[#allocation102_spill] sm:$0xff] }
 0x1cd   :  { %v7144_v62 = vadd.f32 %v1865_v19, %v10470_v33  ;;  %v7149_v37 = vmul.f32 0.09891136, %v3435_v47  ;;  %v7154_v21 = vmul.f32 0.09891136, %v3436_v7  ;;  %v7159_v25 = vmul.f32 0.09891136, %v3437_v57 }
 0x1ce   :  { %v10472_v19 = vld [vmem:[#allocation106_spill] sm:$0xff]  ;;  %v3438_v45 = vld [vmem:[%s8494_s0 + $0x90] sm:$0xff]  ;;  %v3439_v4 = vld [vmem:[%s8494_s0 + $0x98] sm:$0xff]  ;;  %v2057_v50 = vrot.slane %v7100_v40, 2  ;;  %v2061_v34 = vrot.slane %v7113_v9, 2  ;;  %v2069_v12 = vrot.slane %v7141_v54, 2 }
 0x1cf   :  { %10471 = vst [vmem:[#allocation102_spill] sm:$0xff] %v7144_v62  ;;  %v7162_v5 = vadd.f32 %v1868_v31, %v10472_v19  ;;  %v7167_v29 = vmul.f32 0.09891136, %v3438_v45  ;;  %v7172_v43 = vmul.f32 0.09891136, %v3439_v4  ;;  %v10474_v31 = vld [vmem:[#allocation109_spill] sm:$0xff] }
 0x1d0   :  { %v3440_v1 = vld [vmem:[%s8494_s0 + $0xa0] sm:$0xf]  ;;  %v7180_v39 = vadd.f32 %v1870_v10, %v10474_v31  ;;  %v3441_v27 = vld [vmem:[%s8494_s0 + $0xa8] sm:$0xff]  ;;  %v3442_v49 = vld [vmem:[%s8494_s0 + $0xb0] sm:$0xff]  ;;  %v2071_v40 = vrot.slane %v7149_v37, 2 }
 0x1d1   :  { %10473 = vst [vmem:[#allocation106_spill] sm:$0xff] %v7162_v5  ;;  %v7177_v0 = vmul.f32 0.09891136, %v3440_v1  ;;  %v7185_v61 = vmul.f32 0.09891136, %v3441_v27  ;;  %v10476_v10 = vld [vmem:[#allocation113_spill] sm:$0xff] }
 0x1d2   :  { %10475 = vst [vmem:[#allocation109_spill] sm:$0xff] %v7180_v39  ;;  %v7190_v18 = vmul.f32 0.09891136, %v3442_v49  ;;  %v3443_v33 = vld [vmem:[%s8494_s0 + $0xb8] sm:$0xf]  ;;  %v7199_v7 = vadd.f32 %v7008_v14, %v10476_v10  ;;  %v3444_v57 = vld [vmem:[%s8494_s0 + $0xc0] sm:$0xff] }
 0x1d3   :  { %v7195_v47 = vmul.f32 0.09891136, %v3443_v33  ;;  %v7204_v19 = vmul.f32 0.09891136, %v3444_v57  ;;  %v3445_v45 = vld [vmem:[%s8494_s0 + $0xc8] sm:$0xff]  ;;  %v10478_v14 = vld [vmem:[#allocation117_spill] sm:$0xff] }
 0x1d4   :  { %10477 = vst [vmem:[#allocation113_spill] sm:$0xff] %v7199_v7  ;;  %v7209_v4 = vmul.f32 0.09891136, %v3445_v45  ;;  %v3446_v1 = vld [vmem:[%s8494_s0 + $0xd0] sm:$0xf]  ;;  %v7218_v27 = vadd.f32 %v7011_v35, %v10478_v14  ;;  %v3447_v49 = vld [vmem:[%s8494_s0 + $0xd8] sm:$0xff] }
 0x1d5   :  { %v7214_v31 = vmul.f32 0.09891136, %v3446_v1  ;;  %v7223_v33 = vmul.f32 0.09891136, %v3447_v49  ;;  %v3448_v10 = vld [vmem:[%s8494_s0 + $0xe0] sm:$0xff]  ;;  %v10480_v35 = vld [vmem:[#allocation120_spill] sm:$0xff] }
 0x1d6   :  { %10479 = vst [vmem:[#allocation117_spill] sm:$0xff] %v7218_v27  ;;  %v7228_v57 = vmul.f32 0.09891136, %v3448_v10  ;;  %v3449_v45 = vld [vmem:[%s8494_s0 + $0xe8] sm:$0xf]  ;;  %v7237_v14 = vadd.f32 %v7014_v20, %v10480_v35  ;;  %v3450_v49 = vld [vmem:[%s8494_s0 + $0xf0] sm:$0xff] }
 0x1d7   :  { %v7233_v1 = vmul.f32 0.09891136, %v3449_v45  ;;  %v7242_v52 = vmul.f32 0.09891136, %v3450_v49  ;;  %v3451_v10 = vld [vmem:[%s8494_s0 + $0xf8] sm:$0xff]  ;;  %v10482_v20 = vld [vmem:[#allocation123_spill] sm:$0xff] }
 0x1d8   :  { %10481 = vst [vmem:[#allocation120_spill] sm:$0xff] %v7237_v14  ;;  %v7247_v17 = vmul.f32 0.09891136, %v3451_v10  ;;  %v3452_v45 = vld [vmem:[%s8494_s0 + $0x100] sm:$0xf]  ;;  %v7256_v35 = vadd.f32 %v7017_v15, %v10482_v20  ;;  %v3453_v49 = vld [vmem:[%s8494_s0 + $0x108] sm:$0xff] }
 0x1d9   :  { %v7252_v30 = vmul.f32 0.09891136, %v3452_v45  ;;  %v7261_v14 = vmul.f32 0.09891136, %v3453_v49  ;;  %v3454_v10 = vld [vmem:[%s8494_s0 + $0x110] sm:$0xff]  ;;  %v10484_v15 = vld [vmem:[#allocation126_spill] sm:$0xff] }
 0x1da   :  { %10483 = vst [vmem:[#allocation123_spill] sm:$0xff] %v7256_v35  ;;  %v7266_v27 = vmul.f32 0.09891136, %v3454_v10  ;;  %v3455_v45 = vld [vmem:[%s8494_s0 + $0x118] sm:$0xf]  ;;  %v7275_v20 = vadd.f32 %v7020_v56, %v10484_v15  ;;  %v3456_v49 = vld [vmem:[%s8494_s0 + $0x120] sm:$0xff] }
 0x1db   :  { %v7271_v7 = vmul.f32 0.09891136, %v3455_v45  ;;  %v7280_v35 = vmul.f32 0.09891136, %v3456_v49  ;;  %v3457_v10 = vld [vmem:[%s8494_s0 + $0x128] sm:$0xff]  ;;  %v3459_v49 = vld [vmem:[%s8494_s0 + $0x138] sm:$0xff] }
 0x1dc   :  { %10485 = vst [vmem:[#allocation126_spill] sm:$0xff] %v7275_v20  ;;  %v7285_v39 = vmul.f32 0.09891136, %v3457_v10  ;;  %v3458_v45 = vld [vmem:[%s8494_s0 + $0x130] sm:$0xf]  ;;  %v10486_v56 = vld [vmem:[#allocation267_spill] sm:$0xff] }
 0x1dd   :  { %v7290_v5 = vmul.f32 0.09891136, %v3458_v45  ;;  %v7294_v15 = vadd.f32 %v7023_v41, %v10486_v56  ;;  %v7299_v20 = vmul.f32 0.09891136, %v3459_v49  ;;  %v3460_v10 = vld [vmem:[%s8494_s0 + $0x140] sm:$0xff]  ;;  %v10488_v41 = vld [vmem:[#allocation269_spill] sm:$0xff] }
 0x1de   :  { %v7304_v62 = vmul.f32 0.09891136, %v3460_v10  ;;  %v3461_v45 = vld [vmem:[%s8494_s0 + $0x148] sm:$0xf]  ;;  %v7313_v56 = vadd.f32 %v7026_v36, %v10488_v41  ;;  %v3462_v49 = vld [vmem:[%s8494_s0 + $0x150] sm:$0xff]  ;;  %v3463_v10 = vld [vmem:[%s8494_s0 + $0x158] sm:$0xff] }
 0x1df   :  { %10487 = vst [vmem:[#allocation267_spill] sm:$0xff] %v7294_v15  ;;  %v7309_v60 = vmul.f32 0.09891136, %v3461_v45  ;;  %v7318_v15 = vmul.f32 0.09891136, %v3462_v49  ;;  %v10490_v36 = vld [vmem:[#allocation272_spill] sm:$0xff] }
 0x1e0   :  { %10489 = vst [vmem:[#allocation269_spill] sm:$0xff] %v7313_v56  ;;  %v7323_v58 = vmul.f32 0.09891136, %v3463_v10  ;;  %v3464_v45 = vld [vmem:[%s8494_s0 + $0x160] sm:$0xf]  ;;  %v7332_v41 = vadd.f32 %v7029_v8, %v10490_v36  ;;  %v3465_v49 = vld [vmem:[%s8494_s0 + $0x168] sm:$0xff] }
 0x1e1   :  { %v7328_v48 = vmul.f32 0.09891136, %v3464_v45  ;;  %v7337_v56 = vmul.f32 0.09891136, %v3465_v49  ;;  %v3466_v10 = vld [vmem:[%s8494_s0 + $0x170] sm:$0xff]  ;;  %v10492_v8 = vld [vmem:[#allocation274_spill] sm:$0xff] }
 0x1e2   :  { %10491 = vst [vmem:[#allocation272_spill] sm:$0xff] %v7332_v41  ;;  %v7342_v46 = vmul.f32 0.09891136, %v3466_v10  ;;  %v3467_v45 = vld [vmem:[%s8494_s0 + $0x178] sm:$0xf]  ;;  %v7351_v36 = vadd.f32 %v7040_v63, %v10492_v8  ;;  %v10499_v63 = vld [vmem:[#allocation82_spill] sm:$0xff] }
 0x1e3   :  { %v7347_v13 = vmul.f32 0.09891136, %v3467_v45  ;;  %v10494_v41 = vld [vmem:[#allocation49_spill] sm:$0xff]  ;;  %v7362_v10 = vld [vmem:[%s8494_s0 + $0x190] sm:$0xf]  ;;  %v2079_v54 = vrot.slane %v7177_v0, 2 }
 0x1e4   :  { %10493 = vst [vmem:[#allocation274_spill] sm:$0xff] %v7351_v36  ;;  %v7354_v2 = vmul.f32 0.09891136, %v10494_v41  ;;  %v10495_v49 = vld [vmem:[#allocation229_spill] sm:$0xff]  ;;  %10496 = vst [vmem:[#allocation49_spill] sm:$0xff] %v7362_v10  ;;  %v10497_v45 = vld [vmem:[#allocation276_spill] sm:$0xff] }
 0x1e5   :  { %v7357_v11 = vmul.f32 0.09891136, %v10495_v49  ;;  %v7365_v26 = vmul.f32 0.09891136, %v7362_v10  ;;  %v7369_v16 = vadd.f32 %v7043_v3, %v10497_v45  ;;  %v7372_v8 = vmul.f32 0.09891136, %v10499_v63 }
 0x1e6   :  { %v10500_v41 = vld [vmem:[#allocation2_spill] sm:$0xff]  ;;  %v10501_v49 = vld [vmem:[#allocation129_spill] sm:$0xff]  ;;  %v2059_v10 = vrot.slane %v7105_v42, 2  ;;  %v2062_v3 = vrot.slane %v7118_v22, 2  ;;  %v2064_v45 = vrot.slane %v7123_v23, 2  ;;  %v2066_v63 = vrot.slane %v7131_v53, 2 }
 0x1e7   :  { %10498 = vst [vmem:[#allocation229_spill] sm:$0xff] %v7369_v16  ;;  %v7375_v36 = vmul.f32 0.09891136, %v10500_v41  ;;  %v7378_v32 = vmul.f32 0.09891136, %v10501_v49  ;;  %v2067_v41 = vrot.slane %v7136_v6, 2  ;;  %v7389_v16 = vsel %vm469_vm1, %v2056_v51, %v2057_v50 }
 0x1e8   :  { %v7392_v49 = vsel %vm469_vm1, %v2057_v50, %v2059_v10  ;;  %v7397_v42 = vsel %vm469_vm1, %v2061_v34, %v2062_v3  ;;  %v7400_v9 = vsel %vm469_vm1, %v2062_v3, %v2064_v45  ;;  %v2072_v23 = vrot.slane %v7154_v21, 2 }
 0x1e9   :  { %v7403_v22 = vsel %vm469_vm1, %v2066_v63, %v2067_v41  ;;  %v7407_v51 = vsel %vm469_vm1, %v2067_v41, %v2069_v12  ;;  %v2074_v50 = vrot.slane %v7159_v25, 2  ;;  %v2076_v53 = vrot.slane %v7167_v29, 2 }
 0x1ea   :  { %v2077_v6 = vrot.slane %v7172_v43, 2  ;;  %v7413_v34 = vsel %vm469_vm1, %v2071_v40, %v2072_v23  ;;  %v2081_v37 = vrot.slane %v7185_v61, 2  ;;  %v2082_v10 = vrot.slane %v7190_v18, 2 }
 0x1eb   :  { %v7419_v21 = vsel %vm469_vm1, %v2072_v23, %v2074_v50  ;;  %v2084_v25 = vrot.slane %v7195_v47, 2  ;;  %v2086_v29 = vrot.slane %v7204_v19, 2  ;;  %v2087_v0 = vrot.slane %v7209_v4, 2 }
 0x1ec   :  { %v7422_v3 = vsel %vm469_vm1, %v2076_v53, %v2077_v6  ;;  %v2080_v43 = vsel %vm469_vm1, %v2077_v6, %v2079_v54  ;;  %v2083_v45 = vsel %vm469_vm1, %v2081_v37, %v2082_v10  ;;  %v2089_v61 = vrot.slane %v7214_v31, 2 }
 0x1ed   :  { %v2085_v18 = vsel %vm469_vm1, %v2082_v10, %v2084_v25  ;;  %v2091_v63 = vrot.slane %v7223_v33, 2  ;;  %v2092_v41 = vrot.slane %v7228_v57, 2  ;;  %v2094_v12 = vrot.slane %v7233_v1, 2 }
 0x1ee   :  { %v2088_v47 = vsel %vm469_vm1, %v2086_v29, %v2087_v0  ;;  %v2090_v19 = vsel %vm469_vm1, %v2087_v0, %v2089_v61  ;;  %v2096_v40 = vrot.slane %v7242_v52, 2  ;;  %v2097_v23 = vrot.slane %v7247_v17, 2 }
 0x1ef   :  { %v2093_v4 = vsel %vm469_vm1, %v2091_v63, %v2092_v41  ;;  %v2095_v31 = vsel %vm469_vm1, %v2092_v41, %v2094_v12  ;;  %v2099_v50 = vrot.slane %v7252_v30, 2  ;;  %v2101_v33 = vrot.slane %v7261_v14, 2 }
 0x1f0   :  { %v2098_v57 = vsel %vm469_vm1, %v2096_v40, %v2097_v23  ;;  %v2102_v1 = vrot.slane %v7266_v27, 2  ;;  %v2104_v53 = vrot.slane %v7271_v7, 2  ;;  %v2106_v6 = vrot.slane %v7280_v35, 2 }
 0x1f1   :  { %v2100_v52 = vsel %vm469_vm1, %v2097_v23, %v2099_v50  ;;  %v2107_v17 = vrot.slane %v7285_v39, 2  ;;  %v2109_v54 = vrot.slane %v7290_v5, 2  ;;  %v2111_v37 = vrot.slane %v7299_v20, 2  ;;  %v10503_v50 = vld [vmem:[#allocation288_spill] sm:$0xff] }
 0x1f2   :  { %v2103_v30 = vsel %vm469_vm1, %v2101_v33, %v2102_v1  ;;  %v2105_v14 = vsel %vm469_vm1, %v2102_v1, %v2104_v53  ;;  %v2112_v10 = vrot.slane %v7304_v62, 2  ;;  %v2114_v27 = vrot.slane %v7309_v60, 2  ;;  %v10508_v1 = vld [vmem:[#allocation300_spill] sm:$0xff]  ;;  %v10509_v53 = vld [vmem:[#allocation386_spill] sm:$0xff] }
 0x1f3   :  { %v2108_v7 = vsel %vm469_vm1, %v2106_v6, %v2107_v17  ;;  %v2110_v35 = vsel %vm469_vm1, %v2107_v17, %v2109_v54  ;;  %v2116_v25 = vrot.slane %v7318_v15, 2  ;;  %v2117_v39 = vrot.slane %v7323_v58, 2 }
 0x1f4   :  { %v2113_v5 = vsel %vm469_vm1, %v2111_v37, %v2112_v10  ;;  %v2115_v20 = vsel %vm469_vm1, %v2112_v10, %v2114_v27  ;;  %v2119_v29 = vrot.slane %v7328_v48, 2  ;;  %v2121_v0 = vrot.slane %v7337_v56, 2 }
 0x1f5   :  { %v2118_v62 = vsel %vm469_vm1, %v2116_v25, %v2117_v39  ;;  %v2122_v60 = vrot.slane %v7342_v46, 2  ;;  %v2124_v61 = vrot.slane %v7347_v13, 2  ;;  %v2126_v63 = vrot.slane %v7354_v2, 2 }
 0x1f6   :  { %v2120_v15 = vsel %vm469_vm1, %v2117_v39, %v2119_v29  ;;  %v2127_v58 = vrot.slane %v7357_v11, 2  ;;  %v2129_v41 = vrot.slane %v7365_v26, 2  ;;  %v2131_v12 = vrot.slane %v7372_v8, 2 }
 0x1f7   :  { %v2123_v48 = vsel %vm469_vm1, %v2121_v0, %v2122_v60  ;;  %v2125_v56 = vsel %vm469_vm1, %v2122_v60, %v2124_v61  ;;  %v2132_v40 = vrot.slane %v7375_v36, 2  ;;  %v2134_v46 = vrot.slane %v7378_v32, 2 }
 0x1f8   :  { %v2128_v13 = vsel %vm469_vm1, %v2126_v63, %v2127_v58  ;;  %v2130_v2 = vsel %vm469_vm1, %v2127_v58, %v2129_v41  ;;  %v7478_v23 = vadd.f32 %v7389_v16, %v7033_v24  ;;  %v7482_v26 = vadd.f32 %v7392_v49, %v7037_v28  ;;  %v10502_v16 = vld [vmem:[#allocation286_spill] sm:$0xff] }
 0x1f9   :  { %v2133_v11 = vsel %vm469_vm1, %v2131_v12, %v2132_v40  ;;  %v2135_v8 = vsel %vm469_vm1, %v2132_v40, %v2134_v46  ;;  %v7488_v36 = vadd.f32 %v7397_v42, %v7047_v55  ;;  %v7492_v32 = vadd.f32 %v7400_v9, %v7051_v38  ;;  %v10504_v42 = vld [vmem:[#allocation290_spill] sm:$0xff]  ;;  %v10505_v9 = vld [vmem:[#allocation293_spill] sm:$0xff] }
 0x1fa   :  { %v7496_v24 = vadd.f32 %v7403_v22, %v7054_v59  ;;  %v7500_v28 = vadd.f32 %v7407_v51, %v7057_v44  ;;  %v7504_v49 = vadd.f32 %v7413_v34, %v10502_v16  ;;  %v7508_v55 = vadd.f32 %v7419_v21, %v10503_v50  ;;  %v10506_v59 = vld [vmem:[#allocation295_spill] sm:$0xff]  ;;  %v10507_v44 = vld [vmem:[#allocation297_spill] sm:$0xff] }
 0x1fb   :  { %v7512_v38 = vadd.f32 %v7422_v3, %v10504_v42  ;;  %v7515_v33 = vadd.f32 %v2080_v43, %v10505_v9  ;;  %v7518_v22 = vadd.f32 %v2083_v45, %v10506_v59  ;;  %v7521_v51 = vadd.f32 %v2085_v18, %v10507_v44  ;;  %v10510_v21 = vld [vmem:[#allocation387_spill] sm:$0xff]  ;;  %v10511_v3 = vld [vmem:[#allocation86_spill] sm:$0xff]  ;;  %v10543_v42 = vld [vmem:[#allocation228_spill] sm:$0xff] }
 0x1fc   :  { %v7524_v34 = vadd.f32 %v2088_v47, %v10508_v1  ;;  %v7527_v6 = vadd.f32 %v2090_v19, %v10509_v53  ;;  %v7530_v17 = vadd.f32 %v2093_v4, %v10510_v21  ;;  %v7533_v54 = vadd.f32 %v2095_v31, %v10511_v3  ;;  %v10512_v43 = vld [vmem:[#allocation90_spill] sm:$0xff]  ;;  %v10520_v4 = vld [vmem:[#allocation109_spill] sm:$0xff]  ;;  %v10544_v9 = vld [vmem:[#allocation231_spill] sm:$0xff] }
 0x1fd   :  { %v7536_v37 = vadd.f32 %v2098_v57, %v10512_v43  ;;  %v10513_v45 = vld [vmem:[#allocation94_spill] sm:$0xff]  ;;  %v7551_v29 = vadd.f32 %v2110_v35, %v10520_v4  ;;  %v10522_v31 = vld [vmem:[#allocation113_spill] sm:$0xff]  ;;  %v2203_v59 = vrot.slane %v10544_v9, 3  ;;  %v10546_v1 = vld [vmem:[#allocation235_spill] sm:$0xff] }
 0x1fe   :  { %v7539_v10 = vadd.f32 %v2100_v52, %v10513_v45  ;;  %v10514_v18 = vld [vmem:[#allocation98_spill] sm:$0xff]  ;;  %v7554_v0 = vadd.f32 %v2113_v5, %v10522_v31  ;;  %v10524_v57 = vld [vmem:[#allocation117_spill] sm:$0xff]  ;;  %v10526_v52 = vld [vmem:[#allocation120_spill] sm:$0xff] }
 0x1ff   :  { %v7542_v27 = vadd.f32 %v2103_v30, %v10514_v18  ;;  %v10516_v47 = vld [vmem:[#allocation102_spill] sm:$0xff]  ;;  %10521 = vst [vmem:[#allocation286_spill] sm:$0xff] %v7551_v29  ;;  %v7557_v60 = vadd.f32 %v2115_v20, %v10524_v57  ;;  %v7560_v61 = vadd.f32 %v2118_v62, %v10526_v52  ;;  %v10528_v30 = vld [vmem:[#allocation123_spill] sm:$0xff]  ;;  %v10534_v35 = vld [vmem:[#allocation269_spill] sm:$0xff] }
 0x200   :  { %v7545_v25 = vadd.f32 %v2105_v14, %v10516_v47  ;;  %v10518_v19 = vld [vmem:[#allocation106_spill] sm:$0xff]  ;;  %10523 = vst [vmem:[#allocation288_spill] sm:$0xff] %v7554_v0  ;;  %v7563_v63 = vadd.f32 %v2120_v15, %v10528_v30  ;;  %v7572_v12 = vadd.f32 %v2128_v13, %v10534_v35  ;;  %v10536_v5 = vld [vmem:[#allocation272_spill] sm:$0xff]  ;;  %v10540_v62 = vld [vmem:[#allocation229_spill] sm:$0xff]  ;;  %v2206_v13 = vrot.slane %v10546_v1, 3 }
 0x201   :  { %10515 = vst [vmem:[#allocation276_spill] sm:$0xff] %v7542_v27  ;;  %v7548_v39 = vadd.f32 %v2108_v7, %v10518_v19  ;;  %10525 = vst [vmem:[#allocation290_spill] sm:$0xff] %v7557_v60  ;;  %v10530_v14 = vld [vmem:[#allocation126_spill] sm:$0xff]  ;;  %v10532_v7 = vld [vmem:[#allocation267_spill] sm:$0xff]  ;;  %v7575_v40 = vadd.f32 %v2130_v2, %v10536_v5  ;;  %v7581_v16 = vadd.f32 %v2135_v8, %v10540_v62 }
 0x202   :  { %10517 = vst [vmem:[#allocation82_spill] sm:$0xff] %v7545_v25  ;;  %10527 = vst [vmem:[#allocation293_spill] sm:$0xff] %v7560_v61  ;;  %v7566_v58 = vadd.f32 %v2123_v48, %v10530_v14  ;;  %v7569_v41 = vadd.f32 %v2125_v56, %v10532_v7  ;;  %v10538_v20 = vld [vmem:[#allocation274_spill] sm:$0xff]  ;;  %v2201_v48 = vrot.slane %v10543_v42, 3  ;;  %v10545_v56 = vld [vmem:[#allocation233_spill] sm:$0xff] }
 0x203   :  { %10519 = vst [vmem:[#allocation2_spill] sm:$0xff] %v7548_v39  ;;  %10529 = vst [vmem:[#allocation295_spill] sm:$0xff] %v7563_v63  ;;  %v7578_v46 = vadd.f32 %v2133_v11, %v10538_v20  ;;  %v10542_v15 = vld [vmem:[#allocation226_spill] sm:$0xff]  ;;  %v2205_v44 = vrot.slane %v10545_v56, 3  ;;  %v10548_v2 = vld [vmem:[#allocation240_spill] sm:$0xff] }
 0x204   :  { %10531 = vst [vmem:[#allocation297_spill] sm:$0xff] %v7566_v58  ;;  %10533 = vst [vmem:[#allocation300_spill] sm:$0xff] %v7569_v41  ;;  %v2200_v50 = vrot.slane %v10542_v15, 3  ;;  %v10547_v53 = vld [vmem:[#allocation238_spill] sm:$0xff]  ;;  %v2210_v3 = vrot.slane %v10548_v2, 3  ;;  %v7595_v8 = vsel %vm614_vm2, %v2201_v48, %v2203_v59  ;;  %v10550_v18 = vld [vmem:[#allocation245_spill] sm:$0xff] }
 0x205   :  { %10535 = vst [vmem:[#allocation386_spill] sm:$0xff] %v7572_v12  ;;  %10537 = vst [vmem:[#allocation387_spill] sm:$0xff] %v7575_v40  ;;  %v2208_v21 = vrot.slane %v10547_v53, 3  ;;  %v10549_v43 = vld [vmem:[#allocation242_spill] sm:$0xff]  ;;  %v2213_v47 = vrot.slane %v10550_v18, 3  ;;  %v10551_v19 = vld [vmem:[#allocation247_spill] sm:$0xff]  ;;  %v7600_v31 = vsel %vm614_vm2, %v2205_v44, %v2206_v13 }
 0x206   :  { %10539 = vst [vmem:[#allocation86_spill] sm:$0xff] %v7578_v46  ;;  %10541 = vst [vmem:[#allocation90_spill] sm:$0xff] %v7581_v16  ;;  %v2211_v11 = vrot.slane %v10549_v43, 3  ;;  %v7592_v45 = vsel %vm614_vm2, %v2200_v50, %v2201_v48  ;;  %v2215_v4 = vrot.slane %v10551_v19, 3  ;;  %v10552_v30 = vld [vmem:[#allocation249_spill] sm:$0xff]  ;;  %v10553_v35 = vld [vmem:[#allocation252_spill] sm:$0xff] }
 0x207   :  { %v7603_v57 = vsel %vm614_vm2, %v2206_v13, %v2208_v21  ;;  %v2216_v14 = vrot.slane %v10552_v30, 3  ;;  %v2218_v5 = vrot.slane %v10553_v35, 3  ;;  %v10554_v20 = vld [vmem:[#allocation254_spill] sm:$0xff]  ;;  %v10555_v15 = vld [vmem:[#allocation256_spill] sm:$0xff]  ;;  %v10556_v48 = vld [vmem:[#allocation259_spill] sm:$0xff] }
 0x208   :  { %v7606_v52 = vsel %vm614_vm2, %v2210_v3, %v2211_v11  ;;  %v7610_v7 = vsel %vm614_vm2, %v2211_v11, %v2213_v47  ;;  %v2220_v62 = vrot.slane %v10554_v20, 3  ;;  %v2221_v50 = vrot.slane %v10555_v15, 3  ;;  %v10557_v59 = vld [vmem:[#allocation261_spill] sm:$0xff]  ;;  %v10558_v44 = vld [vmem:[#allocation263_spill] sm:$0xff]  ;;  %v10559_v21 = vld [vmem:[#allocation266_spill] sm:$0xff] }
 0x209   :  { %v7616_v42 = vsel %vm614_vm2, %v2215_v4, %v2216_v14  ;;  %v2223_v9 = vrot.slane %v10556_v48, 3  ;;  %v2225_v56 = vrot.slane %v10557_v59, 3  ;;  %v2226_v1 = vrot.slane %v10558_v44, 3  ;;  %v10560_v3 = vld [vmem:[#allocation268_spill] sm:$0xff]  ;;  %v10561_v47 = vld [vmem:[#allocation270_spill] sm:$0xff]  ;;  %v10562_v4 = vld [vmem:[#allocation273_spill] sm:$0xff] }
 0x20a   :  { %v7622_v13 = vsel %vm614_vm2, %v2216_v14, %v2218_v5  ;;  %v7625_v53 = vsel %vm614_vm2, %v2220_v62, %v2221_v50  ;;  %v2228_v2 = vrot.slane %v10559_v21, 3  ;;  %v2230_v43 = vrot.slane %v10560_v3, 3  ;;  %v10563_v20 = vld [vmem:[#allocation275_spill] sm:$0xff]  ;;  %v10564_v5 = vld [vmem:[#allocation277_spill] sm:$0xff]  ;;  %v10565_v62 = vld [vmem:[#allocation280_spill] sm:$0xff] }
 0x20b   :  { %v2224_v11 = vsel %vm614_vm2, %v2221_v50, %v2223_v9  ;;  %v2227_v18 = vsel %vm614_vm2, %v2225_v56, %v2226_v1  ;;  %v2231_v19 = vrot.slane %v10561_v47, 3  ;;  %v2233_v30 = vrot.slane %v10562_v4, 3  ;;  %v10566_v21 = vld [vmem:[#allocation282_spill] sm:$0xff]  ;;  %v10567_v9 = vld [vmem:[#allocation284_spill] sm:$0xff]  ;;  %v10568_v4 = vld [vmem:[#allocation287_spill] sm:$0xff] }
 0x20c   :  { %v2229_v35 = vsel %vm614_vm2, %v2226_v1, %v2228_v2  ;;  %v2235_v14 = vrot.slane %v10563_v20, 3  ;;  %v2236_v15 = vrot.slane %v10564_v5, 3  ;;  %v2238_v48 = vrot.slane %v10565_v62, 3  ;;  %v10569_v2 = vld [vmem:[#allocation289_spill] sm:$0xff]  ;;  %v10570_v16 = vld [vmem:[#allocation291_spill] sm:$0xff]  ;;  %v10571_v46 = vld [vmem:[#allocation294_spill] sm:$0xff] }
 0x20d   :  { %v2232_v59 = vsel %vm614_vm2, %v2230_v43, %v2231_v19  ;;  %v2234_v44 = vsel %vm614_vm2, %v2231_v19, %v2233_v30  ;;  %v2240_v50 = vrot.slane %v10566_v21, 3  ;;  %v2241_v56 = vrot.slane %v10567_v9, 3  ;;  %v10572_v40 = vld [vmem:[#allocation296_spill] sm:$0xff]  ;;  %v10573_v21 = vld [vmem:[#allocation298_spill] sm:$0xff]  ;;  %v10574_v12 = vld [vmem:[#allocation301_spill] sm:$0xff] }
 0x20e   :  { %v2237_v3 = vsel %vm614_vm2, %v2235_v14, %v2236_v15  ;;  %v2239_v47 = vsel %vm614_vm2, %v2236_v15, %v2238_v48  ;;  %v2243_v1 = vrot.slane %v10568_v4, 3  ;;  %v2245_v20 = vrot.slane %v10569_v2, 3  ;;  %v10575_v41 = vld [vmem:[#allocation303_spill] sm:$0xff]  ;;  %v10576_v2 = vld [vmem:[#allocation306_spill] sm:$0xff]  ;;  %v10577_v58 = vld [vmem:[#allocation309_spill] sm:$0xff] }
 0x20f   :  { %v2242_v5 = vsel %vm614_vm2, %v2240_v50, %v2241_v56  ;;  %v2246_v62 = vrot.slane %v10570_v16, 3  ;;  %v2248_v43 = vrot.slane %v10571_v46, 3  ;;  %v2250_v19 = vrot.slane %v10572_v40, 3  ;;  %v10578_v63 = vld [vmem:[#allocation311_spill] sm:$0xff]  ;;  %v10580_v61 = vld [vmem:[#allocation314_spill] sm:$0xff]  ;;  %v10581_v60 = vld [vmem:[#allocation316_spill] sm:$0xff] }
 0x210   :  { %v2244_v30 = vsel %vm614_vm2, %v2241_v56, %v2243_v1  ;;  %v2251_v9 = vrot.slane %v10573_v21, 3  ;;  %v2253_v14 = vrot.slane %v10574_v12, 3  ;;  %v2255_v15 = vrot.slane %v10575_v41, 3  ;;  %v10579_v1 = vld [vmem:[#allocation313_spill] sm:$0xff]  ;;  %v10583_v0 = vld [vmem:[#allocation322_spill] sm:$0xff]  ;;  %v10584_v29 = vld [vmem:[#allocation324_spill] sm:$0xff] }
 0x211   :  { %v2247_v48 = vsel %vm614_vm2, %v2245_v20, %v2246_v62  ;;  %v2249_v4 = vsel %vm614_vm2, %v2246_v62, %v2248_v43  ;;  %v2256_v50 = vrot.slane %v10576_v2, 3  ;;  %v2258_v16 = vrot.slane %v10577_v58, 3  ;;  %v10582_v2 = vld [vmem:[#allocation320_spill] sm:$0xff]  ;;  %v10586_v39 = vld [vmem:[#allocation327_spill] sm:$0xff] }
 0x212   :  { %v2252_v46 = vsel %vm614_vm2, %v2250_v19, %v2251_v9  ;;  %v2254_v40 = vsel %vm614_vm2, %v2251_v9, %v2253_v14  ;;  %v2260_v56 = vrot.slane %v10578_v63, 3  ;;  %v2261_v21 = vrot.slane %v10579_v1, 3  ;;  %v10585_v14 = vld [vmem:[#allocation325_spill] sm:$0xff]  ;;  %v10587_v25 = vld [vmem:[#allocation279_spill] sm:$0xff] }
 0x213   :  { %v2257_v12 = vsel %vm614_vm2, %v2255_v15, %v2256_v50  ;;  %v2259_v41 = vsel %vm614_vm2, %v2256_v50, %v2258_v16  ;;  %v2263_v20 = vrot.slane %v10580_v61, 3  ;;  %v2265_v62 = vrot.slane %v10581_v60, 3  ;;  %v10588_v16 = vld [vmem:[#allocation281_spill] sm:$0xff]  ;;  %v10589_v27 = vld [vmem:[#allocation283_spill] sm:$0xff] }
 0x214   :  { %v2262_v43 = vsel %vm614_vm2, %v2260_v56, %v2261_v21  ;;  %v2266_v58 = vrot.slane %v10582_v2, 3  ;;  %v2268_v19 = vrot.slane %v10583_v0, 3  ;;  %v2270_v9 = vrot.slane %v10584_v29, 3 }
 0x215   :  { %v2264_v63 = vsel %vm614_vm2, %v2261_v21, %v2263_v20  ;;  %v2271_v1 = vrot.slane %v10585_v14, 3  ;;  %v2273_v15 = vrot.slane %v10586_v39, 3  ;;  %v2275_v50 = vrot.slane %v10587_v25, 3  ;;  %v10645_v25 = vld [vmem:[#allocation178_spill] sm:$0xff] }
 0x216   :  { %v2267_v61 = vsel %vm614_vm2, %v2265_v62, %v2266_v58  ;;  %v2269_v60 = vsel %vm614_vm2, %v2266_v58, %v2268_v19  ;;  %v2276_v56 = vrot.slane %v10588_v16, 3  ;;  %v2278_v2 = vrot.slane %v10589_v27, 3  ;;  %v10644_v16 = vld [vmem:[#allocation31_spill] sm:$0xff] }
 0x217   :  { %v2272_v0 = vsel %vm614_vm2, %v2270_v9, %v2271_v1  ;;  %v2274_v29 = vsel %vm614_vm2, %v2271_v1, %v2273_v15  ;;  %v7681_v21 = vadd.f32 %v7592_v45, %v7478_v23  ;;  %v7685_v39 = vadd.f32 %v7595_v8, %v7482_v26  ;;  %v10622_v1 = vld [vmem:[#allocation4_spill] sm:$0xff] }
 0x218   :  { %v2277_v20 = vsel %vm614_vm2, %v2275_v50, %v2276_v56  ;;  %v2279_v62 = vsel %vm614_vm2, %v2276_v56, %v2278_v2  ;;  %v7691_v58 = vadd.f32 %v7600_v31, %v7488_v36  ;;  %v7695_v19 = vadd.f32 %v7603_v57, %v7492_v32  ;;  %v10623_v50 = vld [vmem:[#allocation6_spill] sm:$0xff]  ;;  %v10625_v2 = vld [vmem:[#allocation9_spill] sm:$0xff] }
 0x219   :  { %v7699_v23 = vadd.f32 %v7606_v52, %v7496_v24  ;;  %v7703_v26 = vadd.f32 %v7610_v7, %v7500_v28  ;;  %v7707_v45 = vadd.f32 %v7616_v42, %v7504_v49  ;;  %v7711_v36 = vadd.f32 %v7622_v13, %v7508_v55 }
 0x21a   :  { %v7715_v32 = vadd.f32 %v7625_v53, %v7512_v38  ;;  %v7718_v8 = vadd.f32 %v2224_v11, %v7515_v33  ;;  %v7721_v24 = vadd.f32 %v2227_v18, %v7518_v22  ;;  %v7724_v28 = vadd.f32 %v2229_v35, %v7521_v51  ;;  %v10590_v51 = vld [vmem:[#allocation276_spill] sm:$0xff]  ;;  %v10604_v18 = vld [vmem:[#allocation295_spill] sm:$0xff] }
 0x21b   :  { %v7727_v49 = vadd.f32 %v2232_v59, %v7524_v34  ;;  %v7730_v31 = vadd.f32 %v2234_v44, %v7527_v6  ;;  %v7733_v55 = vadd.f32 %v2237_v3, %v7530_v17  ;;  %v7736_v38 = vadd.f32 %v2239_v47, %v7533_v54  ;;  %v10592_v34 = vld [vmem:[#allocation82_spill] sm:$0xff]  ;;  %v10598_v54 = vld [vmem:[#allocation288_spill] sm:$0xff]  ;;  %v10606_v59 = vld [vmem:[#allocation297_spill] sm:$0xff] }
 0x21c   :  { %v7739_v33 = vadd.f32 %v2242_v5, %v7536_v37  ;;  %v7742_v22 = vadd.f32 %v2244_v30, %v7539_v10  ;;  %v7745_v57 = vadd.f32 %v2247_v48, %v10590_v51  ;;  %v7748_v52 = vadd.f32 %v2249_v4, %v10592_v34  ;;  %v10594_v6 = vld [vmem:[#allocation2_spill] sm:$0xff]  ;;  %v10602_v10 = vld [vmem:[#allocation293_spill] sm:$0xff]  ;;  %v10608_v3 = vld [vmem:[#allocation300_spill] sm:$0xff] }
 0x21d   :  { %v7751_v7 = vadd.f32 %v2252_v46, %v10594_v6  ;;  %v10596_v17 = vld [vmem:[#allocation286_spill] sm:$0xff]  ;;  %v7757_v13 = vadd.f32 %v2257_v12, %v10598_v54  ;;  %v7763_v11 = vadd.f32 %v2262_v43, %v10602_v10  ;;  %v7766_v35 = vadd.f32 %v2264_v63, %v10604_v18  ;;  %v10612_v48 = vld [vmem:[#allocation387_spill] sm:$0xff]  ;;  %v10618_v43 = vld [vmem:[#allocation49_spill] sm:$0xff] }
 0x21e   :  { %10591 = vst [vmem:[#allocation94_spill] sm:$0xff] %v7745_v57  ;;  %10593 = vst [vmem:[#allocation98_spill] sm:$0xff] %v7748_v52  ;;  %v7754_v42 = vadd.f32 %v2254_v40, %v10596_v17  ;;  %v10600_v37 = vld [vmem:[#allocation290_spill] sm:$0xff]  ;;  %v7769_v44 = vadd.f32 %v2267_v61, %v10606_v59  ;;  %v7772_v47 = vadd.f32 %v2269_v60, %v10608_v3  ;;  %v7787_v9 = vmul.f32 -0.016389329, %v10618_v43  ;;  %v10620_v63 = vld [vmem:[#allocation129_spill] sm:$0xff] }
 0x21f   :  { %10595 = vst [vmem:[#allocation102_spill] sm:$0xff] %v7751_v7  ;;  %10599 = vst [vmem:[#allocation109_spill] sm:$0xff] %v7757_v13  ;;  %v7760_v53 = vadd.f32 %v2259_v41, %v10600_v37  ;;  %v10610_v5 = vld [vmem:[#allocation386_spill] sm:$0xff]  ;;  %v7778_v4 = vadd.f32 %v2274_v29, %v10612_v48  ;;  %v7790_v14 = vmul.f32 -0.016389329, %v10620_v63  ;;  %v2352_v15 = vrot.slane %v10622_v1, 4 }
 0x220   :  { %10597 = vst [vmem:[#allocation106_spill] sm:$0xff] %v7754_v42  ;;  %10603 = vst [vmem:[#allocation117_spill] sm:$0xff] %v7763_v11  ;;  %v7775_v30 = vadd.f32 %v2272_v0, %v10610_v5  ;;  %v10614_v46 = vld [vmem:[#allocation86_spill] sm:$0xff]  ;;  %v2353_v61 = vrot.slane %v10623_v50, 4  ;;  %v10624_v60 = vld [vmem:[#allocation8_spill] sm:$0xff]  ;;  %v2357_v0 = vrot.slane %v10625_v2, 4 }
 0x221   :  { %10601 = vst [vmem:[#allocation113_spill] sm:$0xff] %v7760_v53  ;;  %10605 = vst [vmem:[#allocation120_spill] sm:$0xff] %v7766_v35  ;;  %v7781_v40 = vadd.f32 %v2277_v20, %v10614_v46  ;;  %v10616_v12 = vld [vmem:[#allocation90_spill] sm:$0xff]  ;;  %v2355_v56 = vrot.slane %v10624_v60, 4  ;;  %v10628_v6 = vld [vmem:[#allocation12_spill] sm:$0xff] }
 0x222   :  { %10607 = vst [vmem:[#allocation123_spill] sm:$0xff] %v7769_v44  ;;  %10609 = vst [vmem:[#allocation126_spill] sm:$0xff] %v7772_v47  ;;  %v7784_v41 = vadd.f32 %v2279_v62, %v10616_v12  ;;  %v10626_v29 = vld [vmem:[#allocation10_spill] sm:$0xff]  ;;  %v7799_v62 = vsel %vm823_vm3, %v2352_v15, %v2353_v61  ;;  %v2362_v17 = vrot.slane %v10628_v6, 4  ;;  %v10629_v54 = vld [vmem:[#allocation13_spill] sm:$0xff] }
 0x223   :  { %10611 = vst [vmem:[#allocation267_spill] sm:$0xff] %v7775_v30  ;;  %10613 = vst [vmem:[#allocation269_spill] sm:$0xff] %v7778_v4  ;;  %v2358_v20 = vrot.slane %v10626_v29, 4  ;;  %v10627_v51 = vld [vmem:[#allocation166_spill] sm:$0xff]  ;;  %v2363_v37 = vrot.slane %v10629_v54, 4  ;;  %v10630_v10 = vld [vmem:[#allocation168_spill] sm:$0xff]  ;;  %v7805_v59 = vsel %vm823_vm3, %v2353_v61, %v2355_v56 }
 0x224   :  { %10615 = vst [vmem:[#allocation272_spill] sm:$0xff] %v7781_v40  ;;  %10617 = vst [vmem:[#allocation274_spill] sm:$0xff] %v7784_v41  ;;  %v2360_v34 = vrot.slane %v10627_v51, 4  ;;  %v2365_v18 = vrot.slane %v10630_v10, 4  ;;  %v10631_v48 = vld [vmem:[#allocation16_spill] sm:$0xff]  ;;  %v10632_v63 = vld [vmem:[#allocation17_spill] sm:$0xff] }
 0x225   :  { %10619 = vst [vmem:[#allocation229_spill] sm:$0xff] %v7787_v9  ;;  %10621 = vst [vmem:[#allocation226_spill] sm:$0xff] %v7790_v14  ;;  %v7808_v3 = vsel %vm823_vm3, %v2357_v0, %v2358_v20  ;;  %v2367_v46 = vrot.slane %v10631_v48, 4  ;;  %v7815_v12 = vsel %vm823_vm3, %v2362_v17, %v2363_v37  ;;  %v2368_v1 = vrot.slane %v10632_v63, 4  ;;  %v10633_v15 = vld [vmem:[#allocation170_spill] sm:$0xff]  ;;  %v10635_v56 = vld [vmem:[#allocation21_spill] sm:$0xff] }
 0x226   :  { %v7811_v5 = vsel %vm823_vm3, %v2358_v20, %v2360_v34  ;;  %v7818_v43 = vsel %vm823_vm3, %v2363_v37, %v2365_v18  ;;  %v2370_v50 = vrot.slane %v10633_v15, 4  ;;  %v10634_v61 = vld [vmem:[#allocation18_spill] sm:$0xff]  ;;  %v2373_v2 = vrot.slane %v10635_v56, 4  ;;  %v10636_v0 = vld [vmem:[#allocation172_spill] sm:$0xff]  ;;  %v10638_v17 = vld [vmem:[#allocation23_spill] sm:$0xff] }
 0x227   :  { %v2372_v60 = vrot.slane %v10634_v61, 4  ;;  %v2375_v29 = vrot.slane %v10636_v0, 4  ;;  %v10637_v20 = vld [vmem:[#allocation22_spill] sm:$0xff]  ;;  %v7827_v34 = vsel %vm823_vm3, %v2367_v46, %v2368_v1  ;;  %v2378_v54 = vrot.slane %v10638_v17, 4  ;;  %v10641_v61 = vld [vmem:[#allocation27_spill] sm:$0xff]  ;;  %v10646_v41 = vld [vmem:[#allocation32_spill] sm:$0xff] }
 0x228   :  { %v2377_v51 = vrot.slane %v10637_v20, 4  ;;  %v7830_v6 = vsel %vm823_vm3, %v2368_v1, %v2370_v50  ;;  %v10639_v37 = vld [vmem:[#allocation174_spill] sm:$0xff]  ;;  %v2383_v56 = vrot.slane %v10641_v61, 4  ;;  %v10642_v20 = vld [vmem:[#allocation176_spill] sm:$0xff]  ;;  %v10649_v4 = vld [vmem:[#allocation37_spill] sm:$0xff] }
 0x229   :  { %v2380_v10 = vrot.slane %v10639_v37, 4  ;;  %v2374_v18 = vsel %vm823_vm3, %v2372_v60, %v2373_v2  ;;  %v2376_v48 = vsel %vm823_vm3, %v2373_v2, %v2375_v29  ;;  %v10640_v63 = vld [vmem:[#allocation26_spill] sm:$0xff]  ;;  %v2385_v27 = vrot.slane %v10642_v20, 4  ;;  %v10643_v1 = vld [vmem:[#allocation28_spill] sm:$0xff]  ;;  %v10652_v47 = vld [vmem:[#allocation39_spill] sm:$0xff] }
 0x22a   :  { %v2382_v15 = vrot.slane %v10640_v63, 4  ;;  %v2379_v0 = vsel %vm823_vm3, %v2377_v51, %v2378_v54  ;;  %v2387_v50 = vrot.slane %v10643_v1, 4  ;;  %v2388_v37 = vrot.slane %v10644_v16, 4  ;;  %v10647_v63 = vld [vmem:[#allocation33_spill] sm:$0xff]  ;;  %v10648_v40 = vld [vmem:[#allocation180_spill] sm:$0xff]  ;;  %v10650_v1 = vld [vmem:[#allocation38_spill] sm:$0xff] }
 0x22b   :  { %v2381_v46 = vsel %vm823_vm3, %v2378_v54, %v2380_v10  ;;  %v2390_v60 = vrot.slane %v10645_v25, 4  ;;  %v2392_v2 = vrot.slane %v10646_v41, 4  ;;  %v2386_v29 = vsel %vm823_vm3, %v2383_v56, %v2385_v27  ;;  %v10651_v30 = vld [vmem:[#allocation182_spill] sm:$0xff]  ;;  %v10654_v44 = vld [vmem:[#allocation184_spill] sm:$0xff]  ;;  %v10657_v11 = vld [vmem:[#allocation185_spill] sm:$0xff] }
 0x22c   :  { %v2384_v17 = vsel %vm823_vm3, %v2382_v15, %v2383_v56  ;;  %v2393_v61 = vrot.slane %v10647_v63, 4  ;;  %v2395_v51 = vrot.slane %v10648_v40, 4  ;;  %v2397_v54 = vrot.slane %v10649_v4, 4  ;;  %v10653_v56 = vld [vmem:[#allocation43_spill] sm:$0xff]  ;;  %v10655_v35 = vld [vmem:[#allocation44_spill] sm:$0xff]  ;;  %v10658_v53 = vld [vmem:[#allocation50_spill] sm:$0xff] }
 0x22d   :  { %v2389_v10 = vsel %vm823_vm3, %v2387_v50, %v2388_v37  ;;  %v2391_v20 = vsel %vm823_vm3, %v2388_v37, %v2390_v60  ;;  %v2398_v15 = vrot.slane %v10650_v1, 4  ;;  %v2400_v16 = vrot.slane %v10651_v30, 4  ;;  %v10656_v1 = vld [vmem:[#allocation45_spill] sm:$0xff]  ;;  %v10660_v13 = vld [vmem:[#allocation187_spill] sm:$0xff]  ;;  %v10661_v42 = vld [vmem:[#allocation52_spill] sm:$0xff] }
 0x22e   :  { %v2394_v25 = vsel %vm823_vm3, %v2392_v2, %v2393_v61  ;;  %v2396_v41 = vsel %vm823_vm3, %v2393_v61, %v2395_v51  ;;  %v2402_v27 = vrot.slane %v10652_v47, 4  ;;  %v2403_v63 = vrot.slane %v10653_v56, 4  ;;  %v10659_v51 = vld [vmem:[#allocation51_spill] sm:$0xff]  ;;  %v10663_v7 = vld [vmem:[#allocation188_spill] sm:$0xff] }
 0x22f   :  { %v2399_v40 = vsel %vm823_vm3, %v2397_v54, %v2398_v15  ;;  %v2401_v4 = vsel %vm823_vm3, %v2398_v15, %v2400_v16  ;;  %v2405_v50 = vrot.slane %v10654_v44, 4  ;;  %v2407_v37 = vrot.slane %v10655_v35, 4  ;;  %v10662_v16 = vld [vmem:[#allocation57_spill] sm:$0xff]  ;;  %v10664_v52 = vld [vmem:[#allocation56_spill] sm:$0xff]  ;;  %v10666_v57 = vld [vmem:[#allocation243_spill] sm:$0xff] }
 0x230   :  { %v2404_v60 = vsel %vm823_vm3, %v2402_v27, %v2403_v63  ;;  %v2408_v30 = vrot.slane %v10656_v1, 4  ;;  %v2410_v2 = vrot.slane %v10657_v11, 4  ;;  %v2412_v61 = vrot.slane %v10658_v53, 4 }
 0x231   :  { %v2406_v47 = vsel %vm823_vm3, %v2403_v63, %v2405_v50  ;;  %v2413_v56 = vrot.slane %v10659_v51, 4  ;;  %v2415_v54 = vrot.slane %v10660_v13, 4  ;;  %v2417_v15 = vrot.slane %v10661_v42, 4  ;;  %v10665_v50 = vld [vmem:[#allocation236_spill] sm:$0xff] }
 0x232   :  { %v2409_v44 = vsel %vm823_vm3, %v2407_v37, %v2408_v30  ;;  %v2411_v35 = vsel %vm823_vm3, %v2408_v30, %v2410_v2  ;;  %v2418_v27 = vrot.slane %v10662_v16, 4  ;;  %v2420_v1 = vrot.slane %v10663_v7, 4  ;;  %v10667_v16 = vld [vmem:[#allocation305_spill] sm:$0xff] }
 0x233   :  { %v2414_v11 = vsel %vm823_vm3, %v2412_v61, %v2413_v56  ;;  %v2416_v53 = vsel %vm823_vm3, %v2413_v56, %v2415_v54  ;;  %v2422_v63 = vrot.slane %v10664_v52, 4  ;;  %v2423_v51 = vrot.slane %v10665_v50, 4  ;;  %v10726_v52 = vld [vmem:[#allocation336_spill] sm:$0xff] }
 0x234   :  { %v2419_v13 = vsel %vm823_vm3, %v2417_v15, %v2418_v27  ;;  %v2421_v42 = vsel %vm823_vm3, %v2418_v27, %v2420_v1  ;;  %v2425_v37 = vrot.slane %v7787_v9, 4  ;;  %v2427_v30 = vrot.slane %v10666_v57, 4  ;;  %v10700_v57 = vld [vmem:[#allocation103_spill] sm:$0xff] }
 0x235   :  { %v2424_v2 = vsel %vm823_vm3, %v2422_v63, %v2423_v51  ;;  %v2428_v7 = vrot.slane %v10667_v16, 4  ;;  %v2430_v61 = vrot.slane %v7790_v14, 4  ;;  %v2464_v56 = vadd.f32 %v7799_v62, %v7681_v21 }
 0x236   :  { %v2426_v54 = vsel %vm823_vm3, %v2423_v51, %v2425_v37  ;;  %v2465_v15 = vadd.f32 %v7805_v59, %v7685_v39  ;;  %v2466_v27 = vadd.f32 %v7808_v3, %v7691_v58  ;;  %v2467_v1 = vadd.f32 %v7811_v5, %v7695_v19  ;;  %v10683_v37 = vld [vmem:[#allocation274_spill] sm:$0xff] }
 0x237   :  { %v2429_v63 = vsel %vm823_vm3, %v2427_v30, %v2428_v7  ;;  %v2431_v16 = vsel %vm823_vm3, %v2428_v7, %v2430_v61  ;;  %v2468_v14 = vadd.f32 %v7815_v12, %v7699_v23  ;;  %v2469_v21 = vadd.f32 %v7818_v43, %v7703_v26  ;;  %v10668_v43 = vld [vmem:[#allocation94_spill] sm:$0xff]  ;;  %v10691_v7 = vld [vmem:[#allocation84_spill] sm:$0xff] }
 0x238   :  { %v2470_v62 = vadd.f32 %v7827_v34, %v7707_v45  ;;  %v2471_v39 = vadd.f32 %v7830_v6, %v7711_v36  ;;  %v2472_v58 = vadd.f32 %v2374_v18, %v7715_v32  ;;  %v2473_v19 = vadd.f32 %v2376_v48, %v7718_v8  ;;  %v10669_v34 = vld [vmem:[#allocation98_spill] sm:$0xff]  ;;  %v10676_v48 = vld [vmem:[#allocation117_spill] sm:$0xff] }
 0x239   :  { %v2474_v59 = vadd.f32 %v2379_v0, %v7721_v24  ;;  %v2475_v3 = vadd.f32 %v2381_v46, %v7724_v28  ;;  %v2476_v5 = vadd.f32 %v2384_v17, %v7727_v49  ;;  %v2477_v23 = vadd.f32 %v2386_v29, %v7730_v31  ;;  %v10670_v6 = vld [vmem:[#allocation102_spill] sm:$0xff]  ;;  %v7921_v49 = vld [vmem:[%s8494_s0 + $0x1b0] sm:$0xff]  ;;  %v7926_v31 = vld [vmem:[%s8494_s0 + $0x1b8] sm:$0xff] }
 0x23a   :  { %v2478_v26 = vadd.f32 %v2389_v10, %v7733_v55  ;;  %v2479_v12 = vadd.f32 %v2391_v20, %v7736_v38  ;;  %v2480_v45 = vadd.f32 %v2394_v25, %v7739_v33  ;;  %v2481_v36 = vadd.f32 %v2396_v41, %v7742_v22  ;;  %v10671_v18 = vld [vmem:[#allocation106_spill] sm:$0xff]  ;;  %10672 = vst [vmem:[#allocation228_spill] sm:$0xff] %v7921_v49  ;;  %v10674_v55 = vld [vmem:[#allocation109_spill] sm:$0xff]  ;;  %v10677_v46 = vld [vmem:[#allocation120_spill] sm:$0xff] }
 0x23b   :  { %v2482_v32 = vadd.f32 %v2399_v40, %v10668_v43  ;;  %v2483_v8 = vadd.f32 %v2401_v4, %v10669_v34  ;;  %v2484_v24 = vadd.f32 %v2404_v60, %v10670_v6  ;;  %v2485_v28 = vadd.f32 %v2406_v47, %v10671_v18  ;;  %10673 = vst [vmem:[#allocation231_spill] sm:$0xff] %v7926_v31  ;;  %v10675_v33 = vld [vmem:[#allocation113_spill] sm:$0xff]  ;;  %v10678_v29 = vld [vmem:[#allocation123_spill] sm:$0xff]  ;;  %v10679_v20 = vld [vmem:[#allocation126_spill] sm:$0xff] }
 0x23c   :  { %v2486_v38 = vadd.f32 %v2409_v44, %v10674_v55  ;;  %v2487_v22 = vadd.f32 %v2411_v35, %v10675_v33  ;;  %v2488_v0 = vadd.f32 %v2414_v11, %v10676_v48  ;;  %v2489_v17 = vadd.f32 %v2416_v53, %v10677_v46  ;;  %v10680_v41 = vld [vmem:[#allocation267_spill] sm:$0xff]  ;;  %v10681_v4 = vld [vmem:[#allocation269_spill] sm:$0xff]  ;;  %v10682_v47 = vld [vmem:[#allocation272_spill] sm:$0xff] }
 0x23d   :  { %v2490_v10 = vadd.f32 %v2419_v13, %v10678_v29  ;;  %v2491_v25 = vadd.f32 %v2421_v42, %v10679_v20  ;;  %v2492_v40 = vadd.f32 %v2424_v2, %v10680_v41  ;;  %v2493_v60 = vadd.f32 %v2426_v54, %v10681_v4  ;;  %v7941_v44 = vld [vmem:[%s8494_s0 + $0x198] sm:$0xff]  ;;  %v7949_v11 = vld [vmem:[%s8494_s0 + $0x1a0] sm:$0xff]  ;;  %v10690_v2 = vld [vmem:[#allocation83_spill] sm:$0xff] }
 0x23e   :  { %v2494_v51 = vadd.f32 %v2429_v63, %v10682_v47  ;;  %v2495_v30 = vadd.f32 %v2431_v16, %v10683_v37  ;;  %10684 = vst [vmem:[#allocation233_spill] sm:$0xff] %v7941_v44  ;;  %v7944_v35 = vmul.f32 -0.020517742, %v7941_v44  ;;  %10686 = vst [vmem:[#allocation238_spill] sm:$0xff] %v7949_v11  ;;  %v7952_v53 = vmul.f32 -0.020517742, %v7949_v11 }
 0x23f   :  { %v7955_v13 = vmul.f32 -0.020517742, %v7921_v49  ;;  %v7958_v42 = vmul.f32 -0.020517742, %v7926_v31  ;;  %v2500_v16 = vadd.f32 %v2464_v56, %v10690_v2  ;;  %v2501_v61 = vadd.f32 %v2465_v15, %v10691_v7  ;;  %v10692_v54 = vld [vmem:[#allocation87_spill] sm:$0xff]  ;;  %v10693_v43 = vld [vmem:[#allocation88_spill] sm:$0xff] }
 0x240   :  { %10685 = vst [vmem:[#allocation235_spill] sm:$0xff] %v7944_v35  ;;  %10687 = vst [vmem:[#allocation240_spill] sm:$0xff] %v7952_v53  ;;  %v2502_v63 = vadd.f32 %v2466_v27, %v10692_v54  ;;  %v2503_v34 = vadd.f32 %v2467_v1, %v10693_v43  ;;  %v10694_v6 = vld [vmem:[#allocation91_spill] sm:$0xff]  ;;  %v10695_v55 = vld [vmem:[#allocation92_spill] sm:$0xff]  ;;  %v2510_v56 = vadd.f32 %v2474_v59, %v10700_v57 }
 0x241   :  { %10688 = vst [vmem:[#allocation242_spill] sm:$0xff] %v7955_v13  ;;  %10689 = vst [vmem:[#allocation245_spill] sm:$0xff] %v7958_v42  ;;  %v2504_v18 = vadd.f32 %v2468_v14, %v10694_v6  ;;  %v2505_v33 = vadd.f32 %v2469_v21, %v10695_v55  ;;  %v10696_v48 = vld [vmem:[#allocation95_spill] sm:$0xff]  ;;  %v10697_v29 = vld [vmem:[#allocation96_spill] sm:$0xff] }
 0x242   :  { %v2506_v46 = vadd.f32 %v2470_v62, %v10696_v48  ;;  %v2507_v20 = vadd.f32 %v2471_v39, %v10697_v29  ;;  %v10698_v41 = vld [vmem:[#allocation99_spill] sm:$0xff]  ;;  %v10699_v47 = vld [vmem:[#allocation100_spill] sm:$0xff]  ;;  %v10704_v43 = vld [vmem:[#allocation110_spill] sm:$0xff] }
 0x243   :  { %v2508_v4 = vadd.f32 %v2472_v58, %v10698_v41  ;;  %v2509_v37 = vadd.f32 %v2473_v19, %v10699_v47  ;;  %v10701_v2 = vld [vmem:[#allocation104_spill] sm:$0xff]  ;;  %v10702_v7 = vld [vmem:[#allocation107_spill] sm:$0xff]  ;;  %v2514_v14 = vadd.f32 %v2478_v26, %v10704_v43  ;;  %v10706_v55 = vld [vmem:[#allocation114_spill] sm:$0xff] }
 0x244   :  { %v2511_v15 = vadd.f32 %v2475_v3, %v10701_v2  ;;  %v2512_v27 = vadd.f32 %v2476_v5, %v10702_v7  ;;  %v10703_v54 = vld [vmem:[#allocation108_spill] sm:$0xff]  ;;  %v10705_v6 = vld [vmem:[#allocation111_spill] sm:$0xff]  ;;  %v2516_v62 = vadd.f32 %v2480_v45, %v10706_v55  ;;  %v10708_v29 = vld [vmem:[#allocation118_spill] sm:$0xff] }
 0x245   :  { %v2513_v1 = vadd.f32 %v2477_v23, %v10703_v54  ;;  %v2515_v21 = vadd.f32 %v2479_v12, %v10705_v6  ;;  %v10707_v48 = vld [vmem:[#allocation115_spill] sm:$0xff]  ;;  %v2518_v58 = vadd.f32 %v2482_v32, %v10708_v29  ;;  %v10710_v47 = vld [vmem:[#allocation121_spill] sm:$0xff]  ;;  %v10711_v59 = vld [vmem:[#allocation122_spill] sm:$0xff] }
 0x246   :  { %v2517_v39 = vadd.f32 %v2481_v36, %v10707_v48  ;;  %v10709_v41 = vld [vmem:[#allocation119_spill] sm:$0xff]  ;;  %v2520_v57 = vadd.f32 %v2484_v24, %v10710_v47  ;;  %v2521_v3 = vadd.f32 %v2485_v28, %v10711_v59  ;;  %v10712_v2 = vld [vmem:[#allocation124_spill] sm:$0xff]  ;;  %v10713_v7 = vld [vmem:[#allocation125_spill] sm:$0xff]  ;;  %v2528_v24 = vadd.f32 %v7944_v35, %v2492_v40 }
 0x247   :  { %v2519_v19 = vadd.f32 %v2483_v8, %v10709_v41  ;;  %v2522_v5 = vadd.f32 %v2486_v38, %v10712_v2  ;;  %v2523_v23 = vadd.f32 %v2487_v22, %v10713_v7  ;;  %v10714_v54 = vld [vmem:[#allocation127_spill] sm:$0xff]  ;;  %v10715_v43 = vld [vmem:[#allocation128_spill] sm:$0xff]  ;;  %v7989_v45 = vld [vmem:[%s8494_s0 + $0x1c0] sm:$0xf]  ;;  %v2529_v28 = vadd.f32 %v7952_v53, %v2493_v60 }
 0x248   :  { %v2524_v26 = vadd.f32 %v2488_v0, %v10714_v54  ;;  %v2525_v12 = vadd.f32 %v2489_v17, %v10715_v43  ;;  %10716 = vst [vmem:[#allocation247_spill] sm:$0xff] %v7989_v45  ;;  %v10717_v36 = vld [vmem:[#allocation154_spill] sm:$0xff]  ;;  %v10718_v8 = vld [vmem:[#allocation155_spill] sm:$0xff]  ;;  %v2530_v38 = vadd.f32 %v7955_v13, %v2494_v51  ;;  %v2531_v22 = vadd.f32 %v7958_v42, %v2495_v30  ;;  %v10721_v51 = vld [vmem:[#allocation332_spill] sm:$0xff] }
 0x249   :  { %v2526_v32 = vadd.f32 %v2490_v10, %v10717_v36  ;;  %v2527_v6 = vadd.f32 %v2491_v25, %v10718_v8  ;;  %v7998_v0 = vmul.f32 0.010420735, %v7941_v44  ;;  %v8001_v17 = vmul.f32 0.010420735, %v7949_v11  ;;  %v8006_v10 = vld [vmem:[%s8494_s0 + $0x1a8] sm:$0xf] }
 0x24a   :  { %10719 = vst [vmem:[#allocation249_spill] sm:$0xff] %v8006_v10  ;;  %v8009_v25 = vmul.f32 0.010420735, %v8006_v10  ;;  %v8012_v40 = vmul.f32 0.010420735, %v7921_v49  ;;  %v2558_v30 = vadd.f32 %v2500_v16, %v10721_v51  ;;  %v10723_v41 = vld [vmem:[#allocation333_spill] sm:$0xff]  ;;  %v2562_v8 = vadd.f32 %v2504_v18, %v10726_v52 }
 0x24b   :  { %v8015_v60 = vmul.f32 0.010420735, %v7926_v31  ;;  %v8019_v55 = vmul.f32 0.010420735, %v7989_v45  ;;  %v2544_v48 = vrot.slane %v7998_v0, 1  ;;  %v2545_v29 = vrot.slane %v8001_v17, 1 }
 0x24c   :  { %v2559_v47 = vadd.f32 %v2501_v61, %v10723_v41  ;;  %v2547_v59 = vrot.slane %v8009_v25, 1  ;;  %v2549_v2 = vrot.slane %v8012_v40, 1  ;;  %v10724_v54 = vld [vmem:[#allocation334_spill] sm:$0xff]  ;;  %v10725_v51 = vld [vmem:[#allocation335_spill] sm:$0xff]  ;;  %v10727_v41 = vld [vmem:[#allocation337_spill] sm:$0xff] }
 0x24d   :  { %10720 = vst [vmem:[#allocation252_spill] sm:$0xff] %v8015_v60  ;;  %10722 = vst [vmem:[#allocation254_spill] sm:$0xff] %v8019_v55  ;;  %v2550_v7 = vrot.slane %v8015_v60, 1  ;;  %v2560_v43 = vadd.f32 %v2502_v63, %v10724_v54  ;;  %v2546_v9 = vsel %vm228_vm0, %v2544_v48, %v2545_v29  ;;  %v2552_v16 = vrot.slane %v8019_v55, 1  ;;  %v10728_v44 = vld [vmem:[#allocation338_spill] sm:$0xff]  ;;  %v10729_v53 = vld [vmem:[#allocation339_spill] sm:$0xff] }
 0x24e   :  { %v2561_v50 = vadd.f32 %v2503_v34, %v10725_v51  ;;  %v2548_v36 = vsel %vm228_vm0, %v2545_v29, %v2547_v59  ;;  %v2563_v11 = vadd.f32 %v2505_v33, %v10727_v41  ;;  %v2564_v42 = vadd.f32 %v2506_v46, %v10728_v44  ;;  %v10730_v54 = vld [vmem:[#allocation340_spill] sm:$0xff]  ;;  %v10731_v35 = vld [vmem:[#allocation341_spill] sm:$0xff]  ;;  %v10732_v55 = vld [vmem:[#allocation342_spill] sm:$0xff] }
 0x24f   :  { %v2551_v61 = vsel %vm228_vm0, %v2549_v2, %v2550_v7  ;;  %v2553_v13 = vsel %vm228_vm0, %v2550_v7, %v2552_v16  ;;  %v2565_v63 = vadd.f32 %v2507_v20, %v10729_v53  ;;  %v2566_v48 = vadd.f32 %v2508_v4, %v10730_v54  ;;  %v10733_v51 = vld [vmem:[#allocation343_spill] sm:$0xff]  ;;  %v10734_v18 = vld [vmem:[#allocation344_spill] sm:$0xff]  ;;  %v10735_v59 = vld [vmem:[#allocation345_spill] sm:$0xff] }
 0x250   :  { %v2567_v10 = vadd.f32 %v2509_v37, %v10731_v35  ;;  %v2568_v34 = vadd.f32 %v2510_v56, %v10732_v55  ;;  %v2569_v52 = vadd.f32 %v2511_v15, %v10733_v51  ;;  %v2570_v29 = vadd.f32 %v2512_v27, %v10734_v18  ;;  %v10736_v60 = vld [vmem:[#allocation346_spill] sm:$0xff]  ;;  %v10737_v41 = vld [vmem:[#allocation347_spill] sm:$0xff]  ;;  %v10738_v46 = vld [vmem:[#allocation348_spill] sm:$0xff] }
 0x251   :  { %v2571_v2 = vadd.f32 %v2513_v1, %v10735_v59  ;;  %v2572_v33 = vadd.f32 %v2514_v14, %v10736_v60  ;;  %v2573_v44 = vadd.f32 %v2515_v21, %v10737_v41  ;;  %v2574_v7 = vadd.f32 %v2516_v62, %v10738_v46  ;;  %v10739_v16 = vld [vmem:[#allocation349_spill] sm:$0xff]  ;;  %v10740_v20 = vld [vmem:[#allocation350_spill] sm:$0xff]  ;;  %v10741_v54 = vld [vmem:[#allocation351_spill] sm:$0xff] }
 0x252   :  { %v2575_v53 = vadd.f32 %v2517_v39, %v10739_v16  ;;  %v2576_v4 = vadd.f32 %v2518_v58, %v10740_v20  ;;  %v2577_v35 = vadd.f32 %v2519_v19, %v10741_v54  ;;  %v10742_v37 = vld [vmem:[#allocation352_spill] sm:$0xff]  ;;  %v10743_v55 = vld [vmem:[#allocation353_spill] sm:$0xff]  ;;  %v10744_v51 = vld [vmem:[#allocation354_spill] sm:$0xff]  ;;  %v2586_v16 = vadd.f32 %v2546_v9, %v2528_v24 }
 0x253   :  { %v2578_v56 = vadd.f32 %v2520_v57, %v10742_v37  ;;  %v2579_v15 = vadd.f32 %v2521_v3, %v10743_v55  ;;  %v2580_v27 = vadd.f32 %v2522_v5, %v10744_v51  ;;  %v10745_v18 = vld [vmem:[#allocation355_spill] sm:$0xff]  ;;  %v10746_v59 = vld [vmem:[#allocation356_spill] sm:$0xff]  ;;  %v10747_v60 = vld [vmem:[#allocation357_spill] sm:$0xff]  ;;  %v2587_v58 = vadd.f32 %v2548_v36, %v2529_v28 }
 0x254   :  { %v2581_v1 = vadd.f32 %v2523_v23, %v10745_v18  ;;  %v2582_v14 = vadd.f32 %v2524_v26, %v10746_v59  ;;  %v2583_v21 = vadd.f32 %v2525_v12, %v10747_v60  ;;  %v10748_v41 = vld [vmem:[#allocation358_spill] sm:$0xff]  ;;  %v10749_v46 = vld [vmem:[#allocation359_spill] sm:$0xff]  ;;  %v2588_v20 = vadd.f32 %v2551_v61, %v2530_v38  ;;  %v10751_v37 = vld [vmem:[#allocation281_spill] sm:$0xff] }
 0x255   :  { %v2584_v62 = vadd.f32 %v2526_v32, %v10748_v41  ;;  %v2585_v39 = vadd.f32 %v2527_v6, %v10749_v46  ;;  %v2589_v19 = vadd.f32 %v2553_v13, %v2531_v22  ;;  %v2590_v57 = vmul.f32 0.04255406, %v7921_v49  ;;  %v10750_v54 = vld [vmem:[#allocation279_spill] sm:$0xff]  ;;  %v10753_v18 = vld [vmem:[#allocation25_spill] sm:$0xff]  ;;  %v10754_v9 = vld [vmem:[#allocation224_spill] sm:$0xff] }
 0x256   :  { %v2591_v3 = vmul.f32 0.04255406, %v7926_v31  ;;  %v2592_v5 = vmul.f32 0.04255406, %v7989_v45  ;;  %v2596_v23 = vrot.slane %v10750_v54, 2  ;;  %v2597_v26 = vrot.slane %v10751_v37, 2 }
 0x257   :  { %v10752_v55 = vld [vmem:[#allocation283_spill] sm:$0xff]  ;;  %v2601_v51 = vrot.slane %v2590_v57, 2  ;;  %v2610_v6 = vadd.f32 %v2558_v30, %v10753_v18  ;;  %v2611_v36 = vadd.f32 %v2559_v47, %v10754_v9  ;;  %v10755_v38 = vld [vmem:[#allocation360_spill] sm:$0xff]  ;;  %v10756_v59 = vld [vmem:[#allocation361_spill] sm:$0xff] }
 0x258   :  { %v2599_v12 = vrot.slane %v10752_v55, 2  ;;  %v2602_v32 = vrot.slane %v2591_v3, 2  ;;  %v2598_v13 = vsel %vm469_vm1, %v2596_v23, %v2597_v26  ;;  %v2604_v28 = vrot.slane %v2592_v5, 2  ;;  %v10757_v41 = vld [vmem:[#allocation362_spill] sm:$0xff]  ;;  %v10758_v54 = vld [vmem:[#allocation363_spill] sm:$0xff]  ;;  %v10759_v30 = vld [vmem:[#allocation364_spill] sm:$0xff] }
 0x259   :  { %v2612_v22 = vadd.f32 %v2560_v43, %v10755_v38  ;;  %v2613_v60 = vadd.f32 %v2561_v50, %v10756_v59  ;;  %v2614_v46 = vadd.f32 %v2562_v8, %v10757_v41  ;;  %v2615_v57 = vadd.f32 %v2563_v11, %v10758_v54  ;;  %v10760_v47 = vld [vmem:[#allocation365_spill] sm:$0xff]  ;;  %v10761_v23 = vld [vmem:[#allocation366_spill] sm:$0xff]  ;;  %v10766_v59 = vld [vmem:[#allocation371_spill] sm:$0xff] }
 0x25a   :  { %v2600_v24 = vsel %vm469_vm1, %v2597_v26, %v2599_v12  ;;  %v2603_v61 = vsel %vm469_vm1, %v2601_v51, %v2602_v32  ;;  %v2605_v3 = vsel %vm469_vm1, %v2602_v32, %v2604_v28  ;;  %v2616_v37 = vadd.f32 %v2564_v42, %v10759_v30  ;;  %v10762_v26 = vld [vmem:[#allocation367_spill] sm:$0xff]  ;;  %v10763_v12 = vld [vmem:[#allocation368_spill] sm:$0xff]  ;;  %v10764_v9 = vld [vmem:[#allocation369_spill] sm:$0xff] }
 0x25b   :  { %v2617_v55 = vadd.f32 %v2565_v63, %v10760_v47  ;;  %v2618_v18 = vadd.f32 %v2566_v48, %v10761_v23  ;;  %v2619_v5 = vadd.f32 %v2567_v10, %v10762_v26  ;;  %v2620_v43 = vadd.f32 %v2568_v34, %v10763_v12  ;;  %v10765_v38 = vld [vmem:[#allocation370_spill] sm:$0xff]  ;;  %v10767_v41 = vld [vmem:[#allocation372_spill] sm:$0xff]  ;;  %v10768_v54 = vld [vmem:[#allocation373_spill] sm:$0xff] }
 0x25c   :  { %v2621_v51 = vadd.f32 %v2569_v52, %v10764_v9  ;;  %v2622_v50 = vadd.f32 %v2570_v29, %v10765_v38  ;;  %v2623_v8 = vadd.f32 %v2571_v2, %v10766_v59  ;;  %v2624_v11 = vadd.f32 %v2572_v33, %v10767_v41  ;;  %v10769_v28 = vld [vmem:[#allocation374_spill] sm:$0xff]  ;;  %v10770_v30 = vld [vmem:[#allocation375_spill] sm:$0xff]  ;;  %v10771_v47 = vld [vmem:[#allocation376_spill] sm:$0xff] }
 0x25d   :  { %v2625_v32 = vadd.f32 %v2573_v44, %v10768_v54  ;;  %v2626_v42 = vadd.f32 %v2574_v7, %v10769_v28  ;;  %v2627_v63 = vadd.f32 %v2575_v53, %v10770_v30  ;;  %v2628_v48 = vadd.f32 %v2576_v4, %v10771_v47  ;;  %v10772_v23 = vld [vmem:[#allocation377_spill] sm:$0xff]  ;;  %v10773_v26 = vld [vmem:[#allocation378_spill] sm:$0xff]  ;;  %v10774_v12 = vld [vmem:[#allocation379_spill] sm:$0xff] }
 0x25e   :  { %v2629_v10 = vadd.f32 %v2577_v35, %v10772_v23  ;;  %v2630_v34 = vadd.f32 %v2578_v56, %v10773_v26  ;;  %v2631_v52 = vadd.f32 %v2579_v15, %v10774_v12  ;;  %v10775_v9 = vld [vmem:[#allocation380_spill] sm:$0xff]  ;;  %v10776_v38 = vld [vmem:[#allocation381_spill] sm:$0xff]  ;;  %v10777_v59 = vld [vmem:[#allocation382_spill] sm:$0xff]  ;;  %v2638_v30 = vadd.f32 %v2598_v13, %v2586_v16 }
 0x25f   :  { %v2632_v29 = vadd.f32 %v2580_v27, %v10775_v9  ;;  %v2633_v2 = vadd.f32 %v2581_v1, %v10776_v38  ;;  %v2634_v33 = vadd.f32 %v2582_v14, %v10777_v59  ;;  %v10778_v41 = vld [vmem:[#allocation383_spill] sm:$0xff]  ;;  %v10779_v54 = vld [vmem:[#allocation384_spill] sm:$0xff]  ;;  %v10780_v28 = vld [vmem:[#allocation385_spill] sm:$0xff]  ;;  %v2639_v4 = vadd.f32 %v2600_v24, %v2587_v58 }
 0x260   :  { %v2635_v44 = vadd.f32 %v2583_v21, %v10778_v41  ;;  %v2636_v7 = vadd.f32 %v2584_v62, %v10779_v54  ;;  %v2637_v53 = vadd.f32 %v2585_v39, %v10780_v28  ;;  %v2640_v47 = vadd.f32 %v2603_v61, %v2588_v20  ;;  %v10781_v23 = vld [vmem:[#allocation252_spill] sm:$0xff]  ;;  %v10782_v26 = vld [vmem:[#allocation254_spill] sm:$0xff]  ;;  %v10784_v9 = vld [vmem:[#allocation257_spill] sm:$0xff] }
 0x261   :  { %v2641_v35 = vadd.f32 %v2605_v3, %v2589_v19  ;;  %v2642_v56 = vrot.slane %v7998_v0, 3  ;;  %v2643_v15 = vrot.slane %v8001_v17, 3  ;;  %v2645_v27 = vrot.slane %v8009_v25, 3  ;;  %v10783_v12 = vld [vmem:[#allocation250_spill] sm:$0xff]  ;;  %v10785_v16 = vld [vmem:[#allocation264_spill] sm:$0xff]  ;;  %v10786_v19 = vld [vmem:[#allocation225_spill] sm:$0xff] }
 0x262   :  { %v2647_v1 = vrot.slane %v8012_v40, 3  ;;  %v2648_v14 = vrot.slane %v10781_v23, 3  ;;  %v2650_v21 = vrot.slane %v10782_v26, 3  ;;  %v2656_v62 = vadd.f32 %v2610_v6, %v10783_v12  ;;  %v10787_v13 = vld [vmem:[#allocation227_spill] sm:$0xff]  ;;  %v10788_v61 = vld [vmem:[#allocation230_spill] sm:$0xff]  ;;  %v10790_v59 = vld [vmem:[#allocation232_spill] sm:$0xff] }
 0x263   :  { %v2657_v39 = vadd.f32 %v2611_v36, %v10784_v9  ;;  %v2658_v58 = vadd.f32 %v2612_v22, %v10785_v16  ;;  %v2644_v20 = vsel %vm614_vm2, %v2642_v56, %v2643_v15  ;;  %v2646_v0 = vsel %vm614_vm2, %v2643_v15, %v2645_v27  ;;  %v10789_v38 = vld [vmem:[#allocation271_spill] sm:$0xff]  ;;  %v10791_v41 = vld [vmem:[#allocation234_spill] sm:$0xff]  ;;  %v10792_v54 = vld [vmem:[#allocation237_spill] sm:$0xff] }
 0x264   :  { %v2649_v17 = vsel %vm614_vm2, %v2647_v1, %v2648_v14  ;;  %v2659_v25 = vadd.f32 %v2613_v60, %v10786_v19  ;;  %v2651_v40 = vsel %vm614_vm2, %v2648_v14, %v2650_v21  ;;  %v2660_v24 = vadd.f32 %v2614_v46, %v10787_v13  ;;  %v10793_v56 = vld [vmem:[#allocation278_spill] sm:$0xff]  ;;  %v10794_v27 = vld [vmem:[#allocation285_spill] sm:$0xff]  ;;  %v10795_v23 = vld [vmem:[#allocation292_spill] sm:$0xff] }
 0x265   :  { %v2661_v3 = vadd.f32 %v2615_v57, %v10788_v61  ;;  %v2662_v6 = vadd.f32 %v2616_v37, %v10789_v38  ;;  %v2663_v36 = vadd.f32 %v2617_v55, %v10790_v59  ;;  %v2664_v22 = vadd.f32 %v2618_v18, %v10791_v41  ;;  %v10796_v26 = vld [vmem:[#allocation299_spill] sm:$0xff]  ;;  %v10798_v12 = vld [vmem:[#allocation318_spill] sm:$0xff]  ;;  %v10800_v16 = vld [vmem:[#allocation241_spill] sm:$0xff] }
 0x266   :  { %v2665_v28 = vadd.f32 %v2619_v5, %v10792_v54  ;;  %v2666_v15 = vadd.f32 %v2620_v43, %v10793_v56  ;;  %v2667_v1 = vadd.f32 %v2621_v51, %v10794_v27  ;;  %v2668_v60 = vadd.f32 %v2622_v50, %v10795_v23  ;;  %v10797_v21 = vld [vmem:[#allocation307_spill] sm:$0xff]  ;;  %v10801_v19 = vld [vmem:[#allocation244_spill] sm:$0xff]  ;;  %v10802_v13 = vld [vmem:[#allocation246_spill] sm:$0xff] }
 0x267   :  { %v2669_v14 = vadd.f32 %v2623_v8, %v10796_v26  ;;  %v2670_v46 = vadd.f32 %v2624_v11, %v10797_v21  ;;  %v2671_v57 = vadd.f32 %v2625_v32, %v10798_v12  ;;  %v10799_v9 = vld [vmem:[#allocation239_spill] sm:$0xff]  ;;  %v2673_v55 = vadd.f32 %v2627_v63, %v10800_v16  ;;  %v10803_v61 = vld [vmem:[#allocation248_spill] sm:$0xff]  ;;  %v10805_v59 = vld [vmem:[#allocation253_spill] sm:$0xff] }
 0x268   :  { %v2672_v37 = vadd.f32 %v2626_v42, %v10799_v9  ;;  %v2674_v18 = vadd.f32 %v2628_v48, %v10801_v19  ;;  %v2675_v5 = vadd.f32 %v2629_v10, %v10802_v13  ;;  %v2676_v43 = vadd.f32 %v2630_v34, %v10803_v61  ;;  %v10804_v38 = vld [vmem:[#allocation251_spill] sm:$0xff]  ;;  %v10807_v54 = vld [vmem:[#allocation258_spill] sm:$0xff]  ;;  %v10808_v56 = vld [vmem:[#allocation260_spill] sm:$0xff] }
 0x269   :  { %v2677_v51 = vadd.f32 %v2631_v52, %v10804_v38  ;;  %v2678_v50 = vadd.f32 %v2632_v29, %v10805_v59  ;;  %v10806_v41 = vld [vmem:[#allocation255_spill] sm:$0xff]  ;;  %v2680_v11 = vadd.f32 %v2634_v33, %v10807_v54  ;;  %v2681_v32 = vadd.f32 %v2635_v44, %v10808_v56  ;;  %v10809_v27 = vld [vmem:[#allocation262_spill] sm:$0xff]  ;;  %v10810_v23 = vld [vmem:[#allocation265_spill] sm:$0xff] }
 0x26a   :  { %v2679_v8 = vadd.f32 %v2633_v2, %v10806_v41  ;;  %v2682_v42 = vadd.f32 %v2636_v7, %v10809_v27  ;;  %v2683_v63 = vadd.f32 %v2637_v53, %v10810_v23  ;;  %v2684_v26 = vadd.f32 %v2644_v20, %v2638_v30  ;;  %v10811_v12 = vld [vmem:[#allocation249_spill] sm:$0xff]  ;;  %v10814_v29 = vld [vmem:[#allocation235_spill] sm:$0xff]  ;;  %v10815_v9 = vld [vmem:[#allocation240_spill] sm:$0xff] }
 0x26b   :  { %v2685_v48 = vadd.f32 %v2646_v0, %v2639_v4  ;;  %v2686_v21 = vadd.f32 %v2649_v17, %v2640_v47  ;;  %v2687_v10 = vadd.f32 %v2651_v40, %v2641_v35  ;;  %v8135_v34 = vmul.f32 -0.020517742, %v10811_v12  ;;  %v10816_v16 = vld [vmem:[#allocation242_spill] sm:$0xff]  ;;  %v10817_v19 = vld [vmem:[#allocation245_spill] sm:$0xff]  ;;  %v10818_v13 = vld [vmem:[#allocation304_spill] sm:$0xff] }
 0x26c   :  { %v8138_v52 = vmul.f32 -0.020517742, %v7989_v45  ;;  %v2696_v2 = vrot.slane %v10814_v29, 4  ;;  %v2697_v33 = vrot.slane %v10815_v9, 4  ;;  %v2701_v44 = vrot.slane %v10816_v16, 4  ;;  %v10819_v47 = vld [vmem:[#allocation308_spill] sm:$0xff] }
 0x26d   :  { %10812 = vst [vmem:[#allocation256_spill] sm:$0xff] %v8135_v34  ;;  %v2702_v7 = vrot.slane %v10817_v19, 4  ;;  %v2710_v53 = vadd.f32 %v2656_v62, %v10818_v13  ;;  %v2699_v30 = vrot.slane %v8135_v34, 4  ;;  %v2711_v35 = vadd.f32 %v2657_v39, %v10819_v47  ;;  %v10820_v20 = vld [vmem:[#allocation310_spill] sm:$0xff]  ;;  %v10821_v61 = vld [vmem:[#allocation312_spill] sm:$0xff]  ;;  %v10822_v59 = vld [vmem:[#allocation315_spill] sm:$0xff] }
 0x26e   :  { %10813 = vst [vmem:[#allocation259_spill] sm:$0xff] %v8138_v52  ;;  %v2704_v4 = vrot.slane %v8138_v52, 4  ;;  %v2712_v0 = vadd.f32 %v2658_v58, %v10820_v20  ;;  %v2698_v17 = vsel %vm823_vm3, %v2696_v2, %v2697_v33  ;;  %v2713_v38 = vadd.f32 %v2659_v25, %v10821_v61  ;;  %v10823_v56 = vld [vmem:[#allocation317_spill] sm:$0xff]  ;;  %v10824_v23 = vld [vmem:[#allocation319_spill] sm:$0xff]  ;;  %v10827_v20 = vld [vmem:[#allocation326_spill] sm:$0xff] }
 0x26f   :  { %v2703_v40 = vsel %vm823_vm3, %v2701_v44, %v2702_v7  ;;  %v2714_v41 = vadd.f32 %v2660_v24, %v10822_v59  ;;  %v2700_v54 = vsel %vm823_vm3, %v2697_v33, %v2699_v30  ;;  %v2715_v27 = vadd.f32 %v2661_v3, %v10823_v56  ;;  %v10825_v12 = vld [vmem:[#allocation321_spill] sm:$0xff]  ;;  %v10826_v47 = vld [vmem:[#allocation323_spill] sm:$0xff]  ;;  %v10828_v45 = vld [vmem:[#allocation328_spill] sm:$0xff] }
 0x270   :  { %v2705_v62 = vsel %vm823_vm3, %v2702_v7, %v2704_v4  ;;  %v2716_v13 = vadd.f32 %v2662_v6, %v10824_v23  ;;  %v2717_v39 = vadd.f32 %v2663_v36, %v10825_v12  ;;  %v2718_v58 = vadd.f32 %v2664_v22, %v10826_v47  ;;  %v10829_v52 = vld [vmem:[#allocation329_spill] sm:$0xff]  ;;  %v10830_v61 = vld [vmem:[#allocation330_spill] sm:$0xff]  ;;  %v10831_v59 = vld [vmem:[#allocation331_spill] sm:$0xff] }
 0x271   :  { %v2719_v2 = vadd.f32 %v2665_v28, %v10827_v20  ;;  %v2720_v44 = vadd.f32 %v2666_v15, %v10828_v45  ;;  %v2721_v25 = vadd.f32 %v2667_v1, %v10829_v52  ;;  %v2722_v24 = vadd.f32 %v2668_v60, %v10830_v61  ;;  %v10832_v30 = vld [vmem:[#allocation156_spill] sm:$0xff]  ;;  %v10833_v4 = vld [vmem:[#allocation157_spill] sm:$0xff]  ;;  %v10834_v56 = vld [vmem:[#allocation158_spill] sm:$0xff] }
 0x272   :  { %v2723_v33 = vadd.f32 %v2669_v14, %v10831_v59  ;;  %v2724_v7 = vadd.f32 %v2670_v46, %v10832_v30  ;;  %v2725_v3 = vadd.f32 %v2671_v57, %v10833_v4  ;;  %v2726_v6 = vadd.f32 %v2672_v37, %v10834_v56  ;;  %v10835_v23 = vld [vmem:[#allocation159_spill] sm:$0xff]  ;;  %v10836_v12 = vld [vmem:[#allocation160_spill] sm:$0xff]  ;;  %v10837_v47 = vld [vmem:[#allocation161_spill] sm:$0xff] }
 0x273   :  { %v2727_v36 = vadd.f32 %v2673_v55, %v10835_v23  ;;  %v2728_v22 = vadd.f32 %v2674_v18, %v10836_v12  ;;  %v2729_v28 = vadd.f32 %v2675_v5, %v10837_v47  ;;  %v10838_v20 = vld [vmem:[#allocation162_spill] sm:$0xff]  ;;  %v10839_v15 = vld [vmem:[#allocation163_spill] sm:$0xff]  ;;  %v10841_v61 = vld [vmem:[#allocation76_spill] sm:$0xff] }
 0x274   :  { %v2730_v45 = vadd.f32 %v2676_v43, %v10838_v20  ;;  %v2731_v1 = vadd.f32 %v2677_v51, %v10839_v15  ;;  %v10840_v52 = vld [vmem:[#allocation75_spill] sm:$0xff]  ;;  %v2733_v14 = vadd.f32 %v2679_v8, %v10841_v61  ;;  %v10842_v59 = vld [vmem:[#allocation78_spill] sm:$0xff]  ;;  %v10843_v30 = vld [vmem:[#allocation164_spill] sm:$0xff]  ;;  %v2738_v51 = vadd.f32 %v2698_v17, %v2684_v26 }
 0x275   :  { %v2732_v60 = vadd.f32 %v2678_v50, %v10840_v52  ;;  %v2734_v46 = vadd.f32 %v2680_v11, %v10842_v59  ;;  %v2735_v57 = vadd.f32 %v2681_v32, %v10843_v30  ;;  %v10844_v4 = vld [vmem:[#allocation79_spill] sm:$0xff]  ;;  %v8185_v18 = vld [vmem:[%s8494_s0 + $0x1d0] sm:$0xff]  ;;  %v2739_v50 = vadd.f32 %v2700_v54, %v2685_v48  ;;  %v3472_v32 = vld [vmem:[%s8494_s0 + $0x180] sm:$0xff] }
 0x276   :  { %v2736_v37 = vadd.f32 %v2682_v42, %v10844_v4  ;;  %v8180_v55 = vld [vmem:[%s8494_s0 + $0x1c8] sm:$0xff]  ;;  %v10845_v5 = vld [vmem:[#allocation80_spill] sm:$0xff]  ;;  %v2740_v8 = vadd.f32 %v2703_v40, %v2686_v21  ;;  %v2741_v11 = vadd.f32 %v2705_v62, %v2687_v10  ;;  %v8191_v42 = vmul.f32 -0.020277822, %v3472_v32  ;;  %v10848_v12 = vld [vmem:[#allocation233_spill] sm:$0xff] }
 0x277   :  { %v2737_v43 = vadd.f32 %v2683_v63, %v10845_v5  ;;  %v3473_v56 = vld [vmem:[%s8494_s0 + $0x188] sm:$0xff]  ;;  %v8199_v47 = vmul.f32 -0.020277822, %v10848_v12  ;;  %v10850_v63 = vld [vmem:[#allocation238_spill] sm:$0xff]  ;;  %v8205_v48 = vmul.f32 -0.020277822, %v7921_v49 }
 0x278   :  { %10846 = vst [vmem:[#allocation261_spill] sm:$0xff] %v8191_v42  ;;  %v8196_v23 = vmul.f32 -0.020277822, %v3473_v56  ;;  %v8202_v26 = vmul.f32 -0.020277822, %v10850_v63  ;;  %v10854_v10 = vld [vmem:[#allocation29_spill] sm:$0xff] }
 0x279   :  { %10849 = vst [vmem:[#allocation266_spill] sm:$0xff] %v8199_v47  ;;  %10852 = vst [vmem:[#allocation270_spill] sm:$0xff] %v8205_v48  ;;  %v8208_v21 = vmul.f32 -0.020277822, %v7926_v31  ;;  %v2750_v17 = vadd.f32 %v2710_v53, %v10854_v10  ;;  %v8212_v40 = vmul.f32 -0.020277822, %v8180_v55 }
 0x27a   :  { %10847 = vst [vmem:[#allocation263_spill] sm:$0xff] %v8196_v23  ;;  %10851 = vst [vmem:[#allocation268_spill] sm:$0xff] %v8202_v26  ;;  %v8215_v54 = vmul.f32 -0.020277822, %v8185_v18  ;;  %v10857_v62 = vld [vmem:[#allocation30_spill] sm:$0xff]  ;;  %v10859_v61 = vld [vmem:[#allocation35_spill] sm:$0xff] }
 0x27b   :  { %10853 = vst [vmem:[#allocation273_spill] sm:$0xff] %v8208_v21  ;;  %10855 = vst [vmem:[#allocation275_spill] sm:$0xff] %v8212_v40  ;;  %v2751_v20 = vadd.f32 %v2711_v35, %v10857_v62  ;;  %v10858_v15 = vld [vmem:[#allocation34_spill] sm:$0xff]  ;;  %v2753_v59 = vadd.f32 %v2713_v38, %v10859_v61  ;;  %v10860_v30 = vld [vmem:[#allocation36_spill] sm:$0xff] }
 0x27c   :  { %10856 = vst [vmem:[#allocation277_spill] sm:$0xff] %v8215_v54  ;;  %v2752_v52 = vadd.f32 %v2712_v0, %v10858_v15  ;;  %v2754_v4 = vadd.f32 %v2714_v41, %v10860_v30  ;;  %v10861_v5 = vld [vmem:[#allocation40_spill] sm:$0xff]  ;;  %v10862_v56 = vld [vmem:[#allocation41_spill] sm:$0xff]  ;;  %v10863_v63 = vld [vmem:[#allocation42_spill] sm:$0xff] }
 0x27d   :  { %v2755_v32 = vadd.f32 %v2715_v27, %v10861_v5  ;;  %v2756_v12 = vadd.f32 %v2716_v13, %v10862_v56  ;;  %v2757_v53 = vadd.f32 %v2717_v39, %v10863_v63  ;;  %v10864_v10 = vld [vmem:[#allocation46_spill] sm:$0xff]  ;;  %v10865_v49 = vld [vmem:[#allocation47_spill] sm:$0xff]  ;;  %v10866_v16 = vld [vmem:[#allocation48_spill] sm:$0xff] }
 0x27e   :  { %v2758_v31 = vadd.f32 %v2718_v58, %v10864_v10  ;;  %v2759_v19 = vadd.f32 %v2719_v2, %v10865_v49  ;;  %v2760_v34 = vadd.f32 %v2720_v44, %v10866_v16  ;;  %v10867_v9 = vld [vmem:[#allocation53_spill] sm:$0xff]  ;;  %v10868_v62 = vld [vmem:[#allocation54_spill] sm:$0xff]  ;;  %v10869_v15 = vld [vmem:[#allocation55_spill] sm:$0xff] }
 0x27f   :  { %v2761_v35 = vadd.f32 %v2721_v25, %v10867_v9  ;;  %v2762_v0 = vadd.f32 %v2722_v24, %v10868_v62  ;;  %v2763_v38 = vadd.f32 %v2723_v33, %v10869_v15  ;;  %v10870_v61 = vld [vmem:[#allocation58_spill] sm:$0xff]  ;;  %v10871_v30 = vld [vmem:[#allocation59_spill] sm:$0xff]  ;;  %v10872_v5 = vld [vmem:[#allocation60_spill] sm:$0xff]  ;;  %v2777_v62 = vadd.f32 %v8202_v26, %v2737_v43 }
 0x280   :  { %v2764_v41 = vadd.f32 %v2724_v7, %v10870_v61  ;;  %v2765_v27 = vadd.f32 %v2725_v3, %v10871_v30  ;;  %v2766_v13 = vadd.f32 %v2726_v6, %v10872_v5  ;;  %v10873_v56 = vld [vmem:[#allocation62_spill] sm:$0xff]  ;;  %v10874_v63 = vld [vmem:[#allocation63_spill] sm:$0xff]  ;;  %v8238_v49 = vld [vmem:[%s8494_s0 + $0x1d8] sm:$0xf]  ;;  %v2774_v6 = vadd.f32 %v8191_v42, %v2734_v46 }
 0x281   :  { %v2767_v39 = vadd.f32 %v2727_v36, %v10873_v56  ;;  %v2768_v58 = vadd.f32 %v2728_v22, %v10874_v63  ;;  %v10875_v9 = vld [vmem:[#allocation64_spill] sm:$0xff]  ;;  %v10876_v2 = vld [vmem:[#allocation66_spill] sm:$0xff]  ;;  %v10877_v25 = vld [vmem:[#allocation67_spill] sm:$0xff]  ;;  %v2775_v36 = vadd.f32 %v8196_v23, %v2735_v57  ;;  %v2776_v22 = vadd.f32 %v8199_v47, %v2736_v37 }
 0x282   :  { %v2769_v16 = vadd.f32 %v2729_v28, %v10875_v9  ;;  %v2770_v44 = vadd.f32 %v2730_v45, %v10876_v2  ;;  %v2771_v24 = vadd.f32 %v2731_v1, %v10877_v25  ;;  %v10878_v33 = vld [vmem:[#allocation68_spill] sm:$0xff]  ;;  %v10879_v3 = vld [vmem:[#allocation70_spill] sm:$0xff]  ;;  %v2778_v15 = vadd.f32 %v8205_v48, %v2738_v51  ;;  %v10884_v43 = vld [vmem:[#allocation155_spill] sm:$0xff] }
 0x283   :  { %v2772_v7 = vadd.f32 %v2732_v60, %v10878_v33  ;;  %v2773_v10 = vadd.f32 %v2733_v14, %v10879_v3  ;;  %v2779_v28 = vadd.f32 %v8208_v21, %v2739_v50  ;;  %v2780_v45 = vadd.f32 %v8212_v40, %v2740_v8  ;;  %v10883_v57 = vld [vmem:[#allocation154_spill] sm:$0xff]  ;;  %v10886_v8 = vld [vmem:[#allocation240_spill] sm:$0xff]  ;;  %v10889_v2 = vld [vmem:[#allocation245_spill] sm:$0xff] }
 0x284   :  { %v2781_v1 = vadd.f32 %v8215_v54, %v2741_v11  ;;  %v8254_v60 = vmul.f32 -0.020517742, %v8180_v55  ;;  %v8257_v14 = vmul.f32 -0.020517742, %v8185_v18  ;;  %v8260_v46 = vmul.f32 -0.020517742, %v8238_v49 }
 0x285   :  { %v2788_v37 = vrot.slane %v10883_v57, 1  ;;  %v2789_v61 = vrot.slane %v10884_v43, 1  ;;  %v10885_v51 = vld [vmem:[#allocation302_spill] sm:$0xff]  ;;  %v2793_v50 = vrot.slane %v10814_v29, 1  ;;  %v2794_v5 = vrot.slane %v10886_v8, 1  ;;  %v10887_v11 = vld [vmem:[#allocation256_spill] sm:$0xff] }
 0x286   :  { %10880 = vst [vmem:[#allocation280_spill] sm:$0xff] %v8254_v60  ;;  %10881 = vst [vmem:[#allocation282_spill] sm:$0xff] %v8257_v14  ;;  %v2791_v30 = vrot.slane %v10885_v51, 1  ;;  %v2796_v56 = vrot.slane %v10887_v11, 1  ;;  %v10888_v63 = vld [vmem:[#allocation242_spill] sm:$0xff]  ;;  %v2799_v25 = vrot.slane %v10889_v2, 1 }
 0x287   :  { %10882 = vst [vmem:[#allocation284_spill] sm:$0xff] %v8260_v46  ;;  %v2798_v9 = vrot.slane %v10888_v63, 1  ;;  %v2790_v33 = vsel %vm228_vm0, %v2788_v37, %v2789_v61  ;;  %v10890_v54 = vld [vmem:[#allocation259_spill] sm:$0xff]  ;;  %v2803_v21 = vrot.slane %v8254_v60, 1  ;;  %v2795_v48 = vsel %vm228_vm0, %v2793_v50, %v2794_v5  ;;  %v10891_v63 = vld [vmem:[#allocation130_spill] sm:$0xff]  ;;  %v10894_v8 = vld [vmem:[#allocation133_spill] sm:$0xff] }
 0x288   :  { %v2792_v3 = vsel %vm228_vm0, %v2789_v61, %v2791_v30  ;;  %v2801_v40 = vrot.slane %v10890_v54, 1  ;;  %v2797_v26 = vsel %vm228_vm0, %v2794_v5, %v2796_v56  ;;  %v2804_v23 = vrot.slane %v8257_v14, 1  ;;  %v10892_v11 = vld [vmem:[#allocation131_spill] sm:$0xff]  ;;  %v10893_v54 = vld [vmem:[#allocation132_spill] sm:$0xff]  ;;  %v10895_v29 = vld [vmem:[#allocation134_spill] sm:$0xff] }
 0x289   :  { %v2800_v47 = vsel %vm228_vm0, %v2798_v9, %v2799_v25  ;;  %v2806_v2 = vrot.slane %v8260_v46, 1  ;;  %v2816_v37 = vadd.f32 %v2750_v17, %v10891_v63  ;;  %v2817_v61 = vadd.f32 %v2751_v20, %v10892_v11  ;;  %v10896_v9 = vld [vmem:[#allocation135_spill] sm:$0xff]  ;;  %v10897_v51 = vld [vmem:[#allocation136_spill] sm:$0xff]  ;;  %v10899_v43 = vld [vmem:[#allocation138_spill] sm:$0xff] }
 0x28a   :  { %v2802_v42 = vsel %vm228_vm0, %v2799_v25, %v2801_v40  ;;  %v2805_v30 = vsel %vm228_vm0, %v2803_v21, %v2804_v23  ;;  %v2818_v60 = vadd.f32 %v2752_v52, %v10893_v54  ;;  %v2819_v50 = vadd.f32 %v2753_v59, %v10894_v8  ;;  %v10898_v25 = vld [vmem:[#allocation137_spill] sm:$0xff]  ;;  %v10900_v63 = vld [vmem:[#allocation139_spill] sm:$0xff]  ;;  %v10901_v11 = vld [vmem:[#allocation140_spill] sm:$0xff] }
 0x28b   :  { %v2820_v5 = vadd.f32 %v2754_v4, %v10895_v29  ;;  %v2807_v56 = vsel %vm228_vm0, %v2804_v23, %v2806_v2  ;;  %v2821_v14 = vadd.f32 %v2755_v32, %v10896_v9  ;;  %v2822_v40 = vadd.f32 %v2756_v12, %v10897_v51  ;;  %v10902_v57 = vld [vmem:[#allocation141_spill] sm:$0xff]  ;;  %v10903_v52 = vld [vmem:[#allocation142_spill] sm:$0xff]  ;;  %v10904_v8 = vld [vmem:[#allocation143_spill] sm:$0xff] }
 0x28c   :  { %v2823_v46 = vadd.f32 %v2757_v53, %v10898_v25  ;;  %v2824_v17 = vadd.f32 %v2758_v31, %v10899_v43  ;;  %v2825_v20 = vadd.f32 %v2759_v19, %v10900_v63  ;;  %v2826_v21 = vadd.f32 %v2760_v34, %v10901_v11  ;;  %v10905_v4 = vld [vmem:[#allocation144_spill] sm:$0xff]  ;;  %v10906_v2 = vld [vmem:[#allocation145_spill] sm:$0xff]  ;;  %v10907_v9 = vld [vmem:[#allocation146_spill] sm:$0xff] }
 0x28d   :  { %v2827_v54 = vadd.f32 %v2761_v35, %v10902_v57  ;;  %v2828_v59 = vadd.f32 %v2762_v0, %v10903_v52  ;;  %v2829_v29 = vadd.f32 %v2763_v38, %v10904_v8  ;;  %v2830_v23 = vadd.f32 %v2764_v41, %v10905_v4  ;;  %v10908_v51 = vld [vmem:[#allocation147_spill] sm:$0xff]  ;;  %v10909_v25 = vld [vmem:[#allocation148_spill] sm:$0xff]  ;;  %v10910_v43 = vld [vmem:[#allocation149_spill] sm:$0xff] }
 0x28e   :  { %v2831_v32 = vadd.f32 %v2765_v27, %v10906_v2  ;;  %v2832_v12 = vadd.f32 %v2766_v13, %v10907_v9  ;;  %v2833_v53 = vadd.f32 %v2767_v39, %v10908_v51  ;;  %v2834_v31 = vadd.f32 %v2768_v58, %v10909_v25  ;;  %v10911_v63 = vld [vmem:[#allocation150_spill] sm:$0xff]  ;;  %v10912_v11 = vld [vmem:[#allocation151_spill] sm:$0xff]  ;;  %v10913_v57 = vld [vmem:[#allocation152_spill] sm:$0xff] }
 0x28f   :  { %v2835_v19 = vadd.f32 %v2769_v16, %v10910_v43  ;;  %v2836_v34 = vadd.f32 %v2770_v44, %v10911_v63  ;;  %v2837_v35 = vadd.f32 %v2771_v24, %v10912_v11  ;;  %v2838_v0 = vadd.f32 %v2772_v7, %v10913_v57  ;;  %v10914_v52 = vld [vmem:[#allocation153_spill] sm:$0xff]  ;;  %v10915_v51 = vld [vmem:[#allocation228_spill] sm:$0xff]  ;;  %v10916_v25 = vld [vmem:[#allocation231_spill] sm:$0xff] }
 0x290   :  { %v2839_v38 = vadd.f32 %v2773_v10, %v10914_v52  ;;  %v2840_v8 = vadd.f32 %v2790_v33, %v2774_v6  ;;  %v2841_v41 = vadd.f32 %v2792_v3, %v2775_v36  ;;  %v2842_v4 = vadd.f32 %v2795_v48, %v2776_v22  ;;  %v10917_v43 = vld [vmem:[#allocation247_spill] sm:$0xff]  ;;  %v10918_v63 = vld [vmem:[#allocation189_spill] sm:$0xff]  ;;  %v10921_v36 = vld [vmem:[#allocation236_spill] sm:$0xff] }
 0x291   :  { %v2843_v27 = vadd.f32 %v2797_v26, %v2777_v62  ;;  %v2844_v2 = vadd.f32 %v2800_v47, %v2778_v15  ;;  %v2845_v13 = vadd.f32 %v2802_v42, %v2779_v28  ;;  %v2846_v9 = vadd.f32 %v2805_v30, %v2780_v45  ;;  %v10919_v26 = vld [vmem:[#allocation190_spill] sm:$0xff]  ;;  %v10920_v42 = vld [vmem:[#allocation56_spill] sm:$0xff]  ;;  %v10922_v62 = vld [vmem:[#allocation229_spill] sm:$0xff] }
 0x292   :  { %v2847_v39 = vadd.f32 %v2807_v56, %v2781_v1  ;;  %v2848_v58 = vmul.f32 -0.016389329, %v10915_v51  ;;  %v2849_v16 = vmul.f32 -0.016389329, %v10916_v25  ;;  %v2850_v44 = vmul.f32 -0.016389329, %v10917_v43 }
 0x293   :  { %v8310_v24 = vadd.f32 %v2816_v37, %v10918_v63  ;;  %v2851_v7 = vmul.f32 -0.016389329, %v8180_v55  ;;  %v2852_v10 = vmul.f32 -0.016389329, %v8185_v18  ;;  %v2853_v48 = vmul.f32 -0.016389329, %v8238_v49 }
 0x294   :  { %v8316_v47 = vadd.f32 %v2817_v61, %v10919_v26  ;;  %v2860_v6 = vrot.slane %v10920_v42, 2  ;;  %v2861_v22 = vrot.slane %v10921_v36, 2  ;;  %v2863_v15 = vrot.slane %v10922_v62, 2  ;;  %v10923_v28 = vld [vmem:[#allocation243_spill] sm:$0xff]  ;;  %v10924_v1 = vld [vmem:[#allocation305_spill] sm:$0xff]  ;;  %v10925_v3 = vld [vmem:[#allocation226_spill] sm:$0xff] }
 0x295   :  { %v2865_v45 = vrot.slane %v10923_v28, 2  ;;  %v2866_v33 = vrot.slane %v10924_v1, 2  ;;  %v2868_v37 = vrot.slane %v10925_v3, 2  ;;  %v2870_v55 = vrot.slane %v2848_v58, 2  ;;  %v10926_v42 = vld [vmem:[#allocation191_spill] sm:$0xff]  ;;  %v10927_v58 = vld [vmem:[#allocation192_spill] sm:$0xff] }
 0x296   :  { %v2871_v30 = vrot.slane %v2849_v16, 2  ;;  %v2862_v18 = vsel %vm469_vm1, %v2860_v6, %v2861_v22  ;;  %v2864_v56 = vsel %vm469_vm1, %v2861_v22, %v2863_v15  ;;  %v2873_v61 = vrot.slane %v2850_v44, 2  ;;  %v10928_v62 = vld [vmem:[#allocation193_spill] sm:$0xff]  ;;  %v10929_v44 = vld [vmem:[#allocation194_spill] sm:$0xff]  ;;  %v10930_v15 = vld [vmem:[#allocation195_spill] sm:$0xff] }
 0x297   :  { %v2875_v11 = vrot.slane %v2851_v7, 2  ;;  %v2867_v57 = vsel %vm469_vm1, %v2865_v45, %v2866_v33  ;;  %v2869_v52 = vsel %vm469_vm1, %v2866_v33, %v2868_v37  ;;  %v2876_v25 = vrot.slane %v2852_v10, 2  ;;  %v10931_v1 = vld [vmem:[#allocation196_spill] sm:$0xff]  ;;  %v10932_v10 = vld [vmem:[#allocation197_spill] sm:$0xff]  ;;  %v10933_v37 = vld [vmem:[#allocation198_spill] sm:$0xff] }
 0x298   :  { %v2872_v51 = vsel %vm469_vm1, %v2870_v55, %v2871_v30  ;;  %v2874_v63 = vsel %vm469_vm1, %v2871_v30, %v2873_v61  ;;  %v2878_v26 = vrot.slane %v2853_v48, 2  ;;  %v2890_v36 = vadd.f32 %v2818_v60, %v10926_v42  ;;  %v10934_v55 = vld [vmem:[#allocation199_spill] sm:$0xff]  ;;  %v10935_v30 = vld [vmem:[#allocation200_spill] sm:$0xff]  ;;  %v10936_v61 = vld [vmem:[#allocation201_spill] sm:$0xff] }
 0x299   :  { %v2891_v16 = vadd.f32 %v2819_v50, %v10927_v58  ;;  %v2877_v6 = vsel %vm469_vm1, %v2875_v11, %v2876_v25  ;;  %v2892_v22 = vadd.f32 %v2820_v5, %v10928_v62  ;;  %v2893_v7 = vadd.f32 %v2821_v14, %v10929_v44  ;;  %v10937_v42 = vld [vmem:[#allocation202_spill] sm:$0xff]  ;;  %v10938_v58 = vld [vmem:[#allocation203_spill] sm:$0xff]  ;;  %v10939_v62 = vld [vmem:[#allocation204_spill] sm:$0xff] }
 0x29a   :  { %v2894_v28 = vadd.f32 %v2822_v40, %v10930_v15  ;;  %v2879_v45 = vsel %vm469_vm1, %v2876_v25, %v2878_v26  ;;  %v2895_v33 = vadd.f32 %v2823_v46, %v10931_v1  ;;  %v2896_v3 = vadd.f32 %v2824_v17, %v10932_v10  ;;  %v10940_v44 = vld [vmem:[#allocation205_spill] sm:$0xff]  ;;  %v10941_v26 = vld [vmem:[#allocation206_spill] sm:$0xff]  ;;  %v10942_v15 = vld [vmem:[#allocation207_spill] sm:$0xff] }
 0x29b   :  { %v2897_v48 = vadd.f32 %v2825_v20, %v10933_v37  ;;  %v2898_v60 = vadd.f32 %v2826_v21, %v10934_v55  ;;  %v2899_v50 = vadd.f32 %v2827_v54, %v10935_v30  ;;  %v2900_v11 = vadd.f32 %v2828_v59, %v10936_v61  ;;  %v10943_v1 = vld [vmem:[#allocation208_spill] sm:$0xff]  ;;  %v10944_v10 = vld [vmem:[#allocation209_spill] sm:$0xff]  ;;  %v10945_v37 = vld [vmem:[#allocation210_spill] sm:$0xff] }
 0x29c   :  { %v2901_v5 = vadd.f32 %v2829_v29, %v10937_v42  ;;  %v2902_v14 = vadd.f32 %v2830_v23, %v10938_v58  ;;  %v2903_v40 = vadd.f32 %v2831_v32, %v10939_v62  ;;  %v2904_v25 = vadd.f32 %v2832_v12, %v10940_v44  ;;  %v10946_v55 = vld [vmem:[#allocation211_spill] sm:$0xff]  ;;  %v10947_v30 = vld [vmem:[#allocation212_spill] sm:$0xff]  ;;  %v10948_v44 = vld [vmem:[#allocation154_spill] sm:$0xff] }
 0x29d   :  { %v2905_v46 = vadd.f32 %v2833_v53, %v10941_v26  ;;  %v2906_v17 = vadd.f32 %v2834_v31, %v10942_v15  ;;  %v2907_v20 = vadd.f32 %v2835_v19, %v10943_v1  ;;  %v2908_v21 = vadd.f32 %v2836_v34, %v10944_v10  ;;  %v10949_v26 = vld [vmem:[#allocation155_spill] sm:$0xff]  ;;  %v10950_v15 = vld [vmem:[#allocation302_spill] sm:$0xff]  ;;  %v10952_v10 = vld [vmem:[#allocation240_spill] sm:$0xff] }
 0x29e   :  { %v2909_v54 = vadd.f32 %v2837_v35, %v10945_v37  ;;  %v2910_v59 = vadd.f32 %v2838_v0, %v10946_v55  ;;  %v2911_v29 = vadd.f32 %v2839_v38, %v10947_v30  ;;  %v2912_v61 = vadd.f32 %v2862_v18, %v2840_v8  ;;  %v10951_v1 = vld [vmem:[#allocation235_spill] sm:$0xff]  ;;  %v10953_v37 = vld [vmem:[#allocation256_spill] sm:$0xff] }
 0x29f   :  { %v2913_v23 = vadd.f32 %v2864_v56, %v2841_v41  ;;  %v2914_v42 = vadd.f32 %v2867_v57, %v2842_v4  ;;  %v2915_v32 = vadd.f32 %v2869_v52, %v2843_v27  ;;  %v2916_v58 = vadd.f32 %v2872_v51, %v2844_v2  ;;  %v10954_v41 = vld [vmem:[#allocation242_spill] sm:$0xff]  ;;  %v10955_v27 = vld [vmem:[#allocation245_spill] sm:$0xff]  ;;  %v10957_v57 = vld [vmem:[#allocation280_spill] sm:$0xff] }
 0x2a0   :  { %v2917_v12 = vadd.f32 %v2874_v63, %v2845_v13  ;;  %v2918_v62 = vadd.f32 %v2877_v6, %v2846_v9  ;;  %v2919_v53 = vadd.f32 %v2879_v45, %v2847_v39  ;;  %v2920_v31 = vrot.slane %v10948_v44, 3  ;;  %v10956_v13 = vld [vmem:[#allocation259_spill] sm:$0xff]  ;;  %v10958_v6 = vld [vmem:[#allocation282_spill] sm:$0xff]  ;;  %v10959_v55 = vld [vmem:[#allocation284_spill] sm:$0xff] }
 0x2a1   :  { %v2921_v19 = vrot.slane %v10949_v26, 3  ;;  %v2923_v34 = vrot.slane %v10950_v15, 3  ;;  %v2925_v35 = vrot.slane %v10951_v1, 3  ;;  %v2926_v0 = vrot.slane %v10952_v10, 3  ;;  %v10960_v44 = vld [vmem:[#allocation167_spill] sm:$0xff]  ;;  %v10961_v26 = vld [vmem:[#allocation169_spill] sm:$0xff] }
 0x2a2   :  { %v2928_v38 = vrot.slane %v10953_v37, 3  ;;  %v2930_v4 = vrot.slane %v10954_v41, 3  ;;  %v2931_v2 = vrot.slane %v10955_v27, 3  ;;  %v2933_v9 = vrot.slane %v10956_v13, 3  ;;  %v10962_v15 = vld [vmem:[#allocation71_spill] sm:$0xff]  ;;  %v10963_v1 = vld [vmem:[#allocation72_spill] sm:$0xff] }
 0x2a3   :  { %v2922_v8 = vsel %vm614_vm2, %v2920_v31, %v2921_v19  ;;  %v2924_v39 = vsel %vm614_vm2, %v2921_v19, %v2923_v34  ;;  %v2927_v18 = vsel %vm614_vm2, %v2925_v35, %v2926_v0  ;;  %v2935_v52 = vrot.slane %v10957_v57, 3  ;;  %v10964_v37 = vld [vmem:[#allocation74_spill] sm:$0xff]  ;;  %v10965_v41 = vld [vmem:[#allocation171_spill] sm:$0xff]  ;;  %v10966_v27 = vld [vmem:[#allocation173_spill] sm:$0xff] }
 0x2a4   :  { %v2929_v56 = vsel %vm614_vm2, %v2926_v0, %v2928_v38  ;;  %v2932_v51 = vsel %vm614_vm2, %v2930_v4, %v2931_v2  ;;  %v2934_v63 = vsel %vm614_vm2, %v2931_v2, %v2933_v9  ;;  %v2936_v45 = vrot.slane %v10958_v6, 3  ;;  %v10967_v13 = vld [vmem:[#allocation175_spill] sm:$0xff] }
 0x2a5   :  { %v2938_v30 = vrot.slane %v10959_v55, 3  ;;  %v2948_v31 = vadd.f32 %v8310_v24, %v10960_v44  ;;  %v2949_v19 = vadd.f32 %v8316_v47, %v10961_v26  ;;  %v2950_v34 = vadd.f32 %v2890_v36, %v10962_v15  ;;  %v10968_v24 = vld [vmem:[#allocation177_spill] sm:$0xff]  ;;  %v10969_v6 = vld [vmem:[#allocation179_spill] sm:$0xff]  ;;  %v10972_v26 = vld [vmem:[#allocation186_spill] sm:$0xff] }
 0x2a6   :  { %v2951_v35 = vadd.f32 %v2891_v16, %v10963_v1  ;;  %v2937_v10 = vsel %vm614_vm2, %v2935_v52, %v2936_v45  ;;  %v2952_v38 = vadd.f32 %v2892_v22, %v10964_v37  ;;  %v2953_v4 = vadd.f32 %v2893_v7, %v10965_v41  ;;  %v10970_v55 = vld [vmem:[#allocation181_spill] sm:$0xff]  ;;  %v10971_v44 = vld [vmem:[#allocation183_spill] sm:$0xff]  ;;  %v10976_v37 = vld [vmem:[#allocation216_spill] sm:$0xff] }
 0x2a7   :  { %v2939_v0 = vsel %vm614_vm2, %v2936_v45, %v2938_v30  ;;  %v2954_v2 = vadd.f32 %v2894_v28, %v10966_v27  ;;  %v2955_v9 = vadd.f32 %v2895_v33, %v10967_v13  ;;  %v2956_v57 = vadd.f32 %v2896_v3, %v10968_v24  ;;  %v10973_v15 = vld [vmem:[#allocation213_spill] sm:$0xff]  ;;  %v10974_v30 = vld [vmem:[#allocation214_spill] sm:$0xff]  ;;  %v10975_v1 = vld [vmem:[#allocation215_spill] sm:$0xff] }
 0x2a8   :  { %v2957_v47 = vadd.f32 %v2897_v48, %v10969_v6  ;;  %v2958_v36 = vadd.f32 %v2898_v60, %v10970_v55  ;;  %v2959_v16 = vadd.f32 %v2899_v50, %v10971_v44  ;;  %v2960_v52 = vadd.f32 %v2900_v11, %v10972_v26  ;;  %v10977_v41 = vld [vmem:[#allocation217_spill] sm:$0xff]  ;;  %v10978_v27 = vld [vmem:[#allocation218_spill] sm:$0xff]  ;;  %v10979_v13 = vld [vmem:[#allocation219_spill] sm:$0xff] }
 0x2a9   :  { %v2961_v45 = vadd.f32 %v2901_v5, %v10973_v15  ;;  %v2962_v22 = vadd.f32 %v2902_v14, %v10974_v30  ;;  %v2963_v7 = vadd.f32 %v2903_v40, %v10975_v1  ;;  %v2964_v28 = vadd.f32 %v2904_v25, %v10976_v37  ;;  %v10980_v24 = vld [vmem:[#allocation220_spill] sm:$0xff]  ;;  %v10981_v6 = vld [vmem:[#allocation221_spill] sm:$0xff]  ;;  %v10982_v55 = vld [vmem:[#allocation222_spill] sm:$0xff] }
 0x2aa   :  { %v2965_v33 = vadd.f32 %v2905_v46, %v10977_v41  ;;  %v2966_v3 = vadd.f32 %v2906_v17, %v10978_v27  ;;  %v2967_v48 = vadd.f32 %v2907_v20, %v10979_v13  ;;  %v2968_v60 = vadd.f32 %v2908_v21, %v10980_v24  ;;  %v10983_v44 = vld [vmem:[#allocation223_spill] sm:$0xff]  ;;  %v3474_v17 = vld [vmem:[%s8494_s0 + $0x190] sm:$0xf]  ;;  %v10984_v21 = vld [vmem:[#allocation249_spill] sm:$0xff] }
 0x2ab   :  { %v2969_v50 = vadd.f32 %v2909_v54, %v10981_v6  ;;  %v2970_v11 = vadd.f32 %v2910_v59, %v10982_v55  ;;  %v2971_v5 = vadd.f32 %v2911_v29, %v10983_v44  ;;  %v2972_v26 = vadd.f32 %v2922_v8, %v2912_v61  ;;  %v10985_v29 = vld [vmem:[#allocation261_spill] sm:$0xff]  ;;  %v10991_v41 = vld [vmem:[#allocation275_spill] sm:$0xff] }
 0x2ac   :  { %v2973_v14 = vadd.f32 %v2924_v39, %v2913_v23  ;;  %v2974_v15 = vadd.f32 %v2927_v18, %v2914_v42  ;;  %v2975_v40 = vadd.f32 %v2929_v56, %v2915_v32  ;;  %v2976_v30 = vadd.f32 %v2932_v51, %v2916_v58  ;;  %v10986_v23 = vld [vmem:[#allocation263_spill] sm:$0xff]  ;;  %v10987_v58 = vld [vmem:[#allocation266_spill] sm:$0xff]  ;;  %v10990_v51 = vld [vmem:[#allocation273_spill] sm:$0xff] }
 0x2ad   :  { %v2977_v25 = vadd.f32 %v2934_v63, %v2917_v12  ;;  %v2978_v1 = vadd.f32 %v2937_v10, %v2918_v62  ;;  %v2979_v46 = vadd.f32 %v2939_v0, %v2919_v53  ;;  %v2980_v20 = vmul.f32 -0.020277822, %v3474_v17  ;;  %v10988_v62 = vld [vmem:[#allocation268_spill] sm:$0xff]  ;;  %v10989_v18 = vld [vmem:[#allocation270_spill] sm:$0xff]  ;;  %v10992_v6 = vld [vmem:[#allocation277_spill] sm:$0xff] }
 0x2ae   :  { %v2981_v37 = vmul.f32 -0.020277822, %v10984_v21  ;;  %v2982_v54 = vmul.f32 -0.020277822, %v10917_v43  ;;  %v2983_v59 = vmul.f32 -0.020277822, %v8238_v49 }
 0x2af   :  { %v2996_v61 = vrot.slane %v10985_v29, 4  ;;  %v2997_v42 = vrot.slane %v10986_v23, 4  ;;  %v2999_v32 = vrot.slane %v2980_v20, 4  ;;  %v3001_v12 = vrot.slane %v10987_v58, 4  ;;  %v10993_v17 = vld [vmem:[#allocation3_spill] sm:$0xff]  ;;  %v10994_v21 = vld [vmem:[#allocation61_spill] sm:$0xff] }
 0x2b0   :  { %v3002_v53 = vrot.slane %v10988_v62, 4  ;;  %v3004_v8 = vrot.slane %v2981_v37, 4  ;;  %v3006_v56 = vrot.slane %v10989_v18, 4  ;;  %v3007_v63 = vrot.slane %v10990_v51, 4  ;;  %v10997_v58 = vld [vmem:[#allocation5_spill] sm:$0xff] }
 0x2b1   :  { %v2998_v39 = vsel %vm823_vm3, %v2996_v61, %v2997_v42  ;;  %v3009_v10 = vrot.slane %v2982_v54, 4  ;;  %v3000_v43 = vsel %vm823_vm3, %v2997_v42, %v2999_v32  ;;  %v3011_v27 = vrot.slane %v10991_v41, 4  ;;  %v10995_v54 = vld [vmem:[#allocation65_spill] sm:$0xff]  ;;  %v11004_v41 = vld [vmem:[#allocation14_spill] sm:$0xff] }
 0x2b2   :  { %v3003_v49 = vsel %vm823_vm3, %v3001_v12, %v3002_v53  ;;  %v3005_v0 = vsel %vm823_vm3, %v3002_v53, %v3004_v8  ;;  %v3008_v13 = vsel %vm823_vm3, %v3006_v56, %v3007_v63  ;;  %v3012_v55 = vrot.slane %v10992_v6, 4  ;;  %v10996_v61 = vld [vmem:[#allocation69_spill] sm:$0xff]  ;;  %v11005_v6 = vld [vmem:[#allocation15_spill] sm:$0xff] }
 0x2b3   :  { %v3010_v24 = vsel %vm823_vm3, %v3007_v63, %v3009_v10  ;;  %v3014_v44 = vrot.slane %v2983_v59, 4  ;;  %v3024_v20 = vadd.f32 %v2948_v31, %v10993_v17  ;;  %v3025_v37 = vadd.f32 %v2949_v19, %v10994_v21  ;;  %v10998_v62 = vld [vmem:[#allocation73_spill] sm:$0xff]  ;;  %v11002_v63 = vld [vmem:[#allocation7_spill] sm:$0xff] }
 0x2b4   :  { %v3026_v29 = vadd.f32 %v2950_v34, %v10995_v54  ;;  %v3027_v23 = vadd.f32 %v2951_v35, %v10996_v61  ;;  %v3013_v42 = vsel %vm823_vm3, %v3011_v27, %v3012_v55  ;;  %v3028_v12 = vadd.f32 %v2952_v38, %v10997_v58  ;;  %v10999_v8 = vld [vmem:[#allocation77_spill] sm:$0xff]  ;;  %v11003_v10 = vld [vmem:[#allocation11_spill] sm:$0xff]  ;;  %v11009_v54 = vld [vmem:[#allocation20_spill] sm:$0xff] }
 0x2b5   :  { %v3015_v32 = vsel %vm823_vm3, %v3012_v55, %v3014_v44  ;;  %v3029_v53 = vadd.f32 %v2953_v4, %v10998_v62  ;;  %v3030_v18 = vadd.f32 %v2954_v2, %v10999_v8  ;;  %v11000_v56 = vld [vmem:[#allocation81_spill] sm:$0xff]  ;;  %v3033_v19 = vadd.f32 %v2957_v47, %v11002_v63  ;;  %v11008_v21 = vld [vmem:[#allocation19_spill] sm:$0xff]  ;;  %v11016_v63 = vld [vmem:[#allocation24_spill] sm:$0xff] }
 0x2b6   :  { %v3031_v59 = vadd.f32 %v2955_v9, %v11000_v56  ;;  %v11001_v51 = vld [vmem:[#allocation85_spill] sm:$0xff]  ;;  %v3034_v34 = vadd.f32 %v2958_v36, %v11003_v10  ;;  %v3035_v35 = vadd.f32 %v2959_v16, %v11004_v41  ;;  %v3036_v27 = vadd.f32 %v2960_v52, %v11005_v6  ;;  %v11014_v56 = vld [vmem:[#allocation112_spill] sm:$0xff] }
 0x2b7   :  { %v3032_v31 = vadd.f32 %v2956_v57, %v11001_v51  ;;  %v11006_v17 = vld [vmem:[#allocation89_spill] sm:$0xff]  ;;  %v3039_v4 = vadd.f32 %v2963_v7, %v11008_v21  ;;  %v3040_v2 = vadd.f32 %v2964_v28, %v11009_v54  ;;  %v3045_v16 = vadd.f32 %v2969_v50, %v11014_v56  ;;  %v11015_v51 = vld [vmem:[#allocation116_spill] sm:$0xff] }
 0x2b8   :  { %v3037_v55 = vadd.f32 %v2961_v45, %v11006_v17  ;;  %v11007_v44 = vld [vmem:[#allocation93_spill] sm:$0xff]  ;;  %v3046_v52 = vadd.f32 %v2970_v11, %v11015_v51  ;;  %v3047_v45 = vadd.f32 %v2971_v5, %v11016_v63  ;;  %v3048_v10 = vadd.f32 %v2998_v39, %v2972_v26 }
 0x2b9   :  { %v3038_v38 = vadd.f32 %v2962_v22, %v11007_v44  ;;  %v11010_v61 = vld [vmem:[#allocation165_spill] sm:$0xff]  ;;  %v3049_v22 = vadd.f32 %v3000_v43, %v2973_v14  ;;  %v3050_v41 = vadd.f32 %v3003_v49, %v2974_v15  ;;  %v3051_v7 = vadd.f32 %v3005_v0, %v2975_v40 }
 0x2ba   :  { %v3041_v9 = vadd.f32 %v2965_v33, %v11010_v61  ;;  %v11011_v58 = vld [vmem:[#allocation97_spill] sm:$0xff]  ;;  %v3052_v6 = vadd.f32 %v3008_v13, %v2976_v30  ;;  %v3053_v28 = vadd.f32 %v3010_v24, %v2977_v25  ;;  %v3054_v17 = vadd.f32 %v3013_v42, %v2978_v1 }
 0x2bb   :  { %v3042_v57 = vadd.f32 %v2966_v3, %v11011_v58  ;;  %v11012_v62 = vld [vmem:[#allocation101_spill] sm:$0xff]  ;;  %v3055_v33 = vadd.f32 %v3015_v32, %v2979_v46  ;;  %v3287_v44 = vpack.c.bf16 %v3025_v37, %v3024_v20  ;;  %v3292_v3 = vpack.c.bf16 %v3027_v23, %v3026_v29 }
 0x2bc   :  { %v3043_v47 = vadd.f32 %v2967_v48, %v11012_v62  ;;  %v11013_v8 = vld [vmem:[#allocation105_spill] sm:$0xff]  ;;  %v3297_v21 = vpack.c.bf16 %v3029_v53, %v3028_v12  ;;  %v3302_v48 = vpack.c.bf16 %v3031_v59, %v3030_v18  ;;  %v3307_v54 = vpack.c.bf16 %v3033_v19, %v3032_v31 }
 0x2bd   :  { %v3044_v36 = vadd.f32 %v2968_v60, %v11013_v8  ;;  %v3312_v60 = vpack.c.bf16 %v3035_v35, %v3034_v34  ;;  %3288 = vst [vmem:[%s8495_s1] sm:$0xff] %v3287_v44   ;;  %3364 = vst [vmem:[%s8495_s1 + $0x8] sm:$0xff] %v3292_v3   ;;  %v3317_v50 = vpack.c.bf16 %v3037_v55, %v3036_v27 }
 0x2be   :  { %v3322_v11 = vpack.c.bf16 %v3039_v4, %v3038_v38  ;;  %v3327_v5 = vpack.c.bf16 %v3041_v9, %v3040_v2  ;;  %v3332_v26 = vpack.c.bf16 %v3043_v47, %v3042_v57  ;;  %3365 = vst [vmem:[%s8495_s1 + $0x10] sm:$0xff] %v3297_v21   ;;  %3366 = vst [vmem:[%s8495_s1 + $0x18] sm:$0xff] %v3302_v48  }
 0x2bf   :  { %3367 = vst [vmem:[%s8495_s1 + $0x20] sm:$0xff] %v3307_v54   ;;  %3368 = vst [vmem:[%s8495_s1 + $0x28] sm:$0xff] %v3312_v60   ;;  %v3337_v14 = vpack.c.bf16 %v3045_v16, %v3044_v36  ;;  %v3342_v15 = vpack.c.bf16 %v3047_v45, %v3046_v52  ;;  %v3347_v40 = vpack.c.bf16 %v3049_v22, %v3048_v10 }
 0x2c0   :  { %v3352_v30 = vpack.c.bf16 %v3051_v7, %v3050_v41  ;;  %3369 = vst [vmem:[%s8495_s1 + $0x30] sm:$0xff] %v3317_v50   ;;  %3370 = vst [vmem:[%s8495_s1 + $0x38] sm:$0xff] %v3322_v11   ;;  %v3357_v25 = vpack.c.bf16 %v3053_v28, %v3052_v6  ;;  %v3362_v1 = vpack.c.bf16 %v3055_v33, %v3054_v17 }
 0x2c1   :  { %3371 = vst [vmem:[%s8495_s1 + $0x40] sm:$0xff] %v3327_v5   ;;  %3372 = vst [vmem:[%s8495_s1 + $0x48] sm:$0xff] %v3332_v26  }
 0x2c2   :  { %3373 = vst [vmem:[%s8495_s1 + $0x50] sm:$0xff] %v3337_v14   ;;  %3374 = vst [vmem:[%s8495_s1 + $0x58] sm:$0xff] %v3342_v15  }
 0x2c3   :  { %3375 = vst [vmem:[%s8495_s1 + $0x60] sm:$0xff] %v3347_v40   ;;  %3376 = vst [vmem:[%s8495_s1 + $0x68] sm:$0xff] %v3352_v30  }
 0x2c4   :  { %3377 = vst [vmem:[%s8495_s1 + $0x70] sm:$0xff] %v3357_v25   ;;  %3378 = vst [vmem:[%s8495_s1 + $0x78] sm:$0xff] %v3362_v1  }

// kernel: _lambda_.5
= control target key start
LH: loop header
LB: loop body
LE: loop exit
PB: predicated region body
PF: predicated region fallthrough
CT: control target
= control target key end

     0   :  { %s2758_s12 = smov 0   ;;  %s2760_s13 = smov 0   ;;  %s3216_s0 = inlined_call_operand.vmem [shape: bf16[512,686], index: 0, kind: input, shape index: {}]   ;;  %s3217_s1 = inlined_call_operand.vmem [shape: bf16[686,128], index: 1, kind: input, shape index: {}]   ;;  %s3218_s2 = inlined_call_operand.vmem [shape: f32[1,128], index: 2, kind: input, shape index: {}]   ;;  %s3219_s3 = inlined_call_operand.vmem [shape: f32[512,128], index: 3, kind: output, shape index: {}]  }
   0x1   :  { %s2762_s14 = smov 0  }
   0x2 LB: > { %s32_s15 = sadd.s32 1, %s2731_s13  ;;  %p2097_p0 = scmp.ge.s32.totalorder %s2735_s14, 1  ;;  %s2735_s14 = sphi %s2762_s14, %s13_s14   ;;  %s2731_s13 = sphi %s2760_s13, %s3221_s13   ;;  %s2727_s12 = sphi %s2758_s12, %s3220_s12  }
   0x3   : > { %p34_p1 = scmp.ge.s32.totalorder %s32_s15, 2  ;;  %p191_p2 = scmp.lt.s32.totalorder %s2735_s14, 3 }
   0x5   : > { %s3223_s15 = smov (%p34_p1, %s32_s15), 0  ;;  %p192_p3 = pnand %p2097_p0, %p191_p2 }
   0x6   : > { %s2098_s18 = sshll.u32 (!%p192_p3), %s2727_s12, 5 }
   0x7   : > { %195 = sbr.rel (%p192_p3) target bundleno = 439 (0x1b7), region = 32  ;;  %p236_p4 = scmp.lt.s32.totalorder (!%p192_p3), %s2098_s18, 63 }
   0xc   : > { %v2526_v0 = vld [vmem:[%s3217_s1 + $0x78] sm:$0xff]   ;;  %v2528_v2 = vld [vmem:[%s3217_s1 + $0x70] sm:$0xff]   ;;  %v2530_v4 = vld [vmem:[%s3217_s1 + $0x68] sm:$0xff]   ;;  %s3225_s18 = smov (!%p236_p4, %s2098_s18), 63  ;;  %v2737_v24 = vmov 0   ;;  %vm1288_vm0 = vcmask 1046528  }
   0xd   : > { %v2527_v1 = vld [vmem:[%s3217_s1 + $0x38] sm:$0xff]   ;;  %2484 = vmatprep.subr.bf16.mxu1 %v2526_v0  ;;  %2260 = vmatprep.subr.bf16.mxu0 %v2526_v0  ;;  %v2529_v3 = vld [vmem:[%s3217_s1 + $0x30] sm:$0xff]   ;;  %v2531_v5 = vld [vmem:[%s3217_s1 + $0x28] sm:$0xff]   ;;  %s2500_s4 = smul.u32 24, %s3225_s18  ;;  %vm1239_vm1 = vcmask 375808   ;;  %s2101_s19 = sshll.u32 %s3225_s18, 3 }
   0xe   : > { %2492 = vmatpush3.bf16.msra.mxu1 %v2527_v1  ;;  %2261 = vmatpush3.bf16.msra.mxu0 %v2527_v1  ;;  %v2532_v6 = vld [vmem:[%s3217_s1 + $0x60] sm:$0xff]   ;;  %v2534_v8 = vld [vmem:[%s3217_s1 + $0x58] sm:$0xff]   ;;  %v2536_v10 = vld [vmem:[%s3217_s1 + $0x50] sm:$0xff]   ;;  %s3112_s22 = scalar_lea.vmem %s3219_s3, %s2101_s19 }
   0xf   : > { %2485 = vmatprep.subr.bf16.mxu1 %v2528_v2  ;;  %2262 = vmatprep.subr.bf16.mxu0 %v2528_v2  ;;  %v2533_v7 = vld [vmem:[%s3217_s1 + $0x20] sm:$0xff]   ;;  %s2809_s11 = scalar_lea.vmem %s3216_s0, %s2500_s4  ;;  %v2535_v9 = vld [vmem:[%s3217_s1 + $0x18] sm:$0xff]   ;;  %v2537_v13 = vld [vmem:[%s3217_s1 + $0x10] sm:$0xff]  }
  0x10   : > { %v2544_v11 = vld [vmem:[%s2809_s11 + $0x184] ss:$24 sps:$4 sm:$0xff]   ;;  %v2538_v14 = vld [vmem:[%s3217_s1 + $0x48] sm:$0xff]   ;;  %v2542_v19 = vld [vmem:[%s2809_s11 + $0x180] ss:$24 sps:$4 sm:$0xff]  }
  0x11   : > { %v2547_v12 = vld [vmem:[%s2809_s11 + $0x4] ss:$24 sps:$4 sm:$0xff]   ;;  %1388 = vmatprep.mubr.bf16.mxu1 %v2544_v11  ;;  %v2539_v15 = vld [vmem:[%s3217_s1 + $0x8] sm:$0xff]   ;;  %v2545_v20 = vld [vmem:[%s2809_s11] ss:$24 sps:$4 sm:$0xff]  }
  0x12   : > { %2493 = vmatpush3.bf16.msra.mxu1 %v2529_v3  ;;  %2263 = vmatpush3.bf16.msra.mxu0 %v2529_v3  ;;  %v2540_v16 = vld [vmem:[%s3217_s1 + $0x40] sm:$0xff]   ;;  %v2548_v18 = vld [vmem:[%s3217_s1 + $0xf8] sm:$0xff]   ;;  %v2550_v22 = vld [vmem:[%s2809_s11 + $0x1b4] ss:$24 sps:$4 sm:$0xff]  }
  0x13   : > { %2486 = vmatprep.subr.bf16.mxu1 %v2530_v4  ;;  %2264 = vmatprep.subr.bf16.mxu0 %v2530_v4  ;;  %v2541_v17 = vld [vmem:[%s3217_s1] sm:$0xff]   ;;  %v2549_v21 = vld [vmem:[%s3217_s1 + $0xb8] sm:$0xff]   ;;  %v2553_v25 = vld [vmem:[%s2809_s11 + $0x34] ss:$24 sps:$4 sm:$0xff]  }
  0x14   : > { %1324 = vmatprep.mubr.bf16.mxu0 %v2547_v12  ;;  %v2552_v23 = vld [vmem:[%s3217_s1 + $0x138] sm:$0xff]   ;;  %v2556_v26 = vld [vmem:[%s3217_s1 + $0xf0] sm:$0xff]   ;;  %v2565_v31 = vld [vmem:[%s3217_s1 + $0xe8] sm:$0xff]  }
  0x15   : > { %v2558_v27 = vld [vmem:[%s3217_s1 + $0xb0] sm:$0xff]   ;;  %v2560_v32 = vld [vmem:[%s2809_s11 + $0x1e4] ss:$24 sps:$4 sm:$0xff]   ;;  %v2567_v34 = vld [vmem:[%s3217_s1 + $0xa8] sm:$0xff]  }
  0x16   : > { %2494 = vmatpush3.bf16.msra.mxu1 %v2531_v5  ;;  %2265 = vmatpush3.bf16.msra.mxu0 %v2531_v5  ;;  %v2555_v28 = vld [vmem:[%s2809_s11 + $0x1b0] ss:$24 sps:$4 sm:$0xff]   ;;  %v2562_v33 = vld [vmem:[%s2809_s11 + $0x64] ss:$24 sps:$4 sm:$0xff]   ;;  %v2564_v38 = vld [vmem:[%s2809_s11 + $0x1e0] ss:$24 sps:$4 sm:$0xff]  }
  0x17   : > { %2487 = vmatprep.subr.bf16.mxu1 %v2532_v6  ;;  %2266 = vmatprep.subr.bf16.mxu0 %v2532_v6  ;;  %v2557_v29 = vld [vmem:[%s2809_s11 + $0x30] ss:$24 sps:$4 sm:$0xff]   ;;  %v2574_v36 = vld [vmem:[%s3217_s1 + $0xe0] sm:$0xff]   ;;  %v2584_v40 = vld [vmem:[%s3217_s1 + $0xd8] sm:$0xff]  }
  0x18   : > { %v2559_v30 = vld [vmem:[%s3217_s1 + $0x130] sm:$0xff]   ;;  %v2568_v35 = vld [vmem:[%s3217_s1 + $0x128] sm:$0xff]   ;;  %v2576_v37 = vld [vmem:[%s3217_s1 + $0xa0] sm:$0xff]  }
  0x19   : > { %v2577_v39 = vld [vmem:[%s3217_s1 + $0x120] sm:$0xff]   ;;  %v2569_v42 = vld [vmem:[%s2809_s11 + $0x214] ss:$24 sps:$4 sm:$0xff]   ;;  %v2580_v44 = vld [vmem:[%s3217_s1 + $0x118] sm:$0xff]  }
  0x1a   : > { %2495 = vmatpush3.bf16.msra.mxu1 %v2533_v7  ;;  %2267 = vmatpush3.bf16.msra.mxu0 %v2533_v7  ;;  %v2566_v41 = vld [vmem:[%s2809_s11 + $0x60] ss:$24 sps:$4 sm:$0xff]   ;;  %v2571_v43 = vld [vmem:[%s2809_s11 + $0x94] ss:$24 sps:$4 sm:$0xff]   ;;  %v2573_v48 = vld [vmem:[%s2809_s11 + $0x210] ss:$24 sps:$4 sm:$0xff]  }
  0x1b   : > { %2488 = vmatprep.subr.bf16.mxu1 %v2534_v8  ;;  %2268 = vmatprep.subr.bf16.mxu0 %v2534_v8  ;;  %v2586_v45 = vld [vmem:[%s3217_s1 + $0x98] sm:$0xff]   ;;  %v2593_v46 = vld [vmem:[%s3217_s1 + $0xd0] sm:$0xff]   ;;  %v2602_v52 = vld [vmem:[%s3217_s1 + $0xc8] sm:$0xff]  }
  0x1c   : > { %v2587_v47 = vld [vmem:[%s3217_s1 + $0x110] sm:$0xff]   ;;  %v2578_v51 = vld [vmem:[%s2809_s11 + $0x244] ss:$24 sps:$4 sm:$0xff]   ;;  %v2596_v54 = vld [vmem:[%s3217_s1 + $0x108] sm:$0xff]  }
  0x1d   : > { %v2575_v49 = vld [vmem:[%s2809_s11 + $0x90] ss:$24 sps:$4 sm:$0xff]   ;;  %v2581_v53 = vld [vmem:[%s2809_s11 + $0xc4] ss:$24 sps:$4 sm:$0xff]   ;;  %v2583_v57 = vld [vmem:[%s2809_s11 + $0x240] ss:$24 sps:$4 sm:$0xff]  }
  0x1e   : > { %2496 = vmatpush3.bf16.msra.mxu1 %v2535_v9  ;;  %2269 = vmatpush3.bf16.msra.mxu0 %v2535_v9  ;;  %v2595_v50 = vld [vmem:[%s3217_s1 + $0x90] sm:$0xff]   ;;  %v2605_v55 = vld [vmem:[%s3217_s1 + $0x88] sm:$0xff]   ;;  %v2603_v56 = vld [vmem:[%s3217_s1 + $0x100] sm:$0xff]  }
  0x1f   : > { %2489 = vmatprep.subr.bf16.mxu1 %v2536_v10  ;;  %2270 = vmatprep.subr.bf16.mxu0 %v2536_v10  ;;  %v2585_v58 = vld [vmem:[%s2809_s11 + $0xc0] ss:$24 sps:$4 sm:$0xff]   ;;  %v2588_v60 = vld [vmem:[%s2809_s11 + $0x274] ss:$24 sps:$4 sm:$0xff]   ;;  %v2592_v2 = vld [vmem:[%s2809_s11 + $0x270] ss:$24 sps:$4 sm:$0xff]  }
  0x20   : > { %v2612_v59 = vld [vmem:[%s3217_s1 + $0xc0] sm:$0xff]   ;;  %v2606_v61 = vld [vmem:[%s3217_s1 + $0x150] sm:$0x7f]   ;;  %v2615_v1 = vld [vmem:[%s3217_s1 + $0x148] sm:$0xff]  }
  0x21   : > { %v2614_v62 = vld [vmem:[%s3217_s1 + $0x80] sm:$0xff]   ;;  %v2590_v63 = vld [vmem:[%s2809_s11 + $0xf4] ss:$24 sps:$4 sm:$0xff]   ;;  %v1290_v0 = vsel %vm1288_vm0, %v2606_v61, 0  ;;  %v2594_v3 = vld [vmem:[%s2809_s11 + $0xf0] ss:$24 sps:$4 sm:$0xff]  }
  0x22   : > { %2497 = vmatpush3.bf16.msra.mxu1 %v2537_v13  ;;  %2271 = vmatpush3.bf16.msra.mxu0 %v2537_v13  ;;  %v2597_v4 = vld [vmem:[%s2809_s11 + $0x2a4] ss:$24 sps:$4 sm:$0xff]   ;;  %v2601_v7 = vld [vmem:[%s2809_s11 + $0x2a0] ss:$24 sps:$4 sm:$0xff]   ;;  %v2607_v9 = vld [vmem:[%s2809_s11 + $0x2d4] ss:$24 sps:$4 sm:$0xff]  }
  0x23   : > { %2490 = vmatprep.subr.bf16.mxu1 %v2538_v14  ;;  %2272 = vmatprep.subr.bf16.mxu0 %v2538_v14  ;;  %v2599_v5 = vld [vmem:[%s2809_s11 + $0x124] ss:$24 sps:$4 sm:$0xff]   ;;  %v2604_v8 = vld [vmem:[%s2809_s11 + $0x120] ss:$24 sps:$4 sm:$0xff]   ;;  %v2609_v10 = vld [vmem:[%s2809_s11 + $0x154] ss:$24 sps:$4 sm:$0xff]  }
  0x24   : > { %v2616_v6 = vld [vmem:[%s3217_s1 + $0x140] sm:$0xff]   ;;  %v2611_v11 = vld [vmem:[%s2809_s11 + $0x2d0] ss:$24 sps:$4 sm:$0xff]   ;;  %v2622_v14 = vld [vmem:[%s2809_s11 + $0x14] ss:$24 sps:$4 sm:$0xff]  }
  0x25   : > { %v2613_v12 = vld [vmem:[%s2809_s11 + $0x150] ss:$24 sps:$4 sm:$0xff]   ;;  %v2619_v13 = vld [vmem:[%s2809_s11 + $0xc] ss:$24 sps:$4 sm:$0xff]  }
  0x26   : > { %2498 = vmatpush3.bf16.msra.mxu1 %v2539_v15  ;;  %2273 = vmatpush3.bf16.msra.mxu0 %v2539_v15  ;;  %v2617_v15 = vld [vmem:[%s2809_s11 + $0x8] ss:$24 sps:$4 sm:$0xff]   ;;  %v2689_v61 = vld [vmem:[%s2809_s11 + $0x24c] ss:$24 sps:$4 sm:$0xff]  }
  0x27   : > { %2491 = vmatprep.subr.bf16.mxu1 %v2540_v16  ;;  %2274 = vmatprep.subr.bf16.mxu0 %v2540_v16  ;;  %v2620_v16 = vld [vmem:[%s2809_s11 + $0x10] ss:$24 sps:$4 sm:$0xff]  }
  0x2a   : > { %2499 = vmatpush3.bf16.msra.mxu1 %v2541_v17  ;;  %2275 = vmatpush3.bf16.msra.mxu0 %v2541_v17  ;;  %v2623_v17 = vld [vmem:[%s2809_s11 + $0x3c] ss:$24 sps:$4 sm:$0xff]  }
  0x2b   : > { %2372 = vmatprep.subr.bf16.mxu1 %v2548_v18  ;;  %1614 = vmatprep.subr.bf16.mxu0 %v2737_v24  ;;  %v2626_v18 = vld [vmem:[%s2809_s11 + $0x44] ss:$24 sps:$4 sm:$0xff]  }
  0x2d   : > { %1389 = vmatmul.mubr.bf16.vlgmr.msra.gmra.mxu1 %v2542_v19  ;;  %1325 = vmatmul.mubr.bf16.vlgmr.msra.gmra.mxu0 %v2545_v20  ;;  %v2625_v19 = vld [vmem:[%s2809_s11 + $0x38] ss:$24 sps:$4 sm:$0xff]  }
  0x2e   : > { %2373 = vmatpush3.bf16.msra.mxu1 %v2549_v21  ;;  %1396 = vmatprep.mubr.bf16.mxu1 %v2550_v22  ;;  %v2628_v20 = vld [vmem:[%s2809_s11 + $0x40] ss:$24 sps:$4 sm:$0xff]   ;;  %v2629_v21 = vld [vmem:[%s2809_s11 + $0x6c] ss:$24 sps:$4 sm:$0xff]  }
  0x2f   : > { %1615 = vmatpush1.bf16.msra.mxu0 %v2552_v23  ;;  %1332 = vmatprep.mubr.bf16.mxu0 %v2553_v25  ;;  %v2632_v22 = vld [vmem:[%s2809_s11 + $0x74] ss:$24 sps:$4 sm:$0xff]   ;;  %v2631_v23 = vld [vmem:[%s2809_s11 + $0x68] ss:$24 sps:$4 sm:$0xff]  }
  0x30   : > { %2374 = vmatprep.subr.bf16.mxu1 %v2556_v26  ;;  %1616 = vmatprep.subr.bf16.mxu0 %v2737_v24  ;;  %v2635_v25 = vld [vmem:[%s2809_s11 + $0x9c] ss:$24 sps:$4 sm:$0xff]  }
  0x31   : > { %v2638_v26 = vld [vmem:[%s2809_s11 + $0xa4] ss:$24 sps:$4 sm:$0xff]  }
  0x32   : > { %2375 = vmatpush3.bf16.msra.mxu1 %v2558_v27  ;;  %v2637_v27 = vld [vmem:[%s2809_s11 + $0x98] ss:$24 sps:$4 sm:$0xff]  }
  0x33   : > { %1617 = vmatpush1.bf16.msra.mxu0 %v2559_v30  ;;  %2376 = vmatprep.subr.bf16.mxu1 %v2565_v31  ;;  %v2644_v30 = vld [vmem:[%s2809_s11 + $0xd4] ss:$24 sps:$4 sm:$0xff]   ;;  %v2643_v31 = vld [vmem:[%s2809_s11 + $0xc8] ss:$24 sps:$4 sm:$0xff]  }
  0x34   : > { %1618 = vmatprep.subr.bf16.mxu0 %v2737_v24 }
  0x35   : > { %1397 = vmatmul.mubr.bf16.gmra.mxu1 %v2555_v28  ;;  %1333 = vmatmul.mubr.bf16.gmra.mxu0 %v2557_v29  ;;  %v2640_v28 = vld [vmem:[%s2809_s11 + $0xa0] ss:$24 sps:$4 sm:$0xff]   ;;  %v2641_v29 = vld [vmem:[%s2809_s11 + $0xcc] ss:$24 sps:$4 sm:$0xff]  }
  0x36   : > { %1404 = vmatprep.mubr.bf16.mxu1 %v2560_v32  ;;  %1340 = vmatprep.mubr.bf16.mxu0 %v2562_v33  ;;  %v2646_v32 = vld [vmem:[%s2809_s11 + $0xd0] ss:$24 sps:$4 sm:$0xff]   ;;  %v2647_v33 = vld [vmem:[%s2809_s11 + $0xfc] ss:$24 sps:$4 sm:$0xff]  }
  0x37   : > { %2377 = vmatpush3.bf16.msra.mxu1 %v2567_v34  ;;  %1619 = vmatpush1.bf16.msra.mxu0 %v2568_v35  ;;  %v2650_v34 = vld [vmem:[%s2809_s11 + $0x104] ss:$24 sps:$4 sm:$0xff]   ;;  %v2649_v35 = vld [vmem:[%s2809_s11 + $0xf8] ss:$24 sps:$4 sm:$0xff]  }
  0x38   : > { %2378 = vmatprep.subr.bf16.mxu1 %v2574_v36  ;;  %1620 = vmatprep.subr.bf16.mxu0 %v2737_v24  ;;  %v2652_v36 = vld [vmem:[%s2809_s11 + $0x100] ss:$24 sps:$4 sm:$0xff]  }
  0x3b   : > { %2379 = vmatpush3.bf16.msra.mxu1 %v2576_v37  ;;  %1621 = vmatpush1.bf16.msra.mxu0 %v2577_v39  ;;  %v2653_v37 = vld [vmem:[%s2809_s11 + $0x12c] ss:$24 sps:$4 sm:$0xff]   ;;  %v2655_v39 = vld [vmem:[%s2809_s11 + $0x128] ss:$24 sps:$4 sm:$0xff]  }
  0x3c   : > { %1622 = vmatprep.subr.bf16.mxu0 %v2737_v24  ;;  %2380 = vmatprep.subr.bf16.mxu1 %v2584_v40  ;;  %v2658_v40 = vld [vmem:[%s2809_s11 + $0x130] ss:$24 sps:$4 sm:$0xff]  }
  0x3d   : > { %1405 = vmatmul.mubr.bf16.gmra.mxu1 %v2564_v38  ;;  %1341 = vmatmul.mubr.bf16.gmra.mxu0 %v2566_v41  ;;  %v2656_v38 = vld [vmem:[%s2809_s11 + $0x134] ss:$24 sps:$4 sm:$0xff]  }
  0x3e   : > { %1412 = vmatprep.mubr.bf16.mxu1 %v2569_v42  ;;  %1348 = vmatprep.mubr.bf16.mxu0 %v2571_v43  ;;  %v2659_v41 = vld [vmem:[%s2809_s11 + $0x15c] ss:$24 sps:$4 sm:$0xff]   ;;  %v2661_v43 = vld [vmem:[%s2809_s11 + $0x158] ss:$24 sps:$4 sm:$0xff]  }
  0x3f   : > { %1623 = vmatpush1.bf16.msra.mxu0 %v2580_v44  ;;  %2381 = vmatpush3.bf16.msra.mxu1 %v2586_v45  ;;  %v2662_v42 = vld [vmem:[%s2809_s11 + $0x164] ss:$24 sps:$4 sm:$0xff]   ;;  %v2664_v44 = vld [vmem:[%s2809_s11 + $0x160] ss:$24 sps:$4 sm:$0xff]  }
  0x40   : > { %1624 = vmatprep.subr.bf16.mxu0 %v2737_v24  ;;  %2382 = vmatprep.subr.bf16.mxu1 %v2593_v46  ;;  %v2665_v45 = vld [vmem:[%s2809_s11 + $0x18c] ss:$24 sps:$4 sm:$0xff]  }
  0x41   : > { %v2668_v46 = vld [vmem:[%s2809_s11 + $0x194] ss:$24 sps:$4 sm:$0xff]  }
  0x43   : > { %1625 = vmatpush1.bf16.msra.mxu0 %v2587_v47  ;;  %2383 = vmatpush3.bf16.msra.mxu1 %v2595_v50  ;;  %v2667_v47 = vld [vmem:[%s2809_s11 + $0x188] ss:$24 sps:$4 sm:$0xff]   ;;  %v2674_v50 = vld [vmem:[%s2809_s11 + $0x1c4] ss:$24 sps:$4 sm:$0xff]  }
  0x44   : > { %1626 = vmatprep.subr.bf16.mxu0 %v2737_v24  ;;  %2384 = vmatprep.subr.bf16.mxu1 %v2602_v52  ;;  %v2676_v52 = vld [vmem:[%s2809_s11 + $0x1c0] ss:$24 sps:$4 sm:$0xff]  }
  0x45   : > { %1413 = vmatmul.mubr.bf16.gmra.mxu1 %v2573_v48  ;;  %1349 = vmatmul.mubr.bf16.gmra.mxu0 %v2575_v49  ;;  %v2670_v48 = vld [vmem:[%s2809_s11 + $0x190] ss:$24 sps:$4 sm:$0xff]   ;;  %v2671_v49 = vld [vmem:[%s2809_s11 + $0x1bc] ss:$24 sps:$4 sm:$0xff]  }
  0x46   : > { %1420 = vmatprep.mubr.bf16.mxu1 %v2578_v51  ;;  %1356 = vmatprep.mubr.bf16.mxu0 %v2581_v53  ;;  %v2673_v51 = vld [vmem:[%s2809_s11 + $0x1b8] ss:$24 sps:$4 sm:$0xff]   ;;  %v2677_v53 = vld [vmem:[%s2809_s11 + $0x1ec] ss:$24 sps:$4 sm:$0xff]  }
  0x47   : > { %1627 = vmatpush1.bf16.msra.mxu0 %v2596_v54  ;;  %2385 = vmatpush3.bf16.msra.mxu1 %v2605_v55  ;;  %v2680_v54 = vld [vmem:[%s2809_s11 + $0x1f4] ss:$24 sps:$4 sm:$0xff]   ;;  %v2679_v55 = vld [vmem:[%s2809_s11 + $0x1e8] ss:$24 sps:$4 sm:$0xff]  }
  0x48   : > { %1628 = vmatprep.subr.bf16.mxu0 %v2737_v24  ;;  %2386 = vmatprep.subr.bf16.mxu1 %v2612_v59  ;;  %v2685_v59 = vld [vmem:[%s2809_s11 + $0x218] ss:$24 sps:$4 sm:$0xff]  }
  0x4b   : > { %1629 = vmatpush1.bf16.msra.mxu0 %v2603_v56  ;;  %2387 = vmatpush3.bf16.msra.mxu1 %v2614_v62  ;;  %v2682_v56 = vld [vmem:[%s2809_s11 + $0x1f0] ss:$24 sps:$4 sm:$0xff]   ;;  %v2692_v62 = vld [vmem:[%s2809_s11 + $0x254] ss:$24 sps:$4 sm:$0xff]  }
  0x4c   : > { %1640 = vmatprep.subr.bf16.mxu0 %v2737_v24 }
  0x4d   : > { %1421 = vmatmul.mubr.bf16.gmra.mxu1 %v2583_v57  ;;  %1357 = vmatmul.mubr.bf16.gmra.mxu0 %v2585_v58  ;;  %v2683_v57 = vld [vmem:[%s2809_s11 + $0x21c] ss:$24 sps:$4 sm:$0xff]  }
  0x4e   : > { %1428 = vmatprep.mubr.bf16.mxu1 %v2588_v60  ;;  %1364 = vmatprep.mubr.bf16.mxu0 %v2590_v63  ;;  %v2686_v58 = vld [vmem:[%s2809_s11 + $0x224] ss:$24 sps:$4 sm:$0xff]   ;;  %v2688_v60 = vld [vmem:[%s2809_s11 + $0x220] ss:$24 sps:$4 sm:$0xff]  }
  0x4f   : > { %1641 = vmatpush2.bf16.msra.mxu0 %v1290_v0  ;;  %v2691_v63 = vld [vmem:[%s2809_s11 + $0x248] ss:$24 sps:$4 sm:$0xff]  }
  0x50   : > { %1642 = vmatprep.subr.bf16.mxu0 %v2737_v24  ;;  %v2694_v0 = vld [vmem:[%s2809_s11 + $0x250] ss:$24 sps:$4 sm:$0xff]  }
  0x53   : > { %1643 = vmatpush2.bf16.msra.mxu0 %v2615_v1  ;;  %v2695_v1 = vld [vmem:[%s2809_s11 + $0x27c] ss:$24 sps:$4 sm:$0xff]  }
  0x54   : > { %1644 = vmatprep.subr.bf16.mxu0 %v2737_v24  ;;  %v2634_v24 = vld [vmem:[%s2809_s11 + $0x70] ss:$24 sps:$4 sm:$0xff]  }
  0x55   : > { %1429 = vmatmul.mubr.bf16.gmra.mxu1 %v2592_v2  ;;  %1365 = vmatmul.mubr.bf16.gmra.mxu0 %v2594_v3  ;;  %v2698_v2 = vld [vmem:[%s2809_s11 + $0x284] ss:$24 sps:$4 sm:$0xff]   ;;  %v2697_v3 = vld [vmem:[%s2809_s11 + $0x278] ss:$24 sps:$4 sm:$0xff]  }
  0x56   : > { %1436 = vmatprep.mubr.bf16.mxu1 %v2597_v4  ;;  %1372 = vmatprep.mubr.bf16.mxu0 %v2599_v5  ;;  %v2700_v4 = vld [vmem:[%s2809_s11 + $0x280] ss:$24 sps:$4 sm:$0xff]   ;;  %v2701_v5 = vld [vmem:[%s2809_s11 + $0x2ac] ss:$24 sps:$4 sm:$0xff]  }
  0x57   : > { %1645 = vmatpush2.bf16.msra.mxu0 %v2616_v6  ;;  %v2704_v6 = vld [vmem:[%s2809_s11 + $0x2b4] ss:$24 sps:$4 sm:$0xff]  }
  0x5d   : > { %1437 = vmatmul.mubr.bf16.gmra.mxu1 %v2601_v7  ;;  %1373 = vmatmul.mubr.bf16.gmra.mxu0 %v2604_v8  ;;  %v2703_v7 = vld [vmem:[%s2809_s11 + $0x2a8] ss:$24 sps:$4 sm:$0xff]  }
  0x5e   : > { %1444 = vmatprep.mubr.bf16.mxu1 %v2607_v9  ;;  %1380 = vmatprep.mubr.bf16.mxu0 %v2609_v10  ;;  %v2706_v8 = vld [vmem:[%s2809_s11 + $0x2b0] ss:$24 sps:$4 sm:$0xff]   ;;  %v2707_v9 = vld [vmem:[%s2809_s11 + $0x2dc] ss:$24 sps:$4 sm:$0xff]  }
  0x5f   : > { %v2710_v10 = vld [vmem:[%s2809_s11 + $0x2e4] ss:$24 sps:$4 sm:$0xff]  }
  0x65   : > { %1445 = vmatmul.mubr.bf16.gmra.mxu1 %v2611_v11  ;;  %1381 = vmatmul.mubr.bf16.gmra.mxu0 %v2613_v12  ;;  %v2709_v11 = vld [vmem:[%s2809_s11 + $0x2d8] ss:$24 sps:$4 sm:$0xff]  }
  0x66   : > { %1485 = vmatprep.mubr.bf16.mxu1 %v2619_v13  ;;  %2241 = vmatprep.mubr.msk.bf16.mxu0 %vm1239_vm1, %v2622_v14  ;;  %v2712_v12 = vld [vmem:[%s2809_s11 + $0x2e0] ss:$24 sps:$4 sm:$0xff]  }
  0x6d   : > { %1486 = vmatmul.mubr.bf16.vlgmr.msra.gmra.mxu1 %v2617_v15  ;;  %1647 = vmatmul.mubr.bf16.vlgmr.msra.gmra.mxu0 %v2620_v16 }
  0x6e   : > { %1493 = vmatprep.mubr.bf16.mxu1 %v2623_v17  ;;  %2242 = vmatprep.mubr.msk.bf16.mxu0 %vm1239_vm1, %v2626_v18 }
  0x75   : > { %1494 = vmatmul.mubr.bf16.gmra.mxu1 %v2625_v19  ;;  %1655 = vmatmul.mubr.bf16.gmra.mxu0 %v2628_v20 }
  0x76   : > { %1501 = vmatprep.mubr.bf16.mxu1 %v2629_v21  ;;  %2243 = vmatprep.mubr.msk.bf16.mxu0 %vm1239_vm1, %v2632_v22 }
  0x7d   : > { %1502 = vmatmul.mubr.bf16.gmra.mxu1 %v2631_v23  ;;  %1663 = vmatmul.mubr.bf16.gmra.mxu0 %v2634_v24 }
  0x7e   : > { %1509 = vmatprep.mubr.bf16.mxu1 %v2635_v25  ;;  %2244 = vmatprep.mubr.msk.bf16.mxu0 %vm1239_vm1, %v2638_v26 }
  0x85   : > { %1510 = vmatmul.mubr.bf16.gmra.mxu1 %v2637_v27  ;;  %1671 = vmatmul.mubr.bf16.gmra.mxu0 %v2640_v28 }
  0x86   : > { %1517 = vmatprep.mubr.bf16.mxu1 %v2641_v29  ;;  %2245 = vmatprep.mubr.msk.bf16.mxu0 %vm1239_vm1, %v2644_v30 }
  0x8d   : > { %1518 = vmatmul.mubr.bf16.gmra.mxu1 %v2643_v31  ;;  %1679 = vmatmul.mubr.bf16.gmra.mxu0 %v2646_v32 }
  0x8e   : > { %1525 = vmatprep.mubr.bf16.mxu1 %v2647_v33  ;;  %2246 = vmatprep.mubr.msk.bf16.mxu0 %vm1239_vm1, %v2650_v34 }
  0x95   : > { %1526 = vmatmul.mubr.bf16.gmra.mxu1 %v2649_v35  ;;  %1687 = vmatmul.mubr.bf16.gmra.mxu0 %v2652_v36 }
  0x96   : > { %1533 = vmatprep.mubr.bf16.mxu1 %v2653_v37  ;;  %2247 = vmatprep.mubr.msk.bf16.mxu0 %vm1239_vm1, %v2656_v38 }
  0x9d   : > { %1534 = vmatmul.mubr.bf16.gmra.mxu1 %v2655_v39  ;;  %1695 = vmatmul.mubr.bf16.gmra.mxu0 %v2658_v40 }
  0x9e   : > { %1541 = vmatprep.mubr.bf16.mxu1 %v2659_v41  ;;  %2248 = vmatprep.mubr.msk.bf16.mxu0 %vm1239_vm1, %v2662_v42 }
  0xa5   : > { %1542 = vmatmul.mubr.bf16.gmra.mxu1 %v2661_v43  ;;  %1703 = vmatmul.mubr.bf16.gmra.mxu0 %v2664_v44 }
  0xa6   : > { %1549 = vmatprep.mubr.bf16.mxu1 %v2665_v45  ;;  %2249 = vmatprep.mubr.msk.bf16.mxu0 %vm1239_vm1, %v2668_v46 }
  0xad   : > { %1550 = vmatmul.mubr.bf16.gmra.mxu1 %v2667_v47  ;;  %1711 = vmatmul.mubr.bf16.gmra.mxu0 %v2670_v48 }
  0xae   : > { %1557 = vmatprep.mubr.bf16.mxu1 %v2671_v49  ;;  %2250 = vmatprep.mubr.msk.bf16.mxu0 %vm1239_vm1, %v2674_v50 }
  0xb5   : > { %1558 = vmatmul.mubr.bf16.gmra.mxu1 %v2673_v51  ;;  %1719 = vmatmul.mubr.bf16.gmra.mxu0 %v2676_v52 }
  0xb6   : > { %1565 = vmatprep.mubr.bf16.mxu1 %v2677_v53  ;;  %2251 = vmatprep.mubr.msk.bf16.mxu0 %vm1239_vm1, %v2680_v54 }
  0xbd   : > { %1566 = vmatmul.mubr.bf16.gmra.mxu1 %v2679_v55  ;;  %1727 = vmatmul.mubr.bf16.gmra.mxu0 %v2682_v56 }
  0xbe   : > { %1573 = vmatprep.mubr.bf16.mxu1 %v2683_v57  ;;  %2252 = vmatprep.mubr.msk.bf16.mxu0 %vm1239_vm1, %v2686_v58 }
  0xc5   : > { %1574 = vmatmul.mubr.bf16.gmra.mxu1 %v2685_v59  ;;  %1735 = vmatmul.mubr.bf16.gmra.mxu0 %v2688_v60 }
  0xc6   : > { %1581 = vmatprep.mubr.bf16.mxu1 %v2689_v61  ;;  %2253 = vmatprep.mubr.msk.bf16.mxu0 %vm1239_vm1, %v2692_v62 }
  0xcd   : > { %1582 = vmatmul.mubr.bf16.gmra.mxu1 %v2691_v63  ;;  %1743 = vmatmul.mubr.bf16.gmra.mxu0 %v2694_v0 }
  0xce   : > { %1589 = vmatprep.mubr.bf16.mxu1 %v2695_v1  ;;  %2254 = vmatprep.mubr.msk.bf16.mxu0 %vm1239_vm1, %v2698_v2 }
  0xd5   : > { %1590 = vmatmul.mubr.bf16.gmra.mxu1 %v2697_v3  ;;  %1751 = vmatmul.mubr.bf16.gmra.mxu0 %v2700_v4 }
  0xd6   : > { %1597 = vmatprep.mubr.bf16.mxu1 %v2701_v5  ;;  %2255 = vmatprep.mubr.msk.bf16.mxu0 %vm1239_vm1, %v2704_v6 }
  0xdd   : > { %1598 = vmatmul.mubr.bf16.gmra.mxu1 %v2703_v7  ;;  %1759 = vmatmul.mubr.bf16.gmra.mxu0 %v2706_v8 }
  0xde   : > { %1605 = vmatprep.mubr.bf16.mxu1 %v2707_v9  ;;  %2256 = vmatprep.mubr.msk.bf16.mxu0 %vm1239_vm1, %v2710_v10 }
  0xe5   : > { %1606 = vmatmul.mubr.bf16.gmra.mxu1 %v2709_v11  ;;  %1767 = vmatmul.mubr.bf16.gmra.mxu0 %v2712_v12 }
  0xed   : > { %v2324_v13 = vpop.f32.mrf.mxu1  ;;  %v2276_v14 = vpop.f32.mrf.mxu0 }
  0xef   : > { %v2325_v15 = vpop.f32.mrf.mxu1  ;;  %v2277_v16 = vpop.f32.mrf.mxu0 }
  0xf0   : > { %v3036_v17 = vadd.f32 %v2325_v15, %v2324_v13  ;;  %v3038_v18 = vadd.f32 %v2277_v16, %v2276_v14 }
  0xf1   : > { %v2327_v19 = vpop.f32.mrf.mxu1  ;;  %v2279_v20 = vpop.f32.mrf.mxu0 }
  0xf3   : > { %v2328_v21 = vpop.f32.mrf.mxu1  ;;  %v2280_v22 = vpop.f32.mrf.mxu0 }
  0xf4   : > { %v3040_v23 = vadd.f32 %v2328_v21, %v2327_v19  ;;  %v3042_v24 = vadd.f32 %v2280_v22, %v2279_v20 }
  0xf5   : > { %v2330_v25 = vpop.f32.mrf.mxu1  ;;  %v2282_v26 = vpop.f32.mrf.mxu0 }
  0xf7   : > { %v2331_v27 = vpop.f32.mrf.mxu1  ;;  %v2283_v28 = vpop.f32.mrf.mxu0 }
  0xf8   : > { %v3044_v29 = vadd.f32 %v2331_v27, %v2330_v25  ;;  %v3046_v30 = vadd.f32 %v2283_v28, %v2282_v26 }
  0xf9   : > { %v2333_v31 = vpop.f32.mrf.mxu1  ;;  %v2285_v32 = vpop.f32.mrf.mxu0 }
  0xfb   : > { %v2334_v33 = vpop.f32.mrf.mxu1  ;;  %v2286_v34 = vpop.f32.mrf.mxu0 }
  0xfc   : > { %v3048_v35 = vadd.f32 %v2334_v33, %v2333_v31  ;;  %v3050_v36 = vadd.f32 %v2286_v34, %v2285_v32 }
  0xfd   : > { %v2336_v37 = vpop.f32.mrf.mxu1  ;;  %v2288_v38 = vpop.f32.mrf.mxu0 }
  0xff   : > { %v2337_v39 = vpop.f32.mrf.mxu1  ;;  %v2289_v40 = vpop.f32.mrf.mxu0 }
 0x100   : > { %v3052_v41 = vadd.f32 %v2337_v39, %v2336_v37  ;;  %v3054_v42 = vadd.f32 %v2289_v40, %v2288_v38 }
 0x101   : > { %v2339_v43 = vpop.f32.mrf.mxu1  ;;  %v2291_v44 = vpop.f32.mrf.mxu0 }
 0x103   : > { %v2340_v45 = vpop.f32.mrf.mxu1  ;;  %v2292_v46 = vpop.f32.mrf.mxu0 }
 0x104   : > { %v3056_v47 = vadd.f32 %v2340_v45, %v2339_v43  ;;  %v3058_v48 = vadd.f32 %v2292_v46, %v2291_v44 }
 0x105   : > { %v2342_v49 = vpop.f32.mrf.mxu1  ;;  %v2294_v50 = vpop.f32.mrf.mxu0 }
 0x107   : > { %v2343_v51 = vpop.f32.mrf.mxu1  ;;  %v2295_v52 = vpop.f32.mrf.mxu0 }
 0x108   : > { %v3060_v53 = vadd.f32 %v2343_v51, %v2342_v49  ;;  %v3062_v54 = vadd.f32 %v2295_v52, %v2294_v50 }
 0x109   : > { %v2345_v55 = vpop.f32.mrf.mxu1  ;;  %v2297_v56 = vpop.f32.mrf.mxu0 }
 0x10b   : > { %v2346_v57 = vpop.f32.mrf.mxu1  ;;  %v2298_v58 = vpop.f32.mrf.mxu0 }
 0x10c   : > { %v3064_v59 = vadd.f32 %v2346_v57, %v2345_v55  ;;  %v3066_v60 = vadd.f32 %v2298_v58, %v2297_v56 }
 0x10d   : > { %v2348_v61 = vpop.f32.mrf.mxu1  ;;  %v2300_v62 = vpop.f32.mrf.mxu0 }
 0x10f   : > { %v2349_v63 = vpop.f32.mrf.mxu1  ;;  %v2301_v0 = vpop.f32.mrf.mxu0 }
 0x110   : > { %v3068_v1 = vadd.f32 %v2349_v63, %v2348_v61  ;;  %v3070_v2 = vadd.f32 %v2301_v0, %v2300_v62 }
 0x111   : > { %v2351_v3 = vpop.f32.mrf.mxu1  ;;  %v2303_v4 = vpop.f32.mrf.mxu0 }
 0x113   : > { %v2352_v5 = vpop.f32.mrf.mxu1  ;;  %v2304_v6 = vpop.f32.mrf.mxu0 }
 0x114   : > { %v3072_v7 = vadd.f32 %v2352_v5, %v2351_v3  ;;  %v3074_v8 = vadd.f32 %v2304_v6, %v2303_v4 }
 0x115   : > { %v2354_v9 = vpop.f32.mrf.mxu1  ;;  %v2306_v10 = vpop.f32.mrf.mxu0 }
 0x117   : > { %v2355_v11 = vpop.f32.mrf.mxu1  ;;  %v2307_v12 = vpop.f32.mrf.mxu0 }
 0x118   : > { %v3076_v13 = vadd.f32 %v2355_v11, %v2354_v9  ;;  %v3078_v14 = vadd.f32 %v2307_v12, %v2306_v10  ;;  %v3104_v9 = vld [vmem:[%s3218_s2] ss:$0 sm:$0xff] }
 0x119   : > { %v2357_v15 = vpop.f32.mrf.mxu1  ;;  %v2309_v16 = vpop.f32.mrf.mxu0 }
 0x11b   : > { %v2358_v19 = vpop.f32.mrf.mxu1  ;;  %v2310_v20 = vpop.f32.mrf.mxu0 }
 0x11c   : > { %v3080_v21 = vadd.f32 %v2358_v19, %v2357_v15  ;;  %v3082_v22 = vadd.f32 %v2310_v20, %v2309_v16 }
 0x11d   : > { %v2360_v25 = vpop.f32.mrf.mxu1  ;;  %v2312_v26 = vpop.f32.mrf.mxu0 }
 0x11f   : > { %v2361_v27 = vpop.f32.mrf.mxu1  ;;  %v2313_v28 = vpop.f32.mrf.mxu0 }
 0x120   : > { %v3084_v31 = vadd.f32 %v2361_v27, %v2360_v25  ;;  %v3086_v32 = vadd.f32 %v2313_v28, %v2312_v26 }
 0x121   : > { %v2363_v33 = vpop.f32.mrf.mxu1  ;;  %v2315_v34 = vpop.f32.mrf.mxu0 }
 0x123   : > { %v2364_v37 = vpop.f32.mrf.mxu1  ;;  %v2316_v38 = vpop.f32.mrf.mxu0 }
 0x124   : > { %v3088_v39 = vadd.f32 %v2364_v37, %v2363_v33  ;;  %v3090_v40 = vadd.f32 %v2316_v38, %v2315_v34 }
 0x125   : > { %v2366_v43 = vpop.f32.mrf.mxu1  ;;  %v2318_v44 = vpop.f32.mrf.mxu0 }
 0x127   : > { %v2367_v45 = vpop.f32.mrf.mxu1  ;;  %v2319_v46 = vpop.f32.mrf.mxu0 }
 0x128   : > { %v3092_v49 = vadd.f32 %v2367_v45, %v2366_v43  ;;  %v3094_v50 = vadd.f32 %v2319_v46, %v2318_v44 }
 0x129   : > { %v2369_v51 = vpop.f32.mrf.mxu1  ;;  %v2321_v52 = vpop.f32.mrf.mxu0 }
 0x12b   : > { %v2370_v55 = vpop.f32.mrf.mxu1  ;;  %v2322_v56 = vpop.f32.mrf.mxu0 }
 0x12c   : > { %v3096_v57 = vadd.f32 %v2370_v55, %v2369_v51  ;;  %v3098_v58 = vadd.f32 %v2322_v56, %v2321_v52 }
 0x12d   : > { %v2388_v61 = vpop.f32.mrf.mxu1  ;;  %v1648_v62 = vpop.f32.mrf.mxu0 }
 0x12f   : > { %v2389_v63 = vpop.f32.mrf.mxu1  ;;  %v1650_v0 = vpop.f32.mrf.mxu0 }
 0x130   : > { %v2390_v3 = vadd.f32 %v2389_v63, %v2388_v61 }
 0x131   : > { %v2391_v4 = vpop.f32.mrf.mxu1  ;;  %v1651_v5 = vpop.f32.mrf.mxu0 }
 0x132   : > { %v1488_v6 = vadd.f32 %v2390_v3, %v3038_v18 }
 0x133   : > { %v2392_v10 = vpop.f32.mrf.mxu1  ;;  %v1653_v11 = vpop.f32.mrf.mxu0 }
 0x134   : > { %v1649_v12 = vadd.f32 %v1648_v62, %v1488_v6  ;;  %v2393_v15 = vadd.f32 %v2392_v10, %v2391_v4 }
 0x135   : > { %v2394_v16 = vpop.f32.mrf.mxu1  ;;  %v1656_v19 = vpop.f32.mrf.mxu0 }
 0x136   : > { %v1881_v20 = vadd.f32 %v3104_v9, %v1649_v12  ;;  %v1491_v25 = vadd.f32 %v2393_v15, %v3042_v24 }
 0x137   : > { %v2395_v18 = vpop.f32.mrf.mxu1  ;;  %v1658_v26 = vpop.f32.mrf.mxu0 }
 0x138   : > { %v1913_v27 = vmax.f32 %v1881_v20, 0.0  ;;  %v1652_v28 = vadd.f32 %v1651_v5, %v1491_v25  ;;  %v2396_v33 = vadd.f32 %v2395_v18, %v2394_v16 }
 0x139   : > { %v2397_v34 = vpop.f32.mrf.mxu1  ;;  %v1659_v37 = vpop.f32.mrf.mxu0 }
 0x13a   : > { %1945 = vst [vmem:[%s3112_s22] sm:$0xff] %v1913_v27  ;;  %v1882_v38 = vadd.f32 %v3104_v9, %v1652_v28  ;;  %v1496_v43 = vadd.f32 %v2396_v33, %v3046_v30 }
 0x13b   : > { %v2398_v24 = vpop.f32.mrf.mxu1  ;;  %v1661_v44 = vpop.f32.mrf.mxu0 }
 0x13c   : > { %v1914_v45 = vmax.f32 %v1882_v38, 0.0  ;;  %v1657_v46 = vadd.f32 %v1656_v19, %v1496_v43  ;;  %v2399_v51 = vadd.f32 %v2398_v24, %v2397_v34 }
 0x13d   : > { %v2400_v52 = vpop.f32.mrf.mxu1  ;;  %v1664_v55 = vpop.f32.mrf.mxu0 }
 0x13e   : > { %1946 = vst [vmem:[%s3112_s22 + $0x8] sm:$0xff] %v1914_v45  ;;  %v1883_v56 = vadd.f32 %v3104_v9, %v1657_v46  ;;  %v1499_v61 = vadd.f32 %v2399_v51, %v3050_v36 }
 0x13f   : > { %v2401_v62 = vpop.f32.mrf.mxu1  ;;  %v1666_v63 = vpop.f32.mrf.mxu0 }
 0x140   : > { %v1915_v0 = vmax.f32 %v1883_v56, 0.0  ;;  %v1660_v3 = vadd.f32 %v1659_v37, %v1499_v61  ;;  %v2402_v4 = vadd.f32 %v2401_v62, %v2400_v52 }
 0x141   : > { %v2403_v30 = vpop.f32.mrf.mxu1  ;;  %v1667_v5 = vpop.f32.mrf.mxu0 }
 0x142   : > { %1947 = vst [vmem:[%s3112_s22 + $0x10] sm:$0xff] %v1915_v0  ;;  %v1884_v6 = vadd.f32 %v3104_v9, %v1660_v3  ;;  %v1504_v10 = vadd.f32 %v2402_v4, %v3054_v42 }
 0x143   : > { %v2404_v11 = vpop.f32.mrf.mxu1  ;;  %v1669_v12 = vpop.f32.mrf.mxu0 }
 0x144   : > { %v1916_v15 = vmax.f32 %v1884_v6, 0.0  ;;  %v1665_v16 = vadd.f32 %v1664_v55, %v1504_v10  ;;  %v2405_v19 = vadd.f32 %v2404_v11, %v2403_v30 }
 0x145   : > { %v2406_v36 = vpop.f32.mrf.mxu1  ;;  %v1672_v20 = vpop.f32.mrf.mxu0 }
 0x146   : > { %1948 = vst [vmem:[%s3112_s22 + $0x18] sm:$0xff] %v1916_v15  ;;  %v1885_v25 = vadd.f32 %v3104_v9, %v1665_v16  ;;  %v1507_v18 = vadd.f32 %v2405_v19, %v3058_v48 }
 0x147   : > { %v2407_v26 = vpop.f32.mrf.mxu1  ;;  %v1674_v27 = vpop.f32.mrf.mxu0 }
 0x148   : > { %v1917_v28 = vmax.f32 %v1885_v25, 0.0  ;;  %v1668_v33 = vadd.f32 %v1667_v5, %v1507_v18  ;;  %v2408_v34 = vadd.f32 %v2407_v26, %v2406_v36 }
 0x149   : > { %v2409_v42 = vpop.f32.mrf.mxu1  ;;  %v1675_v37 = vpop.f32.mrf.mxu0 }
 0x14a   : > { %1949 = vst [vmem:[%s3112_s22 + $0x20] sm:$0xff] %v1917_v28  ;;  %v1886_v38 = vadd.f32 %v3104_v9, %v1668_v33  ;;  %v1512_v43 = vadd.f32 %v2408_v34, %v3062_v54 }
 0x14b   : > { %v2410_v24 = vpop.f32.mrf.mxu1  ;;  %v1677_v44 = vpop.f32.mrf.mxu0 }
 0x14c   : > { %v1918_v45 = vmax.f32 %v1886_v38, 0.0  ;;  %v1673_v46 = vadd.f32 %v1672_v20, %v1512_v43  ;;  %v2411_v51 = vadd.f32 %v2410_v24, %v2409_v42 }
 0x14d   : > { %v2412_v48 = vpop.f32.mrf.mxu1  ;;  %v1680_v52 = vpop.f32.mrf.mxu0 }
 0x14e   : > { %1950 = vst [vmem:[%s3112_s22 + $0x28] sm:$0xff] %v1918_v45  ;;  %v1887_v55 = vadd.f32 %v3104_v9, %v1673_v46  ;;  %v1515_v56 = vadd.f32 %v2411_v51, %v3066_v60 }
 0x14f   : > { %v2413_v61 = vpop.f32.mrf.mxu1  ;;  %v1682_v62 = vpop.f32.mrf.mxu0 }
 0x150   : > { %v1919_v63 = vmax.f32 %v1887_v55, 0.0  ;;  %v1676_v0 = vadd.f32 %v1675_v37, %v1515_v56  ;;  %v2414_v3 = vadd.f32 %v2413_v61, %v2412_v48 }
 0x151   : > { %v2415_v54 = vpop.f32.mrf.mxu1  ;;  %v1683_v4 = vpop.f32.mrf.mxu0 }
 0x152   : > { %1951 = vst [vmem:[%s3112_s22 + $0x30] sm:$0xff] %v1919_v63  ;;  %v1888_v30 = vadd.f32 %v3104_v9, %v1676_v0  ;;  %v1520_v5 = vadd.f32 %v2414_v3, %v3070_v2 }
 0x153   : > { %v2416_v6 = vpop.f32.mrf.mxu1  ;;  %v1685_v10 = vpop.f32.mrf.mxu0 }
 0x154   : > { %v1920_v11 = vmax.f32 %v1888_v30, 0.0  ;;  %v1681_v12 = vadd.f32 %v1680_v52, %v1520_v5  ;;  %v2417_v15 = vadd.f32 %v2416_v6, %v2415_v54 }
 0x155   : > { %v2418_v60 = vpop.f32.mrf.mxu1  ;;  %v1688_v16 = vpop.f32.mrf.mxu0 }
 0x156   : > { %1952 = vst [vmem:[%s3112_s22 + $0x38] sm:$0xff] %v1920_v11  ;;  %v1889_v19 = vadd.f32 %v3104_v9, %v1681_v12  ;;  %v1523_v36 = vadd.f32 %v2417_v15, %v3074_v8 }
 0x157   : > { %v2419_v20 = vpop.f32.mrf.mxu1  ;;  %v1690_v25 = vpop.f32.mrf.mxu0 }
 0x158   : > { %v1921_v18 = vmax.f32 %v1889_v19, 0.0  ;;  %v1684_v26 = vadd.f32 %v1683_v4, %v1523_v36  ;;  %v2420_v27 = vadd.f32 %v2419_v20, %v2418_v60 }
 0x159   : > { %v2421_v2 = vpop.f32.mrf.mxu1  ;;  %v1691_v28 = vpop.f32.mrf.mxu0 }
 0x15a   : > { %1953 = vst [vmem:[%s3112_s22 + $0x40] sm:$0xff] %v1921_v18  ;;  %v1890_v33 = vadd.f32 %v3104_v9, %v1684_v26  ;;  %v1528_v34 = vadd.f32 %v2420_v27, %v3078_v14 }
 0x15b   : > { %v2422_v42 = vpop.f32.mrf.mxu1  ;;  %v1693_v37 = vpop.f32.mrf.mxu0 }
 0x15c   : > { %v1922_v38 = vmax.f32 %v1890_v33, 0.0  ;;  %v1689_v43 = vadd.f32 %v1688_v16, %v1528_v34  ;;  %v2423_v24 = vadd.f32 %v2422_v42, %v2421_v2 }
 0x15d   : > { %v2424_v8 = vpop.f32.mrf.mxu1  ;;  %v1696_v44 = vpop.f32.mrf.mxu0 }
 0x15e   : > { %1954 = vst [vmem:[%s3112_s22 + $0x48] sm:$0xff] %v1922_v38  ;;  %v1891_v45 = vadd.f32 %v3104_v9, %v1689_v43  ;;  %v1531_v46 = vadd.f32 %v2423_v24, %v3082_v22 }
 0x15f   : > { %v2425_v51 = vpop.f32.mrf.mxu1  ;;  %v1698_v48 = vpop.f32.mrf.mxu0 }
 0x160   : > { %v1923_v52 = vmax.f32 %v1891_v45, 0.0  ;;  %v1692_v55 = vadd.f32 %v1691_v28, %v1531_v46  ;;  %v2426_v56 = vadd.f32 %v2425_v51, %v2424_v8 }
 0x161   : > { %v2427_v14 = vpop.f32.mrf.mxu1  ;;  %v1699_v61 = vpop.f32.mrf.mxu0 }
 0x162   : > { %1955 = vst [vmem:[%s3112_s22 + $0x50] sm:$0xff] %v1923_v52  ;;  %v1892_v62 = vadd.f32 %v3104_v9, %v1692_v55  ;;  %v1536_v63 = vadd.f32 %v2426_v56, %v3086_v32 }
 0x163   : > { %v2428_v0 = vpop.f32.mrf.mxu1  ;;  %v1701_v3 = vpop.f32.mrf.mxu0 }
 0x164   : > { %v1924_v54 = vmax.f32 %v1892_v62, 0.0  ;;  %v1697_v4 = vadd.f32 %v1696_v44, %v1536_v63  ;;  %v2429_v30 = vadd.f32 %v2428_v0, %v2427_v14 }
 0x165   : > { %v2430_v22 = vpop.f32.mrf.mxu1  ;;  %v1704_v5 = vpop.f32.mrf.mxu0 }
 0x166   : > { %1956 = vst [vmem:[%s3112_s22 + $0x58] sm:$0xff] %v1924_v54  ;;  %v1893_v6 = vadd.f32 %v3104_v9, %v1697_v4  ;;  %v1539_v10 = vadd.f32 %v2429_v30, %v3090_v40 }
 0x167   : > { %v2431_v11 = vpop.f32.mrf.mxu1  ;;  %v1706_v12 = vpop.f32.mrf.mxu0 }
 0x168   : > { %v1925_v15 = vmax.f32 %v1893_v6, 0.0  ;;  %v1700_v60 = vadd.f32 %v1699_v61, %v1539_v10  ;;  %v2432_v16 = vadd.f32 %v2431_v11, %v2430_v22 }
 0x169   : > { %v2433_v32 = vpop.f32.mrf.mxu1  ;;  %v1707_v19 = vpop.f32.mrf.mxu0 }
 0x16a   : > { %1957 = vst [vmem:[%s3112_s22 + $0x60] sm:$0xff] %v1925_v15  ;;  %v1894_v36 = vadd.f32 %v3104_v9, %v1700_v60  ;;  %v1544_v20 = vadd.f32 %v2432_v16, %v3094_v50 }
 0x16b   : > { %v2434_v25 = vpop.f32.mrf.mxu1  ;;  %v1709_v18 = vpop.f32.mrf.mxu0 }
 0x16c   : > { %v1926_v26 = vmax.f32 %v1894_v36, 0.0  ;;  %v1705_v27 = vadd.f32 %v1704_v5, %v1544_v20  ;;  %v2435_v2 = vadd.f32 %v2434_v25, %v2433_v32 }
 0x16d   : > { %v2436_v40 = vpop.f32.mrf.mxu1  ;;  %v1712_v28 = vpop.f32.mrf.mxu0 }
 0x16e   : > { %1958 = vst [vmem:[%s3112_s22 + $0x68] sm:$0xff] %v1926_v26  ;;  %v1895_v33 = vadd.f32 %v3104_v9, %v1705_v27  ;;  %v1547_v34 = vadd.f32 %v2435_v2, %v3098_v58 }
 0x16f   : > { %v2437_v42 = vpop.f32.mrf.mxu1  ;;  %v1714_v37 = vpop.f32.mrf.mxu0 }
 0x170   : > { %v1927_v38 = vmax.f32 %v1895_v33, 0.0  ;;  %v1708_v43 = vadd.f32 %v1707_v19, %v1547_v34  ;;  %v2438_v24 = vadd.f32 %v2437_v42, %v2436_v40 }
 0x171   : > { %v2439_v50 = vpop.f32.mrf.mxu1  ;;  %v1715_v8 = vpop.f32.mrf.mxu0 }
 0x172   : > { %1959 = vst [vmem:[%s3112_s22 + $0x70] sm:$0xff] %v1927_v38  ;;  %v1896_v44 = vadd.f32 %v3104_v9, %v1708_v43  ;;  %v1552_v45 = vadd.f32 %v2438_v24, %v3036_v17 }
 0x173   : > { %v2440_v46 = vpop.f32.mrf.mxu1  ;;  %v1717_v51 = vpop.f32.mrf.mxu0 }
 0x174   : > { %v1928_v48 = vmax.f32 %v1896_v44, 0.0  ;;  %v1713_v52 = vadd.f32 %v1712_v28, %v1552_v45  ;;  %v2441_v55 = vadd.f32 %v2440_v46, %v2439_v50 }
 0x175   : > { %v2442_v58 = vpop.f32.mrf.mxu1  ;;  %v1720_v56 = vpop.f32.mrf.mxu0 }
 0x176   : > { %1960 = vst [vmem:[%s3112_s22 + $0x78] sm:$0xff] %v1928_v48  ;;  %v1897_v14 = vadd.f32 %v3104_v9, %v1713_v52  ;;  %v1555_v61 = vadd.f32 %v2441_v55, %v3040_v23 }
 0x177   : > { %v2443_v62 = vpop.f32.mrf.mxu1  ;;  %v1722_v63 = vpop.f32.mrf.mxu0 }
 0x178   : > { %v1929_v0 = vmax.f32 %v1897_v14, 0.0  ;;  %v1716_v3 = vadd.f32 %v1715_v8, %v1555_v61  ;;  %v2444_v54 = vadd.f32 %v2443_v62, %v2442_v58 }
 0x179   : > { %v2445_v17 = vpop.f32.mrf.mxu1  ;;  %v1723_v4 = vpop.f32.mrf.mxu0 }
 0x17a   : > { %1961 = vst [vmem:[%s3112_s22 + $0x80] sm:$0xff] %v1929_v0  ;;  %v1898_v30 = vadd.f32 %v3104_v9, %v1716_v3  ;;  %v1560_v22 = vadd.f32 %v2444_v54, %v3044_v29 }
 0x17b   : > { %v2446_v5 = vpop.f32.mrf.mxu1  ;;  %v1725_v6 = vpop.f32.mrf.mxu0 }
 0x17c   : > { %v1930_v10 = vmax.f32 %v1898_v30, 0.0  ;;  %v1721_v11 = vadd.f32 %v1720_v56, %v1560_v22  ;;  %v2447_v12 = vadd.f32 %v2446_v5, %v2445_v17 }
 0x17d   : > { %v2448_v23 = vpop.f32.mrf.mxu1  ;;  %v1728_v15 = vpop.f32.mrf.mxu0 }
 0x17e   : > { %1962 = vst [vmem:[%s3112_s22 + $0x88] sm:$0xff] %v1930_v10  ;;  %v1899_v60 = vadd.f32 %v3104_v9, %v1721_v11  ;;  %v1563_v16 = vadd.f32 %v2447_v12, %v3048_v35 }
 0x17f   : > { %v2449_v32 = vpop.f32.mrf.mxu1  ;;  %v1730_v19 = vpop.f32.mrf.mxu0 }
 0x180   : > { %v1931_v36 = vmax.f32 %v1899_v60, 0.0  ;;  %v1724_v20 = vadd.f32 %v1723_v4, %v1563_v16  ;;  %v2450_v25 = vadd.f32 %v2449_v32, %v2448_v23 }
 0x181   : > { %v2451_v29 = vpop.f32.mrf.mxu1  ;;  %v1731_v18 = vpop.f32.mrf.mxu0 }
 0x182   : > { %1963 = vst [vmem:[%s3112_s22 + $0x90] sm:$0xff] %v1931_v36  ;;  %v1900_v26 = vadd.f32 %v3104_v9, %v1724_v20  ;;  %v1568_v27 = vadd.f32 %v2450_v25, %v3052_v41 }
 0x183   : > { %v2452_v2 = vpop.f32.mrf.mxu1  ;;  %v1733_v40 = vpop.f32.mrf.mxu0 }
 0x184   : > { %v1932_v28 = vmax.f32 %v1900_v26, 0.0  ;;  %v1729_v33 = vadd.f32 %v1728_v15, %v1568_v27  ;;  %v2453_v34 = vadd.f32 %v2452_v2, %v2451_v29 }
 0x185   : > { %v2454_v35 = vpop.f32.mrf.mxu1  ;;  %v1736_v42 = vpop.f32.mrf.mxu0 }
 0x186   : > { %1964 = vst [vmem:[%s3112_s22 + $0x98] sm:$0xff] %v1932_v28  ;;  %v1901_v37 = vadd.f32 %v3104_v9, %v1729_v33  ;;  %v1571_v38 = vadd.f32 %v2453_v34, %v3056_v47 }
 0x187   : > { %v2455_v43 = vpop.f32.mrf.mxu1  ;;  %v1738_v24 = vpop.f32.mrf.mxu0 }
 0x188   : > { %v1933_v50 = vmax.f32 %v1901_v37, 0.0  ;;  %v1732_v8 = vadd.f32 %v1731_v18, %v1571_v38  ;;  %v2456_v44 = vadd.f32 %v2455_v43, %v2454_v35 }
 0x189   : > { %v2457_v41 = vpop.f32.mrf.mxu1  ;;  %v1739_v45 = vpop.f32.mrf.mxu0 }
 0x18a   : > { %1965 = vst [vmem:[%s3112_s22 + $0xa0] sm:$0xff] %v1933_v50  ;;  %v1902_v46 = vadd.f32 %v3104_v9, %v1732_v8  ;;  %v1576_v51 = vadd.f32 %v2456_v44, %v3060_v53 }
 0x18b   : > { %v2458_v48 = vpop.f32.mrf.mxu1  ;;  %v1741_v52 = vpop.f32.mrf.mxu0 }
 0x18c   : > { %v1934_v55 = vmax.f32 %v1902_v46, 0.0  ;;  %v1737_v58 = vadd.f32 %v1736_v42, %v1576_v51  ;;  %v2459_v56 = vadd.f32 %v2458_v48, %v2457_v41 }
 0x18d   : > { %v2460_v47 = vpop.f32.mrf.mxu1  ;;  %v1744_v14 = vpop.f32.mrf.mxu0 }
 0x18e   : > { %1966 = vst [vmem:[%s3112_s22 + $0xa8] sm:$0xff] %v1934_v55  ;;  %v1903_v61 = vadd.f32 %v3104_v9, %v1737_v58  ;;  %v1579_v62 = vadd.f32 %v2459_v56, %v3064_v59 }
 0x18f   : > { %v2461_v63 = vpop.f32.mrf.mxu1  ;;  %v1746_v0 = vpop.f32.mrf.mxu0 }
 0x190   : > { %v1935_v3 = vmax.f32 %v1903_v61, 0.0  ;;  %v1740_v54 = vadd.f32 %v1739_v45, %v1579_v62  ;;  %v2462_v17 = vadd.f32 %v2461_v63, %v2460_v47 }
 0x191   : > { %v2463_v53 = vpop.f32.mrf.mxu1  ;;  %v1747_v4 = vpop.f32.mrf.mxu0 }
 0x192   : > { %1967 = vst [vmem:[%s3112_s22 + $0xb0] sm:$0xff] %v1935_v3  ;;  %v1904_v30 = vadd.f32 %v3104_v9, %v1740_v54  ;;  %v1584_v22 = vadd.f32 %v2462_v17, %v3068_v1 }
 0x193   : > { %v2464_v5 = vpop.f32.mrf.mxu1  ;;  %v1749_v6 = vpop.f32.mrf.mxu0 }
 0x194   : > { %v1936_v10 = vmax.f32 %v1904_v30, 0.0  ;;  %v1745_v11 = vadd.f32 %v1744_v14, %v1584_v22  ;;  %v2465_v12 = vadd.f32 %v2464_v5, %v2463_v53 }
 0x195   : > { %v2466_v59 = vpop.f32.mrf.mxu1  ;;  %v1752_v23 = vpop.f32.mrf.mxu0 }
 0x196   : > { %1968 = vst [vmem:[%s3112_s22 + $0xb8] sm:$0xff] %v1936_v10  ;;  %v1905_v15 = vadd.f32 %v3104_v9, %v1745_v11  ;;  %v1587_v60 = vadd.f32 %v2465_v12, %v3072_v7 }
 0x197   : > { %v2467_v16 = vpop.f32.mrf.mxu1  ;;  %v1754_v32 = vpop.f32.mrf.mxu0 }
 0x198   : > { %v1937_v19 = vmax.f32 %v1905_v15, 0.0  ;;  %v1748_v36 = vadd.f32 %v1747_v4, %v1587_v60  ;;  %v2468_v20 = vadd.f32 %v2467_v16, %v2466_v59 }
 0x199   : > { %v2469_v1 = vpop.f32.mrf.mxu1  ;;  %v1755_v25 = vpop.f32.mrf.mxu0 }
 0x19a   : > { %1969 = vst [vmem:[%s3112_s22 + $0xc0] sm:$0xff] %v1937_v19  ;;  %v1906_v29 = vadd.f32 %v3104_v9, %v1748_v36  ;;  %v1592_v18 = vadd.f32 %v2468_v20, %v3076_v13 }
 0x19b   : > { %v2470_v26 = vpop.f32.mrf.mxu1  ;;  %v1757_v27 = vpop.f32.mrf.mxu0 }
 0x19c   : > { %v1938_v2 = vmax.f32 %v1906_v29, 0.0  ;;  %v1753_v40 = vadd.f32 %v1752_v23, %v1592_v18  ;;  %v2471_v28 = vadd.f32 %v2470_v26, %v2469_v1 }
 0x19d   : > { %v2472_v7 = vpop.f32.mrf.mxu1  ;;  %v1760_v33 = vpop.f32.mrf.mxu0 }
 0x19e   : > { %1970 = vst [vmem:[%s3112_s22 + $0xc8] sm:$0xff] %v1938_v2  ;;  %v1907_v34 = vadd.f32 %v3104_v9, %v1753_v40  ;;  %v1595_v35 = vadd.f32 %v2471_v28, %v3080_v21 }
 0x19f   : > { %v2473_v42 = vpop.f32.mrf.mxu1  ;;  %v1762_v37 = vpop.f32.mrf.mxu0 }
 0x1a0   : > { %v1939_v38 = vmax.f32 %v1907_v34, 0.0  ;;  %v1756_v43 = vadd.f32 %v1755_v25, %v1595_v35  ;;  %v2474_v24 = vadd.f32 %v2473_v42, %v2472_v7 }
 0x1a1   : > { %v2475_v13 = vpop.f32.mrf.mxu1  ;;  %v1763_v50 = vpop.f32.mrf.mxu0 }
 0x1a2   : > { %1971 = vst [vmem:[%s3112_s22 + $0xd0] sm:$0xff] %v1939_v38  ;;  %v1908_v8 = vadd.f32 %v3104_v9, %v1756_v43  ;;  %v1600_v44 = vadd.f32 %v2474_v24, %v3084_v31 }
 0x1a3   : > { %v2476_v41 = vpop.f32.mrf.mxu1  ;;  %v1765_v45 = vpop.f32.mrf.mxu0 }
 0x1a4   : > { %v1940_v46 = vmax.f32 %v1908_v8, 0.0  ;;  %v1761_v51 = vadd.f32 %v1760_v33, %v1600_v44  ;;  %v2477_v48 = vadd.f32 %v2476_v41, %v2475_v13 }
 0x1a5   : > { %v2478_v21 = vpop.f32.mrf.mxu1  ;;  %v1768_v52 = vpop.f32.mrf.mxu0 }
 0x1a6   : > { %1972 = vst [vmem:[%s3112_s22 + $0xd8] sm:$0xff] %v1940_v46  ;;  %v1909_v55 = vadd.f32 %v3104_v9, %v1761_v51  ;;  %v1603_v58 = vadd.f32 %v2477_v48, %v3088_v39 }
 0x1a7   : > { %v2479_v56 = vpop.f32.mrf.mxu1  ;;  %v1770_v47 = vpop.f32.mrf.mxu0 }
 0x1a8   : > { %v1941_v14 = vmax.f32 %v1909_v55, 0.0  ;;  %v1764_v61 = vadd.f32 %v1763_v50, %v1603_v58  ;;  %v2480_v62 = vadd.f32 %v2479_v56, %v2478_v21 }
 0x1a9   : > { %v2481_v31 = vpop.f32.mrf.mxu1  ;;  %v1771_v63 = vpop.f32.mrf.mxu0 }
 0x1aa   : > { %1973 = vst [vmem:[%s3112_s22 + $0xe0] sm:$0xff] %v1941_v14  ;;  %v1910_v0 = vadd.f32 %v3104_v9, %v1764_v61  ;;  %v1608_v3 = vadd.f32 %v2480_v62, %v3092_v49 }
 0x1ab   : > { %v2482_v54 = vpop.f32.mrf.mxu1  ;;  %v1773_v17 = vpop.f32.mrf.mxu0 }
 0x1ac   : > { %v1942_v53 = vmax.f32 %v1910_v0, 0.0  ;;  %v1769_v4 = vadd.f32 %v1768_v52, %v1608_v3  ;;  %v2483_v39 = vadd.f32 %v2482_v54, %v2481_v31 }
 0x1ae   : > { %1974 = vst [vmem:[%s3112_s22 + $0xe8] sm:$0xff] %v1942_v53  ;;  %v1911_v30 = vadd.f32 %v3104_v9, %v1769_v4  ;;  %v1611_v22 = vadd.f32 %v2483_v39, %v3096_v57 }
 0x1b0   : > { %v1943_v5 = vmax.f32 %v1911_v30, 0.0  ;;  %v1772_v6 = vadd.f32 %v1771_v63, %v1611_v22 }
 0x1b2   : > { %1975 = vst [vmem:[%s3112_s22 + $0xf0] sm:$0xff] %v1943_v5  ;;  %v1912_v10 = vadd.f32 %v3104_v9, %v1772_v6 }
 0x1b4   : > { %v1944_v11 = vmax.f32 %v1912_v10, 0.0 }
 0x1b6   : > { %1976 = vst [vmem:[%s3112_s22 + $0xf8] sm:$0xff] %v1944_v11 }
 0x1b7 PF: > { %s13_s14 = sadd.s32 1, %s2735_s14   ;;  %s3220_s12 = smov %s2731_s13 }
 0x1b8   : > { %p10_p5 = scmp.ge.s32.totalorder %s13_s14, 4   ;;  %s3221_s13 = smov %s3223_s15 }
 0x1ba   :  { %12 = sbr.rel (!%p10_p5) target bundleno = 2 (0x2), region = 76 }

// kernel: _lambda_.7
= control target key start
LH: loop header
LB: loop body
LE: loop exit
PB: predicated region body
PF: predicated region fallthrough
CT: control target
= control target key end

     0   :  { %17 = vsyncpa [#allocation3], 0  ;;  %v2839_v8 = vmov 0   ;;  %vm275_vm0 = vcmask 523264   ;;  %s3585_s0 = inlined_call_operand.vmem [shape: bf16[2,64], index: 0, kind: input, shape index: {}]   ;;  %s3586_s1 = inlined_call_operand.vmem [shape: bf16[64,1024], index: 1, kind: input, shape index: {}]   ;;  %s3587_s2 = inlined_call_operand.vmem [shape: f32[1,1024], index: 2, kind: input, shape index: {}]   ;;  %s3588_s3 = inlined_call_operand.vmem [shape: bf16[1024,128], index: 3, kind: input, shape index: {}]   ;;  %s3589_s4 = inlined_call_operand.vmem [shape: f32[1,128], index: 4, kind: input, shape index: {}]   ;;  %s3590_s5 = inlined_call_operand.vmem [shape: bf16[2,64], index: 5, kind: input, shape index: {}]   ;;  %s3591_s6 = inlined_call_operand.vmem [shape: bf16[64,1024], index: 6, kind: input, shape index: {}]   ;;  %s3592_s7 = inlined_call_operand.vmem [shape: f32[1,1024], index: 7, kind: input, shape index: {}]   ;;  %s3593_s8 = inlined_call_operand.vmem [shape: bf16[1024,128], index: 8, kind: input, shape index: {}]   ;;  %s3594_s9 = inlined_call_operand.vmem [shape: f32[1,128], index: 9, kind: input, shape index: {}]   ;;  %s3595_s10 = inlined_call_operand.hbm [shape: f32[2,128], index: 10, kind: output, shape index: {0}]   ;;  %s3596_s11 = inlined_call_operand.hbm [shape: f32[2,128], index: 11, kind: output, shape index: {1}]  }
   0x1   :  { %v65_v0 = vld [vmem:[%s3586_s1 + $0xc0] sm:$0xff]  ;;  %v66_v2 = vld [vmem:[%s3586_s1 + $0xc8] sm:$0xff]  ;;  %311 = vmatprep.mubr.bf16.mxu0 %v2839_v8  ;;  %352 = vmatprep.mubr.bf16.mxu1 %v2839_v8  ;;  %v67_v31 = vld [vmem:[%s3586_s1 + $0xd0] sm:$0xff] }
   0x2   :  { %v69_v1 = vld [vmem:[%s3586_s1 + $0xe0] sm:$0xff]  ;;  %v70_v4 = vld [vmem:[%s3586_s1 + $0xe8] sm:$0xff]  ;;  %v71_v32 = vld [vmem:[%s3586_s1 + $0xf0] sm:$0xff] }
   0x3   :  { %v2307_v3 = vcombine.high %v65_v0, %v69_v1  ;;  %v2306_v5 = vcombine.low %v65_v0, %v69_v1  ;;  %v57_v6 = vld [vmem:[%s3586_s1 + $0x80] sm:$0xff]  ;;  %v2309_v9 = vcombine.high %v66_v2, %v70_v4  ;;  %v2308_v10 = vcombine.low %v66_v2, %v70_v4  ;;  %v58_v12 = vld [vmem:[%s3586_s1 + $0x88] sm:$0xff]  ;;  %v68_v33 = vld [vmem:[%s3586_s1 + $0xd8] sm:$0xff] }
   0x4   :  { %v61_v7 = vld [vmem:[%s3586_s1 + $0xa0] sm:$0xff]  ;;  %v62_v13 = vld [vmem:[%s3586_s1 + $0xa8] sm:$0xff]  ;;  %v72_v34 = vld [vmem:[%s3586_s1 + $0xf8] sm:$0xff]  ;;  %v2311_v38 = vcombine.high %v67_v31, %v71_v32  ;;  %v2310_v44 = vcombine.low %v67_v31, %v71_v32 }
   0x5   :  { %v2299_v11 = vcombine.high %v57_v6, %v61_v7  ;;  %v49_v14 = vld [vmem:[%s3586_s1 + $0x40] sm:$0xff]  ;;  %287 = vmatprep.subr.bf16.mxu0 %v2307_v3  ;;  %v2301_v15 = vcombine.high %v58_v12, %v62_v13  ;;  %v50_v17 = vld [vmem:[%s3586_s1 + $0x48] sm:$0xff]  ;;  %328 = vmatprep.subr.bf16.mxu1 %v2309_v9  ;;  %v2298_v19 = vcombine.low %v57_v6, %v61_v7  ;;  %v59_v36 = vld [vmem:[%s3586_s1 + $0x90] sm:$0xff] }
   0x6   :  { %v53_v16 = vld [vmem:[%s3586_s1 + $0x60] sm:$0xff]  ;;  %v54_v18 = vld [vmem:[%s3586_s1 + $0x68] sm:$0xff]  ;;  %288 = vmatpush1.bf16.msra.mxu0 %v2306_v5  ;;  %329 = vmatpush1.bf16.msra.mxu1 %v2308_v10  ;;  %v2300_v20 = vcombine.low %v58_v12, %v62_v13  ;;  %v63_v39 = vld [vmem:[%s3586_s1 + $0xb0] sm:$0xff]  ;;  %v2313_v41 = vcombine.high %v68_v33, %v72_v34  ;;  %v2312_v46 = vcombine.low %v68_v33, %v72_v34 }
   0x7   :  { %289 = vmatprep.subr.bf16.mxu0 %v2299_v11  ;;  %v2291_v21 = vcombine.high %v49_v14, %v53_v16  ;;  %330 = vmatprep.subr.bf16.mxu1 %v2301_v15  ;;  %v2293_v22 = vcombine.high %v50_v17, %v54_v18  ;;  %v41_v23 = vld [vmem:[%s3586_s1] sm:$0xff]  ;;  %v42_v25 = vld [vmem:[%s3586_s1 + $0x8] sm:$0xff]  ;;  %v2290_v27 = vcombine.low %v49_v14, %v53_v16  ;;  %v60_v42 = vld [vmem:[%s3586_s1 + $0x98] sm:$0xff] }
   0x8   :  { %v45_v24 = vld [vmem:[%s3586_s1 + $0x20] sm:$0xff]  ;;  %v46_v26 = vld [vmem:[%s3586_s1 + $0x28] sm:$0xff]  ;;  %v2292_v28 = vcombine.low %v50_v17, %v54_v18  ;;  %v64_v43 = vld [vmem:[%s3586_s1 + $0xb8] sm:$0xff]  ;;  %v2303_v47 = vcombine.high %v59_v36, %v63_v39  ;;  %v2302_v52 = vcombine.low %v59_v36, %v63_v39 }
   0x9   :  { %v2283_v29 = vcombine.high %v41_v23, %v45_v24  ;;  %v2285_v30 = vcombine.high %v42_v25, %v46_v26  ;;  %v2282_v35 = vcombine.low %v41_v23, %v45_v24  ;;  %v2284_v37 = vcombine.low %v42_v25, %v46_v26  ;;  %v40_v40 = vld [vmem:[%s3585_s0] sm:$0x1]  ;;  %v51_v45 = vld [vmem:[%s3586_s1 + $0x50] sm:$0xff]  ;;  %v52_v50 = vld [vmem:[%s3586_s1 + $0x58] sm:$0xff] }
   0xa   :  { %290 = vmatpush1.bf16.msra.mxu0 %v2298_v19  ;;  %331 = vmatpush1.bf16.msra.mxu1 %v2300_v20  ;;  %v55_v48 = vld [vmem:[%s3586_s1 + $0x70] sm:$0xff]  ;;  %v2305_v49 = vcombine.high %v60_v42, %v64_v43  ;;  %v56_v51 = vld [vmem:[%s3586_s1 + $0x78] sm:$0xff]  ;;  %v2304_v54 = vcombine.low %v60_v42, %v64_v43  ;;  %v2671_v11 = vld [vmem:[%s3588_s3 + $0x68] sm:$0xff]  }
   0xb   :  { %291 = vmatprep.subr.bf16.mxu0 %v2291_v21  ;;  %332 = vmatprep.subr.bf16.mxu1 %v2293_v22  ;;  %v43_v53 = vld [vmem:[%s3586_s1 + $0x10] sm:$0xff]  ;;  %v2295_v55 = vcombine.high %v51_v45, %v55_v48  ;;  %v2297_v57 = vcombine.high %v52_v50, %v56_v51  ;;  %v44_v58 = vld [vmem:[%s3586_s1 + $0x18] sm:$0xff]  ;;  %v2294_v60 = vcombine.low %v51_v45, %v55_v48  ;;  %v2672_v12 = vld [vmem:[%s3588_s3 + $0xe8] sm:$0xff]  }
   0xc   :  { %v47_v56 = vld [vmem:[%s3586_s1 + $0x30] sm:$0xff]  ;;  %v48_v59 = vld [vmem:[%s3586_s1 + $0x38] sm:$0xff]  ;;  %v2296_v61 = vcombine.low %v52_v50, %v56_v51  ;;  %v2673_v13 = vld [vmem:[%s3588_s3 + $0x28] sm:$0xff]  }
   0xd   :  { %v2287_v62 = vcombine.high %v43_v53, %v47_v56  ;;  %v2289_v63 = vcombine.high %v44_v58, %v48_v59  ;;  %v2286_v0 = vcombine.low %v43_v53, %v47_v56  ;;  %v2663_v1 = vld [vmem:[%s3588_s3 + $0x78] sm:$0xff]   ;;  %v2288_v2 = vcombine.low %v44_v58, %v48_v59  ;;  %v2667_v6 = vld [vmem:[%s3588_s3 + $0x70] sm:$0xff]   ;;  %v2674_v14 = vld [vmem:[%s3588_s3 + $0xa8] sm:$0xff]  }
   0xe   :  { %292 = vmatpush1.bf16.msra.mxu0 %v2290_v27  ;;  %333 = vmatpush1.bf16.msra.mxu1 %v2292_v28  ;;  %v2664_v3 = vld [vmem:[%s3588_s3 + $0xf8] sm:$0xff]   ;;  %v2668_v7 = vld [vmem:[%s3588_s3 + $0xf0] sm:$0xff]   ;;  %v2675_v15 = vld [vmem:[%s3588_s3 + $0x60] sm:$0xff]  }
   0xf   :  { %293 = vmatprep.subr.bf16.mxu0 %v2283_v29  ;;  %334 = vmatprep.subr.bf16.mxu1 %v2285_v30  ;;  %v2665_v4 = vld [vmem:[%s3588_s3 + $0x38] sm:$0xff]   ;;  %v2669_v9 = vld [vmem:[%s3588_s3 + $0x30] sm:$0xff]   ;;  %v2676_v16 = vld [vmem:[%s3588_s3 + $0xe0] sm:$0xff]  }
  0x10   :  { %v2666_v5 = vld [vmem:[%s3588_s3 + $0xb8] sm:$0xff]   ;;  %v2670_v10 = vld [vmem:[%s3588_s3 + $0xb0] sm:$0xff]   ;;  %v2677_v17 = vld [vmem:[%s3588_s3 + $0x20] sm:$0xff]  }
  0x11   :  { %v2678_v18 = vld [vmem:[%s3588_s3 + $0xa0] sm:$0xff]   ;;  %v2679_v19 = vld [vmem:[%s3588_s3 + $0x58] sm:$0xff]   ;;  %v2683_v23 = vld [vmem:[%s3588_s3 + $0x50] sm:$0xff]  }
  0x12   :  { %294 = vmatpush1.bf16.msra.mxu0 %v2282_v35  ;;  %335 = vmatpush1.bf16.msra.mxu1 %v2284_v37  ;;  %v2680_v20 = vld [vmem:[%s3588_s3 + $0xd8] sm:$0xff]   ;;  %v2684_v24 = vld [vmem:[%s3588_s3 + $0xd0] sm:$0xff]   ;;  %v2687_v27 = vld [vmem:[%s3588_s3 + $0x48] sm:$0xff]  }
  0x13   :  { %369 = vmatprep.subr.bf16.mxu0 %v2311_v38  ;;  %410 = vmatprep.subr.bf16.mxu1 %v2313_v41  ;;  %v2681_v21 = vld [vmem:[%s3588_s3 + $0x18] sm:$0xff]   ;;  %v2685_v25 = vld [vmem:[%s3588_s3 + $0x10] sm:$0xff]   ;;  %v2688_v28 = vld [vmem:[%s3588_s3 + $0xc8] sm:$0xff]  }
  0x14   :  { %v2682_v22 = vld [vmem:[%s3588_s3 + $0x98] sm:$0xff]   ;;  %v2686_v26 = vld [vmem:[%s3588_s3 + $0x90] sm:$0xff]   ;;  %v2689_v29 = vld [vmem:[%s3588_s3 + $0x8] sm:$0xff]  }
  0x15   :  { %2314 = vmatmul.mubr.msk.bf16.vlgmr.msra.gmra.mxu0 %vm275_vm0, %v40_v40  ;;  %2315 = vmatmul.mubr.msk.bf16.vlgmr.msra.gmra.mxu1 %vm275_vm0, %v40_v40  ;;  %v2690_v30 = vld [vmem:[%s3588_s3 + $0x88] sm:$0xff]   ;;  %v2691_v31 = vld [vmem:[%s3588_s3 + $0x40] sm:$0xff]   ;;  %v2695_v35 = vld [vmem:[%s3588_s3 + $0x178] sm:$0xff]  }
  0x16   :  { %370 = vmatpush1.bf16.msra.mxu0 %v2310_v44  ;;  %411 = vmatpush1.bf16.msra.mxu1 %v2312_v46  ;;  %v2692_v32 = vld [vmem:[%s3588_s3 + $0xc0] sm:$0xff]   ;;  %v2696_v36 = vld [vmem:[%s3588_s3 + $0x1f8] sm:$0xff]  }
  0x17   :  { %371 = vmatprep.subr.bf16.mxu0 %v2303_v47  ;;  %412 = vmatprep.subr.bf16.mxu1 %v2305_v49  ;;  %v2693_v33 = vld [vmem:[%s3588_s3] sm:$0xff]  }
  0x18   :  { %393 = vmatprep.mubr.bf16.mxu0 %v2839_v8  ;;  %434 = vmatprep.mubr.bf16.mxu1 %v2839_v8  ;;  %v2694_v34 = vld [vmem:[%s3588_s3 + $0x80] sm:$0xff]  }
  0x1a   :  { %372 = vmatpush1.bf16.msra.mxu0 %v2302_v52  ;;  %413 = vmatpush1.bf16.msra.mxu1 %v2304_v54 }
  0x1b   :  { %373 = vmatprep.subr.bf16.mxu0 %v2295_v55  ;;  %414 = vmatprep.subr.bf16.mxu1 %v2297_v57 }
  0x1e   :  { %374 = vmatpush1.bf16.msra.mxu0 %v2294_v60  ;;  %415 = vmatpush1.bf16.msra.mxu1 %v2296_v61 }
  0x1f   :  { %375 = vmatprep.subr.bf16.mxu0 %v2287_v62  ;;  %416 = vmatprep.subr.bf16.mxu1 %v2289_v63 }
  0x22   :  { %376 = vmatpush1.bf16.msra.mxu0 %v2286_v0  ;;  %417 = vmatpush1.bf16.msra.mxu1 %v2288_v2 }
  0x23   :  { %2484 = vmatprep.subr.bf16.mxu0 %v2663_v1  ;;  %2506 = vmatprep.subr.bf16.mxu1 %v2664_v3 }
  0x25   :  { %2316 = vmatmul.mubr.msk.bf16.vlgmr.msra.gmra.mxu0 %vm275_vm0, %v40_v40  ;;  %2317 = vmatmul.mubr.msk.bf16.vlgmr.msra.gmra.mxu1 %vm275_vm0, %v40_v40 }
  0x26   :  { %2485 = vmatpush3.bf16.msra.mxu0 %v2665_v4  ;;  %2507 = vmatpush3.bf16.msra.mxu1 %v2666_v5 }
  0x27   :  { %2486 = vmatprep.subr.bf16.mxu0 %v2667_v6  ;;  %2508 = vmatprep.subr.bf16.mxu1 %v2668_v7 }
  0x2a   :  { %2487 = vmatpush3.bf16.msra.mxu0 %v2669_v9  ;;  %2509 = vmatpush3.bf16.msra.mxu1 %v2670_v10 }
  0x2b   :  { %2488 = vmatprep.subr.bf16.mxu0 %v2671_v11  ;;  %2510 = vmatprep.subr.bf16.mxu1 %v2672_v12 }
  0x2e   :  { %2489 = vmatpush3.bf16.msra.mxu0 %v2673_v13  ;;  %2511 = vmatpush3.bf16.msra.mxu1 %v2674_v14 }
  0x2f   :  { %2490 = vmatprep.subr.bf16.mxu0 %v2675_v15  ;;  %2512 = vmatprep.subr.bf16.mxu1 %v2676_v16 }
  0x32   :  { %2491 = vmatpush3.bf16.msra.mxu0 %v2677_v17  ;;  %2513 = vmatpush3.bf16.msra.mxu1 %v2678_v18 }
  0x33   :  { %2492 = vmatprep.subr.bf16.mxu0 %v2679_v19  ;;  %2514 = vmatprep.subr.bf16.mxu1 %v2680_v20 }
  0x36   :  { %2493 = vmatpush3.bf16.msra.mxu0 %v2681_v21  ;;  %2515 = vmatpush3.bf16.msra.mxu1 %v2682_v22 }
  0x37   :  { %2494 = vmatprep.subr.bf16.mxu0 %v2683_v23  ;;  %2516 = vmatprep.subr.bf16.mxu1 %v2684_v24 }
  0x3a   :  { %2495 = vmatpush3.bf16.msra.mxu0 %v2685_v25  ;;  %2517 = vmatpush3.bf16.msra.mxu1 %v2686_v26 }
  0x3b   :  { %2496 = vmatprep.subr.bf16.mxu0 %v2687_v27  ;;  %2518 = vmatprep.subr.bf16.mxu1 %v2688_v28 }
  0x3e   :  { %2497 = vmatpush3.bf16.msra.mxu0 %v2689_v29  ;;  %2519 = vmatpush3.bf16.msra.mxu1 %v2690_v30 }
  0x3f   :  { %2498 = vmatprep.subr.bf16.mxu0 %v2691_v31  ;;  %2520 = vmatprep.subr.bf16.mxu1 %v2692_v32 }
  0x42   :  { %2499 = vmatpush3.bf16.msra.mxu0 %v2693_v33  ;;  %2521 = vmatpush3.bf16.msra.mxu1 %v2694_v34 }
  0x43   :  { %2528 = vmatprep.subr.bf16.mxu0 %v2695_v35  ;;  %2550 = vmatprep.subr.bf16.mxu1 %v2696_v36 }
  0x44   :  { %18 = vsyncpa [#allocation5], 0  ;;  %v75_v37 = vlaneseq  ;;  %v3118_v40 = vld [vmem:[%s3587_s2] sm:$0xff]  ;;  %v2697_v2 = vld [vmem:[%s3588_s3 + $0x138] sm:$0xff]   ;;  %vm2240_vm2 = vcmask 1041408  }
  0x45   :  { %v2698_v5 = vld [vmem:[%s3588_s3 + $0x1b8] sm:$0xff]   ;;  %v2699_v6 = vld [vmem:[%s3588_s3 + $0x170] sm:$0xff]   ;;  %v2703_v12 = vld [vmem:[%s3588_s3 + $0x168] sm:$0xff]  }
  0x46   :  { %v3112_v38 = vshrl.u32 %v75_v37, 7  ;;  %v2700_v7 = vld [vmem:[%s3588_s3 + $0x1f0] sm:$0xff]   ;;  %v2704_v14 = vld [vmem:[%s3588_s3 + $0x1e8] sm:$0xff]   ;;  %v2707_v18 = vld [vmem:[%s3588_s3 + $0x160] sm:$0xff]  }
  0x47   :  { %v2701_v9 = vld [vmem:[%s3588_s3 + $0x130] sm:$0xff]   ;;  %v2705_v15 = vld [vmem:[%s3588_s3 + $0x128] sm:$0xff]   ;;  %v2708_v21 = vld [vmem:[%s3588_s3 + $0x1e0] sm:$0xff]  }
  0x48   :  { %v77_v39 = vsub.s32 0, %v3112_v38  ;;  %v85_v41 = vsub.s32 2, %v3112_v38  ;;  %v81_v42 = vsub.s32 1, %v3112_v38  ;;  %v89_v43 = vsub.s32 3, %v3112_v38  ;;  %v2702_v11 = vld [vmem:[%s3588_s3 + $0x1b0] sm:$0xff]   ;;  %v2706_v17 = vld [vmem:[%s3588_s3 + $0x1a8] sm:$0xff]  }
  0x49   :  { %v97_v10 = vsub.s32 5, %v3112_v38  ;;  %v105_v13 = vsub.s32 7, %v3112_v38  ;;  %v2709_v24 = vld [vmem:[%s3588_s3 + $0x120] sm:$0xff]   ;;  %v2711_v28 = vld [vmem:[%s3588_s3 + $0x158] sm:$0xff]  }
  0x4a   :  { %v78_v44 = vrot.slane %v3118_v40, %v77_v39  ;;  %v86_v45 = vrot.slane %v3118_v40, %v85_v41  ;;  %v82_v46 = vrot.slane %v3118_v40, %v81_v42  ;;  %v90_v48 = vrot.slane %v3118_v40, %v89_v43  ;;  %v2710_v27 = vld [vmem:[%s3588_s3 + $0x1a0] sm:$0xff]   ;;  %v2712_v31 = vld [vmem:[%s3588_s3 + $0x1d8] sm:$0xff]  }
  0x4b   :  { %v98_v16 = vrot.slane %v3118_v40, %v97_v10  ;;  %v106_v20 = vrot.slane %v3118_v40, %v105_v13  ;;  %v2713_v36 = vld [vmem:[%s3588_s3 + $0x118] sm:$0xff]  }
  0xd5   :  { %v313_v47 = vpop.f32.mrf.mxu0  ;;  %v354_v50 = vpop.f32.mrf.mxu1 }
  0xd6   :  { %v314_v49 = vadd.f32 %v313_v47, %v78_v44  ;;  %v355_v51 = vadd.f32 %v354_v50, %v86_v45  ;;  %v101_v45 = vsub.s32 6, %v3112_v38  ;;  %v93_v47 = vsub.s32 4, %v3112_v38  ;;  %v2785_v38 = vld [vmem:[%s3593_s8 + $0x108] sm:$0xff]  }
  0xd7   :  { %v315_v52 = vpop.f32.mrf.mxu0  ;;  %v356_v54 = vpop.f32.mrf.mxu1 }
  0xd8   :  { %v316_v53 = vadd.f32 %v315_v52, %v82_v46  ;;  %v443_v55 = vmax.f32 %v314_v49, 0.0  ;;  %v445_v56 = vmax.f32 %v355_v51, 0.0  ;;  %v357_v57 = vadd.f32 %v356_v54, %v90_v48  ;;  %v2714_v48 = vld [vmem:[%s3588_s3 + $0x198] sm:$0xff]   ;;  %v2715_v49 = vld [vmem:[%s3588_s3 + $0x150] sm:$0xff]  }
  0xd9   :  { %v317_v58 = vpop.f32.mrf.mxu0  ;;  %v358_v60 = vpop.f32.mrf.mxu1  ;;  %v2716_v51 = vld [vmem:[%s3588_s3 + $0x1d0] sm:$0xff]   ;;  %v102_v52 = vrot.slane %v3118_v40, %v101_v45  ;;  %v94_v54 = vrot.slane %v3118_v40, %v93_v47  ;;  %v2721_v40 = vld [vmem:[%s3588_s3 + $0x108] sm:$0xff]  }
  0xda   :  { %v444_v59 = vmax.f32 %v316_v53, 0.0  ;;  %v446_v61 = vmax.f32 %v357_v57, 0.0  ;;  %v453_v63 = vpack.c.bf16 %v445_v56, %v445_v56  ;;  %v451_v3 = vpack.c.bf16 %v443_v55, %v443_v55  ;;  %v2717_v53 = vld [vmem:[%s3588_s3 + $0x110] sm:$0xff]   ;;  %v2719_v56 = vld [vmem:[%s3588_s3 + $0x148] sm:$0xff]  }
  0xdb   :  { %v318_v62 = vpop.f32.mrf.mxu0  ;;  %v359_v1 = vpop.f32.mrf.mxu1  ;;  %v2718_v55 = vld [vmem:[%s3588_s3 + $0x190] sm:$0xff]   ;;  %v2720_v57 = vld [vmem:[%s3588_s3 + $0x1c8] sm:$0xff]  }
  0xdc   :  { %v452_v0 = vpack.c.bf16 %v444_v59, %v444_v59  ;;  %v454_v4 = vpack.c.bf16 %v446_v61, %v446_v61  ;;  %v2722_v60 = vld [vmem:[%s3588_s3 + $0x188] sm:$0xff]   ;;  %v2723_v61 = vld [vmem:[%s3588_s3 + $0x140] sm:$0xff]  }
  0xdd   :  { %v2724_v62 = vld [vmem:[%s3588_s3 + $0x1c0] sm:$0xff]   ;;  %v1164_v1 = vld [vmem:[%s3591_s6 + $0xc8] sm:$0xff] }
  0xde   :  { %1010 = vmatprep.mubr.bf16.mxu0 %v452_v0  ;;  %1050 = vmatprep.mubr.bf16.mxu1 %v454_v4  ;;  %v1167_v0 = vld [vmem:[%s3591_s6 + $0xe0] sm:$0xff] }
  0xdf   :  { %1011 = vmatmul.mubr.bf16.vlgmr.msra.gmra.mxu0 %v451_v3  ;;  %1051 = vmatmul.mubr.bf16.vlgmr.msra.gmra.mxu1 %v453_v63  ;;  %v1163_v63 = vld [vmem:[%s3591_s6 + $0xc0] sm:$0xff] }
  0xe0   :  { %2529 = vmatpush3.bf16.msra.mxu0 %v2697_v2  ;;  %2551 = vmatpush3.bf16.msra.mxu1 %v2698_v5  ;;  %v1168_v2 = vld [vmem:[%s3591_s6 + $0xe8] sm:$0xff]  ;;  %v2725_v4 = vld [vmem:[%s3588_s3 + $0x100] sm:$0xff]  }
  0xe1   :  { %2530 = vmatprep.subr.bf16.mxu0 %v2699_v6  ;;  %2552 = vmatprep.subr.bf16.mxu1 %v2700_v7  ;;  %v2726_v6 = vld [vmem:[%s3588_s3 + $0x180] sm:$0xff]   ;;  %v2408_v7 = vcombine.high %v1163_v63, %v1167_v0 }
  0xe4   :  { %2531 = vmatpush3.bf16.msra.mxu0 %v2701_v9  ;;  %2553 = vmatpush3.bf16.msra.mxu1 %v2702_v11  ;;  %v2410_v9 = vcombine.high %v1164_v1, %v1168_v2  ;;  %v1155_v11 = vld [vmem:[%s3591_s6 + $0x80] sm:$0xff] }
  0xe5   :  { %2532 = vmatprep.subr.bf16.mxu0 %v2703_v12  ;;  %v395_v19 = vpop.f32.mrf.mxu0  ;;  %2554 = vmatprep.subr.bf16.mxu1 %v2704_v14  ;;  %v436_v22 = vpop.f32.mrf.mxu1  ;;  %v1159_v12 = vld [vmem:[%s3591_s6 + $0xa0] sm:$0xff]  ;;  %v1156_v14 = vld [vmem:[%s3591_s6 + $0x88] sm:$0xff] }
  0xe6   :  { %v437_v58 = vadd.f32 %v436_v22, %v102_v52  ;;  %v396_v59 = vadd.f32 %v395_v19, %v94_v54  ;;  %v2409_v19 = vcombine.low %v1164_v1, %v1168_v2  ;;  %v1147_v22 = vld [vmem:[%s3591_s6 + $0x40] sm:$0xff]  ;;  %v1150_v1 = vld [vmem:[%s3591_s6 + $0x58] sm:$0xff] }
  0xe7   :  { %v397_v23 = vpop.f32.mrf.mxu0  ;;  %v438_v26 = vpop.f32.mrf.mxu1  ;;  %v1154_v2 = vld [vmem:[%s3591_s6 + $0x78] sm:$0xff] }
  0xe8   :  { %2533 = vmatpush3.bf16.msra.mxu0 %v2705_v15  ;;  %v398_v25 = vadd.f32 %v397_v23, %v98_v16  ;;  %2555 = vmatpush3.bf16.msra.mxu1 %v2706_v17  ;;  %v439_v30 = vadd.f32 %v438_v26, %v106_v20  ;;  %v449_v3 = vmax.f32 %v437_v58, 0.0  ;;  %v447_v5 = vmax.f32 %v396_v59, 0.0  ;;  %v1160_v15 = vld [vmem:[%s3591_s6 + $0xa8] sm:$0xff]  ;;  %v1151_v23 = vld [vmem:[%s3591_s6 + $0x60] sm:$0xff]  ;;  %v1162_v58 = vld [vmem:[%s3591_s6 + $0xb8] sm:$0xff] }
  0xe9   :  { %2534 = vmatprep.subr.bf16.mxu0 %v2707_v18  ;;  %v399_v29 = vpop.f32.mrf.mxu0  ;;  %2556 = vmatprep.subr.bf16.mxu1 %v2708_v21  ;;  %v440_v33 = vpop.f32.mrf.mxu1  ;;  %v2407_v17 = vcombine.low %v1163_v63, %v1167_v0  ;;  %v2400_v20 = vcombine.high %v1155_v11, %v1159_v12  ;;  %v2402_v21 = vcombine.high %v1156_v14, %v1160_v15  ;;  %v1149_v63 = vld [vmem:[%s3591_s6 + $0x50] sm:$0xff] }
  0xea   :  { %v448_v32 = vmax.f32 %v398_v25, 0.0  ;;  %v450_v34 = vmax.f32 %v439_v30, 0.0  ;;  %v457_v16 = vpack.c.bf16 %v449_v3, %v449_v3  ;;  %v455_v18 = vpack.c.bf16 %v447_v5, %v447_v5  ;;  %v1152_v25 = vld [vmem:[%s3591_s6 + $0x68] sm:$0xff]  ;;  %v1139_v30 = vld [vmem:[%s3591_s6] sm:$0xff]  ;;  %v1153_v0 = vld [vmem:[%s3591_s6 + $0x70] sm:$0xff] }
  0xeb   :  { %v400_v35 = vpop.f32.mrf.mxu0  ;;  %v441_v46 = vpop.f32.mrf.mxu1  ;;  %v2399_v26 = vcombine.low %v1155_v11, %v1159_v12  ;;  %v1144_v33 = vld [vmem:[%s3591_s6 + $0x28] sm:$0xff]  ;;  %v2396_v5 = vcombine.high %v1149_v63, %v1153_v0  ;;  %v1142_v11 = vld [vmem:[%s3591_s6 + $0x18] sm:$0xff] }
  0xec   :  { %2535 = vmatpush3.bf16.msra.mxu0 %v2709_v24  ;;  %v456_v44 = vpack.c.bf16 %v448_v32, %v448_v32  ;;  %2557 = vmatpush3.bf16.msra.mxu1 %v2710_v27  ;;  %v458_v50 = vpack.c.bf16 %v450_v34, %v450_v34  ;;  %v1148_v24 = vld [vmem:[%s3591_s6 + $0x48] sm:$0xff]  ;;  %v2401_v27 = vcombine.low %v1156_v14, %v1160_v15  ;;  %v1165_v46 = vld [vmem:[%s3591_s6 + $0xd0] sm:$0xff]  ;;  %v1146_v12 = vld [vmem:[%s3591_s6 + $0x38] sm:$0xff] }
  0xed   :  { %2536 = vmatprep.subr.bf16.mxu0 %v2711_v28  ;;  %2558 = vmatprep.subr.bf16.mxu1 %v2712_v31  ;;  %v2392_v28 = vcombine.high %v1147_v22, %v1151_v23  ;;  %v2394_v29 = vcombine.high %v1148_v24, %v1152_v25  ;;  %v1143_v31 = vld [vmem:[%s3591_s6 + $0x20] sm:$0xff]  ;;  %v1140_v32 = vld [vmem:[%s3591_s6 + $0x8] sm:$0xff]  ;;  %v2391_v34 = vcombine.low %v1147_v22, %v1151_v23  ;;  %v2730_v22 = vld [vmem:[%s3593_s8 + $0xb8] sm:$0xff]  }
  0xee   :  { %1090 = vmatprep.mubr.bf16.mxu0 %v456_v44  ;;  %1130 = vmatprep.mubr.bf16.mxu1 %v458_v50  ;;  %v2393_v35 = vcombine.low %v1148_v24, %v1152_v25  ;;  %v2386_v44 = vcombine.high %v1140_v32, %v1144_v33  ;;  %v1170_v50 = vld [vmem:[%s3591_s6 + $0xf8] sm:$0xff]  ;;  %v2385_v52 = vcombine.low %v1140_v32, %v1144_v33  ;;  %v2731_v23 = vld [vmem:[%s3593_s8 + $0x70] sm:$0xff]   ;;  %v2740_v32 = vld [vmem:[%s3593_s8 + $0xe0] sm:$0xff]  }
  0xef   :  { %v2395_v14 = vcombine.low %v1149_v63, %v1153_v0  ;;  %v2397_v15 = vcombine.low %v1150_v1, %v1154_v2  ;;  %v2732_v24 = vld [vmem:[%s3593_s8 + $0xf0] sm:$0xff]   ;;  %v2741_v33 = vld [vmem:[%s3593_s8 + $0x20] sm:$0xff]  }
  0xf0   :  { %2537 = vmatpush3.bf16.msra.mxu0 %v2713_v36  ;;  %2559 = vmatpush3.bf16.msra.mxu1 %v2714_v48  ;;  %v2384_v36 = vcombine.high %v1139_v30, %v1143_v31  ;;  %v1169_v48 = vld [vmem:[%s3591_s6 + $0xf0] sm:$0xff]  ;;  %v2318_v63 = vld [vmem:[%s3589_s4] ss:$0 sm:$0xff] }
  0xf1   :  { %2538 = vmatprep.subr.bf16.mxu0 %v2715_v49  ;;  %2560 = vmatprep.subr.bf16.mxu1 %v2716_v51  ;;  %v1166_v49 = vld [vmem:[%s3591_s6 + $0xd8] sm:$0xff]  ;;  %v2383_v51 = vcombine.low %v1139_v30, %v1143_v31  ;;  %v2411_v59 = vcombine.low %v1165_v46, %v1169_v48  ;;  %v2733_v25 = vld [vmem:[%s3593_s8 + $0x30] sm:$0xff]   ;;  %v2738_v30 = vld [vmem:[%s3593_s8 + $0xa8] sm:$0xff]  }
  0xf2   :  { %v2414_v54 = vcombine.high %v1166_v49, %v1170_v50  ;;  %v2739_v31 = vld [vmem:[%s3593_s8 + $0x60] sm:$0xff]  }
  0xf4   :  { %2539 = vmatpush3.bf16.msra.mxu0 %v2717_v53  ;;  %2561 = vmatpush3.bf16.msra.mxu1 %v2718_v55  ;;  %v2412_v53 = vcombine.high %v1165_v46, %v1169_v48  ;;  %v1157_v55 = vld [vmem:[%s3591_s6 + $0x90] sm:$0xff]  ;;  %v2746_v46 = vld [vmem:[%s3593_s8 + $0x98] sm:$0xff]  }
  0xf5   :  { %2540 = vmatprep.subr.bf16.mxu0 %v2719_v56  ;;  %2562 = vmatprep.subr.bf16.mxu1 %v2720_v57  ;;  %v1161_v56 = vld [vmem:[%s3591_s6 + $0xb0] sm:$0xff]  ;;  %v1158_v57 = vld [vmem:[%s3591_s6 + $0x98] sm:$0xff] }
  0xf6   :  { %v2403_v3 = vcombine.low %v1157_v55, %v1161_v56  ;;  %v2747_v48 = vld [vmem:[%s3593_s8 + $0x50] sm:$0xff]  }
  0xf8   :  { %2541 = vmatpush3.bf16.msra.mxu0 %v2721_v40  ;;  %2563 = vmatpush3.bf16.msra.mxu1 %v2722_v60  ;;  %v1138_v40 = vld [vmem:[%s3590_s5] sm:$0x1]  ;;  %v2413_v60 = vcombine.low %v1166_v49, %v1170_v50  ;;  %v2748_v49 = vld [vmem:[%s3593_s8 + $0xd0] sm:$0xff]  }
  0xf9   :  { %2542 = vmatprep.subr.bf16.mxu0 %v2723_v61  ;;  %2564 = vmatprep.subr.bf16.mxu1 %v2724_v62  ;;  %v2404_v61 = vcombine.high %v1157_v55, %v1161_v56  ;;  %v2406_v62 = vcombine.high %v1158_v57, %v1162_v58  ;;  %v2749_v50 = vld [vmem:[%s3593_s8 + $0x10] sm:$0xff]   ;;  %v2754_v55 = vld [vmem:[%s3593_s8 + $0x88] sm:$0xff]   ;;  %v2755_v56 = vld [vmem:[%s3593_s8 + $0x40] sm:$0xff]  }
  0xfc   :  { %2543 = vmatpush3.bf16.msra.mxu0 %v2725_v4  ;;  %2565 = vmatpush3.bf16.msra.mxu1 %v2726_v6  ;;  %v2405_v4 = vcombine.low %v1158_v57, %v1162_v58  ;;  %v2398_v6 = vcombine.high %v1150_v1, %v1154_v2  ;;  %v2756_v57 = vld [vmem:[%s3593_s8 + $0xc0] sm:$0xff]  }
  0xfd   :  { %1384 = vmatprep.subr.bf16.mxu0 %v2408_v7  ;;  %1425 = vmatprep.subr.bf16.mxu1 %v2410_v9  ;;  %v1141_v7 = vld [vmem:[%s3591_s6 + $0x10] sm:$0xff]  ;;  %v2757_v58 = vld [vmem:[%s3593_s8] sm:$0xff]  }
  0xfe   :  { %v1145_v9 = vld [vmem:[%s3591_s6 + $0x30] sm:$0xff] }
  0xff   :  { %1091 = vmatmul.mubr.bf16.vlgmr.msra.gmra.mxu0 %v455_v18  ;;  %1131 = vmatmul.mubr.bf16.vlgmr.msra.gmra.mxu1 %v457_v16  ;;  %v2388_v16 = vcombine.high %v1141_v7, %v1145_v9  ;;  %v2387_v18 = vcombine.low %v1141_v7, %v1145_v9 }
 0x100   :  { %1385 = vmatpush1.bf16.msra.mxu0 %v2407_v17  ;;  %1426 = vmatpush1.bf16.msra.mxu1 %v2409_v19  ;;  %v2390_v17 = vcombine.high %v1142_v11, %v1146_v12  ;;  %v2389_v19 = vcombine.low %v1142_v11, %v1146_v12 }
 0x101   :  { %1386 = vmatprep.subr.bf16.mxu0 %v2400_v20  ;;  %1427 = vmatprep.subr.bf16.mxu1 %v2402_v21  ;;  %v2728_v20 = vld [vmem:[%s3593_s8 + $0xf8] sm:$0xff]  }
 0x102   :  { %1408 = vmatprep.mubr.bf16.mxu0 %v2839_v8  ;;  %1449 = vmatprep.mubr.bf16.mxu1 %v2839_v8  ;;  %v2729_v21 = vld [vmem:[%s3593_s8 + $0x38] sm:$0xff]  }
 0x104   :  { %1387 = vmatpush1.bf16.msra.mxu0 %v2399_v26  ;;  %1428 = vmatpush1.bf16.msra.mxu1 %v2401_v27  ;;  %v2734_v26 = vld [vmem:[%s3593_s8 + $0xb0] sm:$0xff]   ;;  %v2735_v27 = vld [vmem:[%s3593_s8 + $0x68] sm:$0xff]  }
 0x105   :  { %1388 = vmatprep.subr.bf16.mxu0 %v2392_v28  ;;  %1429 = vmatprep.subr.bf16.mxu1 %v2394_v29  ;;  %v2736_v28 = vld [vmem:[%s3593_s8 + $0xe8] sm:$0xff]  }
 0x106   :  { %v2737_v29 = vld [vmem:[%s3593_s8 + $0x28] sm:$0xff]  }
 0x108   :  { %1389 = vmatpush1.bf16.msra.mxu0 %v2391_v34  ;;  %1430 = vmatpush1.bf16.msra.mxu1 %v2393_v35  ;;  %v2742_v34 = vld [vmem:[%s3593_s8 + $0xa0] sm:$0xff]   ;;  %v2743_v35 = vld [vmem:[%s3593_s8 + $0x58] sm:$0xff]  }
 0x109   :  { %1390 = vmatprep.subr.bf16.mxu0 %v2384_v36  ;;  %1431 = vmatprep.subr.bf16.mxu1 %v2386_v44  ;;  %v2744_v36 = vld [vmem:[%s3593_s8 + $0xd8] sm:$0xff]  }
 0x10a   :  { %v2745_v44 = vld [vmem:[%s3593_s8 + $0x18] sm:$0xff]  }
 0x10c   :  { %1391 = vmatpush1.bf16.msra.mxu0 %v2383_v51  ;;  %1432 = vmatpush1.bf16.msra.mxu1 %v2385_v52  ;;  %v2750_v51 = vld [vmem:[%s3593_s8 + $0x90] sm:$0xff]   ;;  %v2751_v52 = vld [vmem:[%s3593_s8 + $0x48] sm:$0xff]  }
 0x10d   :  { %1466 = vmatprep.subr.bf16.mxu0 %v2412_v53  ;;  %1507 = vmatprep.subr.bf16.mxu1 %v2414_v54  ;;  %v2752_v53 = vld [vmem:[%s3593_s8 + $0xc8] sm:$0xff]  }
 0x10e   :  { %v2753_v54 = vld [vmem:[%s3593_s8 + $0x8] sm:$0xff]  }
 0x10f   :  { %2415 = vmatmul.mubr.msk.bf16.vlgmr.msra.gmra.mxu0 %vm275_vm0, %v1138_v40  ;;  %2416 = vmatmul.mubr.msk.bf16.vlgmr.msra.gmra.mxu1 %vm275_vm0, %v1138_v40 }
 0x110   :  { %1467 = vmatpush1.bf16.msra.mxu0 %v2411_v59  ;;  %1508 = vmatpush1.bf16.msra.mxu1 %v2413_v60  ;;  %v2759_v59 = vld [vmem:[%s3593_s8 + $0x178] sm:$0xff]  }
 0x111   :  { %1468 = vmatprep.subr.bf16.mxu0 %v2404_v61  ;;  %1509 = vmatprep.subr.bf16.mxu1 %v2406_v62  ;;  %v2760_v60 = vld [vmem:[%s3593_s8 + $0x1f8] sm:$0xff]  }
 0x112   :  { %1490 = vmatprep.mubr.bf16.mxu0 %v2839_v8  ;;  %1531 = vmatprep.mubr.bf16.mxu1 %v2839_v8  ;;  %v2727_v8 = vld [vmem:[%s3593_s8 + $0x78] sm:$0xff]  }
 0x114   :  { %1469 = vmatpush1.bf16.msra.mxu0 %v2403_v3  ;;  %1510 = vmatpush1.bf16.msra.mxu1 %v2405_v4 }
 0x115   :  { %1470 = vmatprep.subr.bf16.mxu0 %v2396_v5  ;;  %1511 = vmatprep.subr.bf16.mxu1 %v2398_v6 }
 0x118   :  { %1471 = vmatpush1.bf16.msra.mxu0 %v2395_v14  ;;  %1512 = vmatpush1.bf16.msra.mxu1 %v2397_v15 }
 0x119   :  { %1472 = vmatprep.subr.bf16.mxu0 %v2388_v16  ;;  %1513 = vmatprep.subr.bf16.mxu1 %v2390_v17 }
 0x11c   :  { %1473 = vmatpush1.bf16.msra.mxu0 %v2387_v18  ;;  %1514 = vmatpush1.bf16.msra.mxu1 %v2389_v19 }
 0x11d   :  { %2572 = vmatprep.subr.bf16.mxu0 %v2727_v8  ;;  %2594 = vmatprep.subr.bf16.mxu1 %v2728_v20 }
 0x11f   :  { %2417 = vmatmul.mubr.msk.bf16.vlgmr.msra.gmra.mxu0 %vm275_vm0, %v1138_v40  ;;  %2418 = vmatmul.mubr.msk.bf16.vlgmr.msra.gmra.mxu1 %vm275_vm0, %v1138_v40  ;;  %v2758_v40 = vld [vmem:[%s3593_s8 + $0x80] sm:$0xff]  }
 0x120   :  { %2573 = vmatpush3.bf16.msra.mxu0 %v2729_v21  ;;  %2595 = vmatpush3.bf16.msra.mxu1 %v2730_v22 }
 0x121   :  { %2574 = vmatprep.subr.bf16.mxu0 %v2731_v23  ;;  %2596 = vmatprep.subr.bf16.mxu1 %v2732_v24  ;;  %v3458_v24 = vld [vmem:[%s3592_s7] sm:$0xff] }
 0x124   :  { %2575 = vmatpush3.bf16.msra.mxu0 %v2733_v25  ;;  %2597 = vmatpush3.bf16.msra.mxu1 %v2734_v26  ;;  %v1176_v25 = vrot.slane %v3458_v24, %v77_v39  ;;  %v1184_v26 = vrot.slane %v3458_v24, %v85_v41 }
 0x125   :  { %2576 = vmatprep.subr.bf16.mxu0 %v2735_v27  ;;  %2598 = vmatprep.subr.bf16.mxu1 %v2736_v28  ;;  %v1180_v27 = vrot.slane %v3458_v24, %v81_v42 }
 0x128   :  { %2577 = vmatpush3.bf16.msra.mxu0 %v2737_v29  ;;  %2599 = vmatpush3.bf16.msra.mxu1 %v2738_v30  ;;  %v1188_v29 = vrot.slane %v3458_v24, %v89_v43  ;;  %v2761_v43 = vld [vmem:[%s3593_s8 + $0x138] sm:$0xff]  }
 0x129   :  { %2578 = vmatprep.subr.bf16.mxu0 %v2739_v31  ;;  %2600 = vmatprep.subr.bf16.mxu1 %v2740_v32 }
 0x12c   :  { %2579 = vmatpush3.bf16.msra.mxu0 %v2741_v33  ;;  %2601 = vmatpush3.bf16.msra.mxu1 %v2742_v34 }
 0x12d   :  { %2580 = vmatprep.subr.bf16.mxu0 %v2743_v35  ;;  %2602 = vmatprep.subr.bf16.mxu1 %v2744_v36 }
 0x130   :  { %2581 = vmatpush3.bf16.msra.mxu0 %v2745_v44  ;;  %2603 = vmatpush3.bf16.msra.mxu1 %v2746_v46 }
 0x131   :  { %2582 = vmatprep.subr.bf16.mxu0 %v2747_v48  ;;  %2604 = vmatprep.subr.bf16.mxu1 %v2748_v49 }
 0x134   :  { %2583 = vmatpush3.bf16.msra.mxu0 %v2749_v50  ;;  %2605 = vmatpush3.bf16.msra.mxu1 %v2750_v51 }
 0x135   :  { %2584 = vmatprep.subr.bf16.mxu0 %v2751_v52  ;;  %2606 = vmatprep.subr.bf16.mxu1 %v2752_v53 }
 0x138   :  { %2585 = vmatpush3.bf16.msra.mxu0 %v2753_v54  ;;  %2607 = vmatpush3.bf16.msra.mxu1 %v2754_v55  ;;  %v2762_v55 = vld [vmem:[%s3593_s8 + $0x1b8] sm:$0xff]  }
 0x139   :  { %2586 = vmatprep.subr.bf16.mxu0 %v2755_v56  ;;  %2608 = vmatprep.subr.bf16.mxu1 %v2756_v57  ;;  %v2763_v56 = vld [vmem:[%s3593_s8 + $0x170] sm:$0xff]  }
 0x13a   :  { %v2764_v57 = vld [vmem:[%s3593_s8 + $0x1f0] sm:$0xff]  }
 0x13c   :  { %2587 = vmatpush3.bf16.msra.mxu0 %v2757_v58  ;;  %2609 = vmatpush3.bf16.msra.mxu1 %v2758_v40  ;;  %v2765_v58 = vld [vmem:[%s3593_s8 + $0x130] sm:$0xff]  }
 0x13d   :  { %2616 = vmatprep.subr.bf16.mxu0 %v2759_v59  ;;  %2638 = vmatprep.subr.bf16.mxu1 %v2760_v60  ;;  %v2766_v40 = vld [vmem:[%s3593_s8 + $0x1b0] sm:$0xff]   ;;  %v2767_v59 = vld [vmem:[%s3593_s8 + $0x168] sm:$0xff]  }
 0x13e   :  { %v2768_v60 = vld [vmem:[%s3593_s8 + $0x1e8] sm:$0xff]  }
 0x19f   :  { %v2500_v61 = vpop.f32.mrf.mxu0  ;;  %v2522_v62 = vpop.f32.mrf.mxu1 }
 0x1a1   :  { %v2501_v0 = vpop.f32.mrf.mxu0  ;;  %v2523_v2 = vpop.f32.mrf.mxu1 }
 0x1a2   :  { %v2502_v1 = vadd.f32 %v2501_v0, %v2500_v61  ;;  %v2524_v3 = vadd.f32 %v2523_v2, %v2522_v62  ;;  %v2769_v61 = vld [vmem:[%s3593_s8 + $0x128] sm:$0xff]   ;;  %v1196_v62 = vrot.slane %v3458_v24, %v97_v10  ;;  %v2771_v0 = vld [vmem:[%s3593_s8 + $0x160] sm:$0xff]   ;;  %v1204_v2 = vrot.slane %v3458_v24, %v105_v13 }
 0x1a3   :  { %v2503_v4 = vpop.f32.mrf.mxu0  ;;  %v2525_v6 = vpop.f32.mrf.mxu1  ;;  %v2772_v10 = vld [vmem:[%s3593_s8 + $0x1e0] sm:$0xff]  }
 0x1a4   :  { %v1013_v5 = vadd.f32 %v2502_v1, %v2318_v63  ;;  %v2770_v63 = vld [vmem:[%s3593_s8 + $0x1a8] sm:$0xff]   ;;  %v2774_v13 = vld [vmem:[%s3593_s8 + $0x1a0] sm:$0xff]  }
 0x1a5   :  { %v2504_v7 = vpop.f32.mrf.mxu0  ;;  %v2526_v11 = vpop.f32.mrf.mxu1 }
 0x1a6   :  { %v1053_v9 = vadd.f32 %v2524_v3, %v1013_v5  ;;  %v2773_v5 = vld [vmem:[%s3593_s8 + $0x120] sm:$0xff]  }
 0x1bf   :  { %v2544_v12 = vpop.f32.mrf.mxu0  ;;  %v2566_v14 = vpop.f32.mrf.mxu1 }
 0x1c1   :  { %v2545_v15 = vpop.f32.mrf.mxu0  ;;  %v2567_v17 = vpop.f32.mrf.mxu1 }
 0x1c2   :  { %v2546_v16 = vadd.f32 %v2545_v15, %v2544_v12  ;;  %v2568_v18 = vadd.f32 %v2567_v17, %v2566_v14  ;;  %v2776_v14 = vld [vmem:[%s3593_s8 + $0x1d8] sm:$0xff]  }
 0x1c3   :  { %v2547_v19 = vpop.f32.mrf.mxu0  ;;  %v2569_v20 = vpop.f32.mrf.mxu1 }
 0x1c4   :  { %v1093_v8 = vadd.f32 %v2546_v16, %v1053_v9  ;;  %v2775_v9 = vld [vmem:[%s3593_s8 + $0x158] sm:$0xff]  }
 0x1c5   :  { %v2548_v21 = vpop.f32.mrf.mxu0  ;;  %v2570_v23 = vpop.f32.mrf.mxu1  ;;  %v2777_v19 = vld [vmem:[%s3593_s8 + $0x118] sm:$0xff]  }
 0x1c6   :  { %v3453_v22 = vadd.f32 %v2568_v18, %v1093_v8  ;;  %v2778_v21 = vld [vmem:[%s3593_s8 + $0x198] sm:$0xff]  }
 0x1cf   :  { %v1410_v28 = vpop.f32.mrf.mxu0  ;;  %v1451_v31 = vpop.f32.mrf.mxu1 }
 0x1d0   :  { %v1411_v30 = vadd.f32 %v1410_v28, %v1176_v25  ;;  %v1452_v32 = vadd.f32 %v1451_v31, %v1184_v26  ;;  %v2779_v25 = vld [vmem:[%s3593_s8 + $0x150] sm:$0xff]   ;;  %v2783_v31 = vld [vmem:[%s3593_s8 + $0x148] sm:$0xff]  }
 0x1d1   :  { %v1412_v33 = vpop.f32.mrf.mxu0  ;;  %v1453_v35 = vpop.f32.mrf.mxu1  ;;  %v2780_v26 = vld [vmem:[%s3593_s8 + $0x1d0] sm:$0xff]  }
 0x1d2   :  { %v1413_v34 = vadd.f32 %v1412_v33, %v1180_v27  ;;  %v1540_v39 = vmax.f32 %v1411_v30, 0.0  ;;  %v1542_v36 = vmax.f32 %v1452_v32, 0.0  ;;  %v1454_v44 = vadd.f32 %v1453_v35, %v1188_v29  ;;  %v2781_v28 = vld [vmem:[%s3593_s8 + $0x110] sm:$0xff]   ;;  %v2787_v33 = vld [vmem:[%s3593_s8 + $0x140] sm:$0xff]  }
 0x1d3   :  { %v1414_v46 = vpop.f32.mrf.mxu0  ;;  %v1455_v48 = vpop.f32.mrf.mxu1  ;;  %v1200_v27 = vrot.slane %v3458_v24, %v101_v45  ;;  %v1192_v29 = vrot.slane %v3458_v24, %v93_v47  ;;  %v2782_v30 = vld [vmem:[%s3593_s8 + $0x190] sm:$0xff]   ;;  %v2784_v45 = vld [vmem:[%s3593_s8 + $0x1c8] sm:$0xff]  }
 0x1d4   :  { %v1541_v41 = vmax.f32 %v1413_v34, 0.0  ;;  %v1543_v49 = vmax.f32 %v1454_v44, 0.0  ;;  %v1550_v42 = vpack.c.bf16 %v1542_v36, %v1542_v36  ;;  %v1548_v53 = vpack.c.bf16 %v1540_v39, %v1540_v39  ;;  %v2786_v24 = vld [vmem:[%s3593_s8 + $0x188] sm:$0xff]   ;;  %v2788_v34 = vld [vmem:[%s3593_s8 + $0x1c0] sm:$0xff]  }
 0x1d5   :  { %v1415_v50 = vpop.f32.mrf.mxu0  ;;  %v1456_v52 = vpop.f32.mrf.mxu1  ;;  %v2789_v39 = vld [vmem:[%s3593_s8 + $0x100] sm:$0xff]  }
 0x1d6   :  { %v1549_v51 = vpack.c.bf16 %v1541_v41, %v1541_v41  ;;  %v1551_v54 = vpack.c.bf16 %v1543_v49, %v1543_v49  ;;  %v2790_v44 = vld [vmem:[%s3593_s8 + $0x180] sm:$0xff]   ;;  %s2840_s8 = smov [#allocation4]  }
 0x1d8   :  { %2107 = vmatprep.mubr.bf16.mxu0 %v1549_v51  ;;  %2147 = vmatprep.mubr.bf16.mxu1 %v1551_v54 }
 0x1d9   :  { %2108 = vmatmul.mubr.bf16.vlgmr.msra.gmra.mxu0 %v1548_v53  ;;  %2148 = vmatmul.mubr.bf16.vlgmr.msra.gmra.mxu1 %v1550_v42 }
 0x1da   :  { %2617 = vmatpush3.bf16.msra.mxu0 %v2761_v43  ;;  %2639 = vmatpush3.bf16.msra.mxu1 %v2762_v55  ;;  %v2419_v55 = vld [vmem:[%s3594_s9] ss:$0 sm:$0xff]  ;;  %s2270_s9 = sshll.u32 %s2840_s8, 4  ;;  %s2271_s9 = int_to_ptr.vmem [resolvable:$true] %s2270_s9 }
 0x1db   :  { %2618 = vmatprep.subr.bf16.mxu0 %v2763_v56  ;;  %2640 = vmatprep.subr.bf16.mxu1 %v2764_v57  ;;  %s2795_s24 = scalar_lea.vmem %s2271_s9, 32  ;;  %p2800_p1 = scmp.lt.s32.totalorder %s2271_s9, %s2271_s9 }
 0x1dc   :  { %p2796_p0 = scmp.ne.s32.totalorder %s2271_s9, %s2795_s24  ;;  %p2801_p2 = scmp.lt.s32.totalorder %s2795_s24, %s2795_s24 }
 0x1de   :  { %2619 = vmatpush3.bf16.msra.mxu0 %v2765_v58  ;;  %2641 = vmatpush3.bf16.msra.mxu1 %v2766_v40  ;;  %p2802_p3 = por %p2801_p2, %p2800_p1 }
 0x1df   :  { %2620 = vmatprep.subr.bf16.mxu0 %v2767_v59  ;;  %v1492_v1 = vpop.f32.mrf.mxu0  ;;  %2642 = vmatprep.subr.bf16.mxu1 %v2768_v60  ;;  %v1533_v3 = vpop.f32.mrf.mxu1 }
 0x1e0   :  { %v1534_v32 = vadd.f32 %v1533_v3, %v1200_v27  ;;  %v1493_v47 = vadd.f32 %v1492_v1, %v1192_v29  ;;  %p2803_p4 = pnand %p2802_p3, %p2796_p0 }
 0x1e1   :  { %v1494_v4 = vpop.f32.mrf.mxu0  ;;  %v1535_v7 = vpop.f32.mrf.mxu1 }
 0x1e2   :  { %2621 = vmatpush3.bf16.msra.mxu0 %v2769_v61  ;;  %v1495_v6 = vadd.f32 %v1494_v4, %v1196_v62  ;;  %2643 = vmatpush3.bf16.msra.mxu1 %v2770_v63  ;;  %v1536_v12 = vadd.f32 %v1535_v7, %v1204_v2  ;;  %v1546_v35 = vmax.f32 %v1534_v32, 0.0  ;;  %v1544_v36 = vmax.f32 %v1493_v47, 0.0 }
 0x1e3   :  { %2622 = vmatprep.subr.bf16.mxu0 %v2771_v0  ;;  %v1496_v11 = vpop.f32.mrf.mxu0  ;;  %2644 = vmatprep.subr.bf16.mxu1 %v2772_v10  ;;  %v1537_v16 = vpop.f32.mrf.mxu1  ;;  %v2237_v0 = vand.u32 127, %v75_v37 }
 0x1e4   :  { %v1545_v15 = vmax.f32 %v1495_v6, 0.0  ;;  %v1547_v17 = vmax.f32 %v1536_v12, 0.0  ;;  %v1554_v46 = vpack.c.bf16 %v1546_v35, %v1546_v35  ;;  %v1552_v41 = vpack.c.bf16 %v1544_v36, %v1544_v36 }
 0x1e5   :  { %v1497_v18 = vpop.f32.mrf.mxu0  ;;  %v1538_v20 = vpop.f32.mrf.mxu1  ;;  %vm2238_vm1 = vcmp.lt.s32.totalorder %v2237_v0, 101 }
 0x1e6   :  { %2623 = vmatpush3.bf16.msra.mxu0 %v2773_v5  ;;  %v1553_v8 = vpack.c.bf16 %v1545_v15, %v1545_v15  ;;  %2645 = vmatpush3.bf16.msra.mxu1 %v2774_v13  ;;  %v1555_v23 = vpack.c.bf16 %v1547_v17, %v1547_v17 }
 0x1e7   :  { %2624 = vmatprep.subr.bf16.mxu0 %v2775_v9  ;;  %2646 = vmatprep.subr.bf16.mxu1 %v2776_v14 }
 0x1e8   :  { %2187 = vmatprep.mubr.bf16.mxu0 %v1553_v8  ;;  %2227 = vmatprep.mubr.bf16.mxu1 %v1555_v23 }
 0x1ea   :  { %2625 = vmatpush3.bf16.msra.mxu0 %v2777_v19  ;;  %2647 = vmatpush3.bf16.msra.mxu1 %v2778_v21 }
 0x1eb   :  { %2626 = vmatprep.subr.bf16.mxu0 %v2779_v25  ;;  %2648 = vmatprep.subr.bf16.mxu1 %v2780_v26 }
 0x1ee   :  { %2627 = vmatpush3.bf16.msra.mxu0 %v2781_v28  ;;  %2649 = vmatpush3.bf16.msra.mxu1 %v2782_v30 }
 0x1ef   :  { %2628 = vmatprep.subr.bf16.mxu0 %v2783_v31  ;;  %2650 = vmatprep.subr.bf16.mxu1 %v2784_v45 }
 0x1f2   :  { %2629 = vmatpush3.bf16.msra.mxu0 %v2785_v38  ;;  %2651 = vmatpush3.bf16.msra.mxu1 %v2786_v24 }
 0x1f3   :  { %2630 = vmatprep.subr.bf16.mxu0 %v2787_v33  ;;  %2652 = vmatprep.subr.bf16.mxu1 %v2788_v34 }
 0x1f6   :  { %2631 = vmatpush3.bf16.msra.mxu0 %v2789_v39  ;;  %2653 = vmatpush3.bf16.msra.mxu1 %v2790_v44 }
 0x1f9   :  { %2188 = vmatmul.mubr.bf16.vlgmr.msra.gmra.mxu0 %v1552_v41  ;;  %2228 = vmatmul.mubr.bf16.vlgmr.msra.gmra.mxu1 %v1554_v46 }
 0x299   :  { %v2588_v48 = vpop.f32.mrf.mxu0  ;;  %v2610_v49 = vpop.f32.mrf.mxu1 }
 0x29b   :  { %v2589_v50 = vpop.f32.mrf.mxu0  ;;  %v2611_v42 = vpop.f32.mrf.mxu1 }
 0x29c   :  { %v2590_v54 = vadd.f32 %v2589_v50, %v2588_v48  ;;  %v2612_v58 = vadd.f32 %v2611_v42, %v2610_v49 }
 0x29d   :  { %v2591_v51 = vpop.f32.mrf.mxu0  ;;  %v2613_v52 = vpop.f32.mrf.mxu1 }
 0x29e   :  { %v2110_v56 = vadd.f32 %v2590_v54, %v2419_v55 }
 0x29f   :  { %v2592_v43 = vpop.f32.mrf.mxu0  ;;  %v2614_v53 = vpop.f32.mrf.mxu1 }
 0x2a0   :  { %v2150_v60 = vadd.f32 %v2612_v58, %v2110_v56 }
 0x2b9   :  { %v2632_v57 = vpop.f32.mrf.mxu0  ;;  %v2654_v40 = vpop.f32.mrf.mxu1 }
 0x2bb   :  { %v2633_v59 = vpop.f32.mrf.mxu0  ;;  %v2655_v62 = vpop.f32.mrf.mxu1 }
 0x2bc   :  { %v2634_v61 = vadd.f32 %v2633_v59, %v2632_v57  ;;  %v2656_v2 = vadd.f32 %v2655_v62, %v2654_v40 }
 0x2bd   :  { %v2635_v63 = vpop.f32.mrf.mxu0  ;;  %v2657_v10 = vpop.f32.mrf.mxu1 }
 0x2be   :  { %v2190_v1 = vadd.f32 %v2634_v61, %v2150_v60 }
 0x2bf   :  { %v2636_v3 = vpop.f32.mrf.mxu0  ;;  %v2658_v5 = vpop.f32.mrf.mxu1 }
 0x2c0   :  { %v2230_v4 = vadd.f32 %v2656_v2, %v2190_v1 }
 0x2c2   :  { %v2235_v6 = vadd.f32 %v2230_v4, %v3453_v22 }
 0x2c4   :  { %v2239_v7 = vsel %vm2238_vm1, %v2235_v6, -1e+30  ;;  %2253 = vst [vmem:[#allocation4] sm:$0x3] %v2235_v6 }
 0x2c5   :  { %v2241_v13 = vsel %vm2240_vm2, %v2239_v7, -inf }
 0x2c6   :  { %2242 = vmax.xlane.f32.xlu0 %v2241_v13 }
 0x34f   :  { %v2243_v9 = vpop.xlane.xlu0 %2242 }
 0x350   :  { %v2244_v11 = vsub.f32 %v2239_v7, %v2243_v9 }
 0x352   :  { %v2245_v12 = vmul.f32 1.442695, %v2244_v11 }
 0x354   :  { %2791 = vpow2.f32 %v2245_v12 }
 0x361   :  { %v2792_v14 = vpop.eup %2791 }
 0x362   :  { %v2247_v37 = vsel %vm2240_vm2, %v2792_v14, 0.0 }
 0x363   :  { %2248 = vadd.xlane.f32.xlu0 %v2247_v37 }
 0x364   :  { %2806 = shalt.err (!%p2803_p4)
}
 0x365   :  { %2273 = dma.vmem_to_hbm [thread:$0]  %s2271_s9, 32, %s3596_s11, [#allocation5]  }
 0x366   :  { %s2841_s1 = smov [#allocation2]  }
 0x367   :  { %s2260_s27 = sshll.u32 %s2841_s1, 4  ;;  %s2261_s27 = int_to_ptr.vmem [resolvable:$true] %s2260_s27 }
 0x368   :  { %s2815_s28 = scalar_lea.vmem %s2261_s27, 32  ;;  %p2820_p6 = scmp.lt.s32.totalorder %s2261_s27, %s2261_s27 }
 0x369   :  { %p2816_p5 = scmp.ne.s32.totalorder %s2261_s27, %s2815_s28  ;;  %p2821_p7 = scmp.lt.s32.totalorder %s2815_s28, %s2815_s28 }
 0x36b   :  { %p2822_p8 = por %p2821_p7, %p2820_p6 }
 0x36d   :  { %p2823_p9 = pnand %p2822_p8, %p2816_p5 }
 0x3ec   :  { %v2249_v22 = vpop.xlane.xlu0 %2248 }
 0x3ed   :  { %2793 = vrcp.f32 %v2249_v22 }
 0x3fa   :  { %v2794_v15 = vpop.eup %2793 }
 0x3fb   :  { %v2251_v16 = vmul.f32 %v2794_v15, %v2792_v14 }
 0x3fd   :  { %2252 = vst [vmem:[#allocation2] sm:$0x3] %v2251_v16 }
 0x3fe   :  { %2826 = shalt.err (!%p2823_p9)
}
 0x3ff   :  { %2263 = dma.vmem_to_hbm [thread:$0]  %s2261_s27, 32, %s3595_s10, [#allocation3]  }
 0x400   :  { %2835 = dma.done.wait [#allocation3], 32  }
 0x401   :  { %2836 = vsyncadd [#allocation3], 4294967264 }
 0x402   :  { %2837 = dma.done.wait [#allocation5], 32  }
 0x403   :  { %2838 = vsyncadd [#allocation5], 4294967264 }
 0x404   :  { %2280 = vsyncpa [#allocation3], 1 }
 0x405   :  { %2281 = vsyncpa [#allocation5], 1 }

</bundles_post_ra>
